<compile_context>
chip_gen: v7x
topology: tpu7x:2x2x1
jax: 0.10.0
libtpu: 0.0.40
codegen_flags: <defaults>
</compile_context>

<pallas_src>
import functools
import math

import jax
import jax.numpy as jnp
import numpy as np
from jax import lax
from jax.experimental import pallas as pl
from jax.experimental.pallas import tpu as pltpu


def _mha_kernel(x_ref, wqkv_ref, bqkv_ref, wp_ref, bp_ref, o_ref, *,
                n_heads, head_size, block_q, block_k):
    H, hs, tq, tk = n_heads, head_size, block_q, block_k
    HE = H * hs

    qi = pl.program_id(1)
    q_start = pl.multiple_of(qi * tq, tq)

    # Fused weights / biases (loaded once per grid step, sliced as values).
    w_all = wqkv_ref[...]                  # (E, 3*H*hs)
    b_all = bqkv_ref[...]                  # (1, 3*H*hs)
    wq, wkv = w_all[:, :HE], w_all[:, HE:]
    bq, bkv = b_all[:, :HE], b_all[:, HE:]

    # ---- fused, lane-dense Q projection for this query tile ----------------
    x_q = x_ref[0, pl.ds(q_start, tq), :]                       # (tq, E)
    cdt = x_q.dtype                                             # MXU operand dtype
    q_flat = jnp.dot(x_q, wq, preferred_element_type=jnp.float32) + bq
    # NOTE: 1/sqrt(head_size) is already folded into wq / bq in the wrapper.
    q_heads = [q_flat[:, h * hs:(h + 1) * hs].astype(cdt) for h in range(H)]

    # Tile-local causal mask rows (hoisted out of the KV loop).
    rows = q_start + lax.broadcasted_iota(jnp.int32, (tq, tk), 0)

    def kv_step(j, carry):
        k_start = pl.multiple_of(j * tk, tk)
        x_kv = x_ref[0, pl.ds(k_start, tk), :]                  # (tk, E)
        # Fused, lane-dense K/V projection for this KV tile (one matmul).
        kv = jnp.dot(x_kv, wkv, preferred_element_type=jnp.float32) + bkv
        cols = k_start + lax.broadcasted_iota(jnp.int32, (tq, tk), 1)
        causal = cols <= rows                                   # (tq, tk)

        new_carry = []
        for h in range(H):
            m_h, l_h, acc_h = carry[h]
            q_h = q_heads[h]                                    # (tq, hs)
            k_h = kv[:, h * hs:(h + 1) * hs].astype(cdt)        # (tk, hs)
            v_h = kv[:, HE + h * hs: HE + (h + 1) * hs].astype(cdt)
            s = jnp.einsum('qd,kd->qk', q_h, k_h,
                           preferred_element_type=jnp.float32)  # (tq, tk) f32
            s = jnp.where(causal, s, -1e30)
            # Online softmax (flash) update, all in f32.
            m_new = jnp.maximum(m_h, s.max(axis=-1, keepdims=True))
            alpha = jnp.exp(m_h - m_new)
            p = jnp.exp(s - m_new)
            l_new = alpha * l_h + p.sum(axis=-1, keepdims=True)
            acc_new = alpha * acc_h + jnp.dot(p.astype(cdt), v_h,
                                              preferred_element_type=jnp.float32)
            new_carry.append((m_new, l_new, acc_new))
        return tuple(new_carry)

    init = tuple((jnp.full((tq, 1), -1e30, jnp.float32),
                  jnp.zeros((tq, 1), jnp.float32),
                  jnp.zeros((tq, hs), jnp.float32)) for _ in range(H))
    # Causal tile skipping: only KV tiles at or below this query tile (tk == tq).
    carry = lax.fori_loop(0, qi + 1, kv_step, init)

    # Concatenate heads (torch.cat order) and do one full-depth output matmul.
    ctx = jnp.concatenate(
        [acc_h * pl.reciprocal(l_h, approx=False) for (_, l_h, acc_h) in carry],
        axis=1)                                                 # (tq, H*hs)
    out = jnp.dot(ctx, wp_ref[...], preferred_element_type=jnp.float32) + bp_ref[...]
    o_ref[0] = out.astype(o_ref.dtype)


def multi_head_attention(x, wq, bq, wk, bk, wv, bv, wp, bp, *, block_q=128):
    """x: (B, T, E); wq/wk/wv: (H, E, hs); bq/bk/bv: (H, hs);
    wp: (H*hs, E) (already transposed vs. torch Linear.weight); bp: (E,)."""
    B, T, E = x.shape
    H, _, hs = wq.shape
    HE = H * hs

    tq = min(block_q, T)
    assert T % tq == 0 and (tq % 8 == 0 or tq == T), "query tile must divide T"
    tk = tq                      # causal tile skipping assumes tk == tq
    num_q = T // tq

    # Fuse Q/K/V weights into one lane-dense (E, 3*H*hs) array; fold the
    # 1/sqrt(hs) attention scale into the Q weights/bias.
    scale = 1.0 / math.sqrt(hs)

    def flat(w):                 # (H, E, hs) -> (E, H*hs), head-major columns
        return jnp.transpose(w, (1, 0, 2)).reshape(E, HE)

    wqkv = jnp.concatenate([flat(wq) * scale, flat(wk), flat(wv)], axis=1)
    bqkv = jnp.concatenate([bq.reshape(HE) * scale,
                            bk.reshape(HE),
                            bv.reshape(HE)]).reshape(1, 3 * HE)
    bp2 = bp.reshape(1, E)

    kernel = functools.partial(_mha_kernel, n_heads=H, head_size=hs,
                               block_q=tq, block_k=tk)

    def const(shape):
        return pl.BlockSpec(shape, lambda b, i: (0,) * len(shape))

    return pl.pallas_call(
        kernel,
        out_shape=jax.ShapeDtypeStruct((B, T, E), x.dtype),
        grid=(B, num_q),
        in_specs=[
            pl.BlockSpec((1, T, E), lambda b, i: (b, 0, 0)),   # x (full seq, this batch)
            const((E, 3 * HE)),                                # fused Wqkv
            const((1, 3 * HE)),                                # fused bias
            const((HE, E)),                                    # Wp
            const((1, E)),                                     # bp
        ],
        out_specs=pl.BlockSpec((1, tq, E), lambda b, i: (b, i, 0)),
        compiler_params=pltpu.CompilerParams(
            dimension_semantics=("parallel", "parallel"),
            vmem_limit_bytes=32 * 1024 * 1024),
    )(x, wqkv, bqkv, wp, bp2)


def reference(x, wq, bq, wk, bk, wv, bv, wp, bp):
    """Pure-JAX reference matching the PyTorch forward semantics."""
    H, E, hs = wq.shape
    head_outs = []
    for h in range(H):
        q = x @ wq[h] + bq[h]
        k = x @ wk[h] + bk[h]
        v = x @ wv[h] + bv[h]
        s = jnp.matmul(q, jnp.swapaxes(k, -1, -2)) / math.sqrt(hs)
        T = s.shape[-1]
        tril = jnp.tril(jnp.ones((T, T)))
        s = jnp.where(tril == 0, -jnp.inf, s)
        p = jax.nn.softmax(s, axis=-1)
        head_outs.append(jnp.matmul(p, v))
    cat = jnp.concatenate(head_outs, axis=-1)
    return cat @ wp + bp


if __name__ == "__main__":
    # Module-consistent small shapes: n_embd=64, n_heads=8 -> head_size=8.
    B, T, E, H = 2, 128, 64, 8
    hs = E // H

    key = jax.random.PRNGKey(0)
    keys = jax.random.split(key, 9)
    sc = 0.1
    x  = jax.random.normal(keys[0], (B, T, E), jnp.float32)
    wq = jax.random.normal(keys[1], (H, E, hs), jnp.float32) * sc
    bq = jax.random.normal(keys[2], (H, hs), jnp.float32) * sc
    wk = jax.random.normal(keys[3], (H, E, hs), jnp.float32) * sc
    bk = jax.random.normal(keys[4], (H, hs), jnp.float32) * sc
    wv = jax.random.normal(keys[5], (H, E, hs), jnp.float32) * sc
    bv = jax.random.normal(keys[6], (H, hs), jnp.float32) * sc
    wp = jax.random.normal(keys[7], (H * hs, E), jnp.float32) * sc
    bp = jax.random.normal(keys[8], (E,), jnp.float32) * sc

    out = multi_head_attention(x, wq, bq, wk, bk, wv, bv, wp, bp, block_q=64)
    out = jax.block_until_ready(out)

    ref = reference(x, wq, bq, wk, bk, wv, bv, wp, bp)
    np.testing.assert_allclose(np.asarray(out), np.asarray(ref),
                               rtol=1e-4, atol=1e-5)
    print("KERNEL_OK")
</pallas_src>

<mosaic_0001>
module attributes {stable_mosaic.version = 11 : i64} {
  func.func @_mha_kernel(%arg0: i32, %arg1: i32, %arg2: memref<1x128x64xf32, #tpu.memory_space<vmem>>, %arg3: memref<64x192xf32, #tpu.memory_space<vmem>>, %arg4: memref<1x192xf32, #tpu.memory_space<vmem>>, %arg5: memref<64x64xf32, #tpu.memory_space<vmem>>, %arg6: memref<1x64xf32, #tpu.memory_space<vmem>>, %arg7: memref<1x64x64xf32, #tpu.memory_space<vmem>>) attributes {dimension_semantics = [#tpu.dimension_semantics<parallel>, #tpu.dimension_semantics<parallel>], iteration_bounds = array<i64: 2, 2>, scalar_prefetch = 0 : i64, scratch_operands = 0 : i64, tpu.core_type = #tpu.core_type<tc>, window_params = [{transform_indices = @transform_0, window_bounds = array<i64: 1, 128, 64>}, {pipeline_mode = #tpu.pipeline_mode<synchronous>, transform_indices = @transform_1, window_bounds = array<i64: 64, 192>}, {pipeline_mode = #tpu.pipeline_mode<synchronous>, transform_indices = @transform_2, window_bounds = array<i64: 1, 192>}, {pipeline_mode = #tpu.pipeline_mode<synchronous>, transform_indices = @transform_3, window_bounds = array<i64: 64, 64>}, {pipeline_mode = #tpu.pipeline_mode<synchronous>, transform_indices = @transform_4, window_bounds = array<i64: 1, 64>}, {transform_indices = @transform_5, window_bounds = array<i64: 1, 64, 64>}]} {
    %c64_i32 = arith.constant 64 : i32
    %0 = arith.muli %arg1, %c64_i32 : i32
    %1 = tpu.assume_multiple %0, 64 : i32
    %c0 = arith.constant 0 : index
    %c0_0 = arith.constant 0 : index
    %2 = vector.load %arg3[%c0, %c0_0] : memref<64x192xf32, #tpu.memory_space<vmem>>, vector<64x192xf32>
    %c0_1 = arith.constant 0 : index
    %c0_2 = arith.constant 0 : index
    %3 = vector.load %arg4[%c0_1, %c0_2] : memref<1x192xf32, #tpu.memory_space<vmem>>, vector<1x192xf32>
    %4 = vector.extract_strided_slice %2 {offsets = [0, 0], sizes = [64, 64], strides = [1, 1]} : vector<64x192xf32> to vector<64x64xf32>
    %5 = vector.extract_strided_slice %2 {offsets = [0, 64], sizes = [64, 128], strides = [1, 1]} : vector<64x192xf32> to vector<64x128xf32>
    %6 = vector.extract_strided_slice %3 {offsets = [0, 0], sizes = [1, 64], strides = [1, 1]} : vector<1x192xf32> to vector<1x64xf32>
    %7 = vector.extract_strided_slice %3 {offsets = [0, 64], sizes = [1, 128], strides = [1, 1]} : vector<1x192xf32> to vector<1x128xf32>
    %c0_3 = arith.constant 0 : index
    %8 = arith.index_cast %1 : i32 to index
    %c0_4 = arith.constant 0 : index
    %9 = vector.load %arg2[%c0_3, %8, %c0_4] : memref<1x128x64xf32, #tpu.memory_space<vmem>>, vector<1x64x64xf32>
    %10 = vector.shape_cast %9 : vector<1x64x64xf32> to vector<64x64xf32>
    %cst = arith.constant dense<0.000000e+00> : vector<64x64xf32>
    %11 = tpu.matmul %10, %4, %cst {dimension_numbers = #tpu.dot_dimension_numbers<[1], [0], [0], [1], [0, 0, 1, 1], [], []>} : vector<64x64xf32>, vector<64x64xf32>, vector<64x64xf32> -> vector<64x64xf32>
    %12 = vector.broadcast %6 : vector<1x64xf32> to vector<64x64xf32>
    %13 = arith.addf %11, %12 : vector<64x64xf32>
    %14 = vector.extract_strided_slice %13 {offsets = [0, 0], sizes = [64, 8], strides = [1, 1]} : vector<64x64xf32> to vector<64x8xf32>
    %15 = vector.extract_strided_slice %13 {offsets = [0, 8], sizes = [64, 8], strides = [1, 1]} : vector<64x64xf32> to vector<64x8xf32>
    %16 = vector.extract_strided_slice %13 {offsets = [0, 16], sizes = [64, 8], strides = [1, 1]} : vector<64x64xf32> to vector<64x8xf32>
    %17 = vector.extract_strided_slice %13 {offsets = [0, 24], sizes = [64, 8], strides = [1, 1]} : vector<64x64xf32> to vector<64x8xf32>
    %18 = vector.extract_strided_slice %13 {offsets = [0, 32], sizes = [64, 8], strides = [1, 1]} : vector<64x64xf32> to vector<64x8xf32>
    %19 = vector.extract_strided_slice %13 {offsets = [0, 40], sizes = [64, 8], strides = [1, 1]} : vector<64x64xf32> to vector<64x8xf32>
    %20 = vector.extract_strided_slice %13 {offsets = [0, 48], sizes = [64, 8], strides = [1, 1]} : vector<64x64xf32> to vector<64x8xf32>
    %21 = vector.extract_strided_slice %13 {offsets = [0, 56], sizes = [64, 8], strides = [1, 1]} : vector<64x64xf32> to vector<64x8xf32>
    %22 = tpu.iota {dimensions = array<i32: 0>} : vector<64x64xi32>
    %23 = vector.broadcast %1 : i32 to vector<64x64xi32>
    %24 = arith.addi %23, %22 : vector<64x64xi32>
    %cst_5 = arith.constant -1.000000e+30 : f32
    %25 = vector.broadcast %cst_5 : f32 to vector<64x1xf32>
    %cst_6 = arith.constant 0.000000e+00 : f32
    %26 = vector.broadcast %cst_6 : f32 to vector<64x1xf32>
    %cst_7 = arith.constant 0.000000e+00 : f32
    %27 = vector.broadcast %cst_7 : f32 to vector<64x8xf32>
    %cst_8 = arith.constant -1.000000e+30 : f32
    %28 = vector.broadcast %cst_8 : f32 to vector<64x1xf32>
    %cst_9 = arith.constant 0.000000e+00 : f32
    %29 = vector.broadcast %cst_9 : f32 to vector<64x1xf32>
    %cst_10 = arith.constant 0.000000e+00 : f32
    %30 = vector.broadcast %cst_10 : f32 to vector<64x8xf32>
    %cst_11 = arith.constant -1.000000e+30 : f32
    %31 = vector.broadcast %cst_11 : f32 to vector<64x1xf32>
    %cst_12 = arith.constant 0.000000e+00 : f32
    %32 = vector.broadcast %cst_12 : f32 to vector<64x1xf32>
    %cst_13 = arith.constant 0.000000e+00 : f32
    %33 = vector.broadcast %cst_13 : f32 to vector<64x8xf32>
    %cst_14 = arith.constant -1.000000e+30 : f32
    %34 = vector.broadcast %cst_14 : f32 to vector<64x1xf32>
    %cst_15 = arith.constant 0.000000e+00 : f32
    %35 = vector.broadcast %cst_15 : f32 to vector<64x1xf32>
    %cst_16 = arith.constant 0.000000e+00 : f32
    %36 = vector.broadcast %cst_16 : f32 to vector<64x8xf32>
    %cst_17 = arith.constant -1.000000e+30 : f32
    %37 = vector.broadcast %cst_17 : f32 to vector<64x1xf32>
    %cst_18 = arith.constant 0.000000e+00 : f32
    %38 = vector.broadcast %cst_18 : f32 to vector<64x1xf32>
    %cst_19 = arith.constant 0.000000e+00 : f32
    %39 = vector.broadcast %cst_19 : f32 to vector<64x8xf32>
    %cst_20 = arith.constant -1.000000e+30 : f32
    %40 = vector.broadcast %cst_20 : f32 to vector<64x1xf32>
    %cst_21 = arith.constant 0.000000e+00 : f32
    %41 = vector.broadcast %cst_21 : f32 to vector<64x1xf32>
    %cst_22 = arith.constant 0.000000e+00 : f32
    %42 = vector.broadcast %cst_22 : f32 to vector<64x8xf32>
    %cst_23 = arith.constant -1.000000e+30 : f32
    %43 = vector.broadcast %cst_23 : f32 to vector<64x1xf32>
    %cst_24 = arith.constant 0.000000e+00 : f32
    %44 = vector.broadcast %cst_24 : f32 to vector<64x1xf32>
    %cst_25 = arith.constant 0.000000e+00 : f32
    %45 = vector.broadcast %cst_25 : f32 to vector<64x8xf32>
    %cst_26 = arith.constant -1.000000e+30 : f32
    %46 = vector.broadcast %cst_26 : f32 to vector<64x1xf32>
    %cst_27 = arith.constant 0.000000e+00 : f32
    %47 = vector.broadcast %cst_27 : f32 to vector<64x1xf32>
    %cst_28 = arith.constant 0.000000e+00 : f32
    %48 = vector.broadcast %cst_28 : f32 to vector<64x8xf32>
    %c1_i32 = arith.constant 1 : i32
    %49 = arith.addi %arg1, %c1_i32 : i32
    %c0_i32 = arith.constant 0 : i32
    %50 = arith.subi %49, %c0_i32 : i32
    %51 = arith.addi %c0_i32, %50 : i32
    %c1_i32_29 = arith.constant 1 : i32
    %52:24 = scf.for %arg8 = %c0_i32 to %51 step %c1_i32_29 iter_args(%arg9 = %25, %arg10 = %26, %arg11 = %27, %arg12 = %28, %arg13 = %29, %arg14 = %30, %arg15 = %31, %arg16 = %32, %arg17 = %33, %arg18 = %34, %arg19 = %35, %arg20 = %36, %arg21 = %37, %arg22 = %38, %arg23 = %39, %arg24 = %40, %arg25 = %41, %arg26 = %42, %arg27 = %43, %arg28 = %44, %arg29 = %45, %arg30 = %46, %arg31 = %47, %arg32 = %48) -> (vector<64x1xf32>, vector<64x1xf32>, vector<64x8xf32>, vector<64x1xf32>, vector<64x1xf32>, vector<64x8xf32>, vector<64x1xf32>, vector<64x1xf32>, vector<64x8xf32>, vector<64x1xf32>, vector<64x1xf32>, vector<64x8xf32>, vector<64x1xf32>, vector<64x1xf32>, vector<64x8xf32>, vector<64x1xf32>, vector<64x1xf32>, vector<64x8xf32>, vector<64x1xf32>, vector<64x1xf32>, vector<64x8xf32>, vector<64x1xf32>, vector<64x1xf32>, vector<64x8xf32>)  : i32 {
      %c64_i32_38 = arith.constant 64 : i32
      %86 = arith.muli %arg8, %c64_i32_38 : i32
      %87 = tpu.assume_multiple %86, 64 : i32
      %c0_39 = arith.constant 0 : index
      %88 = arith.index_cast %87 : i32 to index
      %c0_40 = arith.constant 0 : index
      %89 = vector.load %arg2[%c0_39, %88, %c0_40] : memref<1x128x64xf32, #tpu.memory_space<vmem>>, vector<1x64x64xf32>
      %90 = vector.shape_cast %89 : vector<1x64x64xf32> to vector<64x64xf32>
      %cst_41 = arith.constant dense<0.000000e+00> : vector<64x128xf32>
      %91 = tpu.matmul %90, %5, %cst_41 {dimension_numbers = #tpu.dot_dimension_numbers<[1], [0], [0], [1], [0, 0, 1, 1], [], []>} : vector<64x64xf32>, vector<64x128xf32>, vector<64x128xf32> -> vector<64x128xf32>
      %92 = vector.broadcast %7 : vector<1x128xf32> to vector<64x128xf32>
      %93 = arith.addf %91, %92 : vector<64x128xf32>
      %94 = tpu.iota {dimensions = array<i32: 1>} : vector<64x64xi32>
      %95 = vector.broadcast %87 : i32 to vector<64x64xi32>
      %96 = arith.addi %95, %94 : vector<64x64xi32>
      %97 = arith.cmpi sle, %96, %24 : vector<64x64xi32>
      %98 = vector.extract_strided_slice %93 {offsets = [0, 0], sizes = [64, 8], strides = [1, 1]} : vector<64x128xf32> to vector<64x8xf32>
      %99 = vector.extract_strided_slice %93 {offsets = [0, 64], sizes = [64, 8], strides = [1, 1]} : vector<64x128xf32> to vector<64x8xf32>
      "tpu.trace_start"() <{level = 10 : i32, message = "qd,kd->qk"}> : () -> ()
      %cst_42 = arith.constant dense<0.000000e+00> : vector<64x64xf32>
      %100 = tpu.matmul %14, %98, %cst_42 {dimension_numbers = #tpu.dot_dimension_numbers<[1], [1], [0], [0], [0, 0, 1, 0], [], []>} : vector<64x8xf32>, vector<64x8xf32>, vector<64x64xf32> -> vector<64x64xf32>
      %cst_43 = arith.constant -1.000000e+30 : f32
      "tpu.trace_stop"() : () -> ()
      %101 = vector.broadcast %cst_43 : f32 to vector<64x64xf32>
      %102 = arith.select %97, %100, %101 : vector<64x64xi1>, vector<64x64xf32>
      %cst_44 = arith.constant dense<0xFF800000> : vector<64xf32>
      %103 = vector.multi_reduction <maximumf>, %102, %cst_44 [1] : vector<64x64xf32> to vector<64xf32>
      %104 = vector.shape_cast %103 : vector<64xf32> to vector<64x1xf32>
      %105 = arith.maximumf %arg9, %104 : vector<64x1xf32>
      %106 = arith.subf %arg9, %105 : vector<64x1xf32>
      %107 = math.exp %106 : vector<64x1xf32>
      %108 = vector.broadcast %105 : vector<64x1xf32> to vector<64x64xf32>
      %109 = arith.subf %102, %108 : vector<64x64xf32>
      %110 = math.exp %109 : vector<64x64xf32>
      %111 = arith.mulf %107, %arg10 : vector<64x1xf32>
      %cst_45 = arith.constant dense<0.000000e+00> : vector<64xf32>
      %112 = vector.multi_reduction <add>, %110, %cst_45 [1] : vector<64x64xf32> to vector<64xf32>
      %113 = vector.shape_cast %112 : vector<64xf32> to vector<64x1xf32>
      %114 = arith.addf %111, %113 : vector<64x1xf32>
      %115 = vector.broadcast %107 : vector<64x1xf32> to vector<64x8xf32>
      %116 = arith.mulf %115, %arg11 : vector<64x8xf32>
      %cst_46 = arith.constant dense<0.000000e+00> : vector<64x8xf32>
      %117 = tpu.matmul %110, %99, %cst_46 {dimension_numbers = #tpu.dot_dimension_numbers<[1], [0], [0], [1], [0, 0, 1, 1], [], []>} : vector<64x64xf32>, vector<64x8xf32>, vector<64x8xf32> -> vector<64x8xf32>
      %118 = arith.addf %116, %117 : vector<64x8xf32>
      %119 = vector.extract_strided_slice %93 {offsets = [0, 8], sizes = [64, 8], strides = [1, 1]} : vector<64x128xf32> to vector<64x8xf32>
      %120 = vector.extract_strided_slice %93 {offsets = [0, 72], sizes = [64, 8], strides = [1, 1]} : vector<64x128xf32> to vector<64x8xf32>
      "tpu.trace_start"() <{level = 10 : i32, message = "qd,kd->qk"}> : () -> ()
      %cst_47 = arith.constant dense<0.000000e+00> : vector<64x64xf32>
      %121 = tpu.matmul %15, %119, %cst_47 {dimension_numbers = #tpu.dot_dimension_numbers<[1], [1], [0], [0], [0, 0, 1, 0], [], []>} : vector<64x8xf32>, vector<64x8xf32>, vector<64x64xf32> -> vector<64x64xf32>
      %cst_48 = arith.constant -1.000000e+30 : f32
      "tpu.trace_stop"() : () -> ()
      %122 = vector.broadcast %cst_48 : f32 to vector<64x64xf32>
      %123 = arith.select %97, %121, %122 : vector<64x64xi1>, vector<64x64xf32>
      %cst_49 = arith.constant dense<0xFF800000> : vector<64xf32>
      %124 = vector.multi_reduction <maximumf>, %123, %cst_49 [1] : vector<64x64xf32> to vector<64xf32>
      %125 = vector.shape_cast %124 : vector<64xf32> to vector<64x1xf32>
      %126 = arith.maximumf %arg12, %125 : vector<64x1xf32>
      %127 = arith.subf %arg12, %126 : vector<64x1xf32>
      %128 = math.exp %127 : vector<64x1xf32>
      %129 = vector.broadcast %126 : vector<64x1xf32> to vector<64x64xf32>
      %130 = arith.subf %123, %129 : vector<64x64xf32>
      %131 = math.exp %130 : vector<64x64xf32>
      %132 = arith.mulf %128, %arg13 : vector<64x1xf32>
      %cst_50 = arith.constant dense<0.000000e+00> : vector<64xf32>
      %133 = vector.multi_reduction <add>, %131, %cst_50 [1] : vector<64x64xf32> to vector<64xf32>
      %134 = vector.shape_cast %133 : vector<64xf32> to vector<64x1xf32>
      %135 = arith.addf %132, %134 : vector<64x1xf32>
      %136 = vector.broadcast %128 : vector<64x1xf32> to vector<64x8xf32>
      %137 = arith.mulf %136, %arg14 : vector<64x8xf32>
      %cst_51 = arith.constant dense<0.000000e+00> : vector<64x8xf32>
      %138 = tpu.matmul %131, %120, %cst_51 {dimension_numbers = #tpu.dot_dimension_numbers<[1], [0], [0], [1], [0, 0, 1, 1], [], []>} : vector<64x64xf32>, vector<64x8xf32>, vector<64x8xf32> -> vector<64x8xf32>
      %139 = arith.addf %137, %138 : vector<64x8xf32>
      %140 = vector.extract_strided_slice %93 {offsets = [0, 16], sizes = [64, 8], strides = [1, 1]} : vector<64x128xf32> to vector<64x8xf32>
      %141 = vector.extract_strided_slice %93 {offsets = [0, 80], sizes = [64, 8], strides = [1, 1]} : vector<64x128xf32> to vector<64x8xf32>
      "tpu.trace_start"() <{level = 10 : i32, message = "qd,kd->qk"}> : () -> ()
      %cst_52 = arith.constant dense<0.000000e+00> : vector<64x64xf32>
      %142 = tpu.matmul %16, %140, %cst_52 {dimension_numbers = #tpu.dot_dimension_numbers<[1], [1], [0], [0], [0, 0, 1, 0], [], []>} : vector<64x8xf32>, vector<64x8xf32>, vector<64x64xf32> -> vector<64x64xf32>
      %cst_53 = arith.constant -1.000000e+30 : f32
      "tpu.trace_stop"() : () -> ()
      %143 = vector.broadcast %cst_53 : f32 to vector<64x64xf32>
      %144 = arith.select %97, %142, %143 : vector<64x64xi1>, vector<64x64xf32>
      %cst_54 = arith.constant dense<0xFF800000> : vector<64xf32>
      %145 = vector.multi_reduction <maximumf>, %144, %cst_54 [1] : vector<64x64xf32> to vector<64xf32>
      %146 = vector.shape_cast %145 : vector<64xf32> to vector<64x1xf32>
      %147 = arith.maximumf %arg15, %146 : vector<64x1xf32>
      %148 = arith.subf %arg15, %147 : vector<64x1xf32>
      %149 = math.exp %148 : vector<64x1xf32>
      %150 = vector.broadcast %147 : vector<64x1xf32> to vector<64x64xf32>
      %151 = arith.subf %144, %150 : vector<64x64xf32>
      %152 = math.exp %151 : vector<64x64xf32>
      %153 = arith.mulf %149, %arg16 : vector<64x1xf32>
      %cst_55 = arith.constant dense<0.000000e+00> : vector<64xf32>
      %154 = vector.multi_reduction <add>, %152, %cst_55 [1] : vector<64x64xf32> to vector<64xf32>
      %155 = vector.shape_cast %154 : vector<64xf32> to vector<64x1xf32>
      %156 = arith.addf %153, %155 : vector<64x1xf32>
      %157 = vector.broadcast %149 : vector<64x1xf32> to vector<64x8xf32>
      %158 = arith.mulf %157, %arg17 : vector<64x8xf32>
      %cst_56 = arith.constant dense<0.000000e+00> : vector<64x8xf32>
      %159 = tpu.matmul %152, %141, %cst_56 {dimension_numbers = #tpu.dot_dimension_numbers<[1], [0], [0], [1], [0, 0, 1, 1], [], []>} : vector<64x64xf32>, vector<64x8xf32>, vector<64x8xf32> -> vector<64x8xf32>
      %160 = arith.addf %158, %159 : vector<64x8xf32>
      %161 = vector.extract_strided_slice %93 {offsets = [0, 24], sizes = [64, 8], strides = [1, 1]} : vector<64x128xf32> to vector<64x8xf32>
      %162 = vector.extract_strided_slice %93 {offsets = [0, 88], sizes = [64, 8], strides = [1, 1]} : vector<64x128xf32> to vector<64x8xf32>
      "tpu.trace_start"() <{level = 10 : i32, message = "qd,kd->qk"}> : () -> ()
      %cst_57 = arith.constant dense<0.000000e+00> : vector<64x64xf32>
      %163 = tpu.matmul %17, %161, %cst_57 {dimension_numbers = #tpu.dot_dimension_numbers<[1], [1], [0], [0], [0, 0, 1, 0], [], []>} : vector<64x8xf32>, vector<64x8xf32>, vector<64x64xf32> -> vector<64x64xf32>
      %cst_58 = arith.constant -1.000000e+30 : f32
      "tpu.trace_stop"() : () -> ()
      %164 = vector.broadcast %cst_58 : f32 to vector<64x64xf32>
      %165 = arith.select %97, %163, %164 : vector<64x64xi1>, vector<64x64xf32>
      %cst_59 = arith.constant dense<0xFF800000> : vector<64xf32>
      %166 = vector.multi_reduction <maximumf>, %165, %cst_59 [1] : vector<64x64xf32> to vector<64xf32>
      %167 = vector.shape_cast %166 : vector<64xf32> to vector<64x1xf32>
      %168 = arith.maximumf %arg18, %167 : vector<64x1xf32>
      %169 = arith.subf %arg18, %168 : vector<64x1xf32>
      %170 = math.exp %169 : vector<64x1xf32>
      %171 = vector.broadcast %168 : vector<64x1xf32> to vector<64x64xf32>
      %172 = arith.subf %165, %171 : vector<64x64xf32>
      %173 = math.exp %172 : vector<64x64xf32>
      %174 = arith.mulf %170, %arg19 : vector<64x1xf32>
      %cst_60 = arith.constant dense<0.000000e+00> : vector<64xf32>
      %175 = vector.multi_reduction <add>, %173, %cst_60 [1] : vector<64x64xf32> to vector<64xf32>
      %176 = vector.shape_cast %175 : vector<64xf32> to vector<64x1xf32>
      %177 = arith.addf %174, %176 : vector<64x1xf32>
      %178 = vector.broadcast %170 : vector<64x1xf32> to vector<64x8xf32>
      %179 = arith.mulf %178, %arg20 : vector<64x8xf32>
      %cst_61 = arith.constant dense<0.000000e+00> : vector<64x8xf32>
      %180 = tpu.matmul %173, %162, %cst_61 {dimension_numbers = #tpu.dot_dimension_numbers<[1], [0], [0], [1], [0, 0, 1, 1], [], []>} : vector<64x64xf32>, vector<64x8xf32>, vector<64x8xf32> -> vector<64x8xf32>
      %181 = arith.addf %179, %180 : vector<64x8xf32>
      %182 = vector.extract_strided_slice %93 {offsets = [0, 32], sizes = [64, 8], strides = [1, 1]} : vector<64x128xf32> to vector<64x8xf32>
      %183 = vector.extract_strided_slice %93 {offsets = [0, 96], sizes = [64, 8], strides = [1, 1]} : vector<64x128xf32> to vector<64x8xf32>
      "tpu.trace_start"() <{level = 10 : i32, message = "qd,kd->qk"}> : () -> ()
      %cst_62 = arith.constant dense<0.000000e+00> : vector<64x64xf32>
      %184 = tpu.matmul %18, %182, %cst_62 {dimension_numbers = #tpu.dot_dimension_numbers<[1], [1], [0], [0], [0, 0, 1, 0], [], []>} : vector<64x8xf32>, vector<64x8xf32>, vector<64x64xf32> -> vector<64x64xf32>
      %cst_63 = arith.constant -1.000000e+30 : f32
      "tpu.trace_stop"() : () -> ()
      %185 = vector.broadcast %cst_63 : f32 to vector<64x64xf32>
      %186 = arith.select %97, %184, %185 : vector<64x64xi1>, vector<64x64xf32>
      %cst_64 = arith.constant dense<0xFF800000> : vector<64xf32>
      %187 = vector.multi_reduction <maximumf>, %186, %cst_64 [1] : vector<64x64xf32> to vector<64xf32>
      %188 = vector.shape_cast %187 : vector<64xf32> to vector<64x1xf32>
      %189 = arith.maximumf %arg21, %188 : vector<64x1xf32>
      %190 = arith.subf %arg21, %189 : vector<64x1xf32>
      %191 = math.exp %190 : vector<64x1xf32>
      %192 = vector.broadcast %189 : vector<64x1xf32> to vector<64x64xf32>
      %193 = arith.subf %186, %192 : vector<64x64xf32>
      %194 = math.exp %193 : vector<64x64xf32>
      %195 = arith.mulf %191, %arg22 : vector<64x1xf32>
      %cst_65 = arith.constant dense<0.000000e+00> : vector<64xf32>
      %196 = vector.multi_reduction <add>, %194, %cst_65 [1] : vector<64x64xf32> to vector<64xf32>
      %197 = vector.shape_cast %196 : vector<64xf32> to vector<64x1xf32>
      %198 = arith.addf %195, %197 : vector<64x1xf32>
      %199 = vector.broadcast %191 : vector<64x1xf32> to vector<64x8xf32>
      %200 = arith.mulf %199, %arg23 : vector<64x8xf32>
      %cst_66 = arith.constant dense<0.000000e+00> : vector<64x8xf32>
      %201 = tpu.matmul %194, %183, %cst_66 {dimension_numbers = #tpu.dot_dimension_numbers<[1], [0], [0], [1], [0, 0, 1, 1], [], []>} : vector<64x64xf32>, vector<64x8xf32>, vector<64x8xf32> -> vector<64x8xf32>
      %202 = arith.addf %200, %201 : vector<64x8xf32>
      %203 = vector.extract_strided_slice %93 {offsets = [0, 40], sizes = [64, 8], strides = [1, 1]} : vector<64x128xf32> to vector<64x8xf32>
      %204 = vector.extract_strided_slice %93 {offsets = [0, 104], sizes = [64, 8], strides = [1, 1]} : vector<64x128xf32> to vector<64x8xf32>
      "tpu.trace_start"() <{level = 10 : i32, message = "qd,kd->qk"}> : () -> ()
      %cst_67 = arith.constant dense<0.000000e+00> : vector<64x64xf32>
      %205 = tpu.matmul %19, %203, %cst_67 {dimension_numbers = #tpu.dot_dimension_numbers<[1], [1], [0], [0], [0, 0, 1, 0], [], []>} : vector<64x8xf32>, vector<64x8xf32>, vector<64x64xf32> -> vector<64x64xf32>
      %cst_68 = arith.constant -1.000000e+30 : f32
      "tpu.trace_stop"() : () -> ()
      %206 = vector.broadcast %cst_68 : f32 to vector<64x64xf32>
      %207 = arith.select %97, %205, %206 : vector<64x64xi1>, vector<64x64xf32>
      %cst_69 = arith.constant dense<0xFF800000> : vector<64xf32>
      %208 = vector.multi_reduction <maximumf>, %207, %cst_69 [1] : vector<64x64xf32> to vector<64xf32>
      %209 = vector.shape_cast %208 : vector<64xf32> to vector<64x1xf32>
      %210 = arith.maximumf %arg24, %209 : vector<64x1xf32>
      %211 = arith.subf %arg24, %210 : vector<64x1xf32>
      %212 = math.exp %211 : vector<64x1xf32>
      %213 = vector.broadcast %210 : vector<64x1xf32> to vector<64x64xf32>
      %214 = arith.subf %207, %213 : vector<64x64xf32>
      %215 = math.exp %214 : vector<64x64xf32>
      %216 = arith.mulf %212, %arg25 : vector<64x1xf32>
      %cst_70 = arith.constant dense<0.000000e+00> : vector<64xf32>
      %217 = vector.multi_reduction <add>, %215, %cst_70 [1] : vector<64x64xf32> to vector<64xf32>
      %218 = vector.shape_cast %217 : vector<64xf32> to vector<64x1xf32>
      %219 = arith.addf %216, %218 : vector<64x1xf32>
      %220 = vector.broadcast %212 : vector<64x1xf32> to vector<64x8xf32>
      %221 = arith.mulf %220, %arg26 : vector<64x8xf32>
      %cst_71 = arith.constant dense<0.000000e+00> : vector<64x8xf32>
      %222 = tpu.matmul %215, %204, %cst_71 {dimension_numbers = #tpu.dot_dimension_numbers<[1], [0], [0], [1], [0, 0, 1, 1], [], []>} : vector<64x64xf32>, vector<64x8xf32>, vector<64x8xf32> -> vector<64x8xf32>
      %223 = arith.addf %221, %222 : vector<64x8xf32>
      %224 = vector.extract_strided_slice %93 {offsets = [0, 48], sizes = [64, 8], strides = [1, 1]} : vector<64x128xf32> to vector<64x8xf32>
      %225 = vector.extract_strided_slice %93 {offsets = [0, 112], sizes = [64, 8], strides = [1, 1]} : vector<64x128xf32> to vector<64x8xf32>
      "tpu.trace_start"() <{level = 10 : i32, message = "qd,kd->qk"}> : () -> ()
      %cst_72 = arith.constant dense<0.000000e+00> : vector<64x64xf32>
      %226 = tpu.matmul %20, %224, %cst_72 {dimension_numbers = #tpu.dot_dimension_numbers<[1], [1], [0], [0], [0, 0, 1, 0], [], []>} : vector<64x8xf32>, vector<64x8xf32>, vector<64x64xf32> -> vector<64x64xf32>
      %cst_73 = arith.constant -1.000000e+30 : f32
      "tpu.trace_stop"() : () -> ()
      %227 = vector.broadcast %cst_73 : f32 to vector<64x64xf32>
      %228 = arith.select %97, %226, %227 : vector<64x64xi1>, vector<64x64xf32>
      %cst_74 = arith.constant dense<0xFF800000> : vector<64xf32>
      %229 = vector.multi_reduction <maximumf>, %228, %cst_74 [1] : vector<64x64xf32> to vector<64xf32>
      %230 = vector.shape_cast %229 : vector<64xf32> to vector<64x1xf32>
      %231 = arith.maximumf %arg27, %230 : vector<64x1xf32>
      %232 = arith.subf %arg27, %231 : vector<64x1xf32>
      %233 = math.exp %232 : vector<64x1xf32>
      %234 = vector.broadcast %231 : vector<64x1xf32> to vector<64x64xf32>
      %235 = arith.subf %228, %234 : vector<64x64xf32>
      %236 = math.exp %235 : vector<64x64xf32>
      %237 = arith.mulf %233, %arg28 : vector<64x1xf32>
      %cst_75 = arith.constant dense<0.000000e+00> : vector<64xf32>
      %238 = vector.multi_reduction <add>, %236, %cst_75 [1] : vector<64x64xf32> to vector<64xf32>
      %239 = vector.shape_cast %238 : vector<64xf32> to vector<64x1xf32>
      %240 = arith.addf %237, %239 : vector<64x1xf32>
      %241 = vector.broadcast %233 : vector<64x1xf32> to vector<64x8xf32>
      %242 = arith.mulf %241, %arg29 : vector<64x8xf32>
      %cst_76 = arith.constant dense<0.000000e+00> : vector<64x8xf32>
      %243 = tpu.matmul %236, %225, %cst_76 {dimension_numbers = #tpu.dot_dimension_numbers<[1], [0], [0], [1], [0, 0, 1, 1], [], []>} : vector<64x64xf32>, vector<64x8xf32>, vector<64x8xf32> -> vector<64x8xf32>
      %244 = arith.addf %242, %243 : vector<64x8xf32>
      %245 = vector.extract_strided_slice %93 {offsets = [0, 56], sizes = [64, 8], strides = [1, 1]} : vector<64x128xf32> to vector<64x8xf32>
      %246 = vector.extract_strided_slice %93 {offsets = [0, 120], sizes = [64, 8], strides = [1, 1]} : vector<64x128xf32> to vector<64x8xf32>
      "tpu.trace_start"() <{level = 10 : i32, message = "qd,kd->qk"}> : () -> ()
      %cst_77 = arith.constant dense<0.000000e+00> : vector<64x64xf32>
      %247 = tpu.matmul %21, %245, %cst_77 {dimension_numbers = #tpu.dot_dimension_numbers<[1], [1], [0], [0], [0, 0, 1, 0], [], []>} : vector<64x8xf32>, vector<64x8xf32>, vector<64x64xf32> -> vector<64x64xf32>
      %cst_78 = arith.constant -1.000000e+30 : f32
      "tpu.trace_stop"() : () -> ()
      %248 = vector.broadcast %cst_78 : f32 to vector<64x64xf32>
      %249 = arith.select %97, %247, %248 : vector<64x64xi1>, vector<64x64xf32>
      %cst_79 = arith.constant dense<0xFF800000> : vector<64xf32>
      %250 = vector.multi_reduction <maximumf>, %249, %cst_79 [1] : vector<64x64xf32> to vector<64xf32>
      %251 = vector.shape_cast %250 : vector<64xf32> to vector<64x1xf32>
      %252 = arith.maximumf %arg30, %251 : vector<64x1xf32>
      %253 = arith.subf %arg30, %252 : vector<64x1xf32>
      %254 = math.exp %253 : vector<64x1xf32>
      %255 = vector.broadcast %252 : vector<64x1xf32> to vector<64x64xf32>
      %256 = arith.subf %249, %255 : vector<64x64xf32>
      %257 = math.exp %256 : vector<64x64xf32>
      %258 = arith.mulf %254, %arg31 : vector<64x1xf32>
      %cst_80 = arith.constant dense<0.000000e+00> : vector<64xf32>
      %259 = vector.multi_reduction <add>, %257, %cst_80 [1] : vector<64x64xf32> to vector<64xf32>
      %260 = vector.shape_cast %259 : vector<64xf32> to vector<64x1xf32>
      %261 = arith.addf %258, %260 : vector<64x1xf32>
      %262 = vector.broadcast %254 : vector<64x1xf32> to vector<64x8xf32>
      %263 = arith.mulf %262, %arg32 : vector<64x8xf32>
      %cst_81 = arith.constant dense<0.000000e+00> : vector<64x8xf32>
      %264 = tpu.matmul %257, %246, %cst_81 {dimension_numbers = #tpu.dot_dimension_numbers<[1], [0], [0], [1], [0, 0, 1, 1], [], []>} : vector<64x64xf32>, vector<64x8xf32>, vector<64x8xf32> -> vector<64x8xf32>
      %265 = arith.addf %263, %264 : vector<64x8xf32>
      scf.yield %105, %114, %118, %126, %135, %139, %147, %156, %160, %168, %177, %181, %189, %198, %202, %210, %219, %223, %231, %240, %244, %252, %261, %265 : vector<64x1xf32>, vector<64x1xf32>, vector<64x8xf32>, vector<64x1xf32>, vector<64x1xf32>, vector<64x8xf32>, vector<64x1xf32>, vector<64x1xf32>, vector<64x8xf32>, vector<64x1xf32>, vector<64x1xf32>, vector<64x8xf32>, vector<64x1xf32>, vector<64x1xf32>, vector<64x8xf32>, vector<64x1xf32>, vector<64x1xf32>, vector<64x8xf32>, vector<64x1xf32>, vector<64x1xf32>, vector<64x8xf32>, vector<64x1xf32>, vector<64x1xf32>, vector<64x8xf32>
    }
    %53 = tpu.reciprocal %52#1 : vector<64x1xf32> -> vector<64x1xf32>
    %54 = vector.broadcast %53 : vector<64x1xf32> to vector<64x8xf32>
    %55 = arith.mulf %52#2, %54 : vector<64x8xf32>
    %56 = tpu.reciprocal %52#4 : vector<64x1xf32> -> vector<64x1xf32>
    %57 = vector.broadcast %56 : vector<64x1xf32> to vector<64x8xf32>
    %58 = arith.mulf %52#5, %57 : vector<64x8xf32>
    %59 = tpu.reciprocal %52#7 : vector<64x1xf32> -> vector<64x1xf32>
    %60 = vector.broadcast %59 : vector<64x1xf32> to vector<64x8xf32>
    %61 = arith.mulf %52#8, %60 : vector<64x8xf32>
    %62 = tpu.reciprocal %52#10 : vector<64x1xf32> -> vector<64x1xf32>
    %63 = vector.broadcast %62 : vector<64x1xf32> to vector<64x8xf32>
    %64 = arith.mulf %52#11, %63 : vector<64x8xf32>
    %65 = tpu.reciprocal %52#13 : vector<64x1xf32> -> vector<64x1xf32>
    %66 = vector.broadcast %65 : vector<64x1xf32> to vector<64x8xf32>
    %67 = arith.mulf %52#14, %66 : vector<64x8xf32>
    %68 = tpu.reciprocal %52#16 : vector<64x1xf32> -> vector<64x1xf32>
    %69 = vector.broadcast %68 : vector<64x1xf32> to vector<64x8xf32>
    %70 = arith.mulf %52#17, %69 : vector<64x8xf32>
    %71 = tpu.reciprocal %52#19 : vector<64x1xf32> -> vector<64x1xf32>
    %72 = vector.broadcast %71 : vector<64x1xf32> to vector<64x8xf32>
    %73 = arith.mulf %52#20, %72 : vector<64x8xf32>
    %74 = tpu.reciprocal %52#22 : vector<64x1xf32> -> vector<64x1xf32>
    %75 = vector.broadcast %74 : vector<64x1xf32> to vector<64x8xf32>
    %76 = arith.mulf %52#23, %75 : vector<64x8xf32>
    %77 = tpu.concatenate %55, %58, %61, %64, %67, %70, %73, %76 in 1 : vector<64x8xf32>, vector<64x8xf32>, vector<64x8xf32>, vector<64x8xf32>, vector<64x8xf32>, vector<64x8xf32>, vector<64x8xf32>, vector<64x8xf32> -> vector<64x64xf32>
    %c0_30 = arith.constant 0 : index
    %c0_31 = arith.constant 0 : index
    %78 = vector.load %arg5[%c0_30, %c0_31] : memref<64x64xf32, #tpu.memory_space<vmem>>, vector<64x64xf32>
    %cst_32 = arith.constant dense<0.000000e+00> : vector<64x64xf32>
    %79 = tpu.matmul %77, %78, %cst_32 {dimension_numbers = #tpu.dot_dimension_numbers<[1], [0], [0], [1], [0, 0, 1, 1], [], []>} : vector<64x64xf32>, vector<64x64xf32>, vector<64x64xf32> -> vector<64x64xf32>
    %c0_33 = arith.constant 0 : index
    %c0_34 = arith.constant 0 : index
    %80 = vector.load %arg6[%c0_33, %c0_34] : memref<1x64xf32, #tpu.memory_space<vmem>>, vector<1x64xf32>
    %81 = vector.broadcast %80 : vector<1x64xf32> to vector<64x64xf32>
    %82 = arith.addf %79, %81 : vector<64x64xf32>
    %c0_35 = arith.constant 0 : index
    %c0_36 = arith.constant 0 : index
    %c0_37 = arith.constant 0 : index
    %83 = vector.load %arg7[%c0_35, %c0_36, %c0_37] : memref<1x64x64xf32, #tpu.memory_space<vmem>>, vector<1x64x64xf32>
    %84 = vector.shape_cast %83 : vector<1x64x64xf32> to vector<64x64xf32>
    %85 = vector.shape_cast %82 : vector<64x64xf32> to vector<1x64x64xf32>
    tpu.vector_store %arg7[%c0_35, %c0_36, %c0_37], %85 {strides = array<i32>} : memref<1x64x64xf32, #tpu.memory_space<vmem>>, vector<1x64x64xf32>,
    return
  }
  func.func @transform_0(%arg0: i32, %arg1: i32) -> (i32, i32, i32) {
    %c0_i32 = arith.constant 0 : i32
    %c0_i32_0 = arith.constant 0 : i32
    %c0_i32_1 = arith.constant 0 : i32
    return %arg0, %c0_i32, %c0_i32_0 : i32, i32, i32
  }
  func.func @transform_1(%arg0: i32, %arg1: i32) -> (i32, i32) {
    %c0_i32 = arith.constant 0 : i32
    %c0_i32_0 = arith.constant 0 : i32
    %c0_i32_1 = arith.constant 0 : i32
    return %c0_i32, %c0_i32_0 : i32, i32
  }
  func.func @transform_2(%arg0: i32, %arg1: i32) -> (i32, i32) {
    %c0_i32 = arith.constant 0 : i32
    %c0_i32_0 = arith.constant 0 : i32
    %c0_i32_1 = arith.constant 0 : i32
    return %c0_i32, %c0_i32_0 : i32, i32
  }
  func.func @transform_3(%arg0: i32, %arg1: i32) -> (i32, i32) {
    %c0_i32 = arith.constant 0 : i32
    %c0_i32_0 = arith.constant 0 : i32
    %c0_i32_1 = arith.constant 0 : i32
    return %c0_i32, %c0_i32_0 : i32, i32
  }
  func.func @transform_4(%arg0: i32, %arg1: i32) -> (i32, i32) {
    %c0_i32 = arith.constant 0 : i32
    %c0_i32_0 = arith.constant 0 : i32
    %c0_i32_1 = arith.constant 0 : i32
    return %c0_i32, %c0_i32_0 : i32, i32
  }
  func.func @transform_5(%arg0: i32, %arg1: i32) -> (i32, i32, i32) {
    %c0_i32 = arith.constant 0 : i32
    %c0_i32_0 = arith.constant 0 : i32
    return %arg0, %arg1, %c0_i32 : i32, i32, i32
  }
}

</mosaic_0001>

<bundles_post_ra>
// kernel: tpu_custom_call.1
= control target key start
LH: loop header
LB: loop body
LE: loop exit
PB: predicated region body
PF: predicated region fallthrough
CT: control target
= control target key end

     0   :  { %s13269_s18 = smov 0   ;;  %s13271_s19 = smov 0   ;;  %s18808_s0 = inlined_call_operand.vmem [shape: f32[2,128,64], index: 0, kind: input, shape index: {}]   ;;  %s18809_s1 = inlined_call_operand.vmem [shape: f32[64,192], index: 1, kind: input, shape index: {}]   ;;  %s18810_s2 = inlined_call_operand.vmem [shape: f32[1,192], index: 2, kind: input, shape index: {}]   ;;  %s18811_s3 = inlined_call_operand.vmem [shape: f32[64,64], index: 3, kind: input, shape index: {}]   ;;  %s18812_s4 = inlined_call_operand.vmem [shape: f32[1,64], index: 4, kind: input, shape index: {}]   ;;  %s18813_s5 = inlined_call_operand.vmem [shape: f32[2,128,64], index: 5, kind: output, shape index: {}]  }
   0x1   :  { %s13273_s20 = smov 0   ;;  %s13275_s21 = smov 0  }
   0x2   :  { %s13277_s22 = smov 0  }
   0x3 LB: > { %s24_s23 = sadd.s32 1, %s11923_s20  ;;  %s27_s24 = sadd.s32 1, %s11927_s21  ;;  %s11931_s22 = sphi %s13277_s22, %s15_s22   ;;  %s11927_s21 = sphi %s13275_s21, %s21334_s21   ;;  %s11923_s20 = sphi %s13273_s20, %s21333_s20   ;;  %s11919_s19 = sphi %s13271_s19, %s21332_s19   ;;  %s11915_s18 = sphi %s13269_s18, %s21331_s18  }
   0x4   : > { %p25_p0 = scmp.ge.s32.totalorder %s24_s23, 2  ;;  %p5806_p1 = scmp.ge.s32.totalorder %s11931_s22, 1 }
   0x5   : > { %p201_p2 = scmp.lt.s32.totalorder %s11931_s22, 5 }
   0x6   : > { %s21336_s23 = smov (%p25_p0, %s24_s23), 0  ;;  %s21338_s24 = smov (!%p25_p0, %s27_s24), %s11927_s21 }
   0x7   : > { %p202_p3 = pnand %p5806_p1, %p201_p2  ;;  %p29_p4 = scmp.ge.s32.totalorder %s21338_s24, 2 }
   0x9   : > { %s21340_s24 = smov (%p29_p4, %s21338_s24), 0  ;;  %205 = sbr.rel (%p202_p3) target bundleno = 5174 (0x1436), region = 40 }
  0x10   : > { %v13306_v0 = vld [vmem:[%s18809_s1] sm:$0xff]  ;;  %v13311_v1 = vld [vmem:[%s18809_s1 + $0x8] sm:$0xff]  ;;  %v13316_v2 = vld [vmem:[%s18809_s1 + $0x10] sm:$0xff]  ;;  %p233_p5 = scmp.lt.s32.totalorder %s11919_s19, 1  ;;  %s5809_s6 = sshll.u32 %s11915_s18, 3  ;;  %v18814_v3 = vlaneseq  ;;  %vm281_vm0 = vcmask 523264  }
  0x11   : > { %19057 = vst [vmem:[#allocation2_spill] sm:$0xff] %v13306_v0  ;;  %19058 = vst [vmem:[#allocation3_spill] sm:$0xff] %v13311_v1  ;;  %v13323_v4 = vld [vmem:[%s18809_s1 + $0x18] sm:$0xff]  ;;  %v13328_v5 = vld [vmem:[%s18809_s1 + $0x28] sm:$0xff]  ;;  %v6871_v7 = vpack.c.bf16 %v13316_v2, %v13306_v0  ;;  %p241_p6 = scmp.lt.s32.totalorder %s5809_s6, 15  ;;  %s5812_s13 = sshll.u32 %s11915_s18, 6 }
  0x12   : > { %19059 = vst [vmem:[#allocation4_spill] sm:$0xff] %v13316_v2  ;;  %19060 = vst [vmem:[#allocation5_spill] sm:$0xff] %v13323_v4  ;;  %v13333_v6 = vld [vmem:[%s18809_s1 + $0x38] sm:$0xff]  ;;  %v13341_v8 = vld [vmem:[%s18809_s1 + $0x48] sm:$0xff]  ;;  %s21342_s19 = smov (!%p233_p5, %s11919_s19), 1  ;;  %v13355_v11 = vshrl.u32 %v18814_v3, 7  ;;  %v420_v12 = vstv %s5812_s13 }
  0x13   : > { %19061 = vst [vmem:[#allocation6_spill] sm:$0xff] %v13328_v5  ;;  %19062 = vst [vmem:[#allocation7_spill] sm:$0xff] %v13333_v6  ;;  %v13346_v9 = vld [vmem:[%s18809_s1 + $0x58] sm:$0xff]  ;;  %v13351_v10 = vld [vmem:[%s18809_s1 + $0x68] sm:$0xff]  ;;  %6872 = vmatprep.subr.bf16.mxu0 %v6871_v7  ;;  %7239 = vmatprep.subr.bf16.mxu1 %v6871_v7  ;;  %s21344_s6 = smov (!%p241_p6, %s5809_s6), 15  ;;  %s6034_s14 = sshll.u32 %s21342_s19, 7 }
  0x14   : > { %19063 = vst [vmem:[#allocation8_spill] sm:$0xff] %v13341_v8  ;;  %19064 = vst [vmem:[#allocation9_spill] sm:$0xff] %v13346_v9  ;;  %v13362_v13 = vld [vmem:[%s18809_s1 + $0x78] sm:$0xff]  ;;  %v13367_v14 = vld [vmem:[%s18809_s1 + $0x20] sm:$0xff]  ;;  %6874 = vmatpush3.bf16.msra.mxu0 %v6871_v7  ;;  %7243 = vmatpush3.bf16.msra.mxu1 %v6871_v7  ;;  %s5810_s15 = sshll.u32 %s21342_s19, 4  ;;  %v413_v19 = vadd.s32 8, %v13355_v11  ;;  %v13388_v20 = vadd.s32 %v420_v12, %v13355_v11  ;;  %s13395_s25 = scalar_lea.vmem %s18808_s0, %s6034_s14 }
  0x15   : > { %19065 = vst [vmem:[#allocation10_spill] sm:$0xff] %v13351_v10  ;;  %19066 = vst [vmem:[#allocation11_spill] sm:$0xff] %v13355_v11  ;;  %v13372_v15 = vld [vmem:[%s18809_s1 + $0x30] sm:$0xff]  ;;  %v13379_v17 = vld [vmem:[%s18809_s1 + $0x40] sm:$0xff]  ;;  %s244_s26 = sadd.s32 %s5810_s15, %s21344_s6  ;;  %v414_v22 = vadd.s32 16, %v13355_v11  ;;  %v415_v23 = vadd.s32 24, %v13355_v11  ;;  %s13413_s6 = scalar_lea.vmem %s13395_s25, %s5812_s13 }
  0x16   : > { %19067 = vst [vmem:[#allocation12_spill] sm:$0xff] %v13362_v13  ;;  %19068 = vst [vmem:[#allocation13_spill] sm:$0xff] %v13367_v14  ;;  %v6875_v16 = vpack.c.bf16 %v13372_v15, %v13367_v14  ;;  %v13384_v18 = vld [vmem:[%s18809_s1 + $0x50] sm:$0xff]  ;;  %v416_v24 = vadd.s32 32, %v13355_v11  ;;  %v13403_v25 = vld [vmem:[%s18809_s1 + $0x60] sm:$0xff]  ;;  %s5811_s30 = sshll.u32 %s244_s26, 3  ;;  %v13424_v31 = vadd.s32 %v420_v12, %v413_v19 }
  0x17   : > { %19069 = vst [vmem:[#allocation14_spill] sm:$0xff] %v13372_v15  ;;  %19070 = vst [vmem:[#allocation15_spill] sm:$0xff] %v13379_v17  ;;  %v6879_v21 = vpack.c.bf16 %v13384_v18, %v13379_v17  ;;  %v13408_v26 = vld [vmem:[%s18809_s1 + $0x70] sm:$0xff]  ;;  %v417_v27 = vadd.s32 40, %v13355_v11  ;;  %v418_v28 = vadd.s32 48, %v13355_v11  ;;  %v419_v29 = vadd.s32 56, %v13355_v11  ;;  %s13421_s9 = scalar_lea.vmem %s18813_s5, %s5811_s30 }
  0x18   : > { %19071 = vst [vmem:[#allocation16_spill] sm:$0xff] %v13384_v18  ;;  %19072 = vst [vmem:[#allocation17_spill] sm:$0xff] %v13388_v20  ;;  %6876 = vmatprep.subr.bf16.mxu0 %v6875_v16  ;;  %7240 = vmatprep.subr.bf16.mxu1 %v6875_v16  ;;  %v267_v30 = vld [vmem:[%s13413_s6] sm:$0xff]  ;;  %v13426_v32 = vadd.s32 %v420_v12, %v414_v22  ;;  %v13428_v33 = vadd.s32 %v420_v12, %v415_v23  ;;  %v268_v40 = vld [vmem:[%s13413_s6 + $0x8] sm:$0xff]  ;;  %s429_s13 = sadd.s32 1, %s11915_s18  ;;  %v278_v46 = vsub.s32 0, %v13355_v11 }
  0x19   : > { %19073 = vst [vmem:[#allocation18_spill] sm:$0xff] %v13403_v25  ;;  %19074 = vst [vmem:[#allocation19_spill] sm:$0xff] %v13408_v26  ;;  %v13430_v34 = vadd.s32 %v420_v12, %v416_v24  ;;  %v271_v35 = vld [vmem:[%s13413_s6 + $0x20] sm:$0xff]  ;;  %6878 = vmatpush3.bf16.msra.mxu0 %v6875_v16  ;;  %7244 = vmatpush3.bf16.msra.mxu1 %v6875_v16  ;;  %v13433_v36 = vadd.s32 %v420_v12, %v417_v27  ;;  %v272_v41 = vld [vmem:[%s13413_s6 + $0x28] sm:$0xff]  ;;  %p13491_p7 = scmp.le.s32.totalorder %s429_s13, 0  ;;  %v13497_v16 = vmov 0.0  }
  0x1a   : > { %19075 = vst [vmem:[#allocation20_spill] sm:$0xff] %v13424_v31  ;;  %19076 = vst [vmem:[#allocation21_spill] sm:$0xff] %v13426_v32  ;;  %v13435_v37 = vadd.s32 %v420_v12, %v418_v28  ;;  %v13437_v38 = vadd.s32 %v420_v12, %v419_v29  ;;  %6880 = vmatprep.subr.bf16.mxu0 %v6879_v21  ;;  %7241 = vmatprep.subr.bf16.mxu1 %v6879_v21  ;;  %v269_v42 = vld [vmem:[%s13413_s6 + $0x10] sm:$0xff]  ;;  %v270_v44 = vld [vmem:[%s13413_s6 + $0x18] sm:$0xff]  ;;  %v13495_v12 = vmov 0.0   ;;  %v13499_v19 = vmov 0.0  }
  0x1b   : > { %19077 = vst [vmem:[#allocation22_spill] sm:$0xff] %v13428_v33  ;;  %19078 = vst [vmem:[#allocation23_spill] sm:$0xff] %v13430_v34  ;;  %v6883_v39 = vpack.c.bf16 %v13408_v26, %v13403_v25  ;;  %6355 = vmatprep.mubr.msk.f32.mxu0 %vm281_vm0, %v267_v30  ;;  %6361 = vmatprep.mubr.msk.f32.mxu1 %vm281_vm0, %v271_v35  ;;  %v273_v43 = vld [vmem:[%s13413_s6 + $0x30] sm:$0xff]  ;;  %v274_v45 = vld [vmem:[%s13413_s6 + $0x38] sm:$0xff]  ;;  %v13503_v22 = vmov 0.0   ;;  %v13505_v23 = vmov 0.0  }
  0x1c   : > { %19079 = vst [vmem:[#allocation24_spill] sm:$0xff] %v13433_v36  ;;  %19080 = vst [vmem:[#allocation25_spill] sm:$0xff] %v13435_v37  ;;  %v13460_v47 = vld [vmem:[%s18810_s2] sm:$0x3]  ;;  %v13507_v24 = vmov 0.0   ;;  %v13509_v27 = vmov 0.0  }
  0x1d   : > { %19081 = vst [vmem:[#allocation26_spill] sm:$0xff] %v13437_v38  ;;  %6882 = vmatpush3.bf16.msra.mxu0 %v6879_v21  ;;  %7245 = vmatpush3.bf16.msra.mxu1 %v6879_v21  ;;  %19082 = vst [vmem:[#allocation27_spill] sm:$0xff] %v13460_v47  ;;  %v13463_v48 = vrot.slane %v13460_v47, %v278_v46  ;;  %v13501_v21 = vmov 0.0   ;;  %v13511_v28 = vmov 0.0   ;;  %v13513_v29 = vmov 0.0  }
  0x1e   : > { %6884 = vmatprep.subr.bf16.mxu0 %v6883_v39  ;;  %7242 = vmatprep.subr.bf16.mxu1 %v6883_v39  ;;  %v13515_v30 = vmov 0.0   ;;  %v13517_v35 = vmov 0.0   ;;  %v13533_v46 = vmov 0.0   ;;  %v13551_v3 = vmov 0.0  }
  0x1f   : > { %19083 = vst [vmem:[#allocation28_spill] sm:$0xff] %v13463_v48  ;;  %v13553_v37 = vmov 0.0   ;;  %v13555_v38 = vmov 0.0   ;;  %v13557_v34 = vmov 0.0   ;;  %v13559_v36 = vmov 0.0  }
  0x20   : > { %v13561_v33 = vmov 0.0   ;;  %v13563_v32 = vmov 0.0   ;;  %v13565_v20 = vmov 0.0   ;;  %v13567_v31 = vmov 0.0  }
  0x21   : > { %6886 = vmatpush3.bf16.msra.mxu0 %v6883_v39  ;;  %7246 = vmatpush3.bf16.msra.mxu1 %v6883_v39  ;;  %v13519_v39 = vmov 0.0   ;;  %v13585_v47 = vmov 0.0   ;;  %v13587_v11 = vmov 0.0   ;;  %v13591_v10 = vmov 0.0  }
  0x22   : > { %19093 = vst [vmem:[#allocation37_spill] sm:$0xff] %v13519_v39  ;;  %v13593_v25 = vmov 0.0   ;;  %v13595_v13 = vmov 0.0   ;;  %v13597_v26 = vmov 0.0   ;;  %v13599_v8 = vmov 0.0  }
  0x23   : > { %v13601_v17 = vmov 0.0   ;;  %v13603_v9 = vmov 0.0   ;;  %v13605_v18 = vmov 0.0   ;;  %v13607_v4 = vmov 0.0  }
  0x24   : > { %6356 = vmatmul.mubr.msk.f32.vlgmr.msra.gmra.mrb[0].mxu0 %vm281_vm0, %v268_v40  ;;  %6362 = vmatmul.mubr.msk.f32.vlgmr.msra.gmra.mrb[0].mxu1 %vm281_vm0, %v272_v41  ;;  %v13521_v40 = vmov 0.0   ;;  %v13523_v41 = vmov 0.0   ;;  %19098 = vst [vmem:[#allocation42_spill] sm:$0xff] %v13601_v17  ;;  %19099 = vst [vmem:[#allocation43_spill] sm:$0xff] %v13603_v9  ;;  %v13609_v2 = vmov 0.0   ;;  %v13611_v6 = vmov 0.0  }
  0x25   : > { %6358 = vmatprep.mubr.msk.f32.mxu0 %vm281_vm0, %v269_v42  ;;  %6364 = vmatprep.mubr.msk.f32.mxu1 %vm281_vm0, %v273_v43  ;;  %v13525_v42 = vmov 0.0   ;;  %v13527_v43 = vmov 0.0   ;;  %19100 = vst [vmem:[#allocation44_spill] sm:$0xff] %v13605_v18  ;;  %19101 = vst [vmem:[#allocation45_spill] sm:$0xff] %v13607_v4  ;;  %v13613_v15 = vmov 0.0   ;;  %v13615_v1 = vmov 0.0  }
  0x26   : > { %19102 = vst [vmem:[#allocation46_spill] sm:$0xff] %v13609_v2  ;;  %19103 = vst [vmem:[#allocation47_spill] sm:$0xff] %v13611_v6  ;;  %v13617_v0 = vmov 0.0   ;;  %v13619_v5 = vmov 0.0   ;;  %v13621_v14 = vmov 0.0   ;;  %v13623_v17 = vmov 0.0  }
  0x27   : > { %19104 = vst [vmem:[#allocation48_spill] sm:$0xff] %v13613_v15  ;;  %19105 = vst [vmem:[#allocation49_spill] sm:$0xff] %v13615_v1  ;;  %v13625_v9 = vmov 0.0   ;;  %v13627_v18 = vmov 0.0   ;;  %v13629_v4 = vmov 0.0   ;;  %v13631_v2 = vmov 0.0  }
  0x28   : > { %6359 = vmatmul.mubr.msk.f32.gmra.mrb[2].mxu0 %vm281_vm0, %v270_v44  ;;  %6365 = vmatmul.mubr.msk.f32.gmra.mrb[2].mxu1 %vm281_vm0, %v274_v45  ;;  %v13529_v44 = vmov 0.0   ;;  %v13531_v45 = vmov 0.0   ;;  %19106 = vst [vmem:[#allocation50_spill] sm:$0xff] %v13617_v0  ;;  %19107 = vst [vmem:[#allocation51_spill] sm:$0xff] %v13619_v5  ;;  %v13633_v6 = vmov 0.0   ;;  %v13635_v15 = vmov 0.0  }
  0x29   : > { %19108 = vst [vmem:[#allocation52_spill] sm:$0xff] %v13621_v14  ;;  %19109 = vst [vmem:[#allocation53_spill] sm:$0xff] %v13623_v17  ;;  %v13637_v1 = vmov 0.0   ;;  %v13639_v0 = vmov 0.0   ;;  %v13641_v5 = vmov 0.0   ;;  %v13643_v14 = vmov 0.0  }
  0x2a   : > { %19110 = vst [vmem:[#allocation54_spill] sm:$0xff] %v13625_v9  ;;  %19111 = vst [vmem:[#allocation55_spill] sm:$0xff] %v13627_v18  ;;  %v13645_v17 = vmov 0.0   ;;  %v13647_v9 = vmov 0.0   ;;  %v13649_v18 = vmov 0.0  }
  0x2b   : > { %19112 = vst [vmem:[#allocation56_spill] sm:$0xff] %v13629_v4  ;;  %19113 = vst [vmem:[#allocation57_spill] sm:$0xff] %v13631_v2  ;;  %v13651_v4 = vmov 0.0   ;;  %v13653_v2 = vmov 0.0  }
  0x2c   : > { %19114 = vst [vmem:[#allocation58_spill] sm:$0xff] %v13633_v6  ;;  %19115 = vst [vmem:[#allocation59_spill] sm:$0xff] %v13635_v15  ;;  %v13655_v6 = vmov 0.0   ;;  %v13657_v15 = vmov 0.0  }
  0x2d   : > { %19116 = vst [vmem:[#allocation60_spill] sm:$0xff] %v13637_v1  ;;  %19117 = vst [vmem:[#allocation61_spill] sm:$0xff] %v13639_v0  ;;  %v13659_v1 = vmov 0.0   ;;  %v13661_v0 = vmov 0.0  }
  0x2e   : > { %19118 = vst [vmem:[#allocation62_spill] sm:$0xff] %v13641_v5  ;;  %19119 = vst [vmem:[#allocation63_spill] sm:$0xff] %v13643_v14  ;;  %v13663_v5 = vmov 0.0   ;;  %v13665_v14 = vmov 0.0  }
  0x2f   : > { %19120 = vst [vmem:[#allocation64_spill] sm:$0xff] %v13645_v17  ;;  %19121 = vst [vmem:[#allocation65_spill] sm:$0xff] %v13647_v9  ;;  %v13667_v17 = vmov 0.0   ;;  %v13669_v9 = vmov 0.0  }
  0x30   : > { %19122 = vst [vmem:[#allocation66_spill] sm:$0xff] %v13649_v18  ;;  %19123 = vst [vmem:[#allocation67_spill] sm:$0xff] %v13651_v4  ;;  %v13671_v18 = vmov 0.0   ;;  %v13673_v4 = vmov 0.0  }
  0x31   : > { %19124 = vst [vmem:[#allocation68_spill] sm:$0xff] %v13653_v2  ;;  %19125 = vst [vmem:[#allocation69_spill] sm:$0xff] %v13655_v6  ;;  %v13675_v2 = vmov 0.0   ;;  %v13677_v6 = vmov 0.0  }
  0x32   : > { %19126 = vst [vmem:[#allocation70_spill] sm:$0xff] %v13657_v15  ;;  %19127 = vst [vmem:[#allocation71_spill] sm:$0xff] %v13659_v1  ;;  %v13679_v15 = vmov 0.0   ;;  %v13681_v1 = vmov 0.0  }
  0x33   : > { %19128 = vst [vmem:[#allocation72_spill] sm:$0xff] %v13661_v0  ;;  %19129 = vst [vmem:[#allocation73_spill] sm:$0xff] %v13663_v5  ;;  %v13683_v0 = vmov 0.0   ;;  %v13685_v5 = vmov 0.0  }
  0x34   : > { %19130 = vst [vmem:[#allocation74_spill] sm:$0xff] %v13665_v14  ;;  %19131 = vst [vmem:[#allocation75_spill] sm:$0xff] %v13667_v17  ;;  %v13687_v14 = vmov 0.0   ;;  %v13689_v17 = vmov 0.0  }
  0x35   : > { %19132 = vst [vmem:[#allocation76_spill] sm:$0xff] %v13669_v9  ;;  %19133 = vst [vmem:[#allocation77_spill] sm:$0xff] %v13671_v18  ;;  %v13691_v9 = vmov 0.0   ;;  %v13693_v18 = vmov 0.0  }
  0x36   : > { %19134 = vst [vmem:[#allocation78_spill] sm:$0xff] %v13673_v4  ;;  %19135 = vst [vmem:[#allocation79_spill] sm:$0xff] %v13675_v2  ;;  %v13695_v4 = vmov 0.0   ;;  %v13697_v2 = vmov 0.0  }
  0x37   : > { %19136 = vst [vmem:[#allocation80_spill] sm:$0xff] %v13677_v6  ;;  %19137 = vst [vmem:[#allocation81_spill] sm:$0xff] %v13679_v15  ;;  %v13699_v6 = vmov 0.0   ;;  %v13701_v15 = vmov 0.0  }
  0x38   : > { %19138 = vst [vmem:[#allocation82_spill] sm:$0xff] %v13681_v1  ;;  %19139 = vst [vmem:[#allocation83_spill] sm:$0xff] %v13683_v0  ;;  %v13703_v1 = vmov 0.0   ;;  %v13705_v0 = vmov 0.0  }
  0x39   : > { %19140 = vst [vmem:[#allocation84_spill] sm:$0xff] %v13685_v5  ;;  %19141 = vst [vmem:[#allocation85_spill] sm:$0xff] %v13687_v14  ;;  %v13707_v5 = vmov 0.0   ;;  %v13709_v14 = vmov 0.0  }
  0x3a   : > { %19142 = vst [vmem:[#allocation86_spill] sm:$0xff] %v13689_v17  ;;  %19143 = vst [vmem:[#allocation87_spill] sm:$0xff] %v13691_v9  ;;  %v13711_v17 = vmov 0.0   ;;  %v13713_v9 = vmov 0.0  }
  0x3b   : > { %19144 = vst [vmem:[#allocation88_spill] sm:$0xff] %v13693_v18  ;;  %19145 = vst [vmem:[#allocation89_spill] sm:$0xff] %v13695_v4  ;;  %v13715_v18 = vmov 0.0   ;;  %v13717_v4 = vmov 0.0  }
  0x3c   : > { %19146 = vst [vmem:[#allocation90_spill] sm:$0xff] %v13697_v2  ;;  %19147 = vst [vmem:[#allocation91_spill] sm:$0xff] %v13699_v6  ;;  %v13719_v2 = vmov 0.0   ;;  %v13741_v6 = vmov 0.0  }
  0x3d   : > { %19148 = vst [vmem:[#allocation92_spill] sm:$0xff] %v13701_v15  ;;  %19149 = vst [vmem:[#allocation93_spill] sm:$0xff] %v13703_v1  ;;  %v13721_v15 = vmov 0.0   ;;  %v13723_v1 = vmov 0.0  }
  0x3e   : > { %19150 = vst [vmem:[#allocation94_spill] sm:$0xff] %v13705_v0  ;;  %19151 = vst [vmem:[#allocation95_spill] sm:$0xff] %v13707_v5  ;;  %v13725_v0 = vmov 0.0   ;;  %v13727_v5 = vmov 0.0  }
  0x3f   : > { %19152 = vst [vmem:[#allocation96_spill] sm:$0xff] %v13709_v14  ;;  %19153 = vst [vmem:[#allocation97_spill] sm:$0xff] %v13711_v17  ;;  %v13729_v14 = vmov 0.0   ;;  %v13731_v17 = vmov 0.0  }
  0x40   : > { %19154 = vst [vmem:[#allocation98_spill] sm:$0xff] %v13713_v9  ;;  %19155 = vst [vmem:[#allocation99_spill] sm:$0xff] %v13715_v18  ;;  %v13733_v9 = vmov 0.0   ;;  %v13735_v18 = vmov 0.0  }
  0x41   : > { %19156 = vst [vmem:[#allocation100_spill] sm:$0xff] %v13717_v4  ;;  %19157 = vst [vmem:[#allocation101_spill] sm:$0xff] %v13719_v2  ;;  %v13737_v4 = vmov 0.0   ;;  %v13739_v2 = vmov 0.0  }
  0x42   : > { %19158 = vst [vmem:[#allocation102_spill] sm:$0xff] %v13721_v15  ;;  %19159 = vst [vmem:[#allocation103_spill] sm:$0xff] %v13723_v1  ;;  %v13743_v15 = vmov 0.0   ;;  %v13745_v1 = vmov 0.0  }
  0x43   : > { %19160 = vst [vmem:[#allocation104_spill] sm:$0xff] %v13725_v0  ;;  %19161 = vst [vmem:[#allocation105_spill] sm:$0xff] %v13727_v5  ;;  %v13747_v0 = vmov 0.0   ;;  %v13749_v5 = vmov 0.0  }
  0xf7   : > { %v6357_v49 = vpop.f32.mrb[0].mxu0  ;;  %v6363_v50 = vpop.f32.mrb[0].mxu1 }
  0xf8   : > { %v13466_v51 = vadd.f32 %v6357_v49, %v13463_v48  ;;  %v13469_v52 = vadd.f32 %v6363_v50, %v13463_v48  ;;  %v372_v53 = vpop.f32.mrb[1].mxu0  ;;  %v392_v54 = vpop.f32.mrb[1].mxu1  ;;  %v13535_v49 = vmov 0.0   ;;  %v13537_v50 = vmov 0.0  }
  0xf9   : > { %v13472_v55 = vadd.f32 %v372_v53, %v13463_v48  ;;  %v13475_v56 = vadd.f32 %v392_v54, %v13463_v48  ;;  %v13539_v53 = vmov 0.0   ;;  %v13541_v54 = vmov 0.0  }
  0xfa   : > { %19084 = vst [vmem:[#allocation29_spill] sm:$0xff] %v13466_v51  ;;  %19085 = vst [vmem:[#allocation30_spill] sm:$0xff] %v13469_v52  ;;  %v13573_v52 = vmov 0.0   ;;  %v13581_v51 = vmov 0.0   ;;  %5383 = sbr.rel (%p13491_p7) target bundleno = 4688 (0x1250), region = 73 }
  0xfb   : > { %19086 = vst [vmem:[#allocation31_spill] sm:$0xff] %v13472_v55  ;;  %19087 = vst [vmem:[#allocation32_spill] sm:$0xff] %v13475_v56  ;;  %v6360_v57 = vpop.f32.mrb[2].mxu0  ;;  %v6366_v58 = vpop.f32.mrb[2].mxu1  ;;  %v13575_v56 = vmov 0.0   ;;  %v13583_v55 = vmov 0.0  }
  0xfc   : > { %v13478_v59 = vadd.f32 %v6360_v57, %v13463_v48  ;;  %v13481_v60 = vadd.f32 %v6366_v58, %v13463_v48  ;;  %v382_v61 = vpop.f32.mrb[3].mxu0  ;;  %v402_v62 = vpop.f32.mrb[3].mxu1  ;;  %v13543_v57 = vmov 0.0   ;;  %v13545_v58 = vmov 0.0  }
  0xfd   : > { %v13484_v63 = vadd.f32 %v382_v61, %v13463_v48  ;;  %v13487_v7 = vadd.f32 %v402_v62, %v13463_v48  ;;  %19094 = vst [vmem:[#allocation38_spill] sm:$0xff] %v13543_v57  ;;  %19095 = vst [vmem:[#allocation39_spill] sm:$0xff] %v13545_v58  ;;  %v13547_v61 = vmov 0.0   ;;  %v13549_v62 = vmov 0.0  }
  0xfe   : > { %19088 = vst [vmem:[#allocation33_spill] sm:$0xff] %v13478_v59  ;;  %19089 = vst [vmem:[#allocation34_spill] sm:$0xff] %v13481_v60  ;;  %v13569_v60 = vmov 0.0   ;;  %v13577_v59 = vmov 0.0   ;;  %v13589_v48 = vmov 0.0  }
  0xff   : > { %19090 = vst [vmem:[#allocation35_spill] sm:$0xff] %v13484_v63  ;;  %19091 = vst [vmem:[#allocation36_spill] sm:$0xff] %v13487_v7  ;;  %v13571_v7 = vmov 0.0   ;;  %v13579_v63 = vmov 0.0  }
 0x100   : > { %19096 = vst [vmem:[#allocation40_spill] sm:$0xff] %v13547_v61  ;;  %19097 = vst [vmem:[#allocation41_spill] sm:$0xff] %v13549_v62 }
 0x101   : > { %v13753_v0 = vmov 0.0   ;;  %v13755_v1 = vmov 0.0   ;;  %v13757_v2 = vmov 0.0   ;;  %v13759_v3 = vmov 0.0   ;;  %s14137_s14 = smov 0  }
 0x102   : > { %v13761_v4 = vmov 0.0   ;;  %v13763_v5 = vmov 0.0   ;;  %v13765_v6 = vmov 0.0   ;;  %v13767_v7 = vmov 0.0  }
 0x103   : > { %19162 = vst [vmem:[#allocation37_spill] sm:$0xff] %v13763_v5  ;;  %v13769_v8 = vmov 0.0   ;;  %v13771_v9 = vmov 0.0   ;;  %v13773_v10 = vmov 0.0   ;;  %v13775_v11 = vmov 0.0  }
 0x104   : > { %19163 = vst [vmem:[#allocation38_spill] sm:$0xff] %v13771_v9  ;;  %v13777_v13 = vmov 0.0   ;;  %v13779_v14 = vmov 0.0   ;;  %v13781_v15 = vmov 0.0   ;;  %v13783_v17 = vmov 0.0  }
 0x105   : > { %v13785_v18 = vmov -1e+30   ;;  %v13787_v20 = vmov -1e+30   ;;  %v13789_v25 = vmov -1e+30  }
 0x106   : > { %19164 = vst [vmem:[#allocation39_spill] sm:$0xff] %v13785_v18  ;;  %19165 = vst [vmem:[#allocation40_spill] sm:$0xff] %v13787_v20  ;;  %v13791_v26 = vmov -1e+30   ;;  %v13793_v31 = vmov -1e+30  }
 0x107   : > { %v13795_v32 = vmov -1e+30   ;;  %v13797_v33 = vmov -1e+30   ;;  %v13799_v34 = vmov -1e+30  }
 0x108   : > { %v13801_v36 = vmov 0.0   ;;  %v13803_v37 = vmov 0.0   ;;  %v13805_v38 = vmov 0.0   ;;  %v13807_v47 = vmov 0.0  }
 0x109   : > { %19166 = vst [vmem:[#allocation41_spill] sm:$0xff] %v13801_v36  ;;  %v13809_v48 = vmov 0.0   ;;  %v13811_v51 = vmov 0.0   ;;  %v13813_v52 = vmov 0.0   ;;  %v13815_v55 = vmov 0.0  }
 0x10a   : > { %19167 = vst [vmem:[#allocation42_spill] sm:$0xff] %v13809_v48  ;;  %19168 = vst [vmem:[#allocation43_spill] sm:$0xff] %v13813_v52  ;;  %v13817_v56 = vmov 0.0   ;;  %v13819_v59 = vmov 0.0   ;;  %v13821_v60 = vmov 0.0   ;;  %v13823_v63 = vmov 0.0  }
 0x10b   : > { %19169 = vst [vmem:[#allocation44_spill] sm:$0xff] %v13819_v59  ;;  %v13825_v12 = vmov 0.0   ;;  %v13827_v16 = vmov 0.0   ;;  %v13829_v19 = vmov 0.0   ;;  %v13831_v21 = vmov 0.0  }
 0x10c   : > { %v13833_v22 = vmov -1e+30   ;;  %v13835_v23 = vmov -1e+30   ;;  %v13837_v24 = vmov -1e+30  }
 0x10d   : > { %v13839_v27 = vmov -1e+30   ;;  %v13841_v28 = vmov -1e+30   ;;  %v13843_v29 = vmov -1e+30  }
 0x10e   : > { %19170 = vst [vmem:[#allocation45_spill] sm:$0xff] %v13843_v29  ;;  %v13845_v30 = vmov -1e+30   ;;  %v13847_v35 = vmov -1e+30   ;;  %v13849_v39 = vmov 0.0  }
 0x10f   : > { %19171 = vst [vmem:[#allocation46_spill] sm:$0xff] %v13847_v35  ;;  %19172 = vst [vmem:[#allocation47_spill] sm:$0xff] %v13849_v39  ;;  %v13851_v40 = vmov 0.0   ;;  %v13853_v41 = vmov 0.0   ;;  %v13855_v42 = vmov 0.0   ;;  %v13857_v43 = vmov 0.0  }
 0x110   : > { %19173 = vst [vmem:[#allocation48_spill] sm:$0xff] %v13853_v41  ;;  %v13859_v44 = vmov 0.0   ;;  %v13861_v45 = vmov 0.0   ;;  %v13863_v46 = vmov 0.0   ;;  %v13865_v49 = vmov 0.0  }
 0x111   : > { %19174 = vst [vmem:[#allocation49_spill] sm:$0xff] %v13859_v44  ;;  %19175 = vst [vmem:[#allocation50_spill] sm:$0xff] %v13861_v45  ;;  %v13867_v50 = vmov 0.0   ;;  %v13869_v53 = vmov 0.0   ;;  %v13871_v54 = vmov 0.0   ;;  %v13873_v57 = vmov 0.0  }
 0x112   : > { %19176 = vst [vmem:[#allocation51_spill] sm:$0xff] %v13863_v46  ;;  %19177 = vst [vmem:[#allocation52_spill] sm:$0xff] %v13865_v49  ;;  %v13875_v58 = vmov 0.0   ;;  %v13877_v61 = vmov 0.0   ;;  %v13879_v62 = vmov 0.0  }
 0x113   : > { %19178 = vst [vmem:[#allocation53_spill] sm:$0xff] %v13867_v50  ;;  %19179 = vst [vmem:[#allocation54_spill] sm:$0xff] %v13869_v53  ;;  %v13881_v44 = vmov -1e+30   ;;  %v13883_v45 = vmov -1e+30  }
 0x114   : > { %19180 = vst [vmem:[#allocation55_spill] sm:$0xff] %v13871_v54  ;;  %19181 = vst [vmem:[#allocation56_spill] sm:$0xff] %v13873_v57  ;;  %v13885_v46 = vmov -1e+30   ;;  %v13887_v49 = vmov -1e+30  }
 0x115   : > { %19182 = vst [vmem:[#allocation57_spill] sm:$0xff] %v13875_v58  ;;  %19183 = vst [vmem:[#allocation58_spill] sm:$0xff] %v13877_v61  ;;  %v13889_v50 = vmov -1e+30   ;;  %v13891_v53 = vmov -1e+30  }
 0x116   : > { %19184 = vst [vmem:[#allocation59_spill] sm:$0xff] %v13879_v62  ;;  %19185 = vst [vmem:[#allocation60_spill] sm:$0xff] %v13881_v44  ;;  %v13893_v54 = vmov -1e+30   ;;  %v13895_v57 = vmov -1e+30  }
 0x117   : > { %19186 = vst [vmem:[#allocation61_spill] sm:$0xff] %v13883_v45  ;;  %19187 = vst [vmem:[#allocation62_spill] sm:$0xff] %v13885_v46  ;;  %v13897_v58 = vmov 0.0   ;;  %v13899_v61 = vmov 0.0   ;;  %v13901_v62 = vmov 0.0   ;;  %v13903_v44 = vmov 0.0  }
 0x118   : > { %19188 = vst [vmem:[#allocation63_spill] sm:$0xff] %v13887_v49  ;;  %19189 = vst [vmem:[#allocation64_spill] sm:$0xff] %v13889_v50  ;;  %v13905_v45 = vmov 0.0   ;;  %v13907_v46 = vmov 0.0   ;;  %v13909_v49 = vmov 0.0   ;;  %v13911_v50 = vmov 0.0  }
 0x119   : > { %19190 = vst [vmem:[#allocation65_spill] sm:$0xff] %v13891_v53  ;;  %19191 = vst [vmem:[#allocation66_spill] sm:$0xff] %v13893_v54  ;;  %v13913_v53 = vmov 0.0   ;;  %v13915_v54 = vmov 0.0  }
 0x11a   : > { %19192 = vst [vmem:[#allocation67_spill] sm:$0xff] %v13895_v57  ;;  %19193 = vst [vmem:[#allocation68_spill] sm:$0xff] %v13897_v58  ;;  %v13917_v57 = vmov 0.0   ;;  %v13919_v58 = vmov 0.0  }
 0x11b   : > { %19194 = vst [vmem:[#allocation69_spill] sm:$0xff] %v13899_v61  ;;  %19195 = vst [vmem:[#allocation70_spill] sm:$0xff] %v13901_v62  ;;  %v13921_v61 = vmov 0.0   ;;  %v13923_v62 = vmov 0.0  }
 0x11c   : > { %19196 = vst [vmem:[#allocation71_spill] sm:$0xff] %v13903_v44  ;;  %19197 = vst [vmem:[#allocation72_spill] sm:$0xff] %v13905_v45  ;;  %v13925_v44 = vmov 0.0   ;;  %v13927_v45 = vmov 0.0  }
 0x11d   : > { %19198 = vst [vmem:[#allocation73_spill] sm:$0xff] %v13907_v46  ;;  %19199 = vst [vmem:[#allocation74_spill] sm:$0xff] %v13909_v49  ;;  %v13929_v46 = vmov -1e+30   ;;  %v13931_v49 = vmov -1e+30  }
 0x11e   : > { %19200 = vst [vmem:[#allocation75_spill] sm:$0xff] %v13911_v50  ;;  %19201 = vst [vmem:[#allocation76_spill] sm:$0xff] %v13913_v53  ;;  %v13933_v50 = vmov -1e+30   ;;  %v13935_v53 = vmov -1e+30  }
 0x11f   : > { %19202 = vst [vmem:[#allocation77_spill] sm:$0xff] %v13915_v54  ;;  %19203 = vst [vmem:[#allocation78_spill] sm:$0xff] %v13917_v57  ;;  %v13937_v54 = vmov -1e+30   ;;  %v13939_v57 = vmov -1e+30  }
 0x120   : > { %19204 = vst [vmem:[#allocation79_spill] sm:$0xff] %v13919_v58  ;;  %19205 = vst [vmem:[#allocation80_spill] sm:$0xff] %v13921_v61  ;;  %v13941_v58 = vmov -1e+30   ;;  %v13943_v61 = vmov -1e+30  }
 0x121   : > { %19206 = vst [vmem:[#allocation81_spill] sm:$0xff] %v13923_v62  ;;  %19207 = vst [vmem:[#allocation82_spill] sm:$0xff] %v13925_v44  ;;  %v13945_v62 = vmov 0.0   ;;  %v13947_v44 = vmov 0.0  }
 0x122   : > { %19208 = vst [vmem:[#allocation83_spill] sm:$0xff] %v13927_v45  ;;  %19209 = vst [vmem:[#allocation84_spill] sm:$0xff] %v13929_v46  ;;  %v13949_v45 = vmov 0.0   ;;  %v13951_v46 = vmov 0.0  }
 0x123   : > { %19210 = vst [vmem:[#allocation85_spill] sm:$0xff] %v13931_v49  ;;  %19211 = vst [vmem:[#allocation86_spill] sm:$0xff] %v13933_v50  ;;  %v13953_v49 = vmov 0.0   ;;  %v13955_v50 = vmov 0.0  }
 0x124   : > { %19212 = vst [vmem:[#allocation87_spill] sm:$0xff] %v13935_v53  ;;  %19213 = vst [vmem:[#allocation88_spill] sm:$0xff] %v13937_v54  ;;  %v13957_v53 = vmov 0.0   ;;  %v13959_v54 = vmov 0.0  }
 0x125   : > { %19214 = vst [vmem:[#allocation89_spill] sm:$0xff] %v13939_v57  ;;  %19215 = vst [vmem:[#allocation90_spill] sm:$0xff] %v13941_v58  ;;  %v13961_v57 = vmov 0.0   ;;  %v13963_v58 = vmov 0.0  }
 0x126   : > { %19216 = vst [vmem:[#allocation91_spill] sm:$0xff] %v13943_v61  ;;  %19217 = vst [vmem:[#allocation92_spill] sm:$0xff] %v13945_v62  ;;  %v13965_v61 = vmov 0.0   ;;  %v13967_v62 = vmov 0.0  }
 0x127   : > { %19218 = vst [vmem:[#allocation93_spill] sm:$0xff] %v13947_v44  ;;  %19219 = vst [vmem:[#allocation94_spill] sm:$0xff] %v13949_v45  ;;  %v13969_v44 = vmov 0.0   ;;  %v13971_v45 = vmov 0.0  }
 0x128   : > { %19220 = vst [vmem:[#allocation95_spill] sm:$0xff] %v13951_v46  ;;  %19221 = vst [vmem:[#allocation96_spill] sm:$0xff] %v13953_v49  ;;  %v13973_v46 = vmov 0.0   ;;  %v13975_v49 = vmov 0.0  }
 0x129   : > { %19222 = vst [vmem:[#allocation97_spill] sm:$0xff] %v13955_v50  ;;  %19223 = vst [vmem:[#allocation98_spill] sm:$0xff] %v13957_v53  ;;  %v13977_v50 = vmov -1e+30   ;;  %v13979_v53 = vmov -1e+30  }
 0x12a   : > { %19224 = vst [vmem:[#allocation99_spill] sm:$0xff] %v13959_v54  ;;  %19225 = vst [vmem:[#allocation100_spill] sm:$0xff] %v13961_v57  ;;  %v13981_v54 = vmov -1e+30   ;;  %v13983_v57 = vmov -1e+30  }
 0x12b   : > { %19226 = vst [vmem:[#allocation101_spill] sm:$0xff] %v13963_v58  ;;  %19227 = vst [vmem:[#allocation102_spill] sm:$0xff] %v13965_v61  ;;  %v13985_v58 = vmov -1e+30   ;;  %v13987_v61 = vmov -1e+30  }
 0x12c   : > { %19228 = vst [vmem:[#allocation103_spill] sm:$0xff] %v13967_v62  ;;  %19229 = vst [vmem:[#allocation104_spill] sm:$0xff] %v13969_v44  ;;  %v13989_v62 = vmov -1e+30   ;;  %v13991_v44 = vmov -1e+30  }
 0x12d   : > { %19230 = vst [vmem:[#allocation105_spill] sm:$0xff] %v13971_v45  ;;  %19231 = vst [vmem:[#allocation106_spill] sm:$0xff] %v13973_v46  ;;  %v13993_v45 = vmov 0.0   ;;  %v13995_v46 = vmov 0.0  }
 0x12e   : > { %19232 = vst [vmem:[#allocation107_spill] sm:$0xff] %v13975_v49  ;;  %19233 = vst [vmem:[#allocation108_spill] sm:$0xff] %v13977_v50  ;;  %v13997_v49 = vmov 0.0   ;;  %v13999_v50 = vmov 0.0  }
 0x12f   : > { %19234 = vst [vmem:[#allocation109_spill] sm:$0xff] %v13979_v53  ;;  %19235 = vst [vmem:[#allocation110_spill] sm:$0xff] %v13981_v54  ;;  %v14001_v53 = vmov 0.0   ;;  %v14003_v54 = vmov 0.0  }
 0x130   : > { %19236 = vst [vmem:[#allocation111_spill] sm:$0xff] %v13983_v57  ;;  %19237 = vst [vmem:[#allocation112_spill] sm:$0xff] %v13985_v58  ;;  %v14005_v57 = vmov 0.0   ;;  %v14007_v58 = vmov 0.0  }
 0x131   : > { %19238 = vst [vmem:[#allocation113_spill] sm:$0xff] %v13987_v61  ;;  %19239 = vst [vmem:[#allocation114_spill] sm:$0xff] %v13989_v62  ;;  %v14009_v61 = vmov 0.0   ;;  %v14011_v62 = vmov 0.0  }
 0x132   : > { %19240 = vst [vmem:[#allocation115_spill] sm:$0xff] %v13991_v44  ;;  %19241 = vst [vmem:[#allocation116_spill] sm:$0xff] %v13993_v45  ;;  %v14013_v44 = vmov 0.0   ;;  %v14015_v45 = vmov 0.0  }
 0x133   : > { %19242 = vst [vmem:[#allocation117_spill] sm:$0xff] %v13995_v46  ;;  %19243 = vst [vmem:[#allocation118_spill] sm:$0xff] %v13997_v49  ;;  %v14017_v46 = vmov 0.0   ;;  %v14019_v49 = vmov 0.0  }
 0x134   : > { %19244 = vst [vmem:[#allocation119_spill] sm:$0xff] %v13999_v50  ;;  %19245 = vst [vmem:[#allocation120_spill] sm:$0xff] %v14001_v53  ;;  %v14021_v50 = vmov 0.0   ;;  %v14023_v53 = vmov 0.0  }
 0x135   : > { %19246 = vst [vmem:[#allocation121_spill] sm:$0xff] %v14003_v54  ;;  %19247 = vst [vmem:[#allocation122_spill] sm:$0xff] %v14005_v57  ;;  %v14025_v54 = vmov -1e+30   ;;  %v14027_v57 = vmov -1e+30  }
 0x136   : > { %19248 = vst [vmem:[#allocation123_spill] sm:$0xff] %v14007_v58  ;;  %19249 = vst [vmem:[#allocation124_spill] sm:$0xff] %v14009_v61  ;;  %v14029_v58 = vmov -1e+30   ;;  %v14031_v61 = vmov -1e+30  }
 0x137   : > { %19250 = vst [vmem:[#allocation125_spill] sm:$0xff] %v14011_v62  ;;  %19251 = vst [vmem:[#allocation126_spill] sm:$0xff] %v14013_v44  ;;  %v14033_v62 = vmov -1e+30   ;;  %v14035_v44 = vmov -1e+30  }
 0x138   : > { %19252 = vst [vmem:[#allocation127_spill] sm:$0xff] %v14015_v45  ;;  %19253 = vst [vmem:[#allocation128_spill] sm:$0xff] %v14017_v46  ;;  %v14037_v45 = vmov -1e+30   ;;  %v14039_v46 = vmov -1e+30  }
 0x139   : > { %19254 = vst [vmem:[#allocation129_spill] sm:$0xff] %v14019_v49  ;;  %19255 = vst [vmem:[#allocation130_spill] sm:$0xff] %v14021_v50  ;;  %v14041_v49 = vmov 0.0   ;;  %v14043_v50 = vmov 0.0  }
 0x13a   : > { %19256 = vst [vmem:[#allocation131_spill] sm:$0xff] %v14023_v53  ;;  %19257 = vst [vmem:[#allocation132_spill] sm:$0xff] %v14025_v54  ;;  %v14045_v53 = vmov 0.0   ;;  %v14047_v54 = vmov 0.0  }
 0x13b   : > { %19258 = vst [vmem:[#allocation133_spill] sm:$0xff] %v14027_v57  ;;  %19259 = vst [vmem:[#allocation134_spill] sm:$0xff] %v14029_v58  ;;  %v14049_v57 = vmov 0.0   ;;  %v14051_v58 = vmov 0.0  }
 0x13c   : > { %19260 = vst [vmem:[#allocation135_spill] sm:$0xff] %v14031_v61  ;;  %19261 = vst [vmem:[#allocation136_spill] sm:$0xff] %v14033_v62  ;;  %v14053_v61 = vmov 0.0   ;;  %v14055_v62 = vmov 0.0  }
 0x13d   : > { %19262 = vst [vmem:[#allocation137_spill] sm:$0xff] %v14035_v44  ;;  %19263 = vst [vmem:[#allocation138_spill] sm:$0xff] %v14037_v45  ;;  %v14057_v44 = vmov 0.0   ;;  %v14059_v45 = vmov 0.0  }
 0x13e   : > { %19264 = vst [vmem:[#allocation139_spill] sm:$0xff] %v14039_v46  ;;  %19265 = vst [vmem:[#allocation140_spill] sm:$0xff] %v14041_v49  ;;  %v14061_v46 = vmov 0.0   ;;  %v14063_v49 = vmov 0.0  }
 0x13f   : > { %19266 = vst [vmem:[#allocation141_spill] sm:$0xff] %v14043_v50  ;;  %19267 = vst [vmem:[#allocation142_spill] sm:$0xff] %v14045_v53  ;;  %v14065_v50 = vmov 0.0   ;;  %v14067_v53 = vmov 0.0  }
 0x140   : > { %19268 = vst [vmem:[#allocation143_spill] sm:$0xff] %v14047_v54  ;;  %19269 = vst [vmem:[#allocation144_spill] sm:$0xff] %v14049_v57  ;;  %v14069_v54 = vmov 0.0   ;;  %v14071_v57 = vmov 0.0  }
 0x141   : > { %19270 = vst [vmem:[#allocation145_spill] sm:$0xff] %v14051_v58  ;;  %19271 = vst [vmem:[#allocation146_spill] sm:$0xff] %v14053_v61  ;;  %v14073_v58 = vmov -1e+30   ;;  %v14075_v61 = vmov -1e+30  }
 0x142   : > { %19272 = vst [vmem:[#allocation147_spill] sm:$0xff] %v14055_v62  ;;  %19273 = vst [vmem:[#allocation148_spill] sm:$0xff] %v14057_v44  ;;  %v14077_v62 = vmov -1e+30   ;;  %v14079_v44 = vmov -1e+30  }
 0x143   : > { %19274 = vst [vmem:[#allocation149_spill] sm:$0xff] %v14059_v45  ;;  %19275 = vst [vmem:[#allocation150_spill] sm:$0xff] %v14061_v46  ;;  %v14081_v45 = vmov -1e+30   ;;  %v14083_v46 = vmov -1e+30  }
 0x144   : > { %19276 = vst [vmem:[#allocation151_spill] sm:$0xff] %v14063_v49  ;;  %19277 = vst [vmem:[#allocation152_spill] sm:$0xff] %v14065_v50  ;;  %v14085_v49 = vmov -1e+30   ;;  %v14087_v50 = vmov -1e+30  }
 0x145   : > { %19278 = vst [vmem:[#allocation153_spill] sm:$0xff] %v14067_v53  ;;  %19279 = vst [vmem:[#allocation154_spill] sm:$0xff] %v14069_v54  ;;  %v14089_v53 = vmov 0.0   ;;  %v14091_v54 = vmov 0.0  }
 0x146   : > { %19280 = vst [vmem:[#allocation155_spill] sm:$0xff] %v14071_v57  ;;  %19281 = vst [vmem:[#allocation156_spill] sm:$0xff] %v14073_v58  ;;  %v14093_v57 = vmov 0.0   ;;  %v14095_v58 = vmov 0.0  }
 0x147   : > { %19282 = vst [vmem:[#allocation157_spill] sm:$0xff] %v14075_v61  ;;  %19283 = vst [vmem:[#allocation158_spill] sm:$0xff] %v14077_v62  ;;  %v14097_v61 = vmov 0.0   ;;  %v14099_v62 = vmov 0.0  }
 0x148   : > { %19284 = vst [vmem:[#allocation159_spill] sm:$0xff] %v14079_v44  ;;  %19285 = vst [vmem:[#allocation160_spill] sm:$0xff] %v14081_v45  ;;  %v14101_v44 = vmov 0.0   ;;  %v14103_v45 = vmov 0.0  }
 0x149   : > { %19286 = vst [vmem:[#allocation161_spill] sm:$0xff] %v14083_v46  ;;  %19287 = vst [vmem:[#allocation162_spill] sm:$0xff] %v14085_v49  ;;  %v14105_v46 = vmov 0.0   ;;  %v14107_v49 = vmov 0.0  }
 0x14a   : > { %19288 = vst [vmem:[#allocation163_spill] sm:$0xff] %v14087_v50  ;;  %19289 = vst [vmem:[#allocation164_spill] sm:$0xff] %v14089_v53  ;;  %v14109_v50 = vmov 0.0   ;;  %v14111_v53 = vmov 0.0  }
 0x14b   : > { %19290 = vst [vmem:[#allocation165_spill] sm:$0xff] %v14091_v54  ;;  %19291 = vst [vmem:[#allocation166_spill] sm:$0xff] %v14093_v57  ;;  %v14113_v54 = vmov 0.0   ;;  %v14115_v57 = vmov 0.0  }
 0x14c   : > { %19292 = vst [vmem:[#allocation167_spill] sm:$0xff] %v14095_v58  ;;  %19293 = vst [vmem:[#allocation168_spill] sm:$0xff] %v14097_v61  ;;  %v14117_v58 = vmov 0.0   ;;  %v14119_v61 = vmov 0.0  }
 0x14d   : > { %19294 = vst [vmem:[#allocation169_spill] sm:$0xff] %v14099_v62  ;;  %19295 = vst [vmem:[#allocation170_spill] sm:$0xff] %v14101_v44  ;;  %v14121_v62 = vmov -1e+30   ;;  %v14123_v44 = vmov -1e+30  }
 0x14e   : > { %19296 = vst [vmem:[#allocation171_spill] sm:$0xff] %v14103_v45  ;;  %19297 = vst [vmem:[#allocation172_spill] sm:$0xff] %v14105_v46  ;;  %v14125_v45 = vmov -1e+30   ;;  %v14127_v46 = vmov -1e+30  }
 0x14f   : > { %19298 = vst [vmem:[#allocation173_spill] sm:$0xff] %v14107_v49  ;;  %19299 = vst [vmem:[#allocation174_spill] sm:$0xff] %v14109_v50  ;;  %v14129_v49 = vmov -1e+30   ;;  %v14131_v50 = vmov -1e+30  }
 0x150   : > { %19300 = vst [vmem:[#allocation175_spill] sm:$0xff] %v14111_v53  ;;  %19301 = vst [vmem:[#allocation176_spill] sm:$0xff] %v14113_v54  ;;  %v14133_v53 = vmov -1e+30   ;;  %v14135_v54 = vmov -1e+30  }
 0x151   : > { %19302 = vst [vmem:[#allocation177_spill] sm:$0xff] %v14115_v57  ;;  %19303 = vst [vmem:[#allocation178_spill] sm:$0xff] %v14117_v58 }
 0x152   : > { %19304 = vst [vmem:[#allocation179_spill] sm:$0xff] %v14119_v61  ;;  %19305 = vst [vmem:[#allocation180_spill] sm:$0xff] %v14121_v62 }
 0x153   : > { %19306 = vst [vmem:[#allocation181_spill] sm:$0xff] %v14123_v44  ;;  %19307 = vst [vmem:[#allocation182_spill] sm:$0xff] %v14125_v45 }
 0x154   : > { %19308 = vst [vmem:[#allocation183_spill] sm:$0xff] %v14127_v46  ;;  %19309 = vst [vmem:[#allocation184_spill] sm:$0xff] %v14129_v49 }
 0x155   : > { %19310 = vst [vmem:[#allocation185_spill] sm:$0xff] %v14131_v50  ;;  %19311 = vst [vmem:[#allocation186_spill] sm:$0xff] %v14133_v53 }
 0x156   : > { %19312 = vst [vmem:[#allocation187_spill] sm:$0xff] %v14135_v54 }
 0x157 LB: >> { %19464 = vst [vmem:[#allocation188_spill] sm:$0xff] %v11935_v0  ;;  %19465 = vst [vmem:[#allocation189_spill] sm:$0xff] %v11939_v1  ;;  %v19469_v5 = vld [vmem:[#allocation37_spill] sm:$0xff]  ;;  %v19474_v9 = vld [vmem:[#allocation38_spill] sm:$0xff]  ;;  %s13217_s15 = smov 64   ;;  %s5822_s16 = sshll.u32 %s12703_s14, 6  ;;  %s12703_s14 = sphi %s14137_s14, %s20856_s14   ;;  %v12143_v43 = vphi %v13857_v43, %v20577_v43   ;;  %v12139_v42 = vphi %v13855_v42, %v20576_v42   ;;  %v12131_v40 = vphi %v13851_v40, %v20573_v40   ;;  %v12119_v30 = vphi %v13845_v30, %v20568_v30   ;;  %v12111_v28 = vphi %v13841_v28, %v20565_v28   ;;  %v12107_v27 = vphi %v13839_v27, %v20564_v27   ;;  %v12103_v24 = vphi %v13837_v24, %v20563_v24   ;;  %v12099_v23 = vphi %v13835_v23, %v20562_v23   ;;  %v12095_v22 = vphi %v13833_v22, %v20561_v22   ;;  %v12091_v21 = vphi %v13831_v21, %v20560_v21   ;;  %v12087_v19 = vphi %v13829_v19, %v20559_v19   ;;  %v12083_v16 = vphi %v13827_v16, %v20558_v16   ;;  %v12079_v12 = vphi %v13825_v12, %v20557_v12   ;;  %v12075_v63 = vphi %v13823_v63, %v20556_v63   ;;  %v12071_v60 = vphi %v13821_v60, %v20555_v60   ;;  %v12063_v56 = vphi %v13817_v56, %v20553_v56   ;;  %v12059_v55 = vphi %v13815_v55, %v20552_v55   ;;  %v12051_v51 = vphi %v13811_v51, %v20549_v51   ;;  %v12043_v47 = vphi %v13807_v47, %v20546_v47   ;;  %v12039_v38 = vphi %v13805_v38, %v20545_v38   ;;  %v12035_v37 = vphi %v13803_v37, %v20544_v37   ;;  %v12027_v34 = vphi %v13799_v34, %v20542_v34   ;;  %v12023_v33 = vphi %v13797_v33, %v20541_v33   ;;  %v12019_v32 = vphi %v13795_v32, %v20540_v32   ;;  %v12015_v31 = vphi %v13793_v31, %v20539_v31   ;;  %v12011_v26 = vphi %v13791_v26, %v20538_v26   ;;  %v12007_v25 = vphi %v13789_v25, %v20537_v25   ;;  %v11995_v17 = vphi %v13783_v17, %v20534_v17   ;;  %v11991_v15 = vphi %v13781_v15, %v20533_v15   ;;  %v11987_v14 = vphi %v13779_v14, %v20532_v14   ;;  %v11983_v13 = vphi %v13777_v13, %v20531_v13   ;;  %v11979_v11 = vphi %v13775_v11, %v20530_v11   ;;  %v11975_v10 = vphi %v13773_v10, %v20529_v10   ;;  %v11967_v8 = vphi %v13769_v8, %v20527_v8   ;;  %v11963_v7 = vphi %v13767_v7, %v20526_v7   ;;  %v11959_v6 = vphi %v13765_v6, %v20525_v6   ;;  %v11951_v4 = vphi %v13761_v4, %v20523_v4   ;;  %v11947_v3 = vphi %v13759_v3, %v20522_v3   ;;  %v11943_v2 = vphi %v13757_v2, %v20521_v2   ;;  %v11939_v1 = vphi %v13755_v1, %v20520_v1   ;;  %v11935_v0 = vphi %v13753_v0, %v20519_v0  }
 0x158   : >> { %19466 = vst [vmem:[#allocation190_spill] sm:$0xff] %v11943_v2  ;;  %19467 = vst [vmem:[#allocation191_spill] sm:$0xff] %v11947_v3  ;;  %v19482_v18 = vld [vmem:[#allocation39_spill] sm:$0xff]  ;;  %v19484_v20 = vld [vmem:[#allocation40_spill] sm:$0xff]  ;;  %s14744_s17 = scalar_lea.vmem %s13395_s25, %s5822_s16  ;;  %vm853_vm1 = vcmask 64512   ;;  %s13218_s26 = smov 120  }
 0x159   : >> { %19468 = vst [vmem:[#allocation192_spill] sm:$0xff] %v11951_v4  ;;  %19470 = vst [vmem:[#allocation37_spill] sm:$0xff] %v19469_v5  ;;  %v19492_v36 = vld [vmem:[#allocation41_spill] sm:$0xff]  ;;  %v19497_v48 = vld [vmem:[#allocation42_spill] sm:$0xff]  ;;  %s13219_s19 = smov 56   ;;  %s13220_s27 = smov 112  }
 0x15a   : >> { %19471 = vst [vmem:[#allocation193_spill] sm:$0xff] %v11959_v6  ;;  %19472 = vst [vmem:[#allocation194_spill] sm:$0xff] %v11963_v7  ;;  %v19500_v52 = vld [vmem:[#allocation43_spill] sm:$0xff]  ;;  %v19504_v59 = vld [vmem:[#allocation44_spill] sm:$0xff]  ;;  %s13221_s28 = smov 48   ;;  %s13222_s29 = smov 104  }
 0x15b   : >> { %19473 = vst [vmem:[#allocation195_spill] sm:$0xff] %v11967_v8  ;;  %19475 = vst [vmem:[#allocation38_spill] sm:$0xff] %v19474_v9  ;;  %v19517_v29 = vld [vmem:[#allocation45_spill] sm:$0xff]  ;;  %v19520_v35 = vld [vmem:[#allocation46_spill] sm:$0xff]  ;;  %s13223_s30 = smov 40   ;;  %s13224_s6 = smov 96  }
 0x15c   : >> { %19476 = vst [vmem:[#allocation196_spill] sm:$0xff] %v11975_v10  ;;  %19477 = vst [vmem:[#allocation197_spill] sm:$0xff] %v11979_v11  ;;  %v19522_v39 = vld [vmem:[#allocation47_spill] sm:$0xff]  ;;  %v19525_v41 = vld [vmem:[#allocation48_spill] sm:$0xff]  ;;  %s13225_s7 = smov 32   ;;  %s13226_s8 = smov 88  }
 0x15d   : >> { %19478 = vst [vmem:[#allocation198_spill] sm:$0xff] %v11983_v13  ;;  %19479 = vst [vmem:[#allocation199_spill] sm:$0xff] %v11987_v14  ;;  %v19529_v1 = vld [vmem:[#allocation49_spill] sm:$0xff]  ;;  %v19531_v0 = vld [vmem:[#allocation50_spill] sm:$0xff]  ;;  %s13227_s10 = smov 24   ;;  %s13228_s11 = smov 80  }
 0x15e   : >> { %19480 = vst [vmem:[#allocation200_spill] sm:$0xff] %v11991_v15  ;;  %19481 = vst [vmem:[#allocation201_spill] sm:$0xff] %v11995_v17  ;;  %v19533_v3 = vld [vmem:[#allocation51_spill] sm:$0xff]  ;;  %v19535_v2 = vld [vmem:[#allocation52_spill] sm:$0xff]  ;;  %s13229_s12 = smov 16  }
 0x15f   : >> { %19483 = vst [vmem:[#allocation39_spill] sm:$0xff] %v19482_v18  ;;  %19485 = vst [vmem:[#allocation40_spill] sm:$0xff] %v19484_v20  ;;  %v19537_v5 = vld [vmem:[#allocation53_spill] sm:$0xff]  ;;  %v19539_v4 = vld [vmem:[#allocation54_spill] sm:$0xff] }
 0x160   : >> { %19486 = vst [vmem:[#allocation202_spill] sm:$0xff] %v12007_v25  ;;  %19487 = vst [vmem:[#allocation203_spill] sm:$0xff] %v12011_v26  ;;  %v19541_v7 = vld [vmem:[#allocation55_spill] sm:$0xff]  ;;  %v19543_v6 = vld [vmem:[#allocation56_spill] sm:$0xff] }
 0x161   : >> { %19488 = vst [vmem:[#allocation204_spill] sm:$0xff] %v12015_v31  ;;  %19489 = vst [vmem:[#allocation205_spill] sm:$0xff] %v12019_v32  ;;  %v19545_v9 = vld [vmem:[#allocation57_spill] sm:$0xff]  ;;  %v19547_v11 = vld [vmem:[#allocation58_spill] sm:$0xff] }
 0x162   : >> { %19490 = vst [vmem:[#allocation206_spill] sm:$0xff] %v12023_v33  ;;  %19491 = vst [vmem:[#allocation207_spill] sm:$0xff] %v12027_v34  ;;  %v19549_v14 = vld [vmem:[#allocation59_spill] sm:$0xff]  ;;  %v19551_v17 = vld [vmem:[#allocation60_spill] sm:$0xff] }
 0x163   : >> { %19493 = vst [vmem:[#allocation41_spill] sm:$0xff] %v19492_v36  ;;  %19494 = vst [vmem:[#allocation208_spill] sm:$0xff] %v12035_v37  ;;  %v19565_v8 = vld [vmem:[#allocation67_spill] sm:$0xff]  ;;  %v19569_v10 = vld [vmem:[#allocation69_spill] sm:$0xff] }
 0x164   : >> { %19495 = vst [vmem:[#allocation209_spill] sm:$0xff] %v12039_v38  ;;  %19496 = vst [vmem:[#allocation210_spill] sm:$0xff] %v12043_v47  ;;  %v19573_v13 = vld [vmem:[#allocation71_spill] sm:$0xff]  ;;  %v19575_v15 = vld [vmem:[#allocation72_spill] sm:$0xff] }
 0x165   : >> { %19498 = vst [vmem:[#allocation42_spill] sm:$0xff] %v19497_v48  ;;  %19499 = vst [vmem:[#allocation211_spill] sm:$0xff] %v12051_v51  ;;  %v19593_v20 = vld [vmem:[#allocation81_spill] sm:$0xff]  ;;  %v19595_v18 = vld [vmem:[#allocation82_spill] sm:$0xff] }
 0x166   : >> { %19501 = vst [vmem:[#allocation43_spill] sm:$0xff] %v19500_v52  ;;  %19502 = vst [vmem:[#allocation212_spill] sm:$0xff] %v12059_v55  ;;  %v19597_v25 = vld [vmem:[#allocation83_spill] sm:$0xff]  ;;  %v19615_v26 = vld [vmem:[#allocation92_spill] sm:$0xff] }
 0x167   : >> { %19503 = vst [vmem:[#allocation213_spill] sm:$0xff] %v12063_v56  ;;  %19505 = vst [vmem:[#allocation44_spill] sm:$0xff] %v19504_v59  ;;  %v19553_v59 = vld [vmem:[#allocation61_spill] sm:$0xff]  ;;  %v19619_v31 = vld [vmem:[#allocation94_spill] sm:$0xff] }
 0x168   : >> { %19506 = vst [vmem:[#allocation214_spill] sm:$0xff] %v12071_v60  ;;  %19507 = vst [vmem:[#allocation215_spill] sm:$0xff] %v12075_v63  ;;  %v19555_v63 = vld [vmem:[#allocation62_spill] sm:$0xff]  ;;  %v19577_v56 = vld [vmem:[#allocation73_spill] sm:$0xff] }
 0x169   : >> { %19508 = vst [vmem:[#allocation216_spill] sm:$0xff] %v12079_v12  ;;  %19509 = vst [vmem:[#allocation217_spill] sm:$0xff] %v12083_v16  ;;  %v19557_v16 = vld [vmem:[#allocation63_spill] sm:$0xff]  ;;  %v19579_v60 = vld [vmem:[#allocation74_spill] sm:$0xff] }
 0x16a   : >> { %19510 = vst [vmem:[#allocation218_spill] sm:$0xff] %v12087_v19  ;;  %19511 = vst [vmem:[#allocation219_spill] sm:$0xff] %v12091_v21  ;;  %v19559_v21 = vld [vmem:[#allocation64_spill] sm:$0xff]  ;;  %v19581_v12 = vld [vmem:[#allocation75_spill] sm:$0xff] }
 0x16b   : >> { %19512 = vst [vmem:[#allocation220_spill] sm:$0xff] %v12095_v22  ;;  %19513 = vst [vmem:[#allocation221_spill] sm:$0xff] %v12099_v23  ;;  %v19583_v19 = vld [vmem:[#allocation76_spill] sm:$0xff]  ;;  %v19617_v32 = vld [vmem:[#allocation93_spill] sm:$0xff] }
 0x16c   : >> { %19514 = vst [vmem:[#allocation222_spill] sm:$0xff] %v12103_v24  ;;  %19515 = vst [vmem:[#allocation223_spill] sm:$0xff] %v12107_v27  ;;  %v19621_v34 = vld [vmem:[#allocation95_spill] sm:$0xff]  ;;  %v19623_v33 = vld [vmem:[#allocation96_spill] sm:$0xff] }
 0x16d   : >> { %19516 = vst [vmem:[#allocation224_spill] sm:$0xff] %v12111_v28  ;;  %19518 = vst [vmem:[#allocation45_spill] sm:$0xff] %v19517_v29  ;;  %v19625_v37 = vld [vmem:[#allocation97_spill] sm:$0xff]  ;;  %v19627_v36 = vld [vmem:[#allocation98_spill] sm:$0xff] }
 0x16e   : >> { %19519 = vst [vmem:[#allocation225_spill] sm:$0xff] %v12119_v30  ;;  %19521 = vst [vmem:[#allocation46_spill] sm:$0xff] %v19520_v35  ;;  %v19629_v47 = vld [vmem:[#allocation99_spill] sm:$0xff]  ;;  %v19631_v38 = vld [vmem:[#allocation100_spill] sm:$0xff] }
 0x16f   : >> { %19523 = vst [vmem:[#allocation47_spill] sm:$0xff] %v19522_v39  ;;  %19524 = vst [vmem:[#allocation226_spill] sm:$0xff] %v12131_v40  ;;  %v19633_v51 = vld [vmem:[#allocation101_spill] sm:$0xff]  ;;  %v19635_v48 = vld [vmem:[#allocation102_spill] sm:$0xff] }
 0x170   : >> { %19526 = vst [vmem:[#allocation48_spill] sm:$0xff] %v19525_v41  ;;  %19527 = vst [vmem:[#allocation227_spill] sm:$0xff] %v12139_v42  ;;  %v19637_v55 = vld [vmem:[#allocation103_spill] sm:$0xff]  ;;  %v19639_v52 = vld [vmem:[#allocation104_spill] sm:$0xff] }
 0x171   : >> { %19528 = vst [vmem:[#allocation228_spill] sm:$0xff] %v12143_v43  ;;  %19530 = vst [vmem:[#allocation49_spill] sm:$0xff] %v19529_v1  ;;  %v19641_v23 = vld [vmem:[#allocation105_spill] sm:$0xff]  ;;  %v19643_v22 = vld [vmem:[#allocation106_spill] sm:$0xff] }
 0x172   : >> { %19532 = vst [vmem:[#allocation50_spill] sm:$0xff] %v19531_v0  ;;  %19534 = vst [vmem:[#allocation51_spill] sm:$0xff] %v19533_v3  ;;  %v19645_v27 = vld [vmem:[#allocation107_spill] sm:$0xff]  ;;  %v19663_v24 = vld [vmem:[#allocation116_spill] sm:$0xff] }
 0x173   : >> { %19536 = vst [vmem:[#allocation52_spill] sm:$0xff] %v19535_v2  ;;  %19538 = vst [vmem:[#allocation53_spill] sm:$0xff] %v19537_v5  ;;  %v19561_v5 = vld [vmem:[#allocation65_spill] sm:$0xff]  ;;  %v19667_v29 = vld [vmem:[#allocation118_spill] sm:$0xff] }
 0x174   : >> { %19540 = vst [vmem:[#allocation54_spill] sm:$0xff] %v19539_v4  ;;  %19542 = vst [vmem:[#allocation55_spill] sm:$0xff] %v19541_v7  ;;  %v19563_v7 = vld [vmem:[#allocation66_spill] sm:$0xff]  ;;  %v19585_v2 = vld [vmem:[#allocation77_spill] sm:$0xff] }
 0x175   : >> { %19544 = vst [vmem:[#allocation56_spill] sm:$0xff] %v19543_v6  ;;  %19546 = vst [vmem:[#allocation57_spill] sm:$0xff] %v19545_v9  ;;  %v19567_v9 = vld [vmem:[#allocation68_spill] sm:$0xff]  ;;  %v19587_v4 = vld [vmem:[#allocation78_spill] sm:$0xff] }
 0x176   : >> { %19548 = vst [vmem:[#allocation58_spill] sm:$0xff] %v19547_v11  ;;  %19550 = vst [vmem:[#allocation59_spill] sm:$0xff] %v19549_v14  ;;  %v19571_v14 = vld [vmem:[#allocation70_spill] sm:$0xff]  ;;  %v19589_v6 = vld [vmem:[#allocation79_spill] sm:$0xff] }
 0x177   : >> { %19552 = vst [vmem:[#allocation60_spill] sm:$0xff] %v19551_v17  ;;  %19554 = vst [vmem:[#allocation61_spill] sm:$0xff] %v19553_v59  ;;  %v19591_v11 = vld [vmem:[#allocation80_spill] sm:$0xff]  ;;  %v19665_v28 = vld [vmem:[#allocation117_spill] sm:$0xff] }
 0x178   : >> { %19556 = vst [vmem:[#allocation62_spill] sm:$0xff] %v19555_v63  ;;  %19558 = vst [vmem:[#allocation63_spill] sm:$0xff] %v19557_v16  ;;  %v19669_v35 = vld [vmem:[#allocation119_spill] sm:$0xff]  ;;  %v19671_v30 = vld [vmem:[#allocation120_spill] sm:$0xff] }
 0x179   : >> { %19560 = vst [vmem:[#allocation64_spill] sm:$0xff] %v19559_v21  ;;  %19562 = vst [vmem:[#allocation65_spill] sm:$0xff] %v19561_v5  ;;  %v19673_v40 = vld [vmem:[#allocation121_spill] sm:$0xff]  ;;  %v19675_v39 = vld [vmem:[#allocation122_spill] sm:$0xff] }
 0x17a   : >> { %19564 = vst [vmem:[#allocation66_spill] sm:$0xff] %v19563_v7  ;;  %19566 = vst [vmem:[#allocation67_spill] sm:$0xff] %v19565_v8  ;;  %v19677_v42 = vld [vmem:[#allocation123_spill] sm:$0xff]  ;;  %v19679_v41 = vld [vmem:[#allocation124_spill] sm:$0xff] }
 0x17b   : >> { %19568 = vst [vmem:[#allocation68_spill] sm:$0xff] %v19567_v9  ;;  %19570 = vst [vmem:[#allocation69_spill] sm:$0xff] %v19569_v10  ;;  %v19681_v1 = vld [vmem:[#allocation125_spill] sm:$0xff]  ;;  %v19683_v43 = vld [vmem:[#allocation126_spill] sm:$0xff] }
 0x17c   : >> { %19572 = vst [vmem:[#allocation70_spill] sm:$0xff] %v19571_v14  ;;  %19574 = vst [vmem:[#allocation71_spill] sm:$0xff] %v19573_v13  ;;  %v19685_v3 = vld [vmem:[#allocation127_spill] sm:$0xff]  ;;  %v19687_v0 = vld [vmem:[#allocation128_spill] sm:$0xff] }
 0x17d   : >> { %19576 = vst [vmem:[#allocation72_spill] sm:$0xff] %v19575_v15  ;;  %19578 = vst [vmem:[#allocation73_spill] sm:$0xff] %v19577_v56  ;;  %v19689_v59 = vld [vmem:[#allocation129_spill] sm:$0xff]  ;;  %v19691_v17 = vld [vmem:[#allocation130_spill] sm:$0xff] }
 0x17e   : >> { %19580 = vst [vmem:[#allocation74_spill] sm:$0xff] %v19579_v60  ;;  %19582 = vst [vmem:[#allocation75_spill] sm:$0xff] %v19581_v12  ;;  %v19693_v16 = vld [vmem:[#allocation131_spill] sm:$0xff]  ;;  %v19711_v63 = vld [vmem:[#allocation140_spill] sm:$0xff] }
 0x17f   : >> { %19584 = vst [vmem:[#allocation76_spill] sm:$0xff] %v19583_v19  ;;  %19586 = vst [vmem:[#allocation77_spill] sm:$0xff] %v19585_v2  ;;  %v19599_v19 = vld [vmem:[#allocation84_spill] sm:$0xff]  ;;  %v19601_v2 = vld [vmem:[#allocation85_spill] sm:$0xff] }
 0x180   : >> { %19588 = vst [vmem:[#allocation78_spill] sm:$0xff] %v19587_v4  ;;  %19590 = vst [vmem:[#allocation79_spill] sm:$0xff] %v19589_v6  ;;  %v19603_v4 = vld [vmem:[#allocation86_spill] sm:$0xff]  ;;  %v19605_v6 = vld [vmem:[#allocation87_spill] sm:$0xff] }
 0x181   : >> { %19592 = vst [vmem:[#allocation80_spill] sm:$0xff] %v19591_v11  ;;  %19594 = vst [vmem:[#allocation81_spill] sm:$0xff] %v19593_v20  ;;  %v19607_v11 = vld [vmem:[#allocation88_spill] sm:$0xff]  ;;  %v19609_v20 = vld [vmem:[#allocation89_spill] sm:$0xff] }
 0x182   : >> { %19596 = vst [vmem:[#allocation82_spill] sm:$0xff] %v19595_v18  ;;  %19598 = vst [vmem:[#allocation83_spill] sm:$0xff] %v19597_v25  ;;  %v19611_v18 = vld [vmem:[#allocation90_spill] sm:$0xff]  ;;  %v19613_v25 = vld [vmem:[#allocation91_spill] sm:$0xff] }
 0x183   : >> { %19600 = vst [vmem:[#allocation84_spill] sm:$0xff] %v19599_v19  ;;  %19602 = vst [vmem:[#allocation85_spill] sm:$0xff] %v19601_v2  ;;  %v19713_v21 = vld [vmem:[#allocation141_spill] sm:$0xff]  ;;  %v19715_v5 = vld [vmem:[#allocation142_spill] sm:$0xff] }
 0x184   : >> { %19604 = vst [vmem:[#allocation86_spill] sm:$0xff] %v19603_v4  ;;  %19606 = vst [vmem:[#allocation87_spill] sm:$0xff] %v19605_v6  ;;  %v19717_v8 = vld [vmem:[#allocation143_spill] sm:$0xff]  ;;  %v19719_v7 = vld [vmem:[#allocation144_spill] sm:$0xff] }
 0x185   : >> { %19608 = vst [vmem:[#allocation88_spill] sm:$0xff] %v19607_v11  ;;  %19610 = vst [vmem:[#allocation89_spill] sm:$0xff] %v19609_v20  ;;  %v19721_v10 = vld [vmem:[#allocation145_spill] sm:$0xff]  ;;  %v19723_v9 = vld [vmem:[#allocation146_spill] sm:$0xff] }
 0x186   : >> { %19612 = vst [vmem:[#allocation90_spill] sm:$0xff] %v19611_v18  ;;  %19614 = vst [vmem:[#allocation91_spill] sm:$0xff] %v19613_v25  ;;  %v19725_v13 = vld [vmem:[#allocation147_spill] sm:$0xff]  ;;  %v19727_v14 = vld [vmem:[#allocation148_spill] sm:$0xff] }
 0x187   : >> { %19616 = vst [vmem:[#allocation92_spill] sm:$0xff] %v19615_v26  ;;  %19618 = vst [vmem:[#allocation93_spill] sm:$0xff] %v19617_v32  ;;  %v19729_v56 = vld [vmem:[#allocation149_spill] sm:$0xff]  ;;  %v19731_v15 = vld [vmem:[#allocation150_spill] sm:$0xff] }
 0x188   : >> { %19620 = vst [vmem:[#allocation94_spill] sm:$0xff] %v19619_v31  ;;  %19622 = vst [vmem:[#allocation95_spill] sm:$0xff] %v19621_v34  ;;  %v19733_v12 = vld [vmem:[#allocation151_spill] sm:$0xff]  ;;  %v19735_v60 = vld [vmem:[#allocation152_spill] sm:$0xff] }
 0x189   : >> { %19624 = vst [vmem:[#allocation96_spill] sm:$0xff] %v19623_v33  ;;  %19626 = vst [vmem:[#allocation97_spill] sm:$0xff] %v19625_v37  ;;  %v19737_v2 = vld [vmem:[#allocation153_spill] sm:$0xff]  ;;  %v19739_v19 = vld [vmem:[#allocation154_spill] sm:$0xff] }
 0x18a   : >> { %19628 = vst [vmem:[#allocation98_spill] sm:$0xff] %v19627_v36  ;;  %19630 = vst [vmem:[#allocation99_spill] sm:$0xff] %v19629_v47  ;;  %v19741_v6 = vld [vmem:[#allocation155_spill] sm:$0xff]  ;;  %v19755_v4 = vld [vmem:[#allocation164_spill] sm:$0xff] }
 0x18b   : >> { %19632 = vst [vmem:[#allocation100_spill] sm:$0xff] %v19631_v38  ;;  %19634 = vst [vmem:[#allocation101_spill] sm:$0xff] %v19633_v51  ;;  %v19647_v38 = vld [vmem:[#allocation108_spill] sm:$0xff]  ;;  %v19649_v51 = vld [vmem:[#allocation109_spill] sm:$0xff] }
 0x18c   : >> { %19636 = vst [vmem:[#allocation102_spill] sm:$0xff] %v19635_v48  ;;  %19638 = vst [vmem:[#allocation103_spill] sm:$0xff] %v19637_v55  ;;  %v19651_v48 = vld [vmem:[#allocation110_spill] sm:$0xff]  ;;  %v19653_v55 = vld [vmem:[#allocation111_spill] sm:$0xff] }
 0x18d   : >> { %19640 = vst [vmem:[#allocation104_spill] sm:$0xff] %v19639_v52  ;;  %19642 = vst [vmem:[#allocation105_spill] sm:$0xff] %v19641_v23  ;;  %v19655_v52 = vld [vmem:[#allocation112_spill] sm:$0xff]  ;;  %v19657_v23 = vld [vmem:[#allocation113_spill] sm:$0xff] }
 0x18e   : >> { %19644 = vst [vmem:[#allocation106_spill] sm:$0xff] %v19643_v22  ;;  %19646 = vst [vmem:[#allocation107_spill] sm:$0xff] %v19645_v27  ;;  %v19659_v22 = vld [vmem:[#allocation114_spill] sm:$0xff]  ;;  %v19661_v27 = vld [vmem:[#allocation115_spill] sm:$0xff] }
 0x18f   : >> { %19648 = vst [vmem:[#allocation108_spill] sm:$0xff] %v19647_v38  ;;  %19650 = vst [vmem:[#allocation109_spill] sm:$0xff] %v19649_v51  ;;  %v19756_v11 = vld [vmem:[#allocation165_spill] sm:$0xff]  ;;  %v19757_v20 = vld [vmem:[#allocation166_spill] sm:$0xff] }
 0x190   : >> { %19652 = vst [vmem:[#allocation110_spill] sm:$0xff] %v19651_v48  ;;  %19654 = vst [vmem:[#allocation111_spill] sm:$0xff] %v19653_v55  ;;  %v19758_v25 = vld [vmem:[#allocation167_spill] sm:$0xff]  ;;  %v19759_v18 = vld [vmem:[#allocation168_spill] sm:$0xff] }
 0x191   : >> { %19656 = vst [vmem:[#allocation112_spill] sm:$0xff] %v19655_v52  ;;  %19658 = vst [vmem:[#allocation113_spill] sm:$0xff] %v19657_v23  ;;  %v19760_v32 = vld [vmem:[#allocation169_spill] sm:$0xff]  ;;  %v19761_v26 = vld [vmem:[#allocation170_spill] sm:$0xff] }
 0x192   : >> { %19660 = vst [vmem:[#allocation114_spill] sm:$0xff] %v19659_v22  ;;  %19662 = vst [vmem:[#allocation115_spill] sm:$0xff] %v19661_v27  ;;  %v19762_v34 = vld [vmem:[#allocation171_spill] sm:$0xff]  ;;  %v19763_v31 = vld [vmem:[#allocation172_spill] sm:$0xff] }
 0x193   : >> { %19664 = vst [vmem:[#allocation116_spill] sm:$0xff] %v19663_v24  ;;  %19666 = vst [vmem:[#allocation117_spill] sm:$0xff] %v19665_v28  ;;  %v19765_v37 = vld [vmem:[#allocation173_spill] sm:$0xff]  ;;  %v19767_v33 = vld [vmem:[#allocation174_spill] sm:$0xff] }
 0x194   : >> { %19668 = vst [vmem:[#allocation118_spill] sm:$0xff] %v19667_v29  ;;  %19670 = vst [vmem:[#allocation119_spill] sm:$0xff] %v19669_v35  ;;  %v19769_v47 = vld [vmem:[#allocation175_spill] sm:$0xff]  ;;  %v19771_v36 = vld [vmem:[#allocation176_spill] sm:$0xff] }
 0x195   : >> { %19672 = vst [vmem:[#allocation120_spill] sm:$0xff] %v19671_v30  ;;  %19674 = vst [vmem:[#allocation121_spill] sm:$0xff] %v19673_v40  ;;  %v19773_v57 = vld [vmem:[#allocation177_spill] sm:$0xff]  ;;  %v19775_v58 = vld [vmem:[#allocation178_spill] sm:$0xff] }
 0x196   : >> { %19676 = vst [vmem:[#allocation122_spill] sm:$0xff] %v19675_v39  ;;  %19678 = vst [vmem:[#allocation123_spill] sm:$0xff] %v19677_v42  ;;  %v19777_v61 = vld [vmem:[#allocation179_spill] sm:$0xff]  ;;  %v19779_v62 = vld [vmem:[#allocation180_spill] sm:$0xff] }
 0x197   : >> { %19680 = vst [vmem:[#allocation124_spill] sm:$0xff] %v19679_v41  ;;  %19682 = vst [vmem:[#allocation125_spill] sm:$0xff] %v19681_v1  ;;  %v19695_v41 = vld [vmem:[#allocation132_spill] sm:$0xff]  ;;  %v19697_v1 = vld [vmem:[#allocation133_spill] sm:$0xff] }
 0x198   : >> { %19684 = vst [vmem:[#allocation126_spill] sm:$0xff] %v19683_v43  ;;  %19686 = vst [vmem:[#allocation127_spill] sm:$0xff] %v19685_v3  ;;  %v19699_v43 = vld [vmem:[#allocation134_spill] sm:$0xff]  ;;  %v19701_v3 = vld [vmem:[#allocation135_spill] sm:$0xff] }
 0x199   : >> { %19688 = vst [vmem:[#allocation128_spill] sm:$0xff] %v19687_v0  ;;  %19690 = vst [vmem:[#allocation129_spill] sm:$0xff] %v19689_v59  ;;  %v19703_v0 = vld [vmem:[#allocation136_spill] sm:$0xff]  ;;  %v19705_v59 = vld [vmem:[#allocation137_spill] sm:$0xff] }
 0x19a   : >> { %19692 = vst [vmem:[#allocation130_spill] sm:$0xff] %v19691_v17  ;;  %19694 = vst [vmem:[#allocation131_spill] sm:$0xff] %v19693_v16  ;;  %v19707_v17 = vld [vmem:[#allocation138_spill] sm:$0xff]  ;;  %v19709_v16 = vld [vmem:[#allocation139_spill] sm:$0xff] }
 0x19b   : >> { %19696 = vst [vmem:[#allocation132_spill] sm:$0xff] %v19695_v41  ;;  %19698 = vst [vmem:[#allocation133_spill] sm:$0xff] %v19697_v1  ;;  %v19781_v44 = vld [vmem:[#allocation181_spill] sm:$0xff]  ;;  %v19783_v45 = vld [vmem:[#allocation182_spill] sm:$0xff] }
 0x19c   : >> { %19700 = vst [vmem:[#allocation134_spill] sm:$0xff] %v19699_v43  ;;  %19702 = vst [vmem:[#allocation135_spill] sm:$0xff] %v19701_v3  ;;  %v19785_v46 = vld [vmem:[#allocation183_spill] sm:$0xff]  ;;  %v19787_v49 = vld [vmem:[#allocation184_spill] sm:$0xff] }
 0x19d   : >> { %19704 = vst [vmem:[#allocation136_spill] sm:$0xff] %v19703_v0  ;;  %19706 = vst [vmem:[#allocation137_spill] sm:$0xff] %v19705_v59  ;;  %v19789_v50 = vld [vmem:[#allocation185_spill] sm:$0xff]  ;;  %v19791_v53 = vld [vmem:[#allocation186_spill] sm:$0xff] }
 0x19e   : >> { %19708 = vst [vmem:[#allocation138_spill] sm:$0xff] %v19707_v17  ;;  %19710 = vst [vmem:[#allocation139_spill] sm:$0xff] %v19709_v16  ;;  %v19793_v54 = vld [vmem:[#allocation187_spill] sm:$0xff]  ;;  %v19801_v38 = vld [vmem:[#allocation4_spill] sm:$0xff] }
 0x19f   : >> { %19712 = vst [vmem:[#allocation140_spill] sm:$0xff] %v19711_v63  ;;  %19714 = vst [vmem:[#allocation141_spill] sm:$0xff] %v19713_v21  ;;  %v19802_v55 = vld [vmem:[#allocation5_spill] sm:$0xff]  ;;  %v19805_v23 = vld [vmem:[#allocation15_spill] sm:$0xff] }
 0x1a0   : >> { %19716 = vst [vmem:[#allocation142_spill] sm:$0xff] %v19715_v5  ;;  %19718 = vst [vmem:[#allocation143_spill] sm:$0xff] %v19717_v8  ;;  %v9890_v48 = vpack.i.bf16 %v19802_v55, %v19801_v38  ;;  %v19810_v27 = vld [vmem:[#allocation10_spill] sm:$0xff] }
 0x1a1   : >> { %19720 = vst [vmem:[#allocation144_spill] sm:$0xff] %v19719_v7  ;;  %19722 = vst [vmem:[#allocation145_spill] sm:$0xff] %v19721_v10  ;;  %v19849_v41 = vld [vmem:[#allocation26_spill] sm:$0xff] }
 0x1a2   : >> { %19724 = vst [vmem:[#allocation146_spill] sm:$0xff] %v19723_v9  ;;  %19726 = vst [vmem:[#allocation147_spill] sm:$0xff] %v19725_v13 }
 0x1a3   : >> { %19728 = vst [vmem:[#allocation148_spill] sm:$0xff] %v19727_v14  ;;  %19730 = vst [vmem:[#allocation149_spill] sm:$0xff] %v19729_v56  ;;  %v19743_v14 = vld [vmem:[#allocation156_spill] sm:$0xff]  ;;  %v19745_v56 = vld [vmem:[#allocation157_spill] sm:$0xff] }
 0x1a4   : >> { %19732 = vst [vmem:[#allocation150_spill] sm:$0xff] %v19731_v15  ;;  %19734 = vst [vmem:[#allocation151_spill] sm:$0xff] %v19733_v12  ;;  %v19747_v15 = vld [vmem:[#allocation158_spill] sm:$0xff]  ;;  %v19749_v12 = vld [vmem:[#allocation159_spill] sm:$0xff] }
 0x1a5   : >> { %19736 = vst [vmem:[#allocation152_spill] sm:$0xff] %v19735_v60  ;;  %19738 = vst [vmem:[#allocation153_spill] sm:$0xff] %v19737_v2  ;;  %v19751_v60 = vld [vmem:[#allocation160_spill] sm:$0xff]  ;;  %v19752_v2 = vld [vmem:[#allocation161_spill] sm:$0xff] }
 0x1a6   : >> { %19740 = vst [vmem:[#allocation154_spill] sm:$0xff] %v19739_v19  ;;  %19742 = vst [vmem:[#allocation155_spill] sm:$0xff] %v19741_v6  ;;  %v19753_v19 = vld [vmem:[#allocation162_spill] sm:$0xff]  ;;  %v19754_v6 = vld [vmem:[#allocation163_spill] sm:$0xff] }
 0x1a7   : >> { %19744 = vst [vmem:[#allocation156_spill] sm:$0xff] %v19743_v14  ;;  %19746 = vst [vmem:[#allocation157_spill] sm:$0xff] %v19745_v56 }
 0x1a8   : >> { %19748 = vst [vmem:[#allocation158_spill] sm:$0xff] %v19747_v15  ;;  %19750 = vst [vmem:[#allocation159_spill] sm:$0xff] %v19749_v12 }
 0x1a9   : >> { %19764 = vst [vmem:[#allocation160_spill] sm:$0xff] %v19763_v31  ;;  %19766 = vst [vmem:[#allocation161_spill] sm:$0xff] %v19765_v37  ;;  %v19795_v37 = vld [vmem:[#allocation13_spill] sm:$0xff]  ;;  %v19797_v31 = vld [vmem:[#allocation2_spill] sm:$0xff] }
 0x1aa   : >> { %19768 = vst [vmem:[#allocation162_spill] sm:$0xff] %v19767_v33  ;;  %19770 = vst [vmem:[#allocation163_spill] sm:$0xff] %v19769_v47  ;;  %v19796_v47 = vld [vmem:[#allocation6_spill] sm:$0xff]  ;;  %v19798_v33 = vld [vmem:[#allocation3_spill] sm:$0xff] }
 0x1ab   : >> { %19772 = vst [vmem:[#allocation164_spill] sm:$0xff] %v19771_v36  ;;  %19774 = vst [vmem:[#allocation165_spill] sm:$0xff] %v19773_v57  ;;  %v9885_v36 = vpack.i.bf16 %v19798_v33, %v19797_v31  ;;  %v19799_v57 = vld [vmem:[#allocation14_spill] sm:$0xff]  ;;  %v19806_v31 = vld [vmem:[#allocation8_spill] sm:$0xff] }
 0x1ac   : >> { %19776 = vst [vmem:[#allocation166_spill] sm:$0xff] %v19775_v58  ;;  %19778 = vst [vmem:[#allocation167_spill] sm:$0xff] %v19777_v61  ;;  %v9895_v58 = vpack.i.bf16 %v19796_v47, %v19795_v37  ;;  %v19800_v61 = vld [vmem:[#allocation7_spill] sm:$0xff]  ;;  %v19803_v37 = vld [vmem:[#allocation16_spill] sm:$0xff]  ;;  %v9905_v33 = vpack.i.bf16 %v19806_v31, %v19805_v23 }
 0x1ad   : >> { %19780 = vst [vmem:[#allocation168_spill] sm:$0xff] %v19779_v62  ;;  %19782 = vst [vmem:[#allocation169_spill] sm:$0xff] %v19781_v44  ;;  %9886 = vrot.lane.b32.xlu0 %v9885_v36, %s13217_s15  ;;  %v9900_v51 = vpack.i.bf16 %v19800_v61, %v19799_v57  ;;  %v19804_v47 = vld [vmem:[#allocation9_spill] sm:$0xff]  ;;  %v19807_v36 = vld [vmem:[#allocation19_spill] sm:$0xff] }
 0x1ae   : >> { %19784 = vst [vmem:[#allocation170_spill] sm:$0xff] %v19783_v45  ;;  %19786 = vst [vmem:[#allocation171_spill] sm:$0xff] %v19785_v46  ;;  %9896 = vrot.lane.b32.xlu1 %v9895_v58, %s13217_s15  ;;  %v9910_v52 = vpack.i.bf16 %v19804_v47, %v19803_v37  ;;  %v19808_v58 = vld [vmem:[#allocation12_spill] sm:$0xff]  ;;  %v19809_v61 = vld [vmem:[#allocation18_spill] sm:$0xff] }
 0x1af   : >> { %19788 = vst [vmem:[#allocation172_spill] sm:$0xff] %v19787_v49  ;;  %19790 = vst [vmem:[#allocation181_spill] sm:$0xff] %v19789_v50  ;;  %v9920_v57 = vpack.i.bf16 %v19808_v58, %v19807_v36  ;;  %v9915_v38 = vpack.i.bf16 %v19810_v27, %v19809_v61  ;;  %v19813_v23 = vld [vmem:[#allocation27_spill] sm:$0xff] }
 0x1b0   : >> { %19792 = vst [vmem:[#allocation182_spill] sm:$0xff] %v19791_v53  ;;  %19794 = vst [vmem:[#allocation183_spill] sm:$0xff] %v19793_v54 }
 0x1b1   : >> { %9891 = vrot.lane.b32.xlu0 %v9890_v48, %s13217_s15  ;;  %v630_v48 = vld [vmem:[%s14744_s17] sm:$0xff]  ;;  %vm14782_vm2 = vmpackc.low %vm853_vm1, %vm853_vm1 }
 0x1b2   : >> { %9901 = vrot.lane.b32.xlu1 %v9900_v51, %s13217_s15  ;;  %6383 = vmatprep.mubr.msk.f32.mxu0 %vm281_vm0, %v630_v48  ;;  %v19811_v51 = vld [vmem:[#allocation28_spill] sm:$0xff] }
 0x1b5   : >> { %9906 = vrot.lane.b32.xlu0 %v9905_v33, %s13217_s15  ;;  %v19874_v10 = vld [vmem:[#allocation171_spill] sm:$0xff] }
 0x1b6   : >> { %9911 = vrot.lane.b32.xlu1 %v9910_v52, %s13217_s15  ;;  %v19812_v52 = vld [vmem:[#allocation11_spill] sm:$0xff] }
 0x1b7   : >> { %v640_v55 = vsub.s32 1, %v19812_v52 }
 0x1b9   : >> { %9916 = vrot.lane.b32.xlu0 %v9915_v38, %s13217_s15  ;;  %v641_v37 = vrot.slane %v19813_v23, %v640_v55 }
 0x1ba   : >> { %9921 = vrot.lane.b32.xlu1 %v9920_v57, %s13217_s15 }
 0x1bd   : >> { %706 = vrot.lane.b32.xlu0 %v19811_v51, %s13217_s15 }
 0x1be   : >> { %708 = vrot.lane.b32.xlu1 %v641_v37, %s13217_s15 }
 0x21f   : >> { %v9887_v47 = vpop.permute.xlu0 %9886 }
 0x220   : >> { %v9897_v27 = vpop.permute.xlu1 %9896  ;;  %v9889_v36 = vunpack.i.h.bf16 %v9887_v47  ;;  %v9888_v58 = vunpack.i.l.bf16 %v9887_v47 }
 0x221   : >> { %v9899_v31 = vunpack.i.h.bf16 %v9897_v27  ;;  %v9898_v33 = vunpack.i.l.bf16 %v9897_v27 }
 0x222   : >> { %v690_v51 = vsel %vm281_vm0, %v9888_v58, %v9889_v36 }
 0x223   : >> { %v9892_v48 = vpop.permute.xlu0 %9891  ;;  %v692_v55 = vsel %vm281_vm0, %v9898_v33, %v9899_v31 }
 0x224   : >> { %v9902_v61 = vpop.permute.xlu1 %9901  ;;  %v9894_v38 = vunpack.i.h.bf16 %v9892_v48  ;;  %v9893_v28 = vunpack.i.l.bf16 %v9892_v48 }
 0x225   : >> { %v9904_v57 = vunpack.i.h.bf16 %v9902_v61  ;;  %v9903_v22 = vunpack.i.l.bf16 %v9902_v61 }
 0x226   : >> { %v691_v52 = vsel %vm281_vm0, %v9893_v28, %v9894_v38  ;;  %v632_v38 = vld [vmem:[%s14744_s17 + $0x10] sm:$0xff] }
 0x227   : >> { %v693_v23 = vsel %vm281_vm0, %v9903_v22, %v9904_v57  ;;  %v6887_v37 = vpack.c.bf16 %v691_v52, %v690_v51  ;;  %v9907_v35 = vpop.permute.xlu0 %9906  ;;  %v631_v57 = vld [vmem:[%s14744_s17 + $0x8] sm:$0xff]  ;;  %v633_v51 = vld [vmem:[%s14744_s17 + $0x18] sm:$0xff] }
 0x228   : >> { %v9912_v24 = vpop.permute.xlu1 %9911  ;;  %v9909_v47 = vunpack.i.h.bf16 %v9907_v35  ;;  %v9908_v40 = vunpack.i.l.bf16 %v9907_v35  ;;  %v6891_v30 = vpack.c.bf16 %v693_v23, %v692_v55  ;;  %v635_v52 = vld [vmem:[%s14744_s17 + $0x28] sm:$0xff]  ;;  %v636_v55 = vld [vmem:[%s14744_s17 + $0x30] sm:$0xff]  ;;  %v637_v23 = vld [vmem:[%s14744_s17 + $0x38] sm:$0xff] }
 0x229   : >> { %v9914_v27 = vunpack.i.h.bf16 %v9912_v24  ;;  %v9913_v29 = vunpack.i.l.bf16 %v9912_v24  ;;  %6888 = vmatprep.subr.bf16.mxu0 %v6887_v37 }
 0x22a   : >> { %6890 = vmatpush3.bf16.msra.mxu0 %v6887_v37  ;;  %v694_v61 = vsel %vm281_vm0, %v9908_v40, %v9909_v47  ;;  %v19814_v37 = vld [vmem:[#allocation31_spill] sm:$0xff] }
 0x22b   : >> { %v695_v36 = vsel %vm281_vm0, %v9913_v29, %v9914_v27  ;;  %6892 = vmatprep.subr.bf16.mxu0 %v6891_v30  ;;  %v9917_v31 = vpop.permute.xlu0 %9916  ;;  %6411 = vmatprep.mubr.msk.f32.mxu1 %vm853_vm1, %v19814_v37 }
 0x22c   : >> { %v9922_v28 = vpop.permute.xlu1 %9921  ;;  %v6895_v22 = vpack.c.bf16 %v695_v36, %v694_v61  ;;  %v9919_v24 = vunpack.i.h.bf16 %v9917_v31  ;;  %v9918_v48 = vunpack.i.l.bf16 %v9917_v31 }
 0x22d   : >> { %v9924_v33 = vunpack.i.h.bf16 %v9922_v28  ;;  %v9923_v58 = vunpack.i.l.bf16 %v9922_v28 }
 0x22e   : >> { %6894 = vmatpush3.bf16.msra.mxu0 %v6891_v30  ;;  %v696_v35 = vsel %vm281_vm0, %v9918_v48, %v9919_v24  ;;  %v634_v30 = vld [vmem:[%s14744_s17 + $0x20] sm:$0xff]  ;;  %s433_s17 = sadd.s32 1, %s12703_s14  }
 0x22f   : >> { %v697_v40 = vsel %vm281_vm0, %v9923_v58, %v9924_v33  ;;  %6896 = vmatprep.subr.bf16.mxu0 %v6895_v22  ;;  %v707_v27 = vpop.permute.xlu0 %706  ;;  %p17133_p8 = scmp.ge.s32.totalorder %s433_s17, %s429_s13  ;;  %s20856_s14 = smov %s433_s17 }
 0x230   : >> { %v6899_v29 = vpack.c.bf16 %v697_v40, %v696_v35  ;;  %v709_v47 = vpop.permute.xlu1 %708 }
 0x231   : >> { %v710_v61 = vsel %vm281_vm0, %v707_v27, %v709_v47 }
 0x232   : >> { %6898 = vmatpush3.bf16.msra.mxu0 %v6895_v22 }
 0x233   : >> { %6900 = vmatprep.subr.bf16.mxu0 %v6899_v29 }
 0x236   : >> { %6902 = vmatpush3.bf16.msra.mxu0 %v6899_v29 }
 0x239   : >> { %6384 = vmatmul.mubr.msk.f32.vlgmr.msra.gmra.mrb[0].mxu0 %vm281_vm0, %v631_v57 }
 0x23a   : >> { %6386 = vmatprep.mubr.msk.f32.mxu0 %vm281_vm0, %v632_v38 }
 0x23d   : >> { %6387 = vmatmul.mubr.msk.f32.gmra.mrb[2].mxu0 %vm281_vm0, %v633_v51 }
 0x23e   : >> { %6389 = vmatprep.mubr.msk.f32.mxu0 %vm281_vm0, %v634_v30 }
 0x241   : >> { %6390 = vmatmul.mubr.msk.f32.gmra.mrb[4].mxu0 %vm281_vm0, %v635_v52 }
 0x242   : >> { %6392 = vmatprep.mubr.msk.f32.mxu0 %vm281_vm0, %v636_v55 }
 0x245   : >> { %6393 = vmatmul.mubr.msk.f32.gmra.mrb[6].mxu0 %vm281_vm0, %v637_v23 }
 0x30c   : >> { %v6385_v36 = vpop.f32.mrb[0].mxu0 }
 0x30d   : >> { %v808_v28 = vadd.f32 %v6385_v36, %v710_v61  ;;  %v802_v31 = vpop.f32.mrb[1].mxu0 }
 0x30e   : >> { %v803_v22 = vadd.f32 %v802_v31, %v710_v61 }
 0x310   : >> { %v6388_v58 = vpop.f32.mrb[2].mxu0  ;;  %v14786_v24 = vpack.i.bf16 %v808_v28, %v803_v22  ;;  %v6903_v48 = vpack.c.bf16 %v808_v28, %v803_v22 }
 0x311   : >> { %v818_v35 = vadd.f32 %v6388_v58, %v710_v61  ;;  %v812_v40 = vpop.f32.mrb[3].mxu0  ;;  %v19819_v58 = vld [vmem:[#allocation35_spill] sm:$0xff] }
 0x312   : >> { %v813_v29 = vadd.f32 %v812_v40, %v710_v61  ;;  %9926 = vrot.lane.b32.xlu0 %v14786_v24, %s13217_s15  ;;  %6905 = vmatprep.subr.msk.bf16.mxu1 %vm14782_vm2, %v6903_v48  ;;  %v19820_v53 = vmov %v19819_v58  ;;  %v19825_v40 = vld [vmem:[#allocation30_spill] sm:$0xff] }
 0x313   : >> { %6908 = vmatpush3.bf16.xpose.msk.msra.mxu1 %vm14782_vm2, %v6903_v48  ;;  %v19821_v48 = vld [vmem:[#allocation33_spill] sm:$0xff]  ;;  %v19826_v46 = vmov %v19825_v40 }
 0x314   : >> { %v6391_v57 = vpop.f32.mrb[4].mxu0  ;;  %v14794_v38 = vpack.i.bf16 %v818_v35, %v813_v29  ;;  %v6909_v51 = vpack.c.bf16 %v818_v35, %v813_v29  ;;  %v19822_v50 = vmov %v19821_v48  ;;  %v19823_v35 = vld [vmem:[#allocation32_spill] sm:$0xff] }
 0x315   : >> { %v828_v30 = vadd.f32 %v6391_v57, %v710_v61  ;;  %v822_v52 = vpop.f32.mrb[5].mxu0  ;;  %v19824_v49 = vmov %v19823_v35  ;;  %v19827_v29 = vld [vmem:[#allocation36_spill] sm:$0xff]  ;;  %v19829_v57 = vld [vmem:[#allocation34_spill] sm:$0xff] }
 0x316   : >> { %v823_v55 = vadd.f32 %v822_v52, %v710_v61  ;;  %9931 = vrot.lane.b32.xlu1 %v14794_v38, %s13217_s15  ;;  %6911 = vmatprep.subr.msk.bf16.mxu1 %vm14782_vm2, %v6909_v51  ;;  %v19828_v45 = vmov %v19827_v29 }
 0x318   : >> { %v6394_v23 = vpop.f32.mrb[6].mxu0  ;;  %v14800_v37 = vpack.i.bf16 %v828_v30, %v823_v55  ;;  %v6915_v27 = vpack.c.bf16 %v828_v30, %v823_v55 }
 0x319   : >> { %v838_v47 = vadd.f32 %v6394_v23, %v710_v61  ;;  %v832_v36 = vpop.f32.mrb[7].mxu0 }
 0x31a   : >> { %v833_v28 = vadd.f32 %v832_v36, %v710_v61  ;;  %9936 = vrot.lane.b32.xlu0 %v14800_v37, %s13217_s15  ;;  %v19817_v61 = vld [vmem:[#allocation29_spill] sm:$0xff] }
 0x31b   : >> { %6914 = vmatpush3.bf16.xpose.msk.msra.mxu1 %vm14782_vm2, %v6909_v51  ;;  %v19818_v54 = vmov %v19817_v61 }
 0x31c   : >> { %6917 = vmatprep.subr.msk.bf16.mxu1 %vm14782_vm2, %v6915_v27  ;;  %v14808_v31 = vpack.i.bf16 %v838_v47, %v833_v28  ;;  %v6921_v22 = vpack.c.bf16 %v838_v47, %v833_v28 }
 0x31e   : >> { %9941 = vrot.lane.b32.xlu0 %v14808_v31, %s13217_s15  ;;  %s13230_s15 = smov 72  }
 0x323   : >> { %6920 = vmatpush3.bf16.xpose.msk.msra.mxu1 %vm14782_vm2, %v6915_v27 }
 0x324   : >> { %6923 = vmatprep.subr.msk.bf16.mxu1 %vm14782_vm2, %v6921_v22 }
 0x32b   : >> { %6926 = vmatpush3.bf16.xpose.msk.msra.mxu1 %vm14782_vm2, %v6921_v22 }
 0x332   : >> { %6412 = vmatmul.mubr.msk.f32.vlgmr.msra.gmra.mrb[0].mxu1 %vm853_vm1, %v19817_v61 }
 0x333   : >> { %6414 = vmatprep.mubr.msk.f32.mxu1 %vm853_vm1, %v19819_v58 }
 0x336   : >> { %6415 = vmatmul.mubr.msk.f32.gmra.mrb[2].mxu1 %vm853_vm1, %v19821_v48 }
 0x337   : >> { %6417 = vmatprep.mubr.msk.f32.mxu1 %vm853_vm1, %v19823_v35 }
 0x33a   : >> { %6418 = vmatmul.mubr.msk.f32.gmra.mrb[4].mxu1 %vm853_vm1, %v19825_v40 }
 0x33b   : >> { %6420 = vmatprep.mubr.msk.f32.mxu1 %vm853_vm1, %v19827_v29 }
 0x33e   : >> { %6421 = vmatmul.mubr.msk.f32.gmra.mrb[6].mxu1 %vm853_vm1, %v19829_v57  ;;  %v19830_v57 = vlaneseq }
 0x384   : >> { %v9927_v51 = vpop.permute.xlu0 %9926 }
 0x385   : >> { %v9929_v30 = vunpack.i.h.bf16 %v9927_v51  ;;  %v9928_v52 = vunpack.i.l.bf16 %v9927_v51  ;;  %v842_v51 = vand.u32 127, %v19830_v57 }
 0x387   : >> { %v6927_v55 = vpack.c.bf16 %v9929_v30, %v9928_v52  ;;  %v843_v30 = vstv %s5822_s16  ;;  %s13231_s16 = smov 8  }
 0x388   : >> { %v9932_v23 = vpop.permute.xlu1 %9931  ;;  %v844_v52 = vadd.s32 %v843_v30, %v842_v51 }
 0x389   : >> { %v9934_v27 = vunpack.i.h.bf16 %v9932_v23  ;;  %v9933_v47 = vunpack.i.l.bf16 %v9932_v23  ;;  %6928 = vmatprep.subr.bf16.mxu0 %v6927_v55 }
 0x38a   : >> { %6930 = vmatpush3.bf16.msra.mxu0 %v6927_v55  ;;  %v19831_v55 = vld [vmem:[#allocation20_spill] sm:$0xff]  ;;  %vm14900_vm9 = vcmp.le.s32.totalorder %v844_v52, %v19849_v41 }
 0x38b   : >> { %v6931_v36 = vpack.c.bf16 %v9934_v27, %v9933_v47  ;;  %vm14836_vm3 = vcmp.le.s32.totalorder %v844_v52, %v19831_v55  ;;  %v19834_v27 = vld [vmem:[#allocation17_spill] sm:$0xff] }
 0x38c   : >> { %v9937_v28 = vpop.permute.xlu0 %9936  ;;  %vm14841_vm4 = vcmp.le.s32.totalorder %v844_v52, %v19834_v27  ;;  %v19837_v55 = vld [vmem:[#allocation21_spill] sm:$0xff] }
 0x38d   : >> { %v9939_v22 = vunpack.i.h.bf16 %v9937_v28  ;;  %v9938_v61 = vunpack.i.l.bf16 %v9937_v28  ;;  %6932 = vmatprep.subr.bf16.mxu0 %v6931_v36  ;;  %vm14862_vm5 = vcmp.le.s32.totalorder %v844_v52, %v19837_v55 }
 0x38e   : >> { %6934 = vmatpush3.bf16.msra.mxu0 %v6931_v36 }
 0x38f   : >> { %v6935_v58 = vpack.c.bf16 %v9939_v22, %v9938_v61 }
 0x390   : >> { %v9942_v48 = vpop.permute.xlu0 %9941 }
 0x391   : >> { %v9944_v35 = vunpack.i.h.bf16 %v9942_v48  ;;  %v9943_v40 = vunpack.i.l.bf16 %v9942_v48  ;;  %6936 = vmatprep.subr.bf16.mxu0 %v6935_v58 }
 0x392   : >> { %6938 = vmatpush3.bf16.msra.mxu0 %v6935_v58 }
 0x393   : >> { %v6939_v29 = vpack.c.bf16 %v9944_v35, %v9943_v40 }
 0x395   : >> { %6940 = vmatprep.subr.bf16.mxu0 %v6939_v29 }
 0x396   : >> { %6942 = vmatpush3.bf16.msra.mxu0 %v6939_v29 }
 0x405   : >> { %v6413_v36 = vpop.f32.mrb[0].mxu1 }
 0x406   : >> { %v14847_v28 = vsel %vm14836_vm3, %v6413_v36, -1e+30  ;;  %v968_v22 = vpop.f32.mrb[1].mxu1  ;;  %v19840_v36 = vld [vmem:[#allocation22_spill] sm:$0xff] }
 0x407   : >> { %v14851_v61 = vsel %vm14841_vm4, %v968_v22, -1e+30  ;;  %v1018_v58 = vsel %vm281_vm0, %v14847_v28, -inf  ;;  %vm14867_vm6 = vcmp.le.s32.totalorder %v844_v52, %v19840_v36 }
 0x408   : >> { %1019 = vmax.xlane.f32.xlu1 %v1018_v58  ;;  %v1015_v48 = vsel %vm281_vm0, %v14851_v61, -inf }
 0x409   : >> { %1016 = vmax.xlane.f32.xlu0 %v1015_v48  ;;  %v6416_v35 = vpop.f32.mrb[2].mxu1  ;;  %v19843_v48 = vld [vmem:[#allocation24_spill] sm:$0xff] }
 0x40a   : >> { %v978_v40 = vpop.f32.mrb[3].mxu1  ;;  %vm14876_vm7 = vcmp.le.s32.totalorder %v844_v52, %v19843_v48  ;;  %v14882_v55 = vsel %vm14867_vm6, %v6416_v35, -1e+30  ;;  %v19846_v48 = vld [vmem:[#allocation23_spill] sm:$0xff] }
 0x40b   : >> { %v14873_v58 = vsel %vm14862_vm5, %v978_v40, -1e+30  ;;  %v1024_v40 = vsel %vm281_vm0, %v14882_v55, -inf  ;;  %vm14893_vm8 = vcmp.le.s32.totalorder %v844_v52, %v19846_v48  ;;  %v19852_v48 = vld [vmem:[#allocation25_spill] sm:$0xff] }
 0x40c   : >> { %v1021_v39 = vsel %vm281_vm0, %v14873_v58, -inf  ;;  %vm14915_vm10 = vcmp.le.s32.totalorder %v844_v52, %v19852_v48  ;;  %v19855_v52 = vld [vmem:[#allocation31_spill] sm:$0xff] }
 0x40d   : >> { %v6419_v29 = vpop.f32.mrb[4].mxu1 }
 0x40e   : >> { %v988_v57 = vpop.f32.mrb[5].mxu1  ;;  %v14888_v36 = vsel %vm14876_vm7, %v6419_v29, -1e+30 }
 0x40f   : >> { %v1030_v35 = vsel %vm281_vm0, %v14888_v36, -inf }
 0x411   : >> { %v6422_v51 = vpop.f32.mrb[6].mxu1 }
 0x412   : >> { %v998_v30 = vpop.f32.mrb[7].mxu1  ;;  %v14910_v29 = vsel %vm14900_vm9, %v6422_v51, -1e+30 }
 0x413   : >> { %v1036_v41 = vsel %vm281_vm0, %v14910_v29, -inf }
 0x419   : >> { %9946 = vrot.lane.b32.xlu1 %v14786_v24, %s13218_s26 }
 0x41f   : >> { %9951 = vrot.lane.b32.xlu0 %v14794_v38, %s13218_s26 }
 0x43d   : >> { %1022 = vmax.xlane.f32.xlu1 %v1021_v39  ;;  %v14906_v39 = vsel %vm14893_vm8, %v988_v57, -1e+30  ;;  %v14923_v57 = vsel %vm14915_vm10, %v998_v30, -1e+30  ;;  %v19856_v30 = vld [vmem:[#allocation34_spill] sm:$0xff] }
 0x43e   : >> { %1025 = vmax.xlane.f32.xlu0 %v1024_v40  ;;  %v1027_v40 = vsel %vm281_vm0, %v14906_v39, -inf  ;;  %v1033_v51 = vsel %vm281_vm0, %v14923_v57, -inf }
 0x441   : >> { %1031 = vmax.xlane.f32.xlu1 %v1030_v35 }
 0x445   : >> { %1028 = vmax.xlane.f32.xlu1 %v1027_v40  ;;  %v19857_v40 = vld [vmem:[#allocation182_spill] sm:$0xff] }
 0x449   : >> { %1037 = vmax.xlane.f32.xlu1 %v1036_v41 }
 0x44d   : >> { %1034 = vmax.xlane.f32.xlu1 %v1033_v51  ;;  %v19860_v51 = vld [vmem:[#allocation183_spill] sm:$0xff] }
 0x454   : >> { %9956 = vrot.lane.b32.xlu0 %v14800_v37, %s13218_s26 }
 0x458   : >> { %9961 = vrot.lane.b32.xlu0 %v14808_v31, %s13218_s26 }
 0x45c   : >> { %1304 = vrot.lane.b32.xlu0 %v19855_v52, %s13218_s26 }
 0x45e   : >> { %1306 = vrot.lane.b32.xlu1 %v19818_v54, %s13218_s26 }
 0x460   : >> { %1308 = vrot.lane.b32.xlu0 %v19820_v53, %s13218_s26 }
 0x462   : >> { %1310 = vrot.lane.b32.xlu1 %v19822_v50, %s13218_s26 }
 0x464   : >> { %1312 = vrot.lane.b32.xlu0 %v19824_v49, %s13218_s26 }
 0x466   : >> { %1314 = vrot.lane.b32.xlu1 %v19826_v46, %s13218_s26 }
 0x468   : >> { %1316 = vrot.lane.b32.xlu0 %v19828_v45, %s13218_s26 }
 0x46a   : >> { %1318 = vrot.lane.b32.xlu1 %v19856_v30, %s13218_s26 }
 0x46c   : >> { %9966 = vrot.lane.b32.xlu0 %v14786_v24, %s13219_s19 }
 0x46e   : >> { %9971 = vrot.lane.b32.xlu1 %v14794_v38, %s13219_s19 }
 0x470   : >> { %9976 = vrot.lane.b32.xlu0 %v14800_v37, %s13219_s19 }
 0x474   : >> { %9981 = vrot.lane.b32.xlu0 %v14808_v31, %s13219_s19 }
 0x495   : >> { %v1020_v35 = vpop.xlane.xlu1 %1019 }
 0x496   : >> { %v14952_v48 = vmax.f32 %v19857_v40, %v1020_v35   ;;  %v1017_v41 = vpop.xlane.xlu0 %1016 }
 0x497   : >> { %v14955_v52 = vmax.f32 %v19860_v51, %v1017_v41  }
 0x498   : >> { %19858 = vst [vmem:[#allocation186_spill] sm:$0xff] %v14952_v48  ;;  %v19859_v49 = vmov %v14952_v48 }
 0x499   : >> { %19861 = vst [vmem:[#allocation187_spill] sm:$0xff] %v14955_v52  ;;  %v19862_v45 = vmov %v14955_v52  ;;  %v1072_v0 = vsub.f32 %v14847_v28, %v19859_v49  ;;  %v9947_v17 = vpop.permute.xlu1 %9946 }
 0x49a   : >> { %v1071_v16 = vsub.f32 %v14851_v61, %v19862_v45  ;;  %v9949_v21 = vunpack.i.h.bf16 %v9947_v17  ;;  %v9948_v35 = vunpack.i.l.bf16 %v9947_v17  ;;  %v9952_v41 = vpop.permute.xlu0 %9951  ;;  %v19865_v17 = vld [vmem:[#allocation181_spill] sm:$0xff] }
 0x49b   : >> { %v1081_v63 = vmul.f32 1.442695, %v1072_v0  ;;  %v9954_v52 = vunpack.i.h.bf16 %v9952_v41  ;;  %v9953_v28 = vunpack.i.l.bf16 %v9952_v41 }
 0x49c   : >> { %v1079_v48 = vmul.f32 1.442695, %v1071_v16  ;;  %v6943_v8 = vpack.c.bf16 %v9949_v21, %v9948_v35  ;;  %v19868_v21 = vld [vmem:[#allocation172_spill] sm:$0xff] }
 0x49d   : >> { %v6949_v61 = vpack.c.bf16 %v9954_v52, %v9953_v28 }
 0x49e   : >> { %6945 = vmatprep.subr.msk.bf16.mxu0 %vm14782_vm2, %v6943_v8  ;;  %10225 = vpow2.f32 %v1079_v48 }
 0x49f   : >> { %10227 = vpow2.f32 %v1081_v63 }
 0x4a8   : >> { %v14967_v30 = vpop.eup %10225 }
 0x4a9   : >> { %19863 = vst [vmem:[#allocation182_spill] sm:$0xff] %v14967_v30  ;;  %v14969_v59 = vpop.eup %10227  ;;  %6439 = vmatprep.mubr.msk.f32.mxu0 %vm281_vm0, %v14967_v30 }
 0x4aa   : >> { %19864 = vst [vmem:[#allocation183_spill] sm:$0xff] %v14969_v59  ;;  %6440 = vmatmul.mubr.msk.f32.vlgmr.msra.gmra.mrb[8].mxu0 %vm281_vm0, %v14969_v59 }
 0x4ab   : >> { %6948 = vmatpush3.bf16.xpose.msk.msra.mxu0 %vm14782_vm2, %v6943_v8 }
 0x4ac   : >> { %6951 = vmatprep.subr.msk.bf16.mxu0 %vm14782_vm2, %v6949_v61 }
 0x4b3   : >> { %6954 = vmatpush3.bf16.xpose.msk.msra.mxu0 %vm14782_vm2, %v6949_v61 }
 0x4ca   : >> { %v1023_v0 = vpop.xlane.xlu1 %1022 }
 0x4cb   : >> { %v14982_v63 = vmax.f32 %v19865_v17, %v1023_v0   ;;  %v1026_v16 = vpop.xlane.xlu0 %1025  ;;  %v19871_v0 = vld [vmem:[#allocation170_spill] sm:$0xff] }
 0x4cc   : >> { %v14985_v35 = vmax.f32 %v19868_v21, %v1026_v16  }
 0x4cd   : >> { %19866 = vst [vmem:[#allocation185_spill] sm:$0xff] %v14982_v63  ;;  %v19867_v44 = vmov %v14982_v63 }
 0x4ce   : >> { %19869 = vst [vmem:[#allocation184_spill] sm:$0xff] %v14985_v35  ;;  %v19870_v46 = vmov %v14985_v35  ;;  %v1073_v8 = vsub.f32 %v14873_v58, %v19867_v44  ;;  %v1032_v28 = vpop.xlane.xlu1 %1031 }
 0x4cf   : >> { %v1074_v52 = vsub.f32 %v14882_v55, %v19870_v46  ;;  %v14996_v63 = vmax.f32 %v19871_v0, %v1032_v28   ;;  %v9957_v59 = vpop.permute.xlu0 %9956 }
 0x4d0   : >> { %v1083_v61 = vmul.f32 1.442695, %v1073_v8  ;;  %v9959_v35 = vunpack.i.h.bf16 %v9957_v59  ;;  %v9958_v30 = vunpack.i.l.bf16 %v9957_v59 }
 0x4d1   : >> { %19872 = vst [vmem:[#allocation229_spill] sm:$0xff] %v14996_v63  ;;  %v19873_v50 = vmov %v14996_v63  ;;  %v1085_v16 = vmul.f32 1.442695, %v1074_v52 }
 0x4d2   : >> { %10229 = vpow2.f32 %v1083_v61  ;;  %v6955_v58 = vpack.c.bf16 %v9959_v35, %v9958_v30  ;;  %v1029_v5 = vpop.xlane.xlu1 %1028  ;;  %v1076_v41 = vsub.f32 %v14888_v36, %v19873_v50 }
 0x4d3   : >> { %v15003_v55 = vmax.f32 %v19874_v10, %v1029_v5   ;;  %v9962_v8 = vpop.permute.xlu0 %9961  ;;  %10231 = vpow2.f32 %v1085_v16 }
 0x4d4   : >> { %v9964_v28 = vunpack.i.h.bf16 %v9962_v8  ;;  %v9963_v63 = vunpack.i.l.bf16 %v9962_v8  ;;  %6957 = vmatprep.subr.msk.bf16.mxu0 %vm14782_vm2, %v6955_v58  ;;  %v1089_v5 = vmul.f32 1.442695, %v1076_v41 }
 0x4d5   : >> { %19875 = vst [vmem:[#allocation230_spill] sm:$0xff] %v15003_v55  ;;  %v19876_v53 = vmov %v15003_v55  ;;  %6960 = vmatpush3.bf16.xpose.msk.msra.mxu0 %vm14782_vm2, %v6955_v58  ;;  %v19879_v58 = vld [vmem:[#allocation169_spill] sm:$0xff] }
 0x4d6   : >> { %v1075_v30 = vsub.f32 %v14906_v39, %v19876_v53  ;;  %v6961_v36 = vpack.c.bf16 %v9964_v28, %v9963_v63  ;;  %v1038_v52 = vpop.xlane.xlu1 %1037 }
 0x4d7   : >> { %v15014_v16 = vmax.f32 %v19779_v62, %v1038_v52   ;;  %v1305_v35 = vpop.permute.xlu0 %1304 }
 0x4d8   : >> { %v1087_v61 = vmul.f32 1.442695, %v1075_v30  ;;  %6963 = vmatprep.subr.msk.bf16.mxu0 %vm14782_vm2, %v6961_v36 }
 0x4d9   : >> { %19877 = vst [vmem:[#allocation181_spill] sm:$0xff] %v15014_v16  ;;  %v19878_v48 = vmov %v15014_v16 }
 0x4da   : >> { %10233 = vpow2.f32 %v1087_v61  ;;  %v1035_v8 = vpop.xlane.xlu1 %1034  ;;  %v1078_v39 = vsub.f32 %v14910_v29, %v19878_v48 }
 0x4db   : >> { %10235 = vpow2.f32 %v1089_v5  ;;  %v15023_v28 = vmax.f32 %v19879_v58, %v1035_v8   ;;  %v1309_v41 = vpop.permute.xlu0 %1308 }
 0x4dc   : >> { %v15025_v63 = vpop.eup %10229  ;;  %v1093_v61 = vmul.f32 1.442695, %v1078_v39 }
 0x4dd   : >> { %19880 = vst [vmem:[#allocation231_spill] sm:$0xff] %v15023_v28  ;;  %v19881_v59 = vmov %v15023_v28  ;;  %19882 = vst [vmem:[#allocation169_spill] sm:$0xff] %v15025_v63  ;;  %6442 = vmatprep.mubr.msk.f32.mxu0 %vm281_vm0, %v15025_v63  ;;  %6966 = vmatpush3.bf16.xpose.msk.msra.mxu0 %vm14782_vm2, %v6961_v36  ;;  %v15035_v5 = vpop.eup %10231 }
 0x4de   : >> { %v1077_v52 = vsub.f32 %v14923_v57, %v19881_v59  ;;  %19883 = vst [vmem:[#allocation170_spill] sm:$0xff] %v15035_v5  ;;  %v1307_v29 = vpop.permute.xlu1 %1306  ;;  %6443 = vmatmul.mubr.msk.f32.gmra.mrb[10].mxu0 %vm281_vm0, %v15035_v5 }
 0x4df   : >> { %v1313_v8 = vpop.permute.xlu0 %1312 }
 0x4e0   : >> { %v1091_v16 = vmul.f32 1.442695, %v1077_v52 }
 0x4e2   : >> { %10237 = vpow2.f32 %v1091_v16  ;;  %v1311_v28 = vpop.permute.xlu1 %1310 }
 0x4e3   : >> { %10239 = vpow2.f32 %v1093_v61  ;;  %v1317_v30 = vpop.permute.xlu0 %1316 }
 0x4e4   : >> { %v15039_v57 = vpop.eup %10233 }
 0x4e5   : >> { %19884 = vst [vmem:[#allocation171_spill] sm:$0xff] %v15039_v57  ;;  %v15041_v55 = vpop.eup %10235  ;;  %6445 = vmatprep.mubr.msk.f32.mxu0 %vm281_vm0, %v15039_v57 }
 0x4e6   : >> { %19885 = vst [vmem:[#allocation172_spill] sm:$0xff] %v15041_v55  ;;  %6446 = vmatmul.mubr.msk.f32.gmra.mrb[12].mxu0 %vm281_vm0, %v15041_v55  ;;  %v1315_v36 = vpop.permute.xlu1 %1314 }
 0x4e7   : >> { %v9967_v39 = vpop.permute.xlu0 %9966 }
 0x4e8   : >> { %v9969_v52 = vunpack.i.h.bf16 %v9967_v39  ;;  %v9968_v63 = vunpack.i.l.bf16 %v9967_v39 }
 0x4ea   : >> { %v1319_v5 = vpop.permute.xlu1 %1318  ;;  %v6967_v7 = vpack.c.bf16 %v9969_v52, %v9968_v63 }
 0x4eb   : >> { %v9977_v16 = vpop.permute.xlu0 %9976 }
 0x4ec   : >> { %v15047_v13 = vpop.eup %10237  ;;  %6968 = vmatprep.subr.bf16.mxu1 %v6967_v7  ;;  %v9979_v55 = vunpack.i.h.bf16 %v9977_v16  ;;  %v9978_v9 = vunpack.i.l.bf16 %v9977_v16 }
 0x4ed   : >> { %19886 = vst [vmem:[#allocation173_spill] sm:$0xff] %v15047_v13  ;;  %v15049_v61 = vpop.eup %10239  ;;  %6448 = vmatprep.mubr.msk.f32.mxu0 %vm281_vm0, %v15047_v13  ;;  %6970 = vmatpush3.bf16.msra.mxu1 %v6967_v7  ;;  %v20273_v43 = vld [vmem:[#allocation172_spill] sm:$0xff] }
 0x4ee   : >> { %19887 = vst [vmem:[#allocation174_spill] sm:$0xff] %v15049_v61  ;;  %6449 = vmatmul.mubr.msk.f32.gmra.mrb[14].mxu0 %vm281_vm0, %v15049_v61  ;;  %v9972_v57 = vpop.permute.xlu1 %9971  ;;  %v6975_v15 = vpack.c.bf16 %v9979_v55, %v9978_v9  ;;  %v19888_v9 = vsub.f32 %v19857_v40, %v19859_v49 }
 0x4ef   : >> { %v9974_v56 = vunpack.i.h.bf16 %v9972_v57  ;;  %v9973_v39 = vunpack.i.l.bf16 %v9972_v57  ;;  %6467 = vmatprep.mubr.msk.f32.mxu0 %vm853_vm1, %v1305_v35  ;;  %v9982_v63 = vpop.permute.xlu0 %9981  ;;  %v19889_v35 = vsub.f32 %v19860_v51, %v19862_v45  ;;  %v19894_v51 = vsub.f32 %v19868_v21, %v19870_v46 }
 0x4f0   : >> { %v9984_v14 = vunpack.i.h.bf16 %v9982_v63  ;;  %v9983_v12 = vunpack.i.l.bf16 %v9982_v63 }
 0x4f1   : >> { %v6971_v52 = vpack.c.bf16 %v9974_v56, %v9973_v39  ;;  %v1057_v56 = vmul.f32 1.442695, %v19888_v9  ;;  %v1055_v55 = vmul.f32 1.442695, %v19889_v35  ;;  %v19900_v39 = vmov %v19779_v62 }
 0x4f2   : >> { %6468 = vmatmul.mubr.msk.f32.vlgmr.msra.gmra.mrb[16].mxu0 %vm853_vm1, %v1307_v29  ;;  %v6979_v7 = vpack.c.bf16 %v9984_v14, %v9983_v12  ;;  %v1061_v29 = vmul.f32 1.442695, %v19894_v51 }
 0x4f3   : >> { %6972 = vmatprep.subr.bf16.mxu1 %v6971_v52  ;;  %6470 = vmatprep.mubr.msk.f32.mxu0 %vm853_vm1, %v1309_v41  ;;  %10241 = vpow2.f32 %v1057_v56 }
 0x4f4   : >> { %6974 = vmatpush3.bf16.msra.mxu1 %v6971_v52  ;;  %10243 = vpow2.f32 %v1055_v55  ;;  %v19902_v52 = vsub.f32 %v19879_v58, %v19881_v59 }
 0x4f5   : >> { %6976 = vmatprep.subr.bf16.mxu1 %v6975_v15  ;;  %10245 = vpow2.f32 %v1061_v29 }
 0x4f6   : >> { %6471 = vmatmul.mubr.msk.f32.gmra.mrb[18].mxu0 %vm853_vm1, %v1311_v28 }
 0x4f7   : >> { %6473 = vmatprep.mubr.msk.f32.mxu0 %vm853_vm1, %v1313_v8  ;;  %v19895_v8 = vsub.f32 %v19865_v17, %v19867_v44  ;;  %v19901_v17 = vsub.f32 %v19900_v39, %v19878_v48 }
 0x4f8   : >> { %6978 = vmatpush3.bf16.msra.mxu1 %v6975_v15 }
 0x4f9   : >> { %6980 = vmatprep.subr.bf16.mxu1 %v6979_v7  ;;  %v1059_v28 = vmul.f32 1.442695, %v19895_v8  ;;  %v1069_v63 = vmul.f32 1.442695, %v19901_v17 }
 0x4fa   : >> { %6474 = vmatmul.mubr.msk.f32.gmra.mrb[20].mxu0 %vm853_vm1, %v1315_v36 }
 0x4fb   : >> { %6476 = vmatprep.mubr.msk.f32.mxu0 %vm853_vm1, %v1317_v30  ;;  %10247 = vpow2.f32 %v1059_v28 }
 0x4fc   : >> { %6982 = vmatpush3.bf16.msra.mxu1 %v6979_v7  ;;  %v1067_v7 = vmul.f32 1.442695, %v19902_v52 }
 0x4fd   : >> { %v15069_v14 = vpop.eup %10241 }
 0x4fe   : >> { %6477 = vmatmul.mubr.msk.f32.gmra.mrb[22].mxu0 %vm853_vm1, %v1319_v5  ;;  %19890 = vst [vmem:[#allocation175_spill] sm:$0xff] %v15069_v14  ;;  %v15071_v15 = vpop.eup %10243  ;;  %v1136_v12 = vmul.f32 %v19761_v26, %v15069_v14  ;;  %v19896_v26 = vsub.f32 %v19871_v0, %v19873_v50 }
 0x4ff   : >> { %19891 = vst [vmem:[#allocation176_spill] sm:$0xff] %v15071_v15  ;;  %v1135_v30 = vmul.f32 %v19762_v34, %v15071_v15  ;;  %v19897_v34 = vsub.f32 %v19874_v10, %v19876_v53  ;;  %v15093_v16 = vpop.eup %10245 }
 0x500   : >> { %v1065_v57 = vmul.f32 1.442695, %v19896_v26  ;;  %19898 = vst [vmem:[#allocation177_spill] sm:$0xff] %v15093_v16  ;;  %v1138_v0 = vmul.f32 %v19759_v18, %v15093_v16 }
 0x501   : >> { %v1063_v36 = vmul.f32 1.442695, %v19897_v34 }
 0x502   : >> { %10249 = vpow2.f32 %v1065_v57 }
 0x503   : >> { %10251 = vpow2.f32 %v1063_v36 }
 0x504   : >> { %10253 = vpow2.f32 %v1069_v63 }
 0x505   : >> { %v15095_v21 = vpop.eup %10247  ;;  %10255 = vpow2.f32 %v1067_v7 }
 0x506   : >> { %19899 = vst [vmem:[#allocation178_spill] sm:$0xff] %v15095_v21  ;;  %v1137_v10 = vmul.f32 %v19760_v32, %v15095_v21 }
 0x50c   : >> { %v15111_v55 = vpop.eup %10249 }
 0x50d   : >> { %19905 = vst [vmem:[#allocation168_spill] sm:$0xff] %v15111_v55  ;;  %v1140_v58 = vmul.f32 %v19757_v20, %v15111_v55 }
 0x57d   : >> { %v6441_v41 = vpop.f32.mrb[8].mxu0 }
 0x57e   : >> { %v15077_v5 = vadd.f32 %v6441_v41, %v1136_v12   ;;  %v1257_v40 = vpop.f32.mrb[9].mxu0  ;;  %v15113_v12 = vpop.eup %10251 }
 0x57f   : >> { %v15079_v9 = vadd.f32 %v1257_v40, %v1135_v30   ;;  %19906 = vst [vmem:[#allocation179_spill] sm:$0xff] %v15113_v12  ;;  %v1139_v30 = vmul.f32 %v19758_v25, %v15113_v12 }
 0x580   : >> { %19892 = vst [vmem:[#allocation232_spill] sm:$0xff] %v15077_v5 }
 0x581   : >> { %19893 = vst [vmem:[#allocation233_spill] sm:$0xff] %v15079_v9 }
 0x5b1   : >> { %v6444_v9 = vpop.f32.mrb[10].mxu0 }
 0x5b2   : >> { %v15107_v18 = vadd.f32 %v6444_v9, %v1138_v0   ;;  %v1267_v56 = vpop.f32.mrb[11].mxu0 }
 0x5b3   : >> { %v15109_v35 = vadd.f32 %v1267_v56, %v1137_v10  }
 0x5b4   : >> { %19903 = vst [vmem:[#allocation234_spill] sm:$0xff] %v15107_v18  ;;  %v15123_v18 = vpop.eup %10253 }
 0x5b5   : >> { %19904 = vst [vmem:[#allocation235_spill] sm:$0xff] %v15109_v35  ;;  %19909 = vst [vmem:[#allocation180_spill] sm:$0xff] %v15123_v18  ;;  %v15125_v5 = vpop.eup %10255  ;;  %v1142_v40 = vmul.f32 %v19755_v4, %v15123_v18 }
 0x5b6   : >> { %19910 = vst [vmem:[#allocation238_spill] sm:$0xff] %v15125_v5  ;;  %v1141_v29 = vmul.f32 %v19756_v11, %v15125_v5 }
 0x5b9   : >> { %v6447_v41 = vpop.f32.mrb[12].mxu0 }
 0x5ba   : >> { %v15119_v20 = vadd.f32 %v6447_v41, %v1140_v58   ;;  %v1277_v32 = vpop.f32.mrb[13].mxu0 }
 0x5bb   : >> { %v15121_v25 = vadd.f32 %v1277_v32, %v1139_v30  }
 0x5bc   : >> { %19907 = vst [vmem:[#allocation236_spill] sm:$0xff] %v15119_v20 }
 0x5bd   : >> { %19908 = vst [vmem:[#allocation237_spill] sm:$0xff] %v15121_v25 }
 0x5c1   : >> { %v6450_v51 = vpop.f32.mrb[14].mxu0 }
 0x5c2   : >> { %v15131_v4 = vadd.f32 %v6450_v51, %v1142_v40   ;;  %v1287_v8 = vpop.f32.mrb[15].mxu0 }
 0x5c3   : >> { %v15133_v11 = vadd.f32 %v1287_v8, %v1141_v29   ;;  %v19913_v8 = vld [vmem:[#allocation31_spill] sm:$0xff] }
 0x5c4   : >> { %19911 = vst [vmem:[#allocation239_spill] sm:$0xff] %v15131_v4  ;;  %v19914_v45 = vmov %v19913_v8 }
 0x5c5   : >> { %19912 = vst [vmem:[#allocation240_spill] sm:$0xff] %v15133_v11  ;;  %v6469_v20 = vpop.f32.mrb[16].mxu0 }
 0x5c6   : >> { %v1474_v25 = vsel %vm14836_vm3, %v6469_v20, -1e+30  ;;  %v1434_v28 = vpop.f32.mrb[17].mxu0  ;;  %v19915_v20 = vld [vmem:[#allocation35_spill] sm:$0xff] }
 0x5c7   : >> { %v1473_v26 = vsel %vm14841_vm4, %v1434_v28, -1e+30  ;;  %v1484_v34 = vsel %vm281_vm0, %v1474_v25, -inf  ;;  %v19916_v49 = vmov %v19915_v20  ;;  %v19917_v28 = vld [vmem:[#allocation33_spill] sm:$0xff] }
 0x5c8   : >> { %1485 = vmax.xlane.f32.xlu1 %v1484_v34  ;;  %v1481_v36 = vsel %vm281_vm0, %v1473_v26, -inf  ;;  %v19918_v44 = vmov %v19917_v28  ;;  %v19919_v34 = vld [vmem:[#allocation32_spill] sm:$0xff] }
 0x5c9   : >> { %1482 = vmax.xlane.f32.xlu0 %v1481_v36  ;;  %v6472_v39 = vpop.f32.mrb[18].mxu0  ;;  %v19920_v46 = vmov %v19919_v34  ;;  %v19921_v36 = vld [vmem:[#allocation30_spill] sm:$0xff] }
 0x5ca   : >> { %v1444_v17 = vpop.f32.mrb[19].mxu0  ;;  %v15149_v0 = vsel %vm14867_vm6, %v6472_v39, -1e+30  ;;  %v19922_v53 = vmov %v19921_v36  ;;  %v19923_v39 = vld [vmem:[#allocation36_spill] sm:$0xff] }
 0x5cb   : >> { %v15145_v7 = vsel %vm14862_vm5, %v1444_v17, -1e+30  ;;  %v1490_v56 = vsel %vm281_vm0, %v15149_v0, -inf  ;;  %v19924_v50 = vmov %v19923_v39  ;;  %v19925_v17 = vld [vmem:[#allocation34_spill] sm:$0xff] }
 0x5cc   : >> { %v1487_v9 = vsel %vm281_vm0, %v15145_v7, -inf  ;;  %v19926_v59 = vmov %v19925_v17 }
 0x5cd   : >> { %v6475_v4 = vpop.f32.mrb[20].mxu0 }
 0x5ce   : >> { %v1454_v63 = vpop.f32.mrb[21].mxu0  ;;  %v15155_v10 = vsel %vm14876_vm7, %v6475_v4, -1e+30 }
 0x5cf   : >> { %v1496_v35 = vsel %vm281_vm0, %v15155_v10, -inf  ;;  %v15163_v41 = vsel %vm14893_vm8, %v1454_v63, -1e+30 }
 0x5d0   : >> { %v1493_v32 = vsel %vm281_vm0, %v15163_v41, -inf }
 0x5d1   : >> { %v6478_v52 = vpop.f32.mrb[22].mxu0 }
 0x5d2   : >> { %v1464_v11 = vpop.f32.mrb[23].mxu0  ;;  %v15167_v30 = vsel %vm14900_vm9, %v6478_v52, -1e+30 }
 0x5d3   : >> { %v1502_v40 = vsel %vm281_vm0, %v15167_v30, -inf  ;;  %v15175_v51 = vsel %vm14915_vm10, %v1464_v11, -1e+30 }
 0x5d4   : >> { %v1499_v29 = vsel %vm281_vm0, %v15175_v51, -inf }
 0x5d9   : >> { %9986 = vrot.lane.b32.xlu1 %v14786_v24, %s13220_s27 }
 0x5df   : >> { %9991 = vrot.lane.b32.xlu0 %v14794_v38, %s13220_s27 }
 0x5fd   : >> { %1488 = vmax.xlane.f32.xlu1 %v1487_v9 }
 0x5fe   : >> { %1491 = vmax.xlane.f32.xlu0 %v1490_v56 }
 0x601   : >> { %1497 = vmax.xlane.f32.xlu1 %v1496_v35 }
 0x605   : >> { %1494 = vmax.xlane.f32.xlu1 %v1493_v32 }
 0x609   : >> { %1503 = vmax.xlane.f32.xlu1 %v1502_v40 }
 0x60d   : >> { %1500 = vmax.xlane.f32.xlu1 %v1499_v29 }
 0x614   : >> { %9996 = vrot.lane.b32.xlu0 %v14800_v37, %s13220_s27 }
 0x618   : >> { %10001 = vrot.lane.b32.xlu0 %v14808_v31, %s13220_s27 }
 0x61c   : >> { %1770 = vrot.lane.b32.xlu0 %v19913_v8, %s13220_s27 }
 0x61e   : >> { %1772 = vrot.lane.b32.xlu1 %v19818_v54, %s13220_s27 }
 0x620   : >> { %1774 = vrot.lane.b32.xlu0 %v19915_v20, %s13220_s27 }
 0x622   : >> { %1776 = vrot.lane.b32.xlu1 %v19917_v28, %s13220_s27 }
 0x624   : >> { %1778 = vrot.lane.b32.xlu0 %v19919_v34, %s13220_s27 }
 0x626   : >> { %1780 = vrot.lane.b32.xlu1 %v19921_v36, %s13220_s27 }
 0x628   : >> { %1782 = vrot.lane.b32.xlu0 %v19923_v39, %s13220_s27 }
 0x62a   : >> { %1784 = vrot.lane.b32.xlu1 %v19925_v17, %s13220_s27 }
 0x62c   : >> { %10006 = vrot.lane.b32.xlu0 %v14786_v24, %s13221_s28 }
 0x62e   : >> { %10011 = vrot.lane.b32.xlu1 %v14794_v38, %s13221_s28 }
 0x630   : >> { %10016 = vrot.lane.b32.xlu0 %v14800_v37, %s13221_s28 }
 0x634   : >> { %10021 = vrot.lane.b32.xlu0 %v14808_v31, %s13221_s28 }
 0x655   : >> { %v1486_v4 = vpop.xlane.xlu1 %1485 }
 0x656   : >> { %v15194_v63 = vmax.f32 %v19753_v19, %v1486_v4   ;;  %v1483_v52 = vpop.xlane.xlu0 %1482 }
 0x657   : >> { %v15197_v11 = vmax.f32 %v19754_v6, %v1483_v52  }
 0x658   : >> { %19927 = vst [vmem:[#allocation241_spill] sm:$0xff] %v15194_v63  ;;  %v19928_v48 = vmov %v15194_v63 }
 0x659   : >> { %19929 = vst [vmem:[#allocation242_spill] sm:$0xff] %v15197_v11  ;;  %v19930_v61 = vmov %v15197_v11  ;;  %v1538_v56 = vsub.f32 %v1474_v25, %v19928_v48  ;;  %v9987_v40 = vpop.permute.xlu1 %9986 }
 0x65a   : >> { %v1537_v32 = vsub.f32 %v1473_v26, %v19930_v61  ;;  %v9989_v29 = vunpack.i.h.bf16 %v9987_v40  ;;  %v9988_v8 = vunpack.i.l.bf16 %v9987_v40  ;;  %v9992_v36 = vpop.permute.xlu0 %9991 }
 0x65b   : >> { %v1547_v28 = vmul.f32 1.442695, %v1538_v56  ;;  %v9994_v39 = vunpack.i.h.bf16 %v9992_v36  ;;  %v9993_v17 = vunpack.i.l.bf16 %v9992_v36 }
 0x65c   : >> { %v1545_v20 = vmul.f32 1.442695, %v1537_v32  ;;  %v6983_v34 = vpack.c.bf16 %v9989_v29, %v9988_v8  ;;  %v19939_v32 = vld [vmem:[#allocation159_spill] sm:$0xff] }
 0x65d   : >> { %v6989_v26 = vpack.c.bf16 %v9994_v39, %v9993_v17 }
 0x65e   : >> { %6985 = vmatprep.subr.msk.bf16.mxu1 %vm14782_vm2, %v6983_v34  ;;  %10257 = vpow2.f32 %v1545_v20 }
 0x65f   : >> { %10259 = vpow2.f32 %v1547_v28 }
 0x668   : >> { %v15207_v25 = vpop.eup %10257 }
 0x669   : >> { %19931 = vst [vmem:[#allocation243_spill] sm:$0xff] %v15207_v25  ;;  %v15209_v4 = vpop.eup %10259  ;;  %6495 = vmatprep.mubr.msk.f32.mxu1 %vm281_vm0, %v15207_v25 }
 0x66a   : >> { %6496 = vmatmul.mubr.msk.f32.vlgmr.msra.gmra.mrb[8].mxu1 %vm281_vm0, %v15209_v4 }
 0x66b   : >> { %6988 = vmatpush3.bf16.xpose.msk.msra.mxu1 %vm14782_vm2, %v6983_v34  ;;  %v19936_v34 = vld [vmem:[#allocation158_spill] sm:$0xff] }
 0x66c   : >> { %6991 = vmatprep.subr.msk.bf16.mxu1 %vm14782_vm2, %v6989_v26 }
 0x673   : >> { %6994 = vmatpush3.bf16.xpose.msk.msra.mxu1 %vm14782_vm2, %v6989_v26 }
 0x68a   : >> { %v1489_v63 = vpop.xlane.xlu1 %1488 }
 0x68b   : >> { %v15222_v52 = vmax.f32 %v19752_v2, %v1489_v63   ;;  %v1492_v11 = vpop.xlane.xlu0 %1491 }
 0x68c   : >> { %v15225_v56 = vmax.f32 %v19751_v60, %v1492_v11  }
 0x68d   : >> { %19932 = vst [vmem:[#allocation244_spill] sm:$0xff] %v15222_v52  ;;  %v19933_v35 = vmov %v15222_v52 }
 0x68e   : >> { %19934 = vst [vmem:[#allocation245_spill] sm:$0xff] %v15225_v56  ;;  %v19935_v9 = vmov %v15225_v56  ;;  %v1539_v40 = vsub.f32 %v15145_v7, %v19933_v35  ;;  %v1498_v20 = vpop.xlane.xlu1 %1497 }
 0x68f   : >> { %v1540_v8 = vsub.f32 %v15149_v0, %v19935_v9  ;;  %v15236_v36 = vmax.f32 %v19936_v34, %v1498_v20   ;;  %v9997_v39 = vpop.permute.xlu0 %9996 }
 0x690   : >> { %v1549_v28 = vmul.f32 1.442695, %v1539_v40  ;;  %v9999_v26 = vunpack.i.h.bf16 %v9997_v39  ;;  %v9998_v63 = vunpack.i.l.bf16 %v9997_v39 }
 0x691   : >> { %19937 = vst [vmem:[#allocation158_spill] sm:$0xff] %v15236_v36  ;;  %v19938_v57 = vmov %v15236_v36  ;;  %v1551_v17 = vmul.f32 1.442695, %v1540_v8 }
 0x692   : >> { %10261 = vpow2.f32 %v1549_v28  ;;  %v6995_v7 = vpack.c.bf16 %v9999_v26, %v9998_v63  ;;  %v1495_v11 = vpop.xlane.xlu1 %1494  ;;  %v1542_v56 = vsub.f32 %v15155_v10, %v19938_v57 }
 0x693   : >> { %v15243_v0 = vmax.f32 %v19939_v32, %v1495_v11   ;;  %v10002_v40 = vpop.permute.xlu0 %10001  ;;  %10263 = vpow2.f32 %v1551_v17  ;;  %v19942_v11 = vld [vmem:[#allocation156_spill] sm:$0xff] }
 0x694   : >> { %v10004_v20 = vunpack.i.h.bf16 %v10002_v40  ;;  %v10003_v36 = vunpack.i.l.bf16 %v10002_v40  ;;  %6997 = vmatprep.subr.msk.bf16.mxu1 %vm14782_vm2, %v6995_v7  ;;  %v1555_v26 = vmul.f32 1.442695, %v1542_v56 }
 0x695   : >> { %19940 = vst [vmem:[#allocation159_spill] sm:$0xff] %v15243_v0  ;;  %v19941_v29 = vmov %v15243_v0  ;;  %7000 = vmatpush3.bf16.xpose.msk.msra.mxu1 %vm14782_vm2, %v6995_v7  ;;  %v19945_v7 = vld [vmem:[#allocation157_spill] sm:$0xff] }
 0x696   : >> { %v1541_v28 = vsub.f32 %v15163_v41, %v19941_v29  ;;  %v7001_v10 = vpack.c.bf16 %v10004_v20, %v10003_v36  ;;  %v1504_v39 = vpop.xlane.xlu1 %1503 }
 0x697   : >> { %v15254_v17 = vmax.f32 %v19942_v11, %v1504_v39   ;;  %v1771_v0 = vpop.permute.xlu0 %1770 }
 0x698   : >> { %v1553_v63 = vmul.f32 1.442695, %v1541_v28  ;;  %7003 = vmatprep.subr.msk.bf16.mxu1 %vm14782_vm2, %v7001_v10 }
 0x699   : >> { %19943 = vst [vmem:[#allocation156_spill] sm:$0xff] %v15254_v17  ;;  %v19944_v52 = vmov %v15254_v17 }
 0x69a   : >> { %10265 = vpow2.f32 %v1553_v63  ;;  %v1501_v8 = vpop.xlane.xlu1 %1500  ;;  %v1544_v41 = vsub.f32 %v15167_v30, %v19944_v52 }
 0x69b   : >> { %10267 = vpow2.f32 %v1555_v26  ;;  %v15263_v56 = vmax.f32 %v19945_v7, %v1501_v8   ;;  %v1775_v20 = vpop.permute.xlu0 %1774 }
 0x69c   : >> { %v15265_v36 = vpop.eup %10261  ;;  %v1559_v8 = vmul.f32 1.442695, %v1544_v41 }
 0x69d   : >> { %19946 = vst [vmem:[#allocation157_spill] sm:$0xff] %v15263_v56  ;;  %v19947_v58 = vmov %v15263_v56  ;;  %19948 = vst [vmem:[#allocation246_spill] sm:$0xff] %v15265_v36  ;;  %6498 = vmatprep.mubr.msk.f32.mxu1 %vm281_vm0, %v15265_v36  ;;  %7006 = vmatpush3.bf16.xpose.msk.msra.mxu1 %vm14782_vm2, %v7001_v10  ;;  %v15275_v26 = vpop.eup %10263 }
 0x69e   : >> { %v1543_v39 = vsub.f32 %v15175_v51, %v19947_v58  ;;  %v1773_v30 = vpop.permute.xlu1 %1772  ;;  %6499 = vmatmul.mubr.msk.f32.gmra.mrb[10].mxu1 %vm281_vm0, %v15275_v26 }
 0x69f   : >> { %v1779_v63 = vpop.permute.xlu0 %1778 }
 0x6a0   : >> { %v1557_v56 = vmul.f32 1.442695, %v1543_v39 }
 0x6a2   : >> { %10269 = vpow2.f32 %v1557_v56  ;;  %v1777_v17 = vpop.permute.xlu1 %1776 }
 0x6a3   : >> { %10271 = vpow2.f32 %v1559_v8  ;;  %v1783_v28 = vpop.permute.xlu0 %1782 }
 0x6a4   : >> { %v15279_v51 = vpop.eup %10265 }
 0x6a5   : >> { %19949 = vst [vmem:[#allocation247_spill] sm:$0xff] %v15279_v51  ;;  %v15281_v40 = vpop.eup %10267  ;;  %6501 = vmatprep.mubr.msk.f32.mxu1 %vm281_vm0, %v15279_v51 }
 0x6a6   : >> { %6502 = vmatmul.mubr.msk.f32.gmra.mrb[12].mxu1 %vm281_vm0, %v15281_v40  ;;  %v1781_v10 = vpop.permute.xlu1 %1780 }
 0x6a7   : >> { %v10007_v41 = vpop.permute.xlu0 %10006 }
 0x6a8   : >> { %v10009_v39 = vunpack.i.h.bf16 %v10007_v41  ;;  %v10008_v62 = vunpack.i.l.bf16 %v10007_v41 }
 0x6aa   : >> { %v1785_v5 = vpop.permute.xlu1 %1784  ;;  %v7007_v12 = vpack.c.bf16 %v10009_v39, %v10008_v62 }
 0x6ab   : >> { %v10017_v56 = vpop.permute.xlu0 %10016 }
 0x6ac   : >> { %v15287_v14 = vpop.eup %10269  ;;  %7008 = vmatprep.subr.bf16.mxu0 %v7007_v12  ;;  %v10019_v55 = vunpack.i.h.bf16 %v10017_v56  ;;  %v10018_v16 = vunpack.i.l.bf16 %v10017_v56 }
 0x6ad   : >> { %19950 = vst [vmem:[#allocation248_spill] sm:$0xff] %v15287_v14  ;;  %v15289_v8 = vpop.eup %10271  ;;  %6504 = vmatprep.mubr.msk.f32.mxu1 %vm281_vm0, %v15287_v14  ;;  %7010 = vmatpush3.bf16.msra.mxu0 %v7007_v12 }
 0x6ae   : >> { %6505 = vmatmul.mubr.msk.f32.gmra.mrb[14].mxu1 %vm281_vm0, %v15289_v8  ;;  %v10012_v18 = vpop.permute.xlu1 %10011  ;;  %v7015_v36 = vpack.c.bf16 %v10019_v55, %v10018_v16  ;;  %v19951_v16 = vsub.f32 %v19753_v19, %v19928_v48  ;;  %v19952_v55 = vsub.f32 %v19754_v6, %v19930_v61  ;;  %v19959_v6 = vsub.f32 %v19751_v60, %v19935_v9 }
 0x6af   : >> { %v10014_v21 = vunpack.i.h.bf16 %v10012_v18  ;;  %v10013_v41 = vunpack.i.l.bf16 %v10012_v18  ;;  %6523 = vmatprep.mubr.msk.f32.mxu1 %vm853_vm1, %v1771_v0  ;;  %v10022_v62 = vpop.permute.xlu0 %10021 }
 0x6b0   : >> { %v10024_v15 = vunpack.i.h.bf16 %v10022_v62  ;;  %v10023_v51 = vunpack.i.l.bf16 %v10022_v62  ;;  %v1521_v18 = vmul.f32 1.442695, %v19952_v55 }
 0x6b1   : >> { %v7011_v39 = vpack.c.bf16 %v10014_v21, %v10013_v41  ;;  %v1523_v21 = vmul.f32 1.442695, %v19951_v16  ;;  %v19961_v41 = vsub.f32 %v19936_v34, %v19938_v57  ;;  %v19968_v34 = vld [vmem:[#allocation144_spill] sm:$0xff] }
 0x6b2   : >> { %6524 = vmatmul.mubr.msk.f32.vlgmr.msra.gmra.mrb[16].mxu1 %vm853_vm1, %v1773_v30  ;;  %v7019_v12 = vpack.c.bf16 %v10024_v15, %v10023_v51  ;;  %v1527_v51 = vmul.f32 1.442695, %v19959_v6 }
 0x6b3   : >> { %7012 = vmatprep.subr.bf16.mxu0 %v7011_v39  ;;  %6526 = vmatprep.mubr.msk.f32.mxu1 %vm853_vm1, %v1775_v20  ;;  %10273 = vpow2.f32 %v1523_v21  ;;  %v19955_v20 = vld [vmem:[#allocation146_spill] sm:$0xff] }
 0x6b4   : >> { %7014 = vmatpush3.bf16.msra.mxu0 %v7011_v39  ;;  %10275 = vpow2.f32 %v1521_v18  ;;  %v1531_v39 = vmul.f32 1.442695, %v19961_v41 }
 0x6b5   : >> { %7016 = vmatprep.subr.bf16.mxu0 %v7015_v36  ;;  %10277 = vpow2.f32 %v1527_v51  ;;  %v19975_v51 = vld [vmem:[#allocation143_spill] sm:$0xff] }
 0x6b6   : >> { %6527 = vmatmul.mubr.msk.f32.gmra.mrb[18].mxu1 %vm853_vm1, %v1777_v17 }
 0x6b7   : >> { %6529 = vmatprep.mubr.msk.f32.mxu1 %vm853_vm1, %v1779_v63 }
 0x6b8   : >> { %7018 = vmatpush3.bf16.msra.mxu0 %v7015_v36 }
 0x6b9   : >> { %7020 = vmatprep.subr.bf16.mxu0 %v7019_v12 }
 0x6ba   : >> { %6530 = vmatmul.mubr.msk.f32.gmra.mrb[20].mxu1 %vm853_vm1, %v1781_v10  ;;  %v19960_v10 = vsub.f32 %v19752_v2, %v19933_v35  ;;  %v19965_v2 = vsub.f32 %v19942_v11, %v19944_v52 }
 0x6bb   : >> { %6532 = vmatprep.mubr.msk.f32.mxu1 %vm853_vm1, %v1783_v28 }
 0x6bc   : >> { %7022 = vmatpush3.bf16.msra.mxu0 %v7019_v12  ;;  %v1525_v56 = vmul.f32 1.442695, %v19960_v10  ;;  %v19962_v12 = vsub.f32 %v19939_v32, %v19941_v29  ;;  %v1535_v55 = vmul.f32 1.442695, %v19965_v2  ;;  %v19969_v32 = vld [vmem:[#allocation145_spill] sm:$0xff] }
 0x6bd   : >> { %v15309_v15 = vpop.eup %10273 }
 0x6be   : >> { %6533 = vmatmul.mubr.msk.f32.gmra.mrb[22].mxu1 %vm853_vm1, %v1785_v5  ;;  %19953 = vst [vmem:[#allocation249_spill] sm:$0xff] %v15309_v15  ;;  %v15311_v0 = vpop.eup %10275  ;;  %v1602_v36 = vmul.f32 %v19955_v20, %v15309_v15  ;;  %v19956_v5 = vld [vmem:[#allocation147_spill] sm:$0xff]  ;;  %10279 = vpow2.f32 %v1525_v56  ;;  %v1529_v16 = vmul.f32 1.442695, %v19962_v12  ;;  %v19966_v56 = vmov %v19947_v58 }
 0x6bf   : >> { %19954 = vst [vmem:[#allocation250_spill] sm:$0xff] %v15311_v0  ;;  %v1601_v30 = vmul.f32 %v19956_v5, %v15311_v0  ;;  %10281 = vpow2.f32 %v1531_v39  ;;  %v15333_v21 = vpop.eup %10277  ;;  %v19967_v18 = vsub.f32 %v19945_v7, %v19966_v56 }
 0x6c0   : >> { %10283 = vpow2.f32 %v1529_v16  ;;  %19963 = vst [vmem:[#allocation146_spill] sm:$0xff] %v15333_v21 }
 0x6c1   : >> { %v1533_v20 = vmul.f32 1.442695, %v19967_v18  ;;  %10285 = vpow2.f32 %v1535_v55  ;;  %v19981_v55 = vld [vmem:[#allocation141_spill] sm:$0xff] }
 0x6c3   : >> { %10287 = vpow2.f32 %v1533_v20 }
 0x6c8   : >> { %v15335_v60 = vpop.eup %10279 }
 0x6c9   : >> { %19964 = vst [vmem:[#allocation147_spill] sm:$0xff] %v15335_v60  ;;  %v1603_v5 = vmul.f32 %v19969_v32, %v15335_v60  ;;  %v15351_v11 = vpop.eup %10281 }
 0x6ca   : >> { %19972 = vst [vmem:[#allocation144_spill] sm:$0xff] %v15351_v11 }
 0x73d   : >> { %v6497_v28 = vpop.f32.mrb[8].mxu1 }
 0x73e   : >> { %v15317_v63 = vadd.f32 %v6497_v28, %v1602_v36   ;;  %v1723_v19 = vpop.f32.mrb[9].mxu1  ;;  %v1604_v36 = vmul.f32 %v19968_v34, %v15333_v21 }
 0x73f   : >> { %v15319_v17 = vadd.f32 %v1723_v19, %v1601_v30   ;;  %v19974_v19 = vld [vmem:[#allocation142_spill] sm:$0xff] }
 0x740   : >> { %19957 = vst [vmem:[#allocation251_spill] sm:$0xff] %v15317_v63  ;;  %v15353_v63 = vpop.eup %10283 }
 0x741   : >> { %19958 = vst [vmem:[#allocation252_spill] sm:$0xff] %v15319_v17  ;;  %19973 = vst [vmem:[#allocation145_spill] sm:$0xff] %v15353_v63  ;;  %v1606_v17 = vmul.f32 %v19974_v19, %v15351_v11  ;;  %v1605_v56 = vmul.f32 %v19975_v51, %v15353_v63  ;;  %v19999_v63 = vld [vmem:[#allocation135_spill] sm:$0xff] }
 0x771   : >> { %v6500_v28 = vpop.f32.mrb[10].mxu1 }
 0x772   : >> { %v15347_v7 = vadd.f32 %v6500_v28, %v1604_v36   ;;  %v1733_v30 = vpop.f32.mrb[11].mxu1 }
 0x773   : >> { %v15349_v10 = vadd.f32 %v1733_v30, %v1603_v5  }
 0x774   : >> { %19970 = vst [vmem:[#allocation253_spill] sm:$0xff] %v15347_v7  ;;  %v15363_v7 = vpop.eup %10285 }
 0x775   : >> { %19971 = vst [vmem:[#allocation254_spill] sm:$0xff] %v15349_v10  ;;  %19978 = vst [vmem:[#allocation142_spill] sm:$0xff] %v15363_v7  ;;  %v15365_v12 = vpop.eup %10287  ;;  %v19980_v10 = vld [vmem:[#allocation140_spill] sm:$0xff] }
 0x776   : >> { %19979 = vst [vmem:[#allocation143_spill] sm:$0xff] %v15365_v12  ;;  %v1608_v16 = vmul.f32 %v19980_v10, %v15363_v7  ;;  %v1607_v18 = vmul.f32 %v19981_v55, %v15365_v12 }
 0x779   : >> { %v6503_v6 = vpop.f32.mrb[12].mxu1 }
 0x77a   : >> { %v15359_v5 = vadd.f32 %v6503_v6, %v1606_v17   ;;  %v1743_v41 = vpop.f32.mrb[13].mxu1 }
 0x77b   : >> { %v15361_v39 = vadd.f32 %v1743_v41, %v1605_v56  }
 0x77c   : >> { %19976 = vst [vmem:[#allocation255_spill] sm:$0xff] %v15359_v5 }
 0x77d   : >> { %19977 = vst [vmem:[#allocation256_spill] sm:$0xff] %v15361_v39 }
 0x781   : >> { %v6506_v2 = vpop.f32.mrb[14].mxu1 }
 0x782   : >> { %v15371_v20 = vadd.f32 %v6506_v2, %v1608_v16   ;;  %v1753_v34 = vpop.f32.mrb[15].mxu1 }
 0x783   : >> { %v15373_v36 = vadd.f32 %v1753_v34, %v1607_v18  }
 0x784   : >> { %19982 = vst [vmem:[#allocation257_spill] sm:$0xff] %v15371_v20 }
 0x785   : >> { %19983 = vst [vmem:[#allocation258_spill] sm:$0xff] %v15373_v36  ;;  %v6525_v28 = vpop.f32.mrb[16].mxu1 }
 0x786   : >> { %v1940_v32 = vsel %vm14836_vm3, %v6525_v28, -1e+30  ;;  %v1900_v5 = vpop.f32.mrb[17].mxu1 }
 0x787   : >> { %v1939_v30 = vsel %vm14841_vm4, %v1900_v5, -1e+30  ;;  %v1950_v19 = vsel %vm281_vm0, %v1940_v32, -inf }
 0x788   : >> { %1951 = vmax.xlane.f32.xlu1 %v1950_v19  ;;  %v1947_v17 = vsel %vm281_vm0, %v1939_v30, -inf }
 0x789   : >> { %1948 = vmax.xlane.f32.xlu0 %v1947_v17  ;;  %v6528_v6 = vpop.f32.mrb[18].mxu1 }
 0x78a   : >> { %v1910_v51 = vpop.f32.mrb[19].mxu1  ;;  %v15389_v2 = vsel %vm14867_vm6, %v6528_v6, -1e+30 }
 0x78b   : >> { %v15385_v16 = vsel %vm14862_vm5, %v1910_v51, -1e+30  ;;  %v1956_v20 = vsel %vm281_vm0, %v15389_v2, -inf }
 0x78c   : >> { %v1953_v55 = vsel %vm281_vm0, %v15385_v16, -inf }
 0x78d   : >> { %v6531_v56 = vpop.f32.mrb[20].mxu1 }
 0x78e   : >> { %v1920_v41 = vpop.f32.mrb[21].mxu1  ;;  %v15395_v18 = vsel %vm14876_vm7, %v6531_v56, -1e+30  ;;  %v19984_v56 = vld [vmem:[#allocation138_spill] sm:$0xff] }
 0x78f   : >> { %v1962_v34 = vsel %vm281_vm0, %v15395_v18, -inf  ;;  %v15403_v36 = vsel %vm14893_vm8, %v1920_v41, -1e+30 }
 0x790   : >> { %v1959_v5 = vsel %vm281_vm0, %v15403_v36, -inf }
 0x791   : >> { %v6534_v39 = vpop.f32.mrb[22].mxu1 }
 0x792   : >> { %v1930_v10 = vpop.f32.mrb[23].mxu1  ;;  %v15407_v28 = vsel %vm14900_vm9, %v6534_v39, -1e+30 }
 0x793   : >> { %v1968_v19 = vsel %vm281_vm0, %v15407_v28, -inf  ;;  %v15415_v17 = vsel %vm14915_vm10, %v1930_v10, -1e+30  ;;  %v19987_v10 = vld [vmem:[#allocation139_spill] sm:$0xff] }
 0x794   : >> { %v1965_v6 = vsel %vm281_vm0, %v15415_v17, -inf }
 0x799   : >> { %10026 = vrot.lane.b32.xlu1 %v14786_v24, %s13222_s29 }
 0x79f   : >> { %10031 = vrot.lane.b32.xlu0 %v14794_v38, %s13222_s29 }
 0x7bd   : >> { %1954 = vmax.xlane.f32.xlu1 %v1953_v55 }
 0x7be   : >> { %1957 = vmax.xlane.f32.xlu0 %v1956_v20 }
 0x7c1   : >> { %1963 = vmax.xlane.f32.xlu1 %v1962_v34 }
 0x7c5   : >> { %1960 = vmax.xlane.f32.xlu1 %v1959_v5 }
 0x7c9   : >> { %1969 = vmax.xlane.f32.xlu1 %v1968_v19 }
 0x7cd   : >> { %1966 = vmax.xlane.f32.xlu1 %v1965_v6 }
 0x7d4   : >> { %10036 = vrot.lane.b32.xlu0 %v14800_v37, %s13222_s29 }
 0x7d8   : >> { %10041 = vrot.lane.b32.xlu0 %v14808_v31, %s13222_s29 }
 0x7dc   : >> { %2236 = vrot.lane.b32.xlu0 %v19914_v45, %s13222_s29 }
 0x7de   : >> { %2238 = vrot.lane.b32.xlu1 %v19818_v54, %s13222_s29 }
 0x7e0   : >> { %2240 = vrot.lane.b32.xlu0 %v19916_v49, %s13222_s29 }
 0x7e2   : >> { %2242 = vrot.lane.b32.xlu1 %v19918_v44, %s13222_s29 }
 0x7e4   : >> { %2244 = vrot.lane.b32.xlu0 %v19920_v46, %s13222_s29 }
 0x7e6   : >> { %2246 = vrot.lane.b32.xlu1 %v19922_v53, %s13222_s29 }
 0x7e8   : >> { %2248 = vrot.lane.b32.xlu0 %v19924_v50, %s13222_s29 }
 0x7ea   : >> { %2250 = vrot.lane.b32.xlu1 %v19926_v59, %s13222_s29 }
 0x7ec   : >> { %10046 = vrot.lane.b32.xlu0 %v14786_v24, %s13223_s30 }
 0x7ee   : >> { %10051 = vrot.lane.b32.xlu1 %v14794_v38, %s13223_s30 }
 0x7f0   : >> { %10056 = vrot.lane.b32.xlu0 %v14800_v37, %s13223_s30 }
 0x7f4   : >> { %10061 = vrot.lane.b32.xlu0 %v14808_v31, %s13223_s30 }
 0x815   : >> { %v1952_v51 = vpop.xlane.xlu1 %1951 }
 0x816   : >> { %v15434_v41 = vmax.f32 %v19984_v56, %v1952_v51   ;;  %v1949_v39 = vpop.xlane.xlu0 %1948 }
 0x817   : >> { %v15437_v55 = vmax.f32 %v19987_v10, %v1949_v39  }
 0x818   : >> { %19985 = vst [vmem:[#allocation138_spill] sm:$0xff] %v15434_v41  ;;  %v19986_v48 = vmov %v15434_v41 }
 0x819   : >> { %19988 = vst [vmem:[#allocation139_spill] sm:$0xff] %v15437_v55  ;;  %v19989_v35 = vmov %v15437_v55  ;;  %v2004_v34 = vsub.f32 %v1940_v32, %v19986_v48  ;;  %v10027_v6 = vpop.permute.xlu1 %10026 }
 0x81a   : >> { %v2003_v19 = vsub.f32 %v1939_v30, %v19989_v35  ;;  %v10029_v29 = vunpack.i.h.bf16 %v10027_v6  ;;  %v10028_v52 = vunpack.i.l.bf16 %v10027_v6  ;;  %v10032_v39 = vpop.permute.xlu0 %10031 }
 0x81b   : >> { %v2013_v51 = vmul.f32 1.442695, %v2004_v34  ;;  %v10034_v55 = vunpack.i.h.bf16 %v10032_v39  ;;  %v10033_v20 = vunpack.i.l.bf16 %v10032_v39 }
 0x81c   : >> { %v2011_v9 = vmul.f32 1.442695, %v2003_v19  ;;  %v7023_v41 = vpack.c.bf16 %v10029_v29, %v10028_v52  ;;  %v19992_v29 = vld [vmem:[#allocation137_spill] sm:$0xff]  ;;  %v19994_v19 = vld [vmem:[#allocation136_spill] sm:$0xff] }
 0x81d   : >> { %v7029_v30 = vpack.c.bf16 %v10034_v55, %v10033_v20 }
 0x81e   : >> { %7025 = vmatprep.subr.msk.bf16.mxu0 %vm14782_vm2, %v7023_v41  ;;  %10289 = vpow2.f32 %v2011_v9 }
 0x81f   : >> { %10291 = vpow2.f32 %v2013_v51 }
 0x828   : >> { %v15447_v32 = vpop.eup %10289 }
 0x829   : >> { %19990 = vst [vmem:[#allocation140_spill] sm:$0xff] %v15447_v32  ;;  %v15449_v58 = vpop.eup %10291  ;;  %6551 = vmatprep.mubr.msk.f32.mxu0 %vm281_vm0, %v15447_v32 }
 0x82a   : >> { %19991 = vst [vmem:[#allocation141_spill] sm:$0xff] %v15449_v58  ;;  %6552 = vmatmul.mubr.msk.f32.vlgmr.msra.gmra.mrb[24].mxu0 %vm281_vm0, %v15449_v58 }
 0x82b   : >> { %7028 = vmatpush3.bf16.xpose.msk.msra.mxu0 %vm14782_vm2, %v7023_v41 }
 0x82c   : >> { %7031 = vmatprep.subr.msk.bf16.mxu0 %vm14782_vm2, %v7029_v30 }
 0x833   : >> { %7034 = vmatpush3.bf16.xpose.msk.msra.mxu0 %vm14782_vm2, %v7029_v30 }
 0x84a   : >> { %v1955_v9 = vpop.xlane.xlu1 %1954 }
 0x84b   : >> { %v15462_v52 = vmax.f32 %v19992_v29, %v1955_v9   ;;  %v1958_v34 = vpop.xlane.xlu0 %1957  ;;  %v19997_v9 = vld [vmem:[#allocation134_spill] sm:$0xff] }
 0x84c   : >> { %v15465_v6 = vmax.f32 %v19994_v19, %v1958_v34  }
 0x84d   : >> { %19993 = vst [vmem:[#allocation137_spill] sm:$0xff] %v15462_v52  ;;  %v2005_v51 = vsub.f32 %v15385_v16, %v15462_v52 }
 0x84e   : >> { %19995 = vst [vmem:[#allocation136_spill] sm:$0xff] %v15465_v6  ;;  %v19996_v5 = vmov %v15465_v6  ;;  %v1964_v55 = vpop.xlane.xlu1 %1963 }
 0x84f   : >> { %v2006_v39 = vsub.f32 %v15389_v2, %v19996_v5  ;;  %v2015_v30 = vmul.f32 1.442695, %v2005_v51  ;;  %v15476_v61 = vmax.f32 %v19997_v9, %v1964_v55   ;;  %v10037_v57 = vpop.permute.xlu0 %10036 }
 0x850   : >> { %v10039_v6 = vunpack.i.h.bf16 %v10037_v57  ;;  %v10038_v62 = vunpack.i.l.bf16 %v10037_v57 }
 0x851   : >> { %19998 = vst [vmem:[#allocation134_spill] sm:$0xff] %v15476_v61  ;;  %v2017_v34 = vmul.f32 1.442695, %v2006_v39  ;;  %10293 = vpow2.f32 %v2015_v30  ;;  %v2008_v41 = vsub.f32 %v15395_v18, %v15476_v61 }
 0x852   : >> { %v7035_v16 = vpack.c.bf16 %v10039_v6, %v10038_v62  ;;  %v1961_v12 = vpop.xlane.xlu1 %1960  ;;  %v20002_v6 = vld [vmem:[#allocation132_spill] sm:$0xff] }
 0x853   : >> { %v15483_v2 = vmax.f32 %v19999_v63, %v1961_v12   ;;  %v10042_v51 = vpop.permute.xlu0 %10041  ;;  %10295 = vpow2.f32 %v2017_v34  ;;  %v2021_v12 = vmul.f32 1.442695, %v2008_v41 }
 0x854   : >> { %v10044_v55 = vunpack.i.h.bf16 %v10042_v51  ;;  %v10043_v60 = vunpack.i.l.bf16 %v10042_v51  ;;  %7037 = vmatprep.subr.msk.bf16.mxu0 %vm14782_vm2, %v7035_v16 }
 0x855   : >> { %20000 = vst [vmem:[#allocation135_spill] sm:$0xff] %v15483_v2  ;;  %v20001_v58 = vmov %v15483_v2  ;;  %7040 = vmatpush3.bf16.xpose.msk.msra.mxu0 %vm14782_vm2, %v7035_v16 }
 0x856   : >> { %v2007_v62 = vsub.f32 %v15403_v36, %v20001_v58  ;;  %v7041_v18 = vpack.c.bf16 %v10044_v55, %v10043_v60  ;;  %v1970_v39 = vpop.xlane.xlu1 %1969  ;;  %v20005_v60 = vld [vmem:[#allocation133_spill] sm:$0xff] }
 0x857   : >> { %v15494_v41 = vmax.f32 %v20002_v6, %v1970_v39   ;;  %v2237_v34 = vpop.permute.xlu0 %2236 }
 0x858   : >> { %v2019_v30 = vmul.f32 1.442695, %v2007_v62  ;;  %7043 = vmatprep.subr.msk.bf16.mxu0 %vm14782_vm2, %v7041_v18 }
 0x859   : >> { %20003 = vst [vmem:[#allocation132_spill] sm:$0xff] %v15494_v41  ;;  %v20004_v20 = vmov %v15494_v41 }
 0x85a   : >> { %10297 = vpow2.f32 %v2019_v30  ;;  %v1967_v51 = vpop.xlane.xlu1 %1966  ;;  %v2010_v36 = vsub.f32 %v15407_v28, %v20004_v20 }
 0x85b   : >> { %10299 = vpow2.f32 %v2021_v12  ;;  %v15503_v16 = vmax.f32 %v20005_v60, %v1967_v51   ;;  %v2241_v55 = vpop.permute.xlu0 %2240  ;;  %v15505_v62 = vpop.eup %10293 }
 0x85c   : >> { %20008 = vst [vmem:[#allocation259_spill] sm:$0xff] %v15505_v62  ;;  %6554 = vmatprep.mubr.msk.f32.mxu0 %vm281_vm0, %v15505_v62  ;;  %v2025_v30 = vmul.f32 1.442695, %v2010_v36 }
 0x85d   : >> { %20006 = vst [vmem:[#allocation133_spill] sm:$0xff] %v15503_v16  ;;  %v20007_v57 = vmov %v15503_v16  ;;  %7046 = vmatpush3.bf16.xpose.msk.msra.mxu0 %vm14782_vm2, %v7041_v18  ;;  %v15515_v12 = vpop.eup %10295 }
 0x85e   : >> { %v2009_v39 = vsub.f32 %v15415_v17, %v20007_v57  ;;  %v2239_v28 = vpop.permute.xlu1 %2238  ;;  %6555 = vmatmul.mubr.msk.f32.gmra.mrb[26].mxu0 %vm281_vm0, %v15515_v12 }
 0x85f   : >> { %v2245_v16 = vpop.permute.xlu0 %2244 }
 0x860   : >> { %v2023_v51 = vmul.f32 1.442695, %v2009_v39 }
 0x862   : >> { %10301 = vpow2.f32 %v2023_v51  ;;  %v2243_v41 = vpop.permute.xlu1 %2242 }
 0x863   : >> { %10303 = vpow2.f32 %v2025_v30  ;;  %v2249_v2 = vpop.permute.xlu0 %2248 }
 0x864   : >> { %v15519_v17 = vpop.eup %10297 }
 0x865   : >> { %20009 = vst [vmem:[#allocation260_spill] sm:$0xff] %v15519_v17  ;;  %v15521_v0 = vpop.eup %10299  ;;  %6557 = vmatprep.mubr.msk.f32.mxu0 %vm281_vm0, %v15519_v17 }
 0x866   : >> { %20010 = vst [vmem:[#allocation261_spill] sm:$0xff] %v15521_v0  ;;  %6558 = vmatmul.mubr.msk.f32.gmra.mrb[28].mxu0 %vm281_vm0, %v15521_v0  ;;  %v2247_v18 = vpop.permute.xlu1 %2246 }
 0x867   : >> { %v10047_v36 = vpop.permute.xlu0 %10046 }
 0x868   : >> { %v10049_v39 = vunpack.i.h.bf16 %v10047_v36  ;;  %v10048_v7 = vunpack.i.l.bf16 %v10047_v36 }
 0x86a   : >> { %v2251_v11 = vpop.permute.xlu1 %2250  ;;  %v7047_v21 = vpack.c.bf16 %v10049_v39, %v10048_v7 }
 0x86b   : >> { %v10057_v51 = vpop.permute.xlu0 %10056 }
 0x86c   : >> { %v15527_v15 = vpop.eup %10301  ;;  %7048 = vmatprep.subr.bf16.mxu1 %v7047_v21  ;;  %v10059_v62 = vunpack.i.h.bf16 %v10057_v51  ;;  %v10058_v32 = vunpack.i.l.bf16 %v10057_v51  ;;  %v20023_v51 = vsub.f32 %v19997_v9, %v15476_v61  ;;  %v20031_v9 = vld [vmem:[#allocation120_spill] sm:$0xff] }
 0x86d   : >> { %20011 = vst [vmem:[#allocation262_spill] sm:$0xff] %v15527_v15  ;;  %v15529_v30 = vpop.eup %10303  ;;  %6560 = vmatprep.mubr.msk.f32.mxu0 %vm281_vm0, %v15527_v15  ;;  %7050 = vmatpush3.bf16.msra.mxu1 %v7047_v21 }
 0x86e   : >> { %20012 = vst [vmem:[#allocation263_spill] sm:$0xff] %v15529_v30  ;;  %6561 = vmatmul.mubr.msk.f32.gmra.mrb[30].mxu0 %vm281_vm0, %v15529_v30  ;;  %v10052_v17 = vpop.permute.xlu1 %10051  ;;  %v7055_v0 = vpack.c.bf16 %v10059_v62, %v10058_v32 }
 0x86f   : >> { %v10054_v14 = vunpack.i.h.bf16 %v10052_v17  ;;  %v10053_v36 = vunpack.i.l.bf16 %v10052_v17  ;;  %6579 = vmatprep.mubr.msk.f32.mxu0 %vm853_vm1, %v2237_v34  ;;  %v10062_v7 = vpop.permute.xlu0 %10061  ;;  %v20014_v34 = vsub.f32 %v19987_v10, %v19989_v35  ;;  %v20021_v10 = vsub.f32 %v19994_v19, %v19996_v5 }
 0x870   : >> { %v10064_v25 = vunpack.i.h.bf16 %v10062_v7  ;;  %v10063_v13 = vunpack.i.l.bf16 %v10062_v7  ;;  %v20022_v17 = vsub.f32 %v19992_v29, %v15462_v52  ;;  %v20024_v7 = vmov %v20001_v58 }
 0x871   : >> { %v7051_v39 = vpack.c.bf16 %v10054_v14, %v10053_v36  ;;  %v20013_v14 = vsub.f32 %v19984_v56, %v19986_v48  ;;  %v1997_v36 = vmul.f32 1.442695, %v20023_v51  ;;  %v20028_v29 = vsub.f32 %v20002_v6, %v20004_v20  ;;  %v20038_v51 = vld [vmem:[#allocation119_spill] sm:$0xff] }
 0x872   : >> { %6580 = vmatmul.mubr.msk.f32.vlgmr.msra.gmra.mrb[32].mxu0 %vm853_vm1, %v2239_v28  ;;  %v7059_v21 = vpack.c.bf16 %v10064_v25, %v10063_v13 }
 0x873   : >> { %7052 = vmatprep.subr.bf16.mxu1 %v7051_v39  ;;  %6582 = vmatprep.mubr.msk.f32.mxu0 %vm853_vm1, %v2241_v55  ;;  %v1989_v32 = vmul.f32 1.442695, %v20013_v14  ;;  %v1987_v55 = vmul.f32 1.442695, %v20014_v34  ;;  %v20029_v34 = vmov %v20007_v57 }
 0x874   : >> { %7054 = vmatpush3.bf16.msra.mxu1 %v7051_v39 }
 0x875   : >> { %7056 = vmatprep.subr.bf16.mxu1 %v7055_v0  ;;  %10305 = vpow2.f32 %v1989_v32  ;;  %v2001_v32 = vmul.f32 1.442695, %v20028_v29 }
 0x876   : >> { %6583 = vmatmul.mubr.msk.f32.gmra.mrb[34].mxu0 %vm853_vm1, %v2243_v41  ;;  %10307 = vpow2.f32 %v1987_v55  ;;  %v20030_v55 = vsub.f32 %v20005_v60, %v20029_v34  ;;  %v20037_v60 = vld [vmem:[#allocation118_spill] sm:$0xff]  ;;  %v20043_v34 = vld [vmem:[#allocation116_spill] sm:$0xff] }
 0x877   : >> { %6585 = vmatprep.mubr.msk.f32.mxu0 %vm853_vm1, %v2245_v16  ;;  %v1993_v16 = vmul.f32 1.442695, %v20021_v10 }
 0x878   : >> { %7058 = vmatpush3.bf16.msra.mxu1 %v7055_v0  ;;  %v20017_v0 = vld [vmem:[#allocation122_spill] sm:$0xff] }
 0x879   : >> { %7060 = vmatprep.subr.bf16.mxu1 %v7059_v21  ;;  %10309 = vpow2.f32 %v1993_v16 }
 0x87a   : >> { %6586 = vmatmul.mubr.msk.f32.gmra.mrb[36].mxu0 %vm853_vm1, %v2247_v18  ;;  %v1991_v18 = vmul.f32 1.442695, %v20022_v17 }
 0x87b   : >> { %6588 = vmatprep.mubr.msk.f32.mxu0 %vm853_vm1, %v2249_v2 }
 0x87c   : >> { %7062 = vmatpush3.bf16.msra.mxu1 %v7059_v21  ;;  %10311 = vpow2.f32 %v1991_v18 }
 0x87d   : >> { %10313 = vpow2.f32 %v1997_v36 }
 0x87e   : >> { %6589 = vmatmul.mubr.msk.f32.gmra.mrb[38].mxu0 %vm853_vm1, %v2251_v11  ;;  %v20018_v11 = vld [vmem:[#allocation123_spill] sm:$0xff] }
 0x87f   : >> { %v15549_v13 = vpop.eup %10305 }
 0x880   : >> { %20015 = vst [vmem:[#allocation264_spill] sm:$0xff] %v15549_v13  ;;  %v15551_v25 = vpop.eup %10307  ;;  %v2068_v2 = vmul.f32 %v20017_v0, %v15549_v13  ;;  %v1999_v0 = vmul.f32 1.442695, %v20030_v55 }
 0x881   : >> { %20016 = vst [vmem:[#allocation265_spill] sm:$0xff] %v15551_v25  ;;  %v2067_v41 = vmul.f32 %v20018_v11, %v15551_v25 }
 0x883   : >> { %v15573_v14 = vpop.eup %10309 }
 0x884   : >> { %20026 = vst [vmem:[#allocation122_spill] sm:$0xff] %v15573_v14 }
 0x886   : >> { %v15575_v19 = vpop.eup %10311 }
 0x887   : >> { %20027 = vst [vmem:[#allocation123_spill] sm:$0xff] %v15575_v19  ;;  %v15591_v6 = vpop.eup %10313 }
 0x888   : >> { %20035 = vst [vmem:[#allocation120_spill] sm:$0xff] %v15591_v6  ;;  %v2072_v17 = vmul.f32 %v20037_v60, %v15591_v6 }
 0x8fd   : >> { %v6553_v62 = vpop.f32.mrb[24].mxu0 }
 0x8fe   : >> { %v15557_v39 = vadd.f32 %v6553_v62, %v2068_v2   ;;  %v2189_v56 = vpop.f32.mrb[25].mxu0  ;;  %v2070_v2 = vmul.f32 %v20031_v9, %v15573_v14 }
 0x8ff   : >> { %v15559_v28 = vadd.f32 %v2189_v56, %v2067_v41  }
 0x900   : >> { %20019 = vst [vmem:[#allocation266_spill] sm:$0xff] %v15557_v39  ;;  %v20025_v39 = vsub.f32 %v19999_v63, %v20024_v7  ;;  %v20032_v63 = vld [vmem:[#allocation121_spill] sm:$0xff] }
 0x901   : >> { %20020 = vst [vmem:[#allocation267_spill] sm:$0xff] %v15559_v28  ;;  %v2069_v41 = vmul.f32 %v20032_v63, %v15575_v19 }
 0x902   : >> { %v1995_v21 = vmul.f32 1.442695, %v20025_v39 }
 0x904   : >> { %10315 = vpow2.f32 %v1995_v21 }
 0x905   : >> { %10317 = vpow2.f32 %v2001_v32 }
 0x906   : >> { %10319 = vpow2.f32 %v1999_v0 }
 0x90e   : >> { %v15593_v16 = vpop.eup %10315 }
 0x90f   : >> { %20036 = vst [vmem:[#allocation121_spill] sm:$0xff] %v15593_v16  ;;  %v2071_v36 = vmul.f32 %v20038_v51, %v15593_v16  ;;  %v15603_v21 = vpop.eup %10317  ;;  %v20062_v16 = vld [vmem:[#allocation111_spill] sm:$0xff] }
 0x910   : >> { %20041 = vst [vmem:[#allocation118_spill] sm:$0xff] %v15603_v21  ;;  %v15605_v32 = vpop.eup %10319  ;;  %v2074_v55 = vmul.f32 %v20043_v34, %v15603_v21 }
 0x911   : >> { %20042 = vst [vmem:[#allocation119_spill] sm:$0xff] %v15605_v32 }
 0x931   : >> { %v6556_v11 = vpop.f32.mrb[26].mxu0 }
 0x932   : >> { %v15587_v56 = vadd.f32 %v6556_v11, %v2070_v2   ;;  %v2199_v28 = vpop.f32.mrb[27].mxu0  ;;  %v20044_v2 = vld [vmem:[#allocation117_spill] sm:$0xff] }
 0x933   : >> { %v15589_v10 = vadd.f32 %v2199_v28, %v2069_v41   ;;  %v2073_v11 = vmul.f32 %v20044_v2, %v15605_v32 }
 0x934   : >> { %20033 = vst [vmem:[#allocation268_spill] sm:$0xff] %v15587_v56 }
 0x935   : >> { %20034 = vst [vmem:[#allocation269_spill] sm:$0xff] %v15589_v10 }
 0x939   : >> { %v6559_v18 = vpop.f32.mrb[28].mxu0 }
 0x93a   : >> { %v15599_v29 = vadd.f32 %v6559_v18, %v2072_v17   ;;  %v2209_v7 = vpop.f32.mrb[29].mxu0 }
 0x93b   : >> { %v15601_v39 = vadd.f32 %v2209_v7, %v2071_v36  }
 0x93c   : >> { %20039 = vst [vmem:[#allocation270_spill] sm:$0xff] %v15599_v29 }
 0x93d   : >> { %20040 = vst [vmem:[#allocation271_spill] sm:$0xff] %v15601_v39 }
 0x941   : >> { %v6562_v0 = vpop.f32.mrb[30].mxu0 }
 0x942   : >> { %v15611_v63 = vadd.f32 %v6562_v0, %v2074_v55   ;;  %v2219_v41 = vpop.f32.mrb[31].mxu0 }
 0x943   : >> { %v15613_v28 = vadd.f32 %v2219_v41, %v2073_v11  }
 0x944   : >> { %20045 = vst [vmem:[#allocation272_spill] sm:$0xff] %v15611_v63 }
 0x945   : >> { %20046 = vst [vmem:[#allocation273_spill] sm:$0xff] %v15613_v28  ;;  %v6581_v29 = vpop.f32.mrb[32].mxu0 }
 0x946   : >> { %v2406_v56 = vsel %vm14836_vm3, %v6581_v29, -1e+30  ;;  %v2366_v10 = vpop.f32.mrb[33].mxu0 }
 0x947   : >> { %v2405_v60 = vsel %vm14841_vm4, %v2366_v10, -1e+30  ;;  %v2416_v17 = vsel %vm281_vm0, %v2406_v56, -inf }
 0x948   : >> { %2417 = vmax.xlane.f32.xlu1 %v2416_v17  ;;  %v2413_v18 = vsel %vm281_vm0, %v2405_v60, -inf }
 0x949   : >> { %2414 = vmax.xlane.f32.xlu0 %v2413_v18  ;;  %v6584_v51 = vpop.f32.mrb[34].mxu0 }
 0x94a   : >> { %v2376_v36 = vpop.f32.mrb[35].mxu0  ;;  %v15629_v0 = vsel %vm14867_vm6, %v6584_v51, -1e+30 }
 0x94b   : >> { %v15625_v55 = vsel %vm14862_vm5, %v2376_v36, -1e+30  ;;  %v2422_v63 = vsel %vm281_vm0, %v15629_v0, -inf }
 0x94c   : >> { %v2419_v2 = vsel %vm281_vm0, %v15625_v55, -inf }
 0x94d   : >> { %v6587_v7 = vpop.f32.mrb[36].mxu0 }
 0x94e   : >> { %v2386_v39 = vpop.f32.mrb[37].mxu0  ;;  %v15635_v11 = vsel %vm14876_vm7, %v6587_v7, -1e+30 }
 0x94f   : >> { %v2428_v41 = vsel %vm281_vm0, %v15635_v11, -inf  ;;  %v15643_v29 = vsel %vm14893_vm8, %v2386_v39, -1e+30  ;;  %v20047_v39 = vld [vmem:[#allocation114_spill] sm:$0xff] }
 0x950   : >> { %v2425_v17 = vsel %vm281_vm0, %v15643_v29, -inf }
 0x951   : >> { %v6590_v34 = vpop.f32.mrb[38].mxu0 }
 0x952   : >> { %v2396_v28 = vpop.f32.mrb[39].mxu0  ;;  %v15647_v10 = vsel %vm14900_vm9, %v6590_v34, -1e+30 }
 0x953   : >> { %v2434_v18 = vsel %vm281_vm0, %v15647_v10, -inf  ;;  %v15655_v51 = vsel %vm14915_vm10, %v2396_v28, -1e+30 }
 0x954   : >> { %v2431_v36 = vsel %vm281_vm0, %v15655_v51, -inf }
 0x959   : >> { %10066 = vrot.lane.b32.xlu1 %v14786_v24, %s13224_s6 }
 0x95f   : >> { %10071 = vrot.lane.b32.xlu0 %v14794_v38, %s13224_s6 }
 0x97d   : >> { %2420 = vmax.xlane.f32.xlu1 %v2419_v2  ;;  %v20050_v2 = vld [vmem:[#allocation115_spill] sm:$0xff] }
 0x97e   : >> { %2423 = vmax.xlane.f32.xlu0 %v2422_v63 }
 0x981   : >> { %2429 = vmax.xlane.f32.xlu1 %v2428_v41 }
 0x985   : >> { %2426 = vmax.xlane.f32.xlu1 %v2425_v17 }
 0x989   : >> { %2435 = vmax.xlane.f32.xlu1 %v2434_v18 }
 0x98d   : >> { %2432 = vmax.xlane.f32.xlu1 %v2431_v36 }
 0x994   : >> { %10076 = vrot.lane.b32.xlu0 %v14800_v37, %s13224_s6 }
 0x998   : >> { %10081 = vrot.lane.b32.xlu0 %v14808_v31, %s13224_s6 }
 0x99c   : >> { %2702 = vrot.lane.b32.xlu0 %v19914_v45, %s13224_s6 }
 0x99e   : >> { %2704 = vrot.lane.b32.xlu1 %v19818_v54, %s13224_s6 }
 0x9a0   : >> { %2706 = vrot.lane.b32.xlu0 %v19916_v49, %s13224_s6 }
 0x9a2   : >> { %2708 = vrot.lane.b32.xlu1 %v19918_v44, %s13224_s6 }
 0x9a4   : >> { %2710 = vrot.lane.b32.xlu0 %v19920_v46, %s13224_s6 }
 0x9a6   : >> { %2712 = vrot.lane.b32.xlu1 %v19922_v53, %s13224_s6 }
 0x9a8   : >> { %2714 = vrot.lane.b32.xlu0 %v19924_v50, %s13224_s6 }
 0x9aa   : >> { %2716 = vrot.lane.b32.xlu1 %v19926_v59, %s13224_s6 }
 0x9ac   : >> { %10086 = vrot.lane.b32.xlu0 %v14786_v24, %s13225_s7 }
 0x9ae   : >> { %10091 = vrot.lane.b32.xlu1 %v14794_v38, %s13225_s7 }
 0x9b0   : >> { %10096 = vrot.lane.b32.xlu0 %v14800_v37, %s13225_s7 }
 0x9b4   : >> { %10101 = vrot.lane.b32.xlu0 %v14808_v31, %s13225_s7 }
 0x9d5   : >> { %v2418_v7 = vpop.xlane.xlu1 %2417 }
 0x9d6   : >> { %v15674_v34 = vmax.f32 %v20047_v39, %v2418_v7   ;;  %v2415_v28 = vpop.xlane.xlu0 %2414 }
 0x9d7   : >> { %v15677_v63 = vmax.f32 %v20050_v2, %v2415_v28  }
 0x9d8   : >> { %20048 = vst [vmem:[#allocation114_spill] sm:$0xff] %v15674_v34  ;;  %v20049_v48 = vmov %v15674_v34 }
 0x9d9   : >> { %20051 = vst [vmem:[#allocation115_spill] sm:$0xff] %v15677_v63  ;;  %v20052_v52 = vmov %v15677_v63  ;;  %v2470_v17 = vsub.f32 %v2406_v56, %v20049_v48  ;;  %v10067_v35 = vpop.permute.xlu1 %10066 }
 0x9da   : >> { %v2469_v36 = vsub.f32 %v2405_v60, %v20052_v52  ;;  %v10069_v20 = vunpack.i.h.bf16 %v10067_v35  ;;  %v10068_v62 = vunpack.i.l.bf16 %v10067_v35  ;;  %v10072_v28 = vpop.permute.xlu0 %10071 }
 0x9db   : >> { %v2479_v7 = vmul.f32 1.442695, %v2470_v17  ;;  %v10074_v63 = vunpack.i.h.bf16 %v10072_v28  ;;  %v10073_v41 = vunpack.i.l.bf16 %v10072_v28  ;;  %v20057_v17 = vld [vmem:[#allocation112_spill] sm:$0xff] }
 0x9dc   : >> { %v2477_v5 = vmul.f32 1.442695, %v2469_v36  ;;  %v7063_v34 = vpack.c.bf16 %v10069_v20, %v10068_v62 }
 0x9dd   : >> { %v7069_v60 = vpack.c.bf16 %v10074_v63, %v10073_v41 }
 0x9de   : >> { %7065 = vmatprep.subr.msk.bf16.mxu1 %vm14782_vm2, %v7063_v34  ;;  %10321 = vpow2.f32 %v2477_v5  ;;  %v20055_v5 = vld [vmem:[#allocation113_spill] sm:$0xff] }
 0x9df   : >> { %10323 = vpow2.f32 %v2479_v7 }
 0x9e8   : >> { %v15687_v56 = vpop.eup %10321 }
 0x9e9   : >> { %20053 = vst [vmem:[#allocation116_spill] sm:$0xff] %v15687_v56  ;;  %v15689_v61 = vpop.eup %10323  ;;  %6607 = vmatprep.mubr.msk.f32.mxu1 %vm281_vm0, %v15687_v56 }
 0x9ea   : >> { %20054 = vst [vmem:[#allocation117_spill] sm:$0xff] %v15689_v61  ;;  %6608 = vmatmul.mubr.msk.f32.vlgmr.msra.gmra.mrb[24].mxu1 %vm281_vm0, %v15689_v61 }
 0x9eb   : >> { %7068 = vmatpush3.bf16.xpose.msk.msra.mxu1 %vm14782_vm2, %v7063_v34 }
 0x9ec   : >> { %7071 = vmatprep.subr.msk.bf16.mxu1 %vm14782_vm2, %v7069_v60 }
 0x9f3   : >> { %7074 = vmatpush3.bf16.xpose.msk.msra.mxu1 %vm14782_vm2, %v7069_v60 }
 0xa0a   : >> { %v2421_v35 = vpop.xlane.xlu1 %2420 }
 0xa0b   : >> { %v15702_v20 = vmax.f32 %v20055_v5, %v2421_v35   ;;  %v2424_v62 = vpop.xlane.xlu0 %2423  ;;  %v20060_v35 = vld [vmem:[#allocation110_spill] sm:$0xff] }
 0xa0c   : >> { %v15705_v36 = vmax.f32 %v20057_v17, %v2424_v62  }
 0xa0d   : >> { %20056 = vst [vmem:[#allocation113_spill] sm:$0xff] %v15702_v20  ;;  %v2471_v7 = vsub.f32 %v15625_v55, %v15702_v20 }
 0xa0e   : >> { %20058 = vst [vmem:[#allocation112_spill] sm:$0xff] %v15705_v36  ;;  %v20059_v18 = vmov %v15705_v36  ;;  %v2430_v63 = vpop.xlane.xlu1 %2429 }
 0xa0f   : >> { %v2472_v28 = vsub.f32 %v15629_v0, %v20059_v18  ;;  %v2481_v60 = vmul.f32 1.442695, %v2471_v7  ;;  %v15716_v9 = vmax.f32 %v20060_v35, %v2430_v63   ;;  %v10077_v57 = vpop.permute.xlu0 %10076 }
 0xa10   : >> { %v10079_v36 = vunpack.i.h.bf16 %v10077_v57  ;;  %v10078_v58 = vunpack.i.l.bf16 %v10077_v57 }
 0xa11   : >> { %20061 = vst [vmem:[#allocation110_spill] sm:$0xff] %v15716_v9  ;;  %v2483_v62 = vmul.f32 1.442695, %v2472_v28  ;;  %10325 = vpow2.f32 %v2481_v60  ;;  %v2474_v34 = vsub.f32 %v15635_v11, %v15716_v9 }
 0xa12   : >> { %v7075_v55 = vpack.c.bf16 %v10079_v36, %v10078_v58  ;;  %v2427_v32 = vpop.xlane.xlu1 %2426  ;;  %v20065_v36 = vld [vmem:[#allocation108_spill] sm:$0xff] }
 0xa13   : >> { %v15723_v0 = vmax.f32 %v20062_v16, %v2427_v32   ;;  %v10082_v7 = vpop.permute.xlu0 %10081  ;;  %10327 = vpow2.f32 %v2483_v62  ;;  %v2487_v32 = vmul.f32 1.442695, %v2474_v34 }
 0xa14   : >> { %v10084_v63 = vunpack.i.h.bf16 %v10082_v7  ;;  %v10083_v19 = vunpack.i.l.bf16 %v10082_v7  ;;  %7077 = vmatprep.subr.msk.bf16.mxu1 %vm14782_vm2, %v7075_v55 }
 0xa15   : >> { %20063 = vst [vmem:[#allocation111_spill] sm:$0xff] %v15723_v0  ;;  %v20064_v61 = vmov %v15723_v0  ;;  %7080 = vmatpush3.bf16.xpose.msk.msra.mxu1 %vm14782_vm2, %v7075_v55 }
 0xa16   : >> { %v2473_v58 = vsub.f32 %v15643_v29, %v20064_v61  ;;  %v7081_v11 = vpack.c.bf16 %v10084_v63, %v10083_v19  ;;  %v2436_v28 = vpop.xlane.xlu1 %2435  ;;  %v20067_v19 = vld [vmem:[#allocation109_spill] sm:$0xff] }
 0xa17   : >> { %v15734_v62 = vmax.f32 %v20065_v36, %v2436_v28   ;;  %v2703_v0 = vpop.permute.xlu0 %2702 }
 0xa18   : >> { %v2485_v60 = vmul.f32 1.442695, %v2473_v58  ;;  %7083 = vmatprep.subr.msk.bf16.mxu1 %vm14782_vm2, %v7081_v11 }
 0xa19   : >> { %20066 = vst [vmem:[#allocation108_spill] sm:$0xff] %v15734_v62  ;;  %v2476_v29 = vsub.f32 %v15647_v10, %v15734_v62 }
 0xa1a   : >> { %10329 = vpow2.f32 %v2485_v60  ;;  %v2433_v57 = vpop.xlane.xlu1 %2432 }
 0xa1b   : >> { %10331 = vpow2.f32 %v2487_v32  ;;  %v15743_v55 = vmax.f32 %v20067_v19, %v2433_v57   ;;  %v2707_v34 = vpop.permute.xlu0 %2706  ;;  %v15745_v63 = vpop.eup %10325  ;;  %v2491_v57 = vmul.f32 1.442695, %v2476_v29 }
 0xa1c   : >> { %20070 = vst [vmem:[#allocation274_spill] sm:$0xff] %v15745_v63  ;;  %6610 = vmatprep.mubr.msk.f32.mxu1 %vm281_vm0, %v15745_v63 }
 0xa1d   : >> { %20068 = vst [vmem:[#allocation109_spill] sm:$0xff] %v15743_v55  ;;  %v20069_v41 = vmov %v15743_v55  ;;  %7086 = vmatpush3.bf16.xpose.msk.msra.mxu1 %vm14782_vm2, %v7081_v11  ;;  %v15755_v32 = vpop.eup %10327 }
 0xa1e   : >> { %v2475_v28 = vsub.f32 %v15655_v51, %v20069_v41  ;;  %20071 = vst [vmem:[#allocation275_spill] sm:$0xff] %v15755_v32  ;;  %v2705_v10 = vpop.permute.xlu1 %2704  ;;  %6611 = vmatmul.mubr.msk.f32.gmra.mrb[26].mxu1 %vm281_vm0, %v15755_v32 }
 0xa1f   : >> { %v2711_v55 = vpop.permute.xlu0 %2710 }
 0xa20   : >> { %v2489_v60 = vmul.f32 1.442695, %v2475_v28 }
 0xa22   : >> { %10333 = vpow2.f32 %v2489_v60  ;;  %v2709_v58 = vpop.permute.xlu1 %2708 }
 0xa23   : >> { %10335 = vpow2.f32 %v2491_v57  ;;  %v2715_v7 = vpop.permute.xlu0 %2714 }
 0xa24   : >> { %v15759_v51 = vpop.eup %10329 }
 0xa25   : >> { %20072 = vst [vmem:[#allocation276_spill] sm:$0xff] %v15759_v51  ;;  %v15761_v25 = vpop.eup %10331  ;;  %6613 = vmatprep.mubr.msk.f32.mxu1 %vm281_vm0, %v15759_v51 }
 0xa26   : >> { %20073 = vst [vmem:[#allocation277_spill] sm:$0xff] %v15761_v25  ;;  %6614 = vmatmul.mubr.msk.f32.gmra.mrb[28].mxu1 %vm281_vm0, %v15761_v25  ;;  %v2713_v11 = vpop.permute.xlu1 %2712 }
 0xa27   : >> { %v10087_v29 = vpop.permute.xlu0 %10086 }
 0xa28   : >> { %v10089_v28 = vunpack.i.h.bf16 %v10087_v29  ;;  %v10088_v21 = vunpack.i.l.bf16 %v10087_v29 }
 0xa2a   : >> { %v2717_v6 = vpop.permute.xlu1 %2716  ;;  %v7087_v14 = vpack.c.bf16 %v10089_v28, %v10088_v21 }
 0xa2b   : >> { %v10097_v60 = vpop.permute.xlu0 %10096 }
 0xa2c   : >> { %v15767_v13 = vpop.eup %10333  ;;  %7088 = vmatprep.subr.bf16.mxu0 %v7087_v14  ;;  %v10099_v63 = vunpack.i.h.bf16 %v10097_v60  ;;  %v10098_v56 = vunpack.i.l.bf16 %v10097_v60 }
 0xa2d   : >> { %20074 = vst [vmem:[#allocation278_spill] sm:$0xff] %v15767_v13  ;;  %v15769_v57 = vpop.eup %10335  ;;  %6616 = vmatprep.mubr.msk.f32.mxu1 %vm281_vm0, %v15767_v13  ;;  %7090 = vmatpush3.bf16.msra.mxu0 %v7087_v14 }
 0xa2e   : >> { %20075 = vst [vmem:[#allocation279_spill] sm:$0xff] %v15769_v57  ;;  %6617 = vmatmul.mubr.msk.f32.gmra.mrb[30].mxu1 %vm281_vm0, %v15769_v57  ;;  %v10092_v51 = vpop.permute.xlu1 %10091  ;;  %v7095_v30 = vpack.c.bf16 %v10099_v63, %v10098_v56  ;;  %v20080_v63 = vld [vmem:[#allocation98_spill] sm:$0xff] }
 0xa2f   : >> { %v10094_v15 = vunpack.i.h.bf16 %v10092_v51  ;;  %v10093_v29 = vunpack.i.l.bf16 %v10092_v51  ;;  %6635 = vmatprep.mubr.msk.f32.mxu1 %vm853_vm1, %v2703_v0  ;;  %v10102_v21 = vpop.permute.xlu0 %10101  ;;  %v20077_v0 = vsub.f32 %v20050_v2, %v20052_v52  ;;  %v20084_v2 = vsub.f32 %v20057_v17, %v20059_v18 }
 0xa30   : >> { %v10104_v25 = vunpack.i.h.bf16 %v10102_v21  ;;  %v10103_v32 = vunpack.i.l.bf16 %v10102_v21 }
 0xa31   : >> { %v7091_v28 = vpack.c.bf16 %v10094_v15, %v10093_v29  ;;  %v20076_v15 = vsub.f32 %v20047_v39, %v20049_v48  ;;  %v2459_v51 = vmul.f32 1.442695, %v20084_v2  ;;  %v20086_v29 = vsub.f32 %v20060_v35, %v15716_v9  ;;  %v20093_v35 = vld [vmem:[#allocation96_spill] sm:$0xff] }
 0xa32   : >> { %6636 = vmatmul.mubr.msk.f32.vlgmr.msra.gmra.mrb[32].mxu1 %vm853_vm1, %v2705_v10  ;;  %v7099_v14 = vpack.c.bf16 %v10104_v25, %v10103_v32 }
 0xa33   : >> { %7092 = vmatprep.subr.bf16.mxu0 %v7091_v28  ;;  %6638 = vmatprep.mubr.msk.f32.mxu1 %vm853_vm1, %v2707_v34  ;;  %v2455_v56 = vmul.f32 1.442695, %v20076_v15  ;;  %v2453_v34 = vmul.f32 1.442695, %v20077_v0  ;;  %v2463_v21 = vmul.f32 1.442695, %v20086_v29 }
 0xa34   : >> { %7094 = vmatpush3.bf16.msra.mxu0 %v7091_v28  ;;  %v20087_v28 = vsub.f32 %v20062_v16, %v20064_v61  ;;  %v20094_v16 = vld [vmem:[#allocation97_spill] sm:$0xff] }
 0xa35   : >> { %7096 = vmatprep.subr.bf16.mxu0 %v7095_v30  ;;  %10337 = vpow2.f32 %v2455_v56  ;;  %v20090_v56 = vmov %v15734_v62 }
 0xa36   : >> { %6639 = vmatmul.mubr.msk.f32.gmra.mrb[34].mxu1 %vm853_vm1, %v2709_v58  ;;  %10339 = vpow2.f32 %v2453_v34  ;;  %v20092_v34 = vsub.f32 %v20067_v19, %v20069_v41  ;;  %v20099_v19 = vld [vmem:[#allocation94_spill] sm:$0xff] }
 0xa37   : >> { %6641 = vmatprep.mubr.msk.f32.mxu1 %vm853_vm1, %v2711_v55  ;;  %10341 = vpow2.f32 %v2459_v51 }
 0xa38   : >> { %7098 = vmatpush3.bf16.msra.mxu0 %v7095_v30 }
 0xa39   : >> { %7100 = vmatprep.subr.bf16.mxu0 %v7099_v14 }
 0xa3a   : >> { %6642 = vmatmul.mubr.msk.f32.gmra.mrb[36].mxu1 %vm853_vm1, %v2713_v11  ;;  %v20085_v11 = vsub.f32 %v20055_v5, %v15702_v20  ;;  %v20091_v5 = vsub.f32 %v20065_v36, %v20090_v56 }
 0xa3b   : >> { %6644 = vmatprep.mubr.msk.f32.mxu1 %vm853_vm1, %v2715_v7 }
 0xa3c   : >> { %7102 = vmatpush3.bf16.msra.mxu0 %v7099_v14  ;;  %v2457_v60 = vmul.f32 1.442695, %v20085_v11  ;;  %v2461_v14 = vmul.f32 1.442695, %v20087_v28  ;;  %v2467_v0 = vmul.f32 1.442695, %v20091_v5 }
 0xa3e   : >> { %6645 = vmatmul.mubr.msk.f32.gmra.mrb[38].mxu1 %vm853_vm1, %v2717_v6  ;;  %v20081_v6 = vld [vmem:[#allocation99_spill] sm:$0xff]  ;;  %10343 = vpow2.f32 %v2457_v60 }
 0xa3f   : >> { %v15789_v25 = vpop.eup %10337  ;;  %10345 = vpow2.f32 %v2463_v21  ;;  %v20100_v60 = vld [vmem:[#allocation95_spill] sm:$0xff] }
 0xa40   : >> { %20078 = vst [vmem:[#allocation280_spill] sm:$0xff] %v15789_v25  ;;  %v15791_v30 = vpop.eup %10339  ;;  %v2534_v7 = vmul.f32 %v20080_v63, %v15789_v25  ;;  %10347 = vpow2.f32 %v2461_v14  ;;  %v2465_v63 = vmul.f32 1.442695, %v20092_v34 }
 0xa41   : >> { %20079 = vst [vmem:[#allocation281_spill] sm:$0xff] %v15791_v30  ;;  %v2533_v32 = vmul.f32 %v20081_v6, %v15791_v30  ;;  %v15813_v15 = vpop.eup %10341  ;;  %10349 = vpow2.f32 %v2467_v0  ;;  %v20105_v0 = vld [vmem:[#allocation92_spill] sm:$0xff] }
 0xa42   : >> { %20088 = vst [vmem:[#allocation98_spill] sm:$0xff] %v15813_v15  ;;  %10351 = vpow2.f32 %v2465_v63 }
 0xa48   : >> { %v15815_v17 = vpop.eup %10343 }
 0xa49   : >> { %20089 = vst [vmem:[#allocation99_spill] sm:$0xff] %v15815_v17  ;;  %v15831_v36 = vpop.eup %10345 }
 0xa4a   : >> { %20097 = vst [vmem:[#allocation96_spill] sm:$0xff] %v15831_v36  ;;  %v15833_v2 = vpop.eup %10347  ;;  %v2538_v51 = vmul.f32 %v20099_v19, %v15831_v36 }
 0xa4b   : >> { %20098 = vst [vmem:[#allocation97_spill] sm:$0xff] %v15833_v2  ;;  %v2537_v29 = vmul.f32 %v20100_v60, %v15833_v2  ;;  %v15843_v14 = vpop.eup %10349 }
 0xa4c   : >> { %20103 = vst [vmem:[#allocation94_spill] sm:$0xff] %v15843_v14  ;;  %v15845_v56 = vpop.eup %10351  ;;  %v2540_v63 = vmul.f32 %v20105_v0, %v15843_v14 }
 0xa4d   : >> { %20104 = vst [vmem:[#allocation95_spill] sm:$0xff] %v15845_v56 }
 0xabd   : >> { %v6609_v58 = vpop.f32.mrb[24].mxu1 }
 0xabe   : >> { %v15797_v10 = vadd.f32 %v6609_v58, %v2534_v7   ;;  %v2655_v39 = vpop.f32.mrb[25].mxu1  ;;  %v2536_v7 = vmul.f32 %v20093_v35, %v15813_v15 }
 0xabf   : >> { %v15799_v55 = vadd.f32 %v2655_v39, %v2533_v32   ;;  %v2535_v32 = vmul.f32 %v20094_v16, %v15815_v17 }
 0xac0   : >> { %20082 = vst [vmem:[#allocation282_spill] sm:$0xff] %v15797_v10 }
 0xac1   : >> { %20083 = vst [vmem:[#allocation283_spill] sm:$0xff] %v15799_v55 }
 0xaf1   : >> { %v6612_v6 = vpop.f32.mrb[26].mxu1 }
 0xaf2   : >> { %v15827_v10 = vadd.f32 %v6612_v6, %v2536_v7   ;;  %v2665_v39 = vpop.f32.mrb[27].mxu1  ;;  %v20106_v7 = vld [vmem:[#allocation93_spill] sm:$0xff] }
 0xaf3   : >> { %v15829_v55 = vadd.f32 %v2665_v39, %v2535_v32   ;;  %v2539_v6 = vmul.f32 %v20106_v7, %v15845_v56  ;;  %v20124_v56 = vld [vmem:[#allocation87_spill] sm:$0xff] }
 0xaf4   : >> { %20095 = vst [vmem:[#allocation284_spill] sm:$0xff] %v15827_v10 }
 0xaf5   : >> { %20096 = vst [vmem:[#allocation285_spill] sm:$0xff] %v15829_v55 }
 0xaf9   : >> { %v6615_v11 = vpop.f32.mrb[28].mxu1 }
 0xafa   : >> { %v15839_v21 = vadd.f32 %v6615_v11, %v2538_v51   ;;  %v2675_v28 = vpop.f32.mrb[29].mxu1 }
 0xafb   : >> { %v15841_v34 = vadd.f32 %v2675_v28, %v2537_v29  }
 0xafc   : >> { %20101 = vst [vmem:[#allocation286_spill] sm:$0xff] %v15839_v21 }
 0xafd   : >> { %20102 = vst [vmem:[#allocation287_spill] sm:$0xff] %v15841_v34 }
 0xb01   : >> { %v6618_v35 = vpop.f32.mrb[30].mxu1 }
 0xb02   : >> { %v15851_v16 = vadd.f32 %v6618_v35, %v2540_v63   ;;  %v2685_v32 = vpop.f32.mrb[31].mxu1 }
 0xb03   : >> { %v15853_v32 = vadd.f32 %v2685_v32, %v2539_v6  }
 0xb04   : >> { %20107 = vst [vmem:[#allocation288_spill] sm:$0xff] %v15851_v16 }
 0xb05   : >> { %20108 = vst [vmem:[#allocation289_spill] sm:$0xff] %v15853_v32  ;;  %v6637_v10 = vpop.f32.mrb[32].mxu1 }
 0xb06   : >> { %v2872_v34 = vsel %vm14836_vm3, %v6637_v10, -1e+30  ;;  %v2832_v39 = vpop.f32.mrb[33].mxu1 }
 0xb07   : >> { %v2882_v55 = vsel %vm281_vm0, %v2872_v34, -inf  ;;  %v2871_v19 = vsel %vm14841_vm4, %v2832_v39, -1e+30 }
 0xb08   : >> { %v2879_v51 = vsel %vm281_vm0, %v2871_v19, -inf  ;;  %2883 = vmax.xlane.f32.xlu1 %v2882_v55 }
 0xb09   : >> { %2880 = vmax.xlane.f32.xlu0 %v2879_v51  ;;  %v6640_v11 = vpop.f32.mrb[34].mxu1 }
 0xb0a   : >> { %v2842_v60 = vpop.f32.mrb[35].mxu1  ;;  %v15869_v35 = vsel %vm14867_vm6, %v6640_v11, -1e+30 }
 0xb0b   : >> { %v15865_v63 = vsel %vm14862_vm5, %v2842_v60, -1e+30  ;;  %v2888_v16 = vsel %vm281_vm0, %v15869_v35, -inf }
 0xb0c   : >> { %v2885_v7 = vsel %vm281_vm0, %v15865_v63, -inf }
 0xb0d   : >> { %v6643_v29 = vpop.f32.mrb[36].mxu1 }
 0xb0e   : >> { %v2852_v21 = vpop.f32.mrb[37].mxu1  ;;  %v15875_v6 = vsel %vm14876_vm7, %v6643_v29, -1e+30 }
 0xb0f   : >> { %v2894_v32 = vsel %vm281_vm0, %v15875_v6, -inf  ;;  %v15883_v10 = vsel %vm14893_vm8, %v2852_v21, -1e+30  ;;  %v20109_v21 = vld [vmem:[#allocation90_spill] sm:$0xff] }
 0xb10   : >> { %v2891_v55 = vsel %vm281_vm0, %v15883_v10, -inf }
 0xb11   : >> { %v6646_v28 = vpop.f32.mrb[38].mxu1 }
 0xb12   : >> { %v2862_v0 = vpop.f32.mrb[39].mxu1  ;;  %v15887_v39 = vsel %vm14900_vm9, %v6646_v28, -1e+30 }
 0xb13   : >> { %v2900_v51 = vsel %vm281_vm0, %v15887_v39, -inf  ;;  %v15895_v11 = vsel %vm14915_vm10, %v2862_v0, -1e+30 }
 0xb14   : >> { %v2897_v60 = vsel %vm281_vm0, %v15895_v11, -inf }
 0xb19   : >> { %10106 = vrot.lane.b32.xlu1 %v14786_v24, %s13226_s8 }
 0xb1f   : >> { %10111 = vrot.lane.b32.xlu0 %v14794_v38, %s13226_s8 }
 0xb3d   : >> { %2886 = vmax.xlane.f32.xlu1 %v2885_v7  ;;  %v20112_v7 = vld [vmem:[#allocation91_spill] sm:$0xff] }
 0xb3e   : >> { %2889 = vmax.xlane.f32.xlu0 %v2888_v16 }
 0xb41   : >> { %2895 = vmax.xlane.f32.xlu1 %v2894_v32 }
 0xb45   : >> { %2892 = vmax.xlane.f32.xlu1 %v2891_v55 }
 0xb49   : >> { %2901 = vmax.xlane.f32.xlu1 %v2900_v51 }
 0xb4d   : >> { %2898 = vmax.xlane.f32.xlu1 %v2897_v60 }
 0xb54   : >> { %10116 = vrot.lane.b32.xlu0 %v14800_v37, %s13226_s8 }
 0xb58   : >> { %10121 = vrot.lane.b32.xlu0 %v14808_v31, %s13226_s8 }
 0xb5c   : >> { %3168 = vrot.lane.b32.xlu0 %v19914_v45, %s13226_s8 }
 0xb5e   : >> { %3170 = vrot.lane.b32.xlu1 %v19818_v54, %s13226_s8 }
 0xb60   : >> { %3172 = vrot.lane.b32.xlu0 %v19916_v49, %s13226_s8 }
 0xb62   : >> { %3174 = vrot.lane.b32.xlu1 %v19918_v44, %s13226_s8 }
 0xb64   : >> { %3176 = vrot.lane.b32.xlu0 %v19920_v46, %s13226_s8 }
 0xb66   : >> { %3178 = vrot.lane.b32.xlu1 %v19922_v53, %s13226_s8 }
 0xb68   : >> { %3180 = vrot.lane.b32.xlu0 %v19924_v50, %s13226_s8 }
 0xb6a   : >> { %3182 = vrot.lane.b32.xlu1 %v19926_v59, %s13226_s8 }
 0xb6c   : >> { %10126 = vrot.lane.b32.xlu0 %v14786_v24, %s13227_s10 }
 0xb6e   : >> { %10131 = vrot.lane.b32.xlu1 %v14794_v38, %s13227_s10 }
 0xb70   : >> { %10136 = vrot.lane.b32.xlu0 %v14800_v37, %s13227_s10 }
 0xb74   : >> { %10141 = vrot.lane.b32.xlu0 %v14808_v31, %s13227_s10 }
 0xb95   : >> { %v2884_v29 = vpop.xlane.xlu1 %2883 }
 0xb96   : >> { %v15914_v28 = vmax.f32 %v20109_v21, %v2884_v29   ;;  %v2881_v0 = vpop.xlane.xlu0 %2880 }
 0xb97   : >> { %v15917_v16 = vmax.f32 %v20112_v7, %v2881_v0  }
 0xb98   : >> { %20110 = vst [vmem:[#allocation90_spill] sm:$0xff] %v15914_v28  ;;  %v20111_v52 = vmov %v15914_v28 }
 0xb99   : >> { %20113 = vst [vmem:[#allocation91_spill] sm:$0xff] %v15917_v16  ;;  %v20114_v48 = vmov %v15917_v16  ;;  %v2936_v55 = vsub.f32 %v2872_v34, %v20111_v52  ;;  %v10107_v20 = vpop.permute.xlu1 %10106 }
 0xb9a   : >> { %v2935_v60 = vsub.f32 %v2871_v19, %v20114_v48  ;;  %v10109_v41 = vunpack.i.h.bf16 %v10107_v20  ;;  %v10108_v57 = vunpack.i.l.bf16 %v10107_v20  ;;  %v10112_v0 = vpop.permute.xlu0 %10111  ;;  %v20117_v20 = vld [vmem:[#allocation89_spill] sm:$0xff] }
 0xb9b   : >> { %v2945_v29 = vmul.f32 1.442695, %v2936_v55  ;;  %v10114_v16 = vunpack.i.h.bf16 %v10112_v0  ;;  %v10113_v32 = vunpack.i.l.bf16 %v10112_v0  ;;  %v20119_v55 = vld [vmem:[#allocation88_spill] sm:$0xff] }
 0xb9c   : >> { %v2943_v61 = vmul.f32 1.442695, %v2935_v60  ;;  %v7103_v28 = vpack.c.bf16 %v10109_v41, %v10108_v57 }
 0xb9d   : >> { %v7109_v19 = vpack.c.bf16 %v10114_v16, %v10113_v32 }
 0xb9e   : >> { %7105 = vmatprep.subr.msk.bf16.mxu0 %vm14782_vm2, %v7103_v28  ;;  %10353 = vpow2.f32 %v2943_v61 }
 0xb9f   : >> { %10355 = vpow2.f32 %v2945_v29 }
 0xba8   : >> { %v15927_v34 = vpop.eup %10353 }
 0xba9   : >> { %20115 = vst [vmem:[#allocation92_spill] sm:$0xff] %v15927_v34  ;;  %v15929_v18 = vpop.eup %10355  ;;  %6663 = vmatprep.mubr.msk.f32.mxu0 %vm281_vm0, %v15927_v34 }
 0xbaa   : >> { %20116 = vst [vmem:[#allocation93_spill] sm:$0xff] %v15929_v18  ;;  %6664 = vmatmul.mubr.msk.f32.vlgmr.msra.gmra.mrb[40].mxu0 %vm281_vm0, %v15929_v18 }
 0xbab   : >> { %7108 = vmatpush3.bf16.xpose.msk.msra.mxu0 %vm14782_vm2, %v7103_v28 }
 0xbac   : >> { %7111 = vmatprep.subr.msk.bf16.mxu0 %vm14782_vm2, %v7109_v19 }
 0xbb3   : >> { %7114 = vmatpush3.bf16.xpose.msk.msra.mxu0 %vm14782_vm2, %v7109_v19 }
 0xbca   : >> { %v2887_v61 = vpop.xlane.xlu1 %2886 }
 0xbcb   : >> { %v15942_v41 = vmax.f32 %v20117_v20, %v2887_v61   ;;  %v2890_v57 = vpop.xlane.xlu0 %2889  ;;  %v20122_v61 = vld [vmem:[#allocation86_spill] sm:$0xff] }
 0xbcc   : >> { %v15945_v60 = vmax.f32 %v20119_v55, %v2890_v57  }
 0xbcd   : >> { %20118 = vst [vmem:[#allocation89_spill] sm:$0xff] %v15942_v41  ;;  %v2937_v28 = vsub.f32 %v15865_v63, %v15942_v41 }
 0xbce   : >> { %20120 = vst [vmem:[#allocation88_spill] sm:$0xff] %v15945_v60  ;;  %v20121_v29 = vmov %v15945_v60  ;;  %v2896_v19 = vpop.xlane.xlu1 %2895 }
 0xbcf   : >> { %v2938_v16 = vsub.f32 %v15869_v35, %v20121_v29  ;;  %v2947_v51 = vmul.f32 1.442695, %v2937_v28  ;;  %v15956_v9 = vmax.f32 %v20122_v61, %v2896_v19   ;;  %v10117_v5 = vpop.permute.xlu0 %10116 }
 0xbd0   : >> { %v10119_v60 = vunpack.i.h.bf16 %v10117_v5  ;;  %v10118_v62 = vunpack.i.l.bf16 %v10117_v5 }
 0xbd1   : >> { %20123 = vst [vmem:[#allocation86_spill] sm:$0xff] %v15956_v9  ;;  %v2949_v57 = vmul.f32 1.442695, %v2938_v16  ;;  %10357 = vpow2.f32 %v2947_v51  ;;  %v2940_v0 = vsub.f32 %v15875_v6, %v15956_v9 }
 0xbd2   : >> { %v7115_v63 = vpack.c.bf16 %v10119_v60, %v10118_v62  ;;  %v2893_v58 = vpop.xlane.xlu1 %2892  ;;  %v20127_v60 = vld [vmem:[#allocation84_spill] sm:$0xff] }
 0xbd3   : >> { %v15963_v6 = vmax.f32 %v20124_v56, %v2893_v58   ;;  %v10122_v28 = vpop.permute.xlu0 %10121  ;;  %10359 = vpow2.f32 %v2949_v57  ;;  %v2953_v58 = vmul.f32 1.442695, %v2940_v0 }
 0xbd4   : >> { %v10124_v19 = vunpack.i.h.bf16 %v10122_v28  ;;  %v10123_v2 = vunpack.i.l.bf16 %v10122_v28  ;;  %7117 = vmatprep.subr.msk.bf16.mxu0 %vm14782_vm2, %v7115_v63 }
 0xbd5   : >> { %20125 = vst [vmem:[#allocation87_spill] sm:$0xff] %v15963_v6  ;;  %v20126_v35 = vmov %v15963_v6  ;;  %7120 = vmatpush3.bf16.xpose.msk.msra.mxu0 %vm14782_vm2, %v7115_v63 }
 0xbd6   : >> { %v2939_v62 = vsub.f32 %v15883_v10, %v20126_v35  ;;  %v7121_v51 = vpack.c.bf16 %v10124_v19, %v10123_v2  ;;  %v2902_v16 = vpop.xlane.xlu1 %2901  ;;  %v20130_v2 = vld [vmem:[#allocation85_spill] sm:$0xff] }
 0xbd7   : >> { %v15974_v19 = vmax.f32 %v20127_v60, %v2902_v16   ;;  %v3169_v28 = vpop.permute.xlu0 %3168 }
 0xbd8   : >> { %v2951_v6 = vmul.f32 1.442695, %v2939_v62  ;;  %7123 = vmatprep.subr.msk.bf16.mxu0 %vm14782_vm2, %v7121_v51 }
 0xbd9   : >> { %20128 = vst [vmem:[#allocation84_spill] sm:$0xff] %v15974_v19  ;;  %v20129_v57 = vmov %v15974_v19 }
 0xbda   : >> { %10361 = vpow2.f32 %v2951_v6  ;;  %v2899_v32 = vpop.xlane.xlu1 %2898  ;;  %v2942_v10 = vsub.f32 %v15887_v39, %v20129_v57 }
 0xbdb   : >> { %10363 = vpow2.f32 %v2953_v58  ;;  %v15983_v63 = vmax.f32 %v20130_v2, %v2899_v32   ;;  %v3173_v0 = vpop.permute.xlu0 %3172  ;;  %v15985_v62 = vpop.eup %10357 }
 0xbdc   : >> { %20133 = vst [vmem:[#allocation290_spill] sm:$0xff] %v15985_v62  ;;  %6666 = vmatprep.mubr.msk.f32.mxu0 %vm281_vm0, %v15985_v62  ;;  %v2957_v32 = vmul.f32 1.442695, %v2942_v10 }
 0xbdd   : >> { %20131 = vst [vmem:[#allocation85_spill] sm:$0xff] %v15983_v63  ;;  %v20132_v18 = vmov %v15983_v63  ;;  %7126 = vmatpush3.bf16.xpose.msk.msra.mxu0 %vm14782_vm2, %v7121_v51  ;;  %v15995_v58 = vpop.eup %10359 }
 0xbde   : >> { %v2941_v16 = vsub.f32 %v15895_v11, %v20132_v18  ;;  %20134 = vst [vmem:[#allocation291_spill] sm:$0xff] %v15995_v58  ;;  %v3171_v39 = vpop.permute.xlu1 %3170  ;;  %6667 = vmatmul.mubr.msk.f32.gmra.mrb[42].mxu0 %vm281_vm0, %v15995_v58 }
 0xbdf   : >> { %v3177_v63 = vpop.permute.xlu0 %3176 }
 0xbe0   : >> { %v2955_v6 = vmul.f32 1.442695, %v2941_v16 }
 0xbe2   : >> { %10365 = vpow2.f32 %v2955_v6  ;;  %v3175_v19 = vpop.permute.xlu1 %3174 }
 0xbe3   : >> { %10367 = vpow2.f32 %v2957_v32  ;;  %v3181_v5 = vpop.permute.xlu0 %3180 }
 0xbe4   : >> { %v15999_v11 = vpop.eup %10361 }
 0xbe5   : >> { %20135 = vst [vmem:[#allocation292_spill] sm:$0xff] %v15999_v11  ;;  %v16001_v17 = vpop.eup %10363  ;;  %6669 = vmatprep.mubr.msk.f32.mxu0 %vm281_vm0, %v15999_v11 }
 0xbe6   : >> { %20136 = vst [vmem:[#allocation293_spill] sm:$0xff] %v16001_v17  ;;  %6670 = vmatmul.mubr.msk.f32.gmra.mrb[44].mxu0 %vm281_vm0, %v16001_v17  ;;  %v3179_v51 = vpop.permute.xlu1 %3178 }
 0xbe7   : >> { %v10127_v10 = vpop.permute.xlu0 %10126 }
 0xbe8   : >> { %v10129_v16 = vunpack.i.h.bf16 %v10127_v10  ;;  %v10128_v30 = vunpack.i.l.bf16 %v10127_v10 }
 0xbea   : >> { %v3183_v14 = vpop.permute.xlu1 %3182  ;;  %v7127_v36 = vpack.c.bf16 %v10129_v16, %v10128_v30 }
 0xbeb   : >> { %v10137_v6 = vpop.permute.xlu0 %10136 }
 0xbec   : >> { %v16007_v15 = vpop.eup %10365  ;;  %7128 = vmatprep.subr.bf16.mxu1 %v7127_v36  ;;  %v10139_v11 = vunpack.i.h.bf16 %v10137_v6  ;;  %v10138_v62 = vunpack.i.l.bf16 %v10137_v6 }
 0xbed   : >> { %20137 = vst [vmem:[#allocation294_spill] sm:$0xff] %v16007_v15  ;;  %v16009_v32 = vpop.eup %10367  ;;  %6672 = vmatprep.mubr.msk.f32.mxu0 %vm281_vm0, %v16007_v15  ;;  %7130 = vmatpush3.bf16.msra.mxu1 %v7127_v36 }
 0xbee   : >> { %20138 = vst [vmem:[#allocation295_spill] sm:$0xff] %v16009_v32  ;;  %6673 = vmatmul.mubr.msk.f32.gmra.mrb[46].mxu0 %vm281_vm0, %v16009_v32  ;;  %v10132_v25 = vpop.permute.xlu1 %10131  ;;  %v7135_v58 = vpack.c.bf16 %v10139_v11, %v10138_v62  ;;  %v20143_v62 = vld [vmem:[#allocation74_spill] sm:$0xff] }
 0xbef   : >> { %v10134_v34 = vunpack.i.h.bf16 %v10132_v25  ;;  %v10133_v10 = vunpack.i.l.bf16 %v10132_v25  ;;  %6691 = vmatprep.mubr.msk.f32.mxu0 %vm853_vm1, %v3169_v28  ;;  %v10142_v30 = vpop.permute.xlu0 %10141  ;;  %v20139_v25 = vsub.f32 %v20109_v21, %v20111_v52  ;;  %v20140_v28 = vsub.f32 %v20112_v7, %v20114_v48 }
 0xbf0   : >> { %v10144_v13 = vunpack.i.h.bf16 %v10142_v30  ;;  %v10143_v17 = vunpack.i.l.bf16 %v10142_v30  ;;  %v20147_v7 = vsub.f32 %v20119_v55, %v20121_v29 }
 0xbf1   : >> { %v7131_v16 = vpack.c.bf16 %v10134_v34, %v10133_v10  ;;  %v2921_v34 = vmul.f32 1.442695, %v20139_v25  ;;  %v20149_v10 = vsub.f32 %v20122_v61, %v15956_v9  ;;  %v20157_v61 = vld [vmem:[#allocation72_spill] sm:$0xff] }
 0xbf2   : >> { %6692 = vmatmul.mubr.msk.f32.vlgmr.msra.gmra.mrb[48].mxu0 %vm853_vm1, %v3171_v39  ;;  %v7139_v36 = vpack.c.bf16 %v10144_v13, %v10143_v17  ;;  %v2925_v11 = vmul.f32 1.442695, %v20147_v7 }
 0xbf3   : >> { %7132 = vmatprep.subr.bf16.mxu1 %v7131_v16  ;;  %6694 = vmatprep.mubr.msk.f32.mxu0 %vm853_vm1, %v3173_v0  ;;  %v2919_v0 = vmul.f32 1.442695, %v20140_v28  ;;  %10369 = vpow2.f32 %v2921_v34  ;;  %v2929_v30 = vmul.f32 1.442695, %v20149_v10  ;;  %v20155_v28 = vmov %v20132_v18 }
 0xbf4   : >> { %7134 = vmatpush3.bf16.msra.mxu1 %v7131_v16  ;;  %v20150_v16 = vsub.f32 %v20124_v56, %v20126_v35  ;;  %v20158_v56 = vld [vmem:[#allocation73_spill] sm:$0xff] }
 0xbf5   : >> { %7136 = vmatprep.subr.bf16.mxu1 %v7135_v58  ;;  %10371 = vpow2.f32 %v2919_v0  ;;  %v20156_v0 = vsub.f32 %v20130_v2, %v20155_v28  ;;  %v20163_v2 = vld [vmem:[#allocation70_spill] sm:$0xff]  ;;  %v20169_v28 = vld [vmem:[#allocation68_spill] sm:$0xff] }
 0xbf6   : >> { %6695 = vmatmul.mubr.msk.f32.gmra.mrb[50].mxu0 %vm853_vm1, %v3175_v19  ;;  %10373 = vpow2.f32 %v2925_v11 }
 0xbf7   : >> { %6697 = vmatprep.mubr.msk.f32.mxu0 %vm853_vm1, %v3177_v63 }
 0xbf8   : >> { %7138 = vmatpush3.bf16.msra.mxu1 %v7135_v58 }
 0xbf9   : >> { %7140 = vmatprep.subr.bf16.mxu1 %v7139_v36 }
 0xbfa   : >> { %6698 = vmatmul.mubr.msk.f32.gmra.mrb[52].mxu0 %vm853_vm1, %v3179_v51  ;;  %v20148_v51 = vsub.f32 %v20117_v20, %v15942_v41 }
 0xbfb   : >> { %6700 = vmatprep.mubr.msk.f32.mxu0 %vm853_vm1, %v3181_v5 }
 0xbfc   : >> { %7142 = vmatpush3.bf16.msra.mxu1 %v7139_v36  ;;  %v2923_v6 = vmul.f32 1.442695, %v20148_v51  ;;  %v2927_v36 = vmul.f32 1.442695, %v20150_v16 }
 0xbfd   : >> { %v16029_v13 = vpop.eup %10369 }
 0xbfe   : >> { %6701 = vmatmul.mubr.msk.f32.gmra.mrb[54].mxu0 %vm853_vm1, %v3183_v14  ;;  %20141 = vst [vmem:[#allocation296_spill] sm:$0xff] %v16029_v13  ;;  %v3000_v5 = vmul.f32 %v20143_v62, %v16029_v13  ;;  %v20144_v14 = vld [vmem:[#allocation75_spill] sm:$0xff]  ;;  %10375 = vpow2.f32 %v2923_v6 }
 0xbff   : >> { %v16031_v17 = vpop.eup %10371  ;;  %10377 = vpow2.f32 %v2929_v30  ;;  %v20164_v6 = vld [vmem:[#allocation71_spill] sm:$0xff] }
 0xc00   : >> { %20142 = vst [vmem:[#allocation297_spill] sm:$0xff] %v16031_v17  ;;  %v2999_v58 = vmul.f32 %v20144_v14, %v16031_v17  ;;  %10379 = vpow2.f32 %v2927_v36  ;;  %v16053_v25 = vpop.eup %10373  ;;  %v2931_v14 = vmul.f32 1.442695, %v20156_v0 }
 0xc01   : >> { %20151 = vst [vmem:[#allocation74_spill] sm:$0xff] %v16053_v25 }
 0xc08   : >> { %v16055_v55 = vpop.eup %10375 }
 0xc09   : >> { %20152 = vst [vmem:[#allocation75_spill] sm:$0xff] %v16055_v55 }
 0xc7d   : >> { %v6665_v19 = vpop.f32.mrb[40].mxu0 }
 0xc7e   : >> { %v16037_v39 = vadd.f32 %v6665_v19, %v3000_v5   ;;  %v3121_v21 = vpop.f32.mrb[41].mxu0  ;;  %v20153_v19 = vmov %v20129_v57 }
 0xc7f   : >> { %v16039_v63 = vadd.f32 %v3121_v21, %v2999_v58   ;;  %v20154_v20 = vsub.f32 %v20127_v60, %v20153_v19  ;;  %v3002_v58 = vmul.f32 %v20157_v61, %v16053_v25  ;;  %v3001_v21 = vmul.f32 %v20158_v56, %v16055_v55  ;;  %v16071_v60 = vpop.eup %10377 }
 0xc80   : >> { %20145 = vst [vmem:[#allocation298_spill] sm:$0xff] %v16037_v39  ;;  %20161 = vst [vmem:[#allocation72_spill] sm:$0xff] %v16071_v60  ;;  %v16073_v19 = vpop.eup %10379  ;;  %v3004_v11 = vmul.f32 %v20163_v2, %v16071_v60 }
 0xc81   : >> { %20146 = vst [vmem:[#allocation299_spill] sm:$0xff] %v16039_v63  ;;  %v2933_v34 = vmul.f32 1.442695, %v20154_v20  ;;  %20162 = vst [vmem:[#allocation73_spill] sm:$0xff] %v16073_v19  ;;  %v3003_v10 = vmul.f32 %v20164_v6, %v16073_v19  ;;  %v20188_v19 = vld [vmem:[#allocation63_spill] sm:$0xff] }
 0xc83   : >> { %10381 = vpow2.f32 %v2933_v34 }
 0xc84   : >> { %10383 = vpow2.f32 %v2931_v14 }
 0xc8d   : >> { %v16083_v20 = vpop.eup %10381 }
 0xc8e   : >> { %20167 = vst [vmem:[#allocation70_spill] sm:$0xff] %v16083_v20  ;;  %v16085_v34 = vpop.eup %10383  ;;  %v3006_v0 = vmul.f32 %v20169_v28, %v16083_v20 }
 0xc8f   : >> { %20168 = vst [vmem:[#allocation71_spill] sm:$0xff] %v16085_v34 }
 0xcb1   : >> { %v6668_v39 = vpop.f32.mrb[42].mxu0 }
 0xcb2   : >> { %v16067_v63 = vadd.f32 %v6668_v39, %v3002_v58   ;;  %v3131_v7 = vpop.f32.mrb[43].mxu0  ;;  %v20170_v39 = vld [vmem:[#allocation69_spill] sm:$0xff] }
 0xcb3   : >> { %v16069_v56 = vadd.f32 %v3131_v7, %v3001_v21  }
 0xcb4   : >> { %20159 = vst [vmem:[#allocation300_spill] sm:$0xff] %v16067_v63 }
 0xcb5   : >> { %20160 = vst [vmem:[#allocation301_spill] sm:$0xff] %v16069_v56  ;;  %v3005_v56 = vmul.f32 %v20170_v39, %v16085_v34 }
 0xcb9   : >> { %v6671_v51 = vpop.f32.mrb[44].mxu0 }
 0xcba   : >> { %v16079_v30 = vadd.f32 %v6671_v51, %v3004_v11   ;;  %v3141_v16 = vpop.f32.mrb[45].mxu0 }
 0xcbb   : >> { %v16081_v36 = vadd.f32 %v3141_v16, %v3003_v10  }
 0xcbc   : >> { %20165 = vst [vmem:[#allocation302_spill] sm:$0xff] %v16079_v30 }
 0xcbd   : >> { %20166 = vst [vmem:[#allocation303_spill] sm:$0xff] %v16081_v36 }
 0xcc1   : >> { %v6674_v14 = vpop.f32.mrb[46].mxu0 }
 0xcc2   : >> { %v16091_v10 = vadd.f32 %v6674_v14, %v3006_v0   ;;  %v3151_v21 = vpop.f32.mrb[47].mxu0 }
 0xcc3   : >> { %v16093_v63 = vadd.f32 %v3151_v21, %v3005_v56  }
 0xcc4   : >> { %20171 = vst [vmem:[#allocation304_spill] sm:$0xff] %v16091_v10 }
 0xcc5   : >> { %20172 = vst [vmem:[#allocation305_spill] sm:$0xff] %v16093_v63  ;;  %v6693_v7 = vpop.f32.mrb[48].mxu0 }
 0xcc6   : >> { %v3338_v2 = vsel %vm14836_vm3, %v6693_v7, -1e+30  ;;  %v3298_v11 = vpop.f32.mrb[49].mxu0 }
 0xcc7   : >> { %v3348_v51 = vsel %vm281_vm0, %v3338_v2, -inf  ;;  %v3337_v6 = vsel %vm14841_vm4, %v3298_v11, -1e+30 }
 0xcc8   : >> { %v3345_v30 = vsel %vm281_vm0, %v3337_v6, -inf  ;;  %3349 = vmax.xlane.f32.xlu1 %v3348_v51 }
 0xcc9   : >> { %3346 = vmax.xlane.f32.xlu0 %v3345_v30  ;;  %v6696_v16 = vpop.f32.mrb[50].mxu0 }
 0xcca   : >> { %v3308_v36 = vpop.f32.mrb[51].mxu0  ;;  %v16109_v56 = vsel %vm14867_vm6, %v6696_v16, -1e+30 }
 0xccb   : >> { %v16105_v39 = vsel %vm14862_vm5, %v3308_v36, -1e+30  ;;  %v3354_v7 = vsel %vm281_vm0, %v16109_v56, -inf }
 0xccc   : >> { %v3351_v21 = vsel %vm281_vm0, %v16105_v39, -inf }
 0xccd   : >> { %v6699_v10 = vpop.f32.mrb[52].mxu0 }
 0xcce   : >> { %v3318_v28 = vpop.f32.mrb[53].mxu0  ;;  %v16115_v63 = vsel %vm14876_vm7, %v6699_v10, -1e+30 }
 0xccf   : >> { %v3360_v11 = vsel %vm281_vm0, %v16115_v63, -inf  ;;  %v16123_v51 = vsel %vm14893_vm8, %v3318_v28, -1e+30 }
 0xcd0   : >> { %v3357_v16 = vsel %vm281_vm0, %v16123_v51, -inf }
 0xcd1   : >> { %v6702_v0 = vpop.f32.mrb[54].mxu0 }
 0xcd2   : >> { %v3328_v14 = vpop.f32.mrb[55].mxu0  ;;  %v16127_v30 = vsel %vm14900_vm9, %v6702_v0, -1e+30 }
 0xcd3   : >> { %v3366_v36 = vsel %vm281_vm0, %v16127_v30, -inf  ;;  %v16135_v10 = vsel %vm14915_vm10, %v3328_v14, -1e+30  ;;  %v20173_v14 = vld [vmem:[#allocation66_spill] sm:$0xff] }
 0xcd4   : >> { %v3363_v28 = vsel %vm281_vm0, %v16135_v10, -inf }
 0xcd9   : >> { %10146 = vrot.lane.b32.xlu1 %v14786_v24, %s13228_s11 }
 0xcdf   : >> { %10151 = vrot.lane.b32.xlu0 %v14794_v38, %s13228_s11 }
 0xcfd   : >> { %3352 = vmax.xlane.f32.xlu1 %v3351_v21 }
 0xcfe   : >> { %3355 = vmax.xlane.f32.xlu0 %v3354_v7 }
 0xd01   : >> { %3361 = vmax.xlane.f32.xlu1 %v3360_v11  ;;  %v20176_v11 = vld [vmem:[#allocation67_spill] sm:$0xff] }
 0xd05   : >> { %3358 = vmax.xlane.f32.xlu1 %v3357_v16 }
 0xd09   : >> { %3367 = vmax.xlane.f32.xlu1 %v3366_v36 }
 0xd0d   : >> { %3364 = vmax.xlane.f32.xlu1 %v3363_v28 }
 0xd14   : >> { %10156 = vrot.lane.b32.xlu0 %v14800_v37, %s13228_s11 }
 0xd18   : >> { %10161 = vrot.lane.b32.xlu0 %v14808_v31, %s13228_s11 }
 0xd1c   : >> { %3634 = vrot.lane.b32.xlu0 %v19914_v45, %s13228_s11 }
 0xd1e   : >> { %3636 = vrot.lane.b32.xlu1 %v19818_v54, %s13228_s11 }
 0xd20   : >> { %3638 = vrot.lane.b32.xlu0 %v19916_v49, %s13228_s11 }
 0xd22   : >> { %3640 = vrot.lane.b32.xlu1 %v19918_v44, %s13228_s11 }
 0xd24   : >> { %3642 = vrot.lane.b32.xlu0 %v19920_v46, %s13228_s11 }
 0xd26   : >> { %3644 = vrot.lane.b32.xlu1 %v19922_v53, %s13228_s11 }
 0xd28   : >> { %3646 = vrot.lane.b32.xlu0 %v19924_v50, %s13228_s11 }
 0xd2a   : >> { %3648 = vrot.lane.b32.xlu1 %v19926_v59, %s13228_s11 }
 0xd2c   : >> { %10166 = vrot.lane.b32.xlu0 %v14786_v24, %s13229_s12 }
 0xd2e   : >> { %10171 = vrot.lane.b32.xlu1 %v14794_v38, %s13229_s12 }
 0xd30   : >> { %10176 = vrot.lane.b32.xlu0 %v14800_v37, %s13229_s12 }
 0xd34   : >> { %10181 = vrot.lane.b32.xlu0 %v14808_v31, %s13229_s12 }
 0xd55   : >> { %v3350_v0 = vpop.xlane.xlu1 %3349 }
 0xd56   : >> { %v16154_v7 = vmax.f32 %v20173_v14, %v3350_v0   ;;  %v3347_v21 = vpop.xlane.xlu0 %3346 }
 0xd57   : >> { %v16157_v16 = vmax.f32 %v20176_v11, %v3347_v21  }
 0xd58   : >> { %20174 = vst [vmem:[#allocation66_spill] sm:$0xff] %v16154_v7  ;;  %v20175_v48 = vmov %v16154_v7 }
 0xd59   : >> { %20177 = vst [vmem:[#allocation67_spill] sm:$0xff] %v16157_v16  ;;  %v20178_v52 = vmov %v16157_v16  ;;  %v3402_v28 = vsub.f32 %v3338_v2, %v20175_v48  ;;  %v10147_v35 = vpop.permute.xlu1 %10146 }
 0xd5a   : >> { %v3401_v29 = vsub.f32 %v3337_v6, %v20178_v52  ;;  %v10149_v18 = vunpack.i.h.bf16 %v10147_v35  ;;  %v10148_v62 = vunpack.i.l.bf16 %v10147_v35  ;;  %v10152_v21 = vpop.permute.xlu0 %10151 }
 0xd5b   : >> { %v3411_v0 = vmul.f32 1.442695, %v3402_v28  ;;  %v10154_v16 = vunpack.i.h.bf16 %v10152_v21  ;;  %v10153_v36 = vunpack.i.l.bf16 %v10152_v21 }
 0xd5c   : >> { %v3409_v9 = vmul.f32 1.442695, %v3401_v29  ;;  %v7143_v7 = vpack.c.bf16 %v10149_v18, %v10148_v62  ;;  %v20181_v18 = vld [vmem:[#allocation65_spill] sm:$0xff]  ;;  %v20183_v62 = vld [vmem:[#allocation64_spill] sm:$0xff] }
 0xd5d   : >> { %v7149_v6 = vpack.c.bf16 %v10154_v16, %v10153_v36 }
 0xd5e   : >> { %7145 = vmatprep.subr.msk.bf16.mxu1 %vm14782_vm2, %v7143_v7  ;;  %10385 = vpow2.f32 %v3409_v9 }
 0xd5f   : >> { %10387 = vpow2.f32 %v3411_v0 }
 0xd68   : >> { %v16167_v2 = vpop.eup %10385 }
 0xd69   : >> { %20179 = vst [vmem:[#allocation68_spill] sm:$0xff] %v16167_v2  ;;  %v16169_v58 = vpop.eup %10387  ;;  %6719 = vmatprep.mubr.msk.f32.mxu1 %vm281_vm0, %v16167_v2 }
 0xd6a   : >> { %20180 = vst [vmem:[#allocation69_spill] sm:$0xff] %v16169_v58  ;;  %6720 = vmatmul.mubr.msk.f32.vlgmr.msra.gmra.mrb[40].mxu1 %vm281_vm0, %v16169_v58 }
 0xd6b   : >> { %7148 = vmatpush3.bf16.xpose.msk.msra.mxu1 %vm14782_vm2, %v7143_v7 }
 0xd6c   : >> { %7151 = vmatprep.subr.msk.bf16.mxu1 %vm14782_vm2, %v7149_v6 }
 0xd73   : >> { %7154 = vmatpush3.bf16.xpose.msk.msra.mxu1 %vm14782_vm2, %v7149_v6 }
 0xd8a   : >> { %v3353_v9 = vpop.xlane.xlu1 %3352 }
 0xd8b   : >> { %v16182_v29 = vmax.f32 %v20181_v18, %v3353_v9   ;;  %v3356_v35 = vpop.xlane.xlu0 %3355  ;;  %v20186_v9 = vld [vmem:[#allocation62_spill] sm:$0xff] }
 0xd8c   : >> { %v16185_v21 = vmax.f32 %v20183_v62, %v3356_v35  }
 0xd8d   : >> { %20182 = vst [vmem:[#allocation65_spill] sm:$0xff] %v16182_v29  ;;  %v3403_v28 = vsub.f32 %v16105_v39, %v16182_v29 }
 0xd8e   : >> { %20184 = vst [vmem:[#allocation64_spill] sm:$0xff] %v16185_v21  ;;  %v20185_v41 = vmov %v16185_v21  ;;  %v3362_v16 = vpop.xlane.xlu1 %3361 }
 0xd8f   : >> { %v3404_v7 = vsub.f32 %v16109_v56, %v20185_v41  ;;  %v3413_v6 = vmul.f32 1.442695, %v3403_v28  ;;  %v16196_v61 = vmax.f32 %v20186_v9, %v3362_v16   ;;  %v10157_v57 = vpop.permute.xlu0 %10156 }
 0xd90   : >> { %v10159_v21 = vunpack.i.h.bf16 %v10157_v57  ;;  %v10158_v5 = vunpack.i.l.bf16 %v10157_v57 }
 0xd91   : >> { %20187 = vst [vmem:[#allocation62_spill] sm:$0xff] %v16196_v61  ;;  %v3415_v35 = vmul.f32 1.442695, %v3404_v7  ;;  %10389 = vpow2.f32 %v3413_v6  ;;  %v3406_v0 = vsub.f32 %v16115_v63, %v16196_v61  ;;  %v20191_v6 = vld [vmem:[#allocation60_spill] sm:$0xff] }
 0xd92   : >> { %v7155_v39 = vpack.c.bf16 %v10159_v21, %v10158_v5  ;;  %v3359_v34 = vpop.xlane.xlu1 %3358 }
 0xd93   : >> { %v16203_v16 = vmax.f32 %v20188_v19, %v3359_v34   ;;  %v10162_v56 = vpop.permute.xlu0 %10161  ;;  %10391 = vpow2.f32 %v3415_v35  ;;  %v3419_v34 = vmul.f32 1.442695, %v3406_v0 }
 0xd94   : >> { %v10164_v28 = vunpack.i.h.bf16 %v10162_v56  ;;  %v10163_v55 = vunpack.i.l.bf16 %v10162_v56  ;;  %7157 = vmatprep.subr.msk.bf16.mxu1 %vm14782_vm2, %v7155_v39 }
 0xd95   : >> { %20189 = vst [vmem:[#allocation63_spill] sm:$0xff] %v16203_v16  ;;  %v20190_v20 = vmov %v16203_v16  ;;  %7160 = vmatpush3.bf16.xpose.msk.msra.mxu1 %vm14782_vm2, %v7155_v39 }
 0xd96   : >> { %v3405_v5 = vsub.f32 %v16123_v51, %v20190_v20  ;;  %v7161_v63 = vpack.c.bf16 %v10164_v28, %v10163_v55  ;;  %v3368_v7 = vpop.xlane.xlu1 %3367  ;;  %v20193_v55 = vld [vmem:[#allocation61_spill] sm:$0xff] }
 0xd97   : >> { %v16214_v35 = vmax.f32 %v20191_v6, %v3368_v7   ;;  %v3635_v21 = vpop.permute.xlu0 %3634 }
 0xd98   : >> { %v3417_v16 = vmul.f32 1.442695, %v3405_v5  ;;  %7163 = vmatprep.subr.msk.bf16.mxu1 %vm14782_vm2, %v7161_v63 }
 0xd99   : >> { %20192 = vst [vmem:[#allocation60_spill] sm:$0xff] %v16214_v35  ;;  %v3408_v51 = vsub.f32 %v16127_v30, %v16214_v35 }
 0xd9a   : >> { %10393 = vpow2.f32 %v3417_v16  ;;  %v3365_v57 = vpop.xlane.xlu1 %3364 }
 0xd9b   : >> { %10395 = vpow2.f32 %v3419_v34  ;;  %v16223_v39 = vmax.f32 %v20193_v55, %v3365_v57   ;;  %v3639_v0 = vpop.permute.xlu0 %3638  ;;  %v16225_v28 = vpop.eup %10389  ;;  %v3423_v57 = vmul.f32 1.442695, %v3408_v51 }
 0xd9c   : >> { %20196 = vst [vmem:[#allocation306_spill] sm:$0xff] %v16225_v28  ;;  %6722 = vmatprep.mubr.msk.f32.mxu1 %vm281_vm0, %v16225_v28 }
 0xd9d   : >> { %20194 = vst [vmem:[#allocation61_spill] sm:$0xff] %v16223_v39  ;;  %v20195_v36 = vmov %v16223_v39  ;;  %7166 = vmatpush3.bf16.xpose.msk.msra.mxu1 %vm14782_vm2, %v7161_v63  ;;  %v16235_v34 = vpop.eup %10391 }
 0xd9e   : >> { %v3407_v7 = vsub.f32 %v16135_v10, %v20195_v36  ;;  %20197 = vst [vmem:[#allocation307_spill] sm:$0xff] %v16235_v34  ;;  %v3637_v30 = vpop.permute.xlu1 %3636  ;;  %6723 = vmatmul.mubr.msk.f32.gmra.mrb[42].mxu1 %vm281_vm0, %v16235_v34 }
 0xd9f   : >> { %v3643_v39 = vpop.permute.xlu0 %3642 }
 0xda0   : >> { %v3421_v16 = vmul.f32 1.442695, %v3407_v7 }
 0xda2   : >> { %10397 = vpow2.f32 %v3421_v16  ;;  %v3641_v5 = vpop.permute.xlu1 %3640 }
 0xda3   : >> { %10399 = vpow2.f32 %v3423_v57  ;;  %v3647_v56 = vpop.permute.xlu0 %3646 }
 0xda4   : >> { %v16239_v10 = vpop.eup %10393 }
 0xda5   : >> { %20198 = vst [vmem:[#allocation308_spill] sm:$0xff] %v16239_v10  ;;  %v16241_v17 = vpop.eup %10395  ;;  %6725 = vmatprep.mubr.msk.f32.mxu1 %vm281_vm0, %v16239_v10 }
 0xda6   : >> { %20199 = vst [vmem:[#allocation309_spill] sm:$0xff] %v16241_v17  ;;  %6726 = vmatmul.mubr.msk.f32.gmra.mrb[44].mxu1 %vm281_vm0, %v16241_v17  ;;  %v3645_v63 = vpop.permute.xlu1 %3644 }
 0xda7   : >> { %v10167_v51 = vpop.permute.xlu0 %10166 }
 0xda8   : >> { %v10169_v7 = vunpack.i.h.bf16 %v10167_v51  ;;  %v10168_v60 = vunpack.i.l.bf16 %v10167_v51 }
 0xdaa   : >> { %v3649_v25 = vpop.permute.xlu1 %3648  ;;  %v7167_v13 = vpack.c.bf16 %v10169_v7, %v10168_v60 }
 0xdab   : >> { %v10177_v16 = vpop.permute.xlu0 %10176 }
 0xdac   : >> { %v16247_v28 = vpop.eup %10397  ;;  %7168 = vmatprep.subr.bf16.mxu0 %v7167_v13  ;;  %v10179_v2 = vunpack.i.h.bf16 %v10177_v16  ;;  %v10178_v15 = vunpack.i.l.bf16 %v10177_v16  ;;  %v20209_v16 = vsub.f32 %v20186_v9, %v16196_v61  ;;  %v20213_v9 = vld [vmem:[#allocation228_spill] sm:$0xff] }
 0xdad   : >> { %v16249_v57 = vpop.eup %10399  ;;  %6728 = vmatprep.mubr.msk.f32.mxu1 %vm281_vm0, %v16247_v28  ;;  %7170 = vmatpush3.bf16.msra.mxu0 %v7167_v13 }
 0xdae   : >> { %20200 = vst [vmem:[#allocation310_spill] sm:$0xff] %v16249_v57  ;;  %6729 = vmatmul.mubr.msk.f32.gmra.mrb[46].mxu1 %vm281_vm0, %v16249_v57  ;;  %v10172_v10 = vpop.permute.xlu1 %10171  ;;  %v7175_v32 = vpack.c.bf16 %v10179_v2, %v10178_v15  ;;  %v20201_v15 = vsub.f32 %v20173_v14, %v20175_v48  ;;  %v20202_v2 = vsub.f32 %v20176_v11, %v20178_v52 }
 0xdaf   : >> { %v10174_v17 = vunpack.i.h.bf16 %v10172_v10  ;;  %v10173_v51 = vunpack.i.l.bf16 %v10172_v10  ;;  %6747 = vmatprep.mubr.msk.f32.mxu1 %vm853_vm1, %v3635_v21  ;;  %v10182_v60 = vpop.permute.xlu0 %10181  ;;  %v20207_v11 = vsub.f32 %v20183_v62, %v20185_v41  ;;  %v20208_v10 = vsub.f32 %v20181_v18, %v16182_v29 }
 0xdb0   : >> { %v10184_v34 = vunpack.i.h.bf16 %v10182_v60  ;;  %v10183_v58 = vunpack.i.l.bf16 %v10182_v60  ;;  %v3385_v21 = vmul.f32 1.442695, %v20202_v2  ;;  %v20210_v60 = vsub.f32 %v20188_v19, %v20190_v20  ;;  %v20214_v19 = vld [vmem:[#allocation49_spill] sm:$0xff] }
 0xdb1   : >> { %v7171_v7 = vpack.c.bf16 %v10174_v17, %v10173_v51  ;;  %v3387_v17 = vmul.f32 1.442695, %v20201_v15  ;;  %v3395_v51 = vmul.f32 1.442695, %v20209_v16  ;;  %v20211_v18 = vsub.f32 %v20191_v6, %v16214_v35  ;;  %v20238_v35 = vld [vmem:[#allocation223_spill] sm:$0xff] }
 0xdb2   : >> { %6748 = vmatmul.mubr.msk.f32.vlgmr.msra.gmra.mrb[48].mxu1 %vm853_vm1, %v3637_v30  ;;  %v7179_v13 = vpack.c.bf16 %v10184_v34, %v10183_v58 }
 0xdb3   : >> { %7172 = vmatprep.subr.bf16.mxu0 %v7171_v7  ;;  %6750 = vmatprep.mubr.msk.f32.mxu1 %vm853_vm1, %v3639_v0  ;;  %10401 = vpow2.f32 %v3387_v17  ;;  %v20203_v0 = vld [vmem:[#allocation50_spill] sm:$0xff]  ;;  %v3399_v15 = vmul.f32 1.442695, %v20211_v18  ;;  %v20212_v17 = vsub.f32 %v20193_v55, %v20195_v36  ;;  %v20217_v55 = vld [vmem:[#allocation48_spill] sm:$0xff] }
 0xdb4   : >> { %7174 = vmatpush3.bf16.msra.mxu0 %v7171_v7  ;;  %10403 = vpow2.f32 %v3385_v21 }
 0xdb5   : >> { %7176 = vmatprep.subr.bf16.mxu0 %v7175_v32  ;;  %v3397_v2 = vmul.f32 1.442695, %v20212_v17 }
 0xdb6   : >> { %6751 = vmatmul.mubr.msk.f32.gmra.mrb[50].mxu1 %vm853_vm1, %v3641_v5 }
 0xdb7   : >> { %6753 = vmatprep.mubr.msk.f32.mxu1 %vm853_vm1, %v3643_v39  ;;  %v3391_v39 = vmul.f32 1.442695, %v20207_v11  ;;  %v20218_v11 = vld [vmem:[#allocation227_spill] sm:$0xff] }
 0xdb8   : >> { %7178 = vmatpush3.bf16.msra.mxu0 %v7175_v32 }
 0xdb9   : >> { %7180 = vmatprep.subr.bf16.mxu0 %v7179_v13  ;;  %10405 = vpow2.f32 %v3391_v39 }
 0xdba   : >> { %6754 = vmatmul.mubr.msk.f32.gmra.mrb[52].mxu1 %vm853_vm1, %v3645_v63  ;;  %v3389_v63 = vmul.f32 1.442695, %v20208_v10 }
 0xdbb   : >> { %6756 = vmatprep.mubr.msk.f32.mxu1 %vm853_vm1, %v3647_v56 }
 0xdbc   : >> { %7182 = vmatpush3.bf16.msra.mxu0 %v7179_v13  ;;  %10407 = vpow2.f32 %v3389_v63 }
 0xdbd   : >> { %v16269_v58 = vpop.eup %10401  ;;  %10409 = vpow2.f32 %v3395_v51 }
 0xdbe   : >> { %6757 = vmatmul.mubr.msk.f32.gmra.mrb[54].mxu1 %vm853_vm1, %v3649_v25  ;;  %v16271_v32 = vpop.eup %10403  ;;  %v3466_v56 = vmul.f32 %v20203_v0, %v16269_v58  ;;  %v20204_v25 = vld [vmem:[#allocation51_spill] sm:$0xff] }
 0xdbf   : >> { %v3465_v34 = vmul.f32 %v20204_v25, %v16271_v32 }
 0xdc3   : >> { %v16293_v13 = vpop.eup %10405 }
 0xdc4   : >> { %v3468_v21 = vmul.f32 %v20213_v9, %v16293_v13 }
 0xdc6   : >> { %v16295_v62 = vpop.eup %10407 }
 0xdc7   : >> { %v16311_v6 = vpop.eup %10409 }
 0xe3d   : >> { %v6721_v5 = vpop.f32.mrb[40].mxu1 }
 0xe3e   : >> { %v16277_v7 = vadd.f32 %v6721_v5, %v3466_v56   ;;  %v3587_v14 = vpop.f32.mrb[41].mxu1  ;;  %v3467_v56 = vmul.f32 %v20214_v19, %v16295_v62 }
 0xe3f   : >> { %v16279_v30 = vadd.f32 %v3587_v14, %v3465_v34   ;;  %v3470_v14 = vmul.f32 %v20217_v55, %v16311_v6 }
 0xe40   : >> { %20205 = vst [vmem:[#allocation311_spill] sm:$0xff] %v16277_v7  ;;  %v3393_v7 = vmul.f32 1.442695, %v20210_v60 }
 0xe41   : >> { %20206 = vst [vmem:[#allocation312_spill] sm:$0xff] %v16279_v30 }
 0xe42   : >> { %10411 = vpow2.f32 %v3393_v7 }
 0xe43   : >> { %10413 = vpow2.f32 %v3399_v15 }
 0xe44   : >> { %10415 = vpow2.f32 %v3397_v2  ;;  %v20222_v2 = vld [vmem:[#allocation226_spill] sm:$0xff] }
 0xe4c   : >> { %v16313_v34 = vpop.eup %10411 }
 0xe4d   : >> { %v3469_v39 = vmul.f32 %v20218_v11, %v16313_v34  ;;  %v16323_v51 = vpop.eup %10413 }
 0xe4e   : >> { %v16325_v7 = vpop.eup %10415 }
 0xe71   : >> { %v6724_v0 = vpop.f32.mrb[42].mxu1 }
 0xe72   : >> { %v16307_v5 = vadd.f32 %v6724_v0, %v3468_v21   ;;  %v3597_v25 = vpop.f32.mrb[43].mxu1  ;;  %v3471_v21 = vmul.f32 %v20222_v2, %v16325_v7 }
 0xe73   : >> { %v16309_v60 = vadd.f32 %v3597_v25, %v3467_v56  }
 0xe74   : >> { %20215 = vst [vmem:[#allocation313_spill] sm:$0xff] %v16307_v5 }
 0xe75   : >> { %20216 = vst [vmem:[#allocation314_spill] sm:$0xff] %v16309_v60  ;;  %v20221_v60 = vld [vmem:[#allocation47_spill] sm:$0xff] }
 0xe76   : >> { %v3472_v15 = vmul.f32 %v20221_v60, %v16323_v51 }
 0xe79   : >> { %v6727_v30 = vpop.f32.mrb[44].mxu1 }
 0xe7a   : >> { %v16319_v10 = vadd.f32 %v6727_v30, %v3470_v14   ;;  %v3607_v63 = vpop.f32.mrb[45].mxu1 }
 0xe7b   : >> { %v16321_v16 = vadd.f32 %v3607_v63, %v3469_v39  }
 0xe7c   : >> { %20219 = vst [vmem:[#allocation315_spill] sm:$0xff] %v16319_v10 }
 0xe7d   : >> { %20220 = vst [vmem:[#allocation316_spill] sm:$0xff] %v16321_v16 }
 0xe81   : >> { %v6730_v17 = vpop.f32.mrb[46].mxu1 }
 0xe82   : >> { %v16331_v39 = vadd.f32 %v6730_v17, %v3472_v15   ;;  %v3617_v0 = vpop.f32.mrb[47].mxu1 }
 0xe83   : >> { %v16333_v19 = vadd.f32 %v3617_v0, %v3471_v21  }
 0xe84   : >> { %20223 = vst [vmem:[#allocation317_spill] sm:$0xff] %v16331_v39 }
 0xe85   : >> { %20224 = vst [vmem:[#allocation318_spill] sm:$0xff] %v16333_v19  ;;  %v6749_v56 = vpop.f32.mrb[48].mxu1 }
 0xe86   : >> { %v3804_v25 = vsel %vm14836_vm3, %v6749_v56, -1e+30  ;;  %v3764_v55 = vpop.f32.mrb[49].mxu1 }
 0xe87   : >> { %v3814_v14 = vsel %vm281_vm0, %v3804_v25, -inf  ;;  %v3803_v30 = vsel %vm14841_vm4, %v3764_v55, -1e+30 }
 0xe88   : >> { %v3811_v11 = vsel %vm281_vm0, %v3803_v30, -inf  ;;  %3815 = vmax.xlane.f32.xlu1 %v3814_v14 }
 0xe89   : >> { %3812 = vmax.xlane.f32.xlu0 %v3811_v11  ;;  %v6752_v10 = vpop.f32.mrb[50].mxu1 }
 0xe8a   : >> { %v3774_v63 = vpop.f32.mrb[51].mxu1  ;;  %v16349_v2 = vsel %vm14867_vm6, %v6752_v10, -1e+30 }
 0xe8b   : >> { %v16345_v17 = vsel %vm14862_vm5, %v3774_v63, -1e+30  ;;  %v3820_v19 = vsel %vm281_vm0, %v16349_v2, -inf }
 0xe8c   : >> { %v3817_v21 = vsel %vm281_vm0, %v16345_v17, -inf }
 0xe8d   : >> { %v6755_v39 = vpop.f32.mrb[52].mxu1 }
 0xe8e   : >> { %v3784_v16 = vpop.f32.mrb[53].mxu1  ;;  %v16355_v0 = vsel %vm14876_vm7, %v6755_v39, -1e+30 }
 0xe8f   : >> { %v3826_v56 = vsel %vm281_vm0, %v16355_v0, -inf  ;;  %v16363_v55 = vsel %vm14893_vm8, %v3784_v16, -1e+30 }
 0xe90   : >> { %v3823_v11 = vsel %vm281_vm0, %v16363_v55, -inf }
 0xe91   : >> { %v6758_v60 = vpop.f32.mrb[54].mxu1 }
 0xe92   : >> { %v3794_v15 = vpop.f32.mrb[55].mxu1  ;;  %v16367_v14 = vsel %vm14900_vm9, %v6758_v60, -1e+30  ;;  %v20225_v60 = vld [vmem:[#allocation225_spill] sm:$0xff] }
 0xe93   : >> { %v3832_v10 = vsel %vm281_vm0, %v16367_v14, -inf  ;;  %v16375_v63 = vsel %vm14915_vm10, %v3794_v15, -1e+30 }
 0xe94   : >> { %v3829_v39 = vsel %vm281_vm0, %v16375_v63, -inf }
 0xe99   : >> { %10186 = vrot.lane.b32.xlu1 %v14786_v24, %s13230_s15 }
 0xe9f   : >> { %10191 = vrot.lane.b32.xlu0 %v14794_v38, %s13230_s15 }
 0xebd   : >> { %3818 = vmax.xlane.f32.xlu1 %v3817_v21 }
 0xebe   : >> { %3821 = vmax.xlane.f32.xlu0 %v3820_v19  ;;  %v20228_v19 = vld [vmem:[#allocation46_spill] sm:$0xff] }
 0xec1   : >> { %3827 = vmax.xlane.f32.xlu1 %v3826_v56 }
 0xec5   : >> { %3824 = vmax.xlane.f32.xlu1 %v3823_v11 }
 0xec9   : >> { %3833 = vmax.xlane.f32.xlu1 %v3832_v10 }
 0xecd   : >> { %3830 = vmax.xlane.f32.xlu1 %v3829_v39 }
 0xed4   : >> { %10196 = vrot.lane.b32.xlu0 %v14800_v37, %s13230_s15 }
 0xed8   : >> { %10201 = vrot.lane.b32.xlu0 %v14808_v31, %s13230_s15 }
 0xedc   : >> { %4100 = vrot.lane.b32.xlu0 %v19914_v45, %s13230_s15 }
 0xede   : >> { %4102 = vrot.lane.b32.xlu1 %v19818_v54, %s13230_s15 }
 0xee0   : >> { %4104 = vrot.lane.b32.xlu0 %v19916_v49, %s13230_s15 }
 0xee2   : >> { %4106 = vrot.lane.b32.xlu1 %v19918_v44, %s13230_s15 }
 0xee4   : >> { %4108 = vrot.lane.b32.xlu0 %v19920_v46, %s13230_s15 }
 0xee6   : >> { %4110 = vrot.lane.b32.xlu1 %v19922_v53, %s13230_s15 }
 0xee8   : >> { %4112 = vrot.lane.b32.xlu0 %v19924_v50, %s13230_s15 }
 0xeea   : >> { %4114 = vrot.lane.b32.xlu1 %v19926_v59, %s13230_s15 }
 0xeee   : >> { %10206 = vrot.lane.b32.xlu1 %v14786_v24, %s13231_s16 }
 0xf15   : >> { %v3816_v16 = vpop.xlane.xlu1 %3815 }
 0xf16   : >> { %v16392_v15 = vmax.f32 %v20225_v60, %v3816_v16   ;;  %v3813_v21 = vpop.xlane.xlu0 %3812 }
 0xf17   : >> { %v16395_v56 = vmax.f32 %v20228_v19, %v3813_v21  }
 0xf18   : >> { %20226 = vst [vmem:[#allocation47_spill] sm:$0xff] %v16392_v15  ;;  %v20227_v39 = vmov %v16392_v15 }
 0xf19   : >> { %20229 = vst [vmem:[#allocation46_spill] sm:$0xff] %v16395_v56  ;;  %v20230_v44 = vmov %v16395_v56  ;;  %v3868_v10 = vsub.f32 %v3804_v25, %v20227_v39  ;;  %v10187_v49 = vpop.permute.xlu1 %10186 }
 0xf1a   : >> { %v3867_v46 = vsub.f32 %v3803_v30, %v20230_v44  ;;  %v10189_v24 = vunpack.i.h.bf16 %v10187_v49  ;;  %v10188_v50 = vunpack.i.l.bf16 %v10187_v49  ;;  %v10192_v21 = vpop.permute.xlu0 %10191  ;;  %v20231_v49 = vld [vmem:[#allocation45_spill] sm:$0xff] }
 0xf1b   : >> { %v3877_v16 = vmul.f32 1.442695, %v3868_v10  ;;  %v10194_v56 = vunpack.i.h.bf16 %v10192_v21  ;;  %v10193_v11 = vunpack.i.l.bf16 %v10192_v21  ;;  %v20233_v10 = vld [vmem:[#allocation224_spill] sm:$0xff] }
 0xf1c   : >> { %v3875_v53 = vmul.f32 1.442695, %v3867_v46  ;;  %v7183_v15 = vpack.c.bf16 %v10189_v24, %v10188_v50 }
 0xf1d   : >> { %v7189_v30 = vpack.c.bf16 %v10194_v56, %v10193_v11 }
 0xf1e   : >> { %7185 = vmatprep.subr.msk.bf16.mxu0 %vm14782_vm2, %v7183_v15  ;;  %10417 = vpow2.f32 %v3875_v53 }
 0xf1f   : >> { %10419 = vpow2.f32 %v3877_v16 }
 0xf28   : >> { %v16405_v25 = vpop.eup %10417 }
 0xf29   : >> { %v16407_v54 = vpop.eup %10419  ;;  %6775 = vmatprep.mubr.msk.f32.mxu0 %vm281_vm0, %v16405_v25 }
 0xf2a   : >> { %6776 = vmatmul.mubr.msk.f32.vlgmr.msra.gmra.mrb[56].mxu0 %vm281_vm0, %v16407_v54 }
 0xf2b   : >> { %7188 = vmatpush3.bf16.xpose.msk.msra.mxu0 %vm14782_vm2, %v7183_v15 }
 0xf2c   : >> { %7191 = vmatprep.subr.msk.bf16.mxu0 %vm14782_vm2, %v7189_v30 }
 0xf33   : >> { %7194 = vmatpush3.bf16.xpose.msk.msra.mxu0 %vm14782_vm2, %v7189_v30 }
 0xf4a   : >> { %v3819_v46 = vpop.xlane.xlu1 %3818 }
 0xf4b   : >> { %v16420_v50 = vmax.f32 %v20231_v49, %v3819_v46   ;;  %v3822_v53 = vpop.xlane.xlu0 %3821  ;;  %v20236_v46 = vld [vmem:[#allocation222_spill] sm:$0xff] }
 0xf4c   : >> { %v16423_v24 = vmax.f32 %v20233_v10, %v3822_v53  }
 0xf4d   : >> { %20232 = vst [vmem:[#allocation45_spill] sm:$0xff] %v16420_v50  ;;  %v3869_v16 = vsub.f32 %v16345_v17, %v16420_v50 }
 0xf4e   : >> { %20234 = vst [vmem:[#allocation48_spill] sm:$0xff] %v16423_v24  ;;  %v20235_v45 = vmov %v16423_v24  ;;  %v3828_v56 = vpop.xlane.xlu1 %3827 }
 0xf4f   : >> { %v3870_v21 = vsub.f32 %v16349_v2, %v20235_v45  ;;  %v3879_v30 = vmul.f32 1.442695, %v3869_v16  ;;  %v16434_v24 = vmax.f32 %v20236_v46, %v3828_v56   ;;  %v10197_v59 = vpop.permute.xlu0 %10196 }
 0xf50   : >> { %v10199_v29 = vunpack.i.h.bf16 %v10197_v59  ;;  %v10198_v41 = vunpack.i.l.bf16 %v10197_v59 }
 0xf51   : >> { %20237 = vst [vmem:[#allocation49_spill] sm:$0xff] %v16434_v24  ;;  %v3881_v53 = vmul.f32 1.442695, %v3870_v21  ;;  %10421 = vpow2.f32 %v3879_v30  ;;  %v3872_v15 = vsub.f32 %v16355_v0, %v16434_v24  ;;  %v20241_v30 = vld [vmem:[#allocation220_spill] sm:$0xff] }
 0xf52   : >> { %v7195_v17 = vpack.c.bf16 %v10199_v29, %v10198_v41  ;;  %v3825_v36 = vpop.xlane.xlu1 %3824 }
 0xf53   : >> { %v16441_v2 = vmax.f32 %v20238_v35, %v3825_v36   ;;  %v10202_v16 = vpop.permute.xlu0 %10201  ;;  %10423 = vpow2.f32 %v3881_v53  ;;  %v3885_v36 = vmul.f32 1.442695, %v3872_v15 }
 0xf54   : >> { %v10204_v56 = vunpack.i.h.bf16 %v10202_v16  ;;  %v10203_v48 = vunpack.i.l.bf16 %v10202_v16  ;;  %7197 = vmatprep.subr.msk.bf16.mxu0 %vm14782_vm2, %v7195_v17 }
 0xf55   : >> { %20239 = vst [vmem:[#allocation50_spill] sm:$0xff] %v16441_v2  ;;  %v20240_v57 = vmov %v16441_v2  ;;  %7200 = vmatpush3.bf16.xpose.msk.msra.mxu0 %vm14782_vm2, %v7195_v17  ;;  %v20243_v17 = vld [vmem:[#allocation221_spill] sm:$0xff] }
 0xf56   : >> { %v3871_v41 = vsub.f32 %v16363_v55, %v20240_v57  ;;  %v7201_v29 = vpack.c.bf16 %v10204_v56, %v10203_v48  ;;  %v3834_v0 = vpop.xlane.xlu1 %3833 }
 0xf57   : >> { %v16452_v53 = vmax.f32 %v20241_v30, %v3834_v0  }
 0xf58   : >> { %v3883_v21 = vmul.f32 1.442695, %v3871_v41  ;;  %7203 = vmatprep.subr.msk.bf16.mxu0 %vm14782_vm2, %v7201_v29 }
 0xf59   : >> { %20242 = vst [vmem:[#allocation51_spill] sm:$0xff] %v16452_v53  ;;  %v3874_v55 = vsub.f32 %v16367_v14, %v16452_v53 }
 0xf5a   : >> { %10425 = vpow2.f32 %v3883_v21  ;;  %v3831_v16 = vpop.xlane.xlu1 %3830 }
 0xf5b   : >> { %10427 = vpow2.f32 %v3885_v36  ;;  %v16461_v48 = vmax.f32 %v20243_v17, %v3831_v16   ;;  %v16463_v15 = vpop.eup %10421  ;;  %v3889_v36 = vmul.f32 1.442695, %v3874_v55 }
 0xf5c   : >> { %6778 = vmatprep.mubr.msk.f32.mxu0 %vm281_vm0, %v16463_v15 }
 0xf5d   : >> { %20244 = vst [vmem:[#allocation319_spill] sm:$0xff] %v16461_v48  ;;  %v3849_v56 = vsub.f32 %v20243_v17, %v16461_v48  ;;  %v3873_v41 = vsub.f32 %v16375_v63, %v16461_v48  ;;  %7206 = vmatpush3.bf16.xpose.msk.msra.mxu0 %vm14782_vm2, %v7201_v29  ;;  %v16473_v0 = vpop.eup %10423  ;;  %v4101_v29 = vpop.permute.xlu0 %4100  ;;  %v20308_v48 = vld [vmem:[#allocation116_spill] sm:$0xff] }
 0xf5e   : >> { %v4103_v14 = vpop.permute.xlu1 %4102  ;;  %6779 = vmatmul.mubr.msk.f32.gmra.mrb[58].mxu0 %vm281_vm0, %v16473_v0 }
 0xf5f   : >> { %v3887_v21 = vmul.f32 1.442695, %v3873_v41 }
 0xf61   : >> { %10429 = vpow2.f32 %v3887_v21  ;;  %v4105_v21 = vpop.permute.xlu0 %4104 }
 0xf62   : >> { %v4107_v16 = vpop.permute.xlu1 %4106  ;;  %10431 = vpow2.f32 %v3889_v36 }
 0xf64   : >> { %v16477_v17 = vpop.eup %10425 }
 0xf65   : >> { %v16479_v63 = vpop.eup %10427  ;;  %6781 = vmatprep.mubr.msk.f32.mxu0 %vm281_vm0, %v16477_v17  ;;  %v4109_v5 = vpop.permute.xlu0 %4108 }
 0xf66   : >> { %6782 = vmatmul.mubr.msk.f32.gmra.mrb[60].mxu0 %vm281_vm0, %v16479_v63  ;;  %v4111_v33 = vpop.permute.xlu1 %4110 }
 0xf69   : >> { %v4113_v9 = vpop.permute.xlu0 %4112 }
 0xf6a   : >> { %v4115_v55 = vpop.permute.xlu1 %4114 }
 0xf6b   : >> { %v16485_v41 = vpop.eup %10429 }
 0xf6c   : >> { %v16487_v2 = vpop.eup %10431  ;;  %6784 = vmatprep.mubr.msk.f32.mxu0 %vm281_vm0, %v16485_v41 }
 0xf6d   : >> { %6785 = vmatmul.mubr.msk.f32.gmra.mrb[62].mxu0 %vm281_vm0, %v16487_v2 }
 0xf6e   : >> { %v10207_v36 = vpop.permute.xlu1 %10206  ;;  %6803 = vmatprep.mubr.msk.f32.mxu0 %vm853_vm1, %v4101_v29 }
 0xf6f   : >> { %v10209_v59 = vunpack.i.h.bf16 %v10207_v36  ;;  %v10208_v11 = vunpack.i.l.bf16 %v10207_v36 }
 0xf71   : >> { %v7207_v52 = vpack.c.bf16 %v10209_v59, %v10208_v11  ;;  %6804 = vmatmul.mubr.msk.f32.vlgmr.msra.gmra.mrb[64].mxu0 %vm853_vm1, %v4103_v14  ;;  %v20245_v11 = vsub.f32 %v20225_v60, %v20227_v39  ;;  %v20246_v14 = vsub.f32 %v20228_v19, %v20230_v44  ;;  %v20252_v19 = vsub.f32 %v20233_v10, %v20235_v45  ;;  %v20266_v39 = vld [vmem:[#allocation208_spill] sm:$0xff] }
 0xf72   : >> { %6806 = vmatprep.mubr.msk.f32.mxu0 %vm853_vm1, %v4105_v21 }
 0xf73   : >> { %7208 = vmatprep.subr.bf16.mxu1 %v7207_v52  ;;  %v3853_v59 = vmul.f32 1.442695, %v20245_v11  ;;  %v3857_v11 = vmul.f32 1.442695, %v20252_v19 }
 0xf74   : >> { %7210 = vmatpush3.bf16.msra.mxu1 %v7207_v52  ;;  %v3851_v52 = vmul.f32 1.442695, %v20246_v14 }
 0xf75   : >> { %6807 = vmatmul.mubr.msk.f32.gmra.mrb[66].mxu0 %vm853_vm1, %v4107_v16  ;;  %10433 = vpow2.f32 %v3853_v59  ;;  %v20253_v59 = vsub.f32 %v20231_v49, %v16420_v50  ;;  %v20256_v49 = vsub.f32 %v20241_v30, %v16452_v53  ;;  %v20261_v30 = vld [vmem:[#allocation209_spill] sm:$0xff]  ;;  %v20309_v53 = vld [vmem:[#allocation39_spill] sm:$0xff] }
 0xf76   : >> { %6809 = vmatprep.mubr.msk.f32.mxu0 %vm853_vm1, %v4109_v5  ;;  %10435 = vpow2.f32 %v3851_v52  ;;  %v20254_v52 = vsub.f32 %v20236_v46, %v16434_v24  ;;  %v20307_v24 = vld [vmem:[#allocation307_spill] sm:$0xff] }
 0xf77   : >> { %v3855_v14 = vmul.f32 1.442695, %v20253_v59  ;;  %10437 = vpow2.f32 %v3857_v11  ;;  %v20258_v11 = vld [vmem:[#allocation211_spill] sm:$0xff] }
 0xf79   : >> { %6810 = vmatmul.mubr.msk.f32.gmra.mrb[68].mxu0 %vm853_vm1, %v4111_v33  ;;  %v20248_v33 = vld [vmem:[#allocation43_spill] sm:$0xff]  ;;  %10439 = vpow2.f32 %v3855_v14 }
 0xf7a   : >> { %6812 = vmatprep.mubr.msk.f32.mxu0 %vm853_vm1, %v4113_v9 }
 0xf7d   : >> { %6813 = vmatmul.mubr.msk.f32.gmra.mrb[70].mxu0 %vm853_vm1, %v4115_v55  ;;  %v20249_v55 = vld [vmem:[#allocation212_spill] sm:$0xff] }
 0xf7f   : >> { %v16507_v16 = vpop.eup %10433 }
 0xf80   : >> { %v16509_v5 = vpop.eup %10435  ;;  %v3932_v29 = vmul.f32 %v20248_v33, %v16507_v16  ;;  %v3861_v33 = vmul.f32 1.442695, %v20254_v52 }
 0xf81   : >> { %20247 = vst [vmem:[#allocation228_spill] sm:$0xff] %v16509_v5  ;;  %v3931_v36 = vmul.f32 %v20249_v55, %v16509_v5 }
 0xf82   : >> { %10441 = vpow2.f32 %v3861_v33 }
 0xffd   : >> { %v6777_v9 = vpop.f32.mrb[56].mxu0 }
 0xffe   : >> { %v16515_v21 = vadd.f32 %v6777_v9, %v3932_v29   ;;  %v4053_v60 = vpop.f32.mrb[57].mxu0  ;;  %v20255_v29 = vsub.f32 %v20238_v35, %v20240_v57 }
 0xfff   : >> { %v16517_v55 = vadd.f32 %v4053_v60, %v3931_v36   ;;  %v3865_v36 = vmul.f32 1.442695, %v20256_v49  ;;  %v20257_v60 = vld [vmem:[#allocation42_spill] sm:$0xff] }
0x1000   : >> { %20250 = vst [vmem:[#allocation320_spill] sm:$0xff] %v16515_v21  ;;  %v3859_v9 = vmul.f32 1.442695, %v20255_v29  ;;  %v3863_v21 = vmul.f32 1.442695, %v3849_v56 }
0x1001   : >> { %20251 = vst [vmem:[#allocation321_spill] sm:$0xff] %v16517_v55  ;;  %v16531_v55 = vpop.eup %10437 }
0x1002   : >> { %10443 = vpow2.f32 %v3859_v9  ;;  %v16533_v10 = vpop.eup %10439  ;;  %v3934_v19 = vmul.f32 %v20257_v60, %v16531_v55  ;;  %v20262_v60 = vld [vmem:[#allocation210_spill] sm:$0xff] }
0x1003   : >> { %v3933_v59 = vmul.f32 %v20258_v11, %v16533_v10  ;;  %10445 = vpow2.f32 %v3865_v36  ;;  %v16546_v33 = vpop.eup %10441 }
0x1004   : >> { %10447 = vpow2.f32 %v3863_v21  ;;  %v3936_v56 = vmul.f32 %v20261_v30, %v16546_v33 }
0x100c   : >> { %v16548_v29 = vpop.eup %10443 }
0x100d   : >> { %v3935_v20 = vmul.f32 %v20262_v60, %v16548_v29  ;;  %v16558_v11 = vpop.eup %10445 }
0x100e   : >> { %v16560_v21 = vpop.eup %10447 }
0x100f   : >> { %v3937_v30 = vmul.f32 %v20266_v39, %v16560_v21 }
0x1031   : >> { %v6780_v46 = vpop.f32.mrb[58].mxu0 }
0x1032   : >> { %v16542_v49 = vadd.f32 %v6780_v46, %v3934_v19   ;;  %v4063_v35 = vpop.f32.mrb[59].mxu0  ;;  %v20313_v46 = vld [vmem:[#allocation276_spill] sm:$0xff] }
0x1033   : >> { %v16544_v14 = vadd.f32 %v4063_v35, %v3933_v59   ;;  %v20265_v59 = vld [vmem:[#allocation41_spill] sm:$0xff] }
0x1034   : >> { %20259 = vst [vmem:[#allocation322_spill] sm:$0xff] %v16542_v49  ;;  %v3938_v35 = vmul.f32 %v20265_v59, %v16558_v11  ;;  %v20312_v49 = vld [vmem:[#allocation310_spill] sm:$0xff] }
0x1035   : >> { %20260 = vst [vmem:[#allocation323_spill] sm:$0xff] %v16544_v14 }
0x1039   : >> { %v6783_v9 = vpop.f32.mrb[60].mxu0 }
0x103a   : >> { %v16554_v44 = vadd.f32 %v6783_v9, %v3936_v56   ;;  %v4073_v36 = vpop.f32.mrb[61].mxu0 }
0x103b   : >> { %v16556_v19 = vadd.f32 %v4073_v36, %v3935_v20  }
0x103c   : >> { %20263 = vst [vmem:[#allocation324_spill] sm:$0xff] %v16554_v44 }
0x103d   : >> { %20264 = vst [vmem:[#allocation325_spill] sm:$0xff] %v16556_v19 }
0x1040   : >> { %v6786_v14 = vpop.f32.mrb[62].mxu0 }
0x1041   : >> { %v16566_v45 = vadd.f32 %v6786_v14, %v3938_v35   ;;  %v4083_v57 = vpop.f32.mrb[63].mxu0 }
0x1042   : >> { %v16568_v60 = vadd.f32 %v4083_v57, %v3937_v30  }
0x1043   : >> { %20267 = vst [vmem:[#allocation326_spill] sm:$0xff] %v16566_v45  ;;  %20543 = vst [vmem:[#allocation41_spill] sm:$0xff] %v16566_v45 }
0x1044   : >> { %20268 = vst [vmem:[#allocation327_spill] sm:$0xff] %v16568_v60  ;;  %v20269_v9 = vmov %v16568_v60  ;;  %v6805_v44 = vpop.f32.mrb[64].mxu0 }
0x1045   : >> { %v16572_v20 = vsel %vm14836_vm3, %v6805_v44, -1e+30  ;;  %v4230_v56 = vpop.f32.mrb[65].mxu0 }
0x1046   : >> { %v4280_v36 = vsel %vm281_vm0, %v16572_v20, -inf  ;;  %v16578_v19 = vsel %vm14841_vm4, %v4230_v56, -1e+30 }
0x1047   : >> { %v4277_v39 = vsel %vm281_vm0, %v16578_v19, -inf  ;;  %4281 = vmax.xlane.f32.xlu1 %v4280_v36 }
0x1048   : >> { %4278 = vmax.xlane.f32.xlu0 %v4277_v39  ;;  %v6808_v57 = vpop.f32.mrb[66].mxu0 }
0x1049   : >> { %v16584_v59 = vsel %vm14867_vm6, %v6808_v57, -1e+30  ;;  %v4240_v23 = vpop.f32.mrb[67].mxu0 }
0x104a   : >> { %v4286_v35 = vsel %vm281_vm0, %v16584_v59, -inf  ;;  %v16590_v14 = vsel %vm14862_vm5, %v4240_v23, -1e+30  ;;  %v20270_v23 = vld [vmem:[#allocation182_spill] sm:$0xff] }
0x104b   : >> { %v4283_v22 = vsel %vm281_vm0, %v16590_v14, -inf }
0x104c   : >> { %4287 = vmax.xlane.f32.xlu0 %v4286_v35  ;;  %v6811_v47 = vpop.f32.mrb[68].mxu0  ;;  %v1103_v35 = vsel %vm281_vm0, %v20270_v23, 0.0 }
0x104d   : >> { %v4250_v30 = vpop.f32.mrb[69].mxu0  ;;  %v16602_v56 = vsel %vm14876_vm7, %v6811_v47, -1e+30  ;;  %v20271_v47 = vld [vmem:[#allocation169_spill] sm:$0xff] }
0x104e   : >> { %v16594_v60 = vsel %vm14893_vm8, %v4250_v30, -1e+30  ;;  %v4292_v1 = vsel %vm281_vm0, %v16602_v56, -inf  ;;  %v1109_v30 = vsel %vm281_vm0, %v20271_v47, 0.0  ;;  %v20277_v47 = vld [vmem:[#allocation183_spill] sm:$0xff] }
0x104f   : >> { %v4289_v44 = vsel %vm281_vm0, %v16594_v60, -inf }
0x1050   : >> { %4284 = vmax.xlane.f32.xlu0 %v4283_v22  ;;  %4290 = vmax.xlane.f32.xlu1 %v4289_v44  ;;  %v6814_v27 = vpop.f32.mrb[70].mxu0  ;;  %v20274_v44 = vld [vmem:[#allocation174_spill] sm:$0xff] }
0x1051   : >> { %v4260_v36 = vpop.f32.mrb[71].mxu0  ;;  %v16606_v39 = vsel %vm14900_vm9, %v6814_v27, -1e+30  ;;  %v1124_v27 = vsel %vm281_vm0, %v20274_v44, 0.0 }
0x1052   : >> { %v4298_v57 = vsel %vm281_vm0, %v16606_v39, -inf  ;;  %v16618_v42 = vsel %vm14915_vm10, %v4260_v36, -1e+30  ;;  %v1572_v36 = vsel %vm281_vm0, %v15209_v4, 0.0  ;;  %v2044_v4 = vsel %vm281_vm0, %v15515_v12, 0.0 }
0x1053   : >> { %v4295_v3 = vsel %vm281_vm0, %v16618_v42, -inf }
0x1054   : >> { %4293 = vmax.xlane.f32.xlu0 %v4292_v1  ;;  %v1578_v1 = vsel %vm281_vm0, %v15275_v26, 0.0 }
0x1058   : >> { %4299 = vmax.xlane.f32.xlu0 %v4298_v57  ;;  %v1584_v57 = vsel %vm281_vm0, %v15281_v40, 0.0  ;;  %v1106_v40 = vsel %vm281_vm0, %v20277_v47, 0.0  ;;  %v20287_v47 = vld [vmem:[#allocation247_spill] sm:$0xff] }
0x1061   : >> { %10216 = vrot.lane.b32.xlu1 %v14800_v37, %s13231_s16  ;;  %v20272_v37 = vld [vmem:[#allocation170_spill] sm:$0xff] }
0x1062   : >> { %v1112_v22 = vsel %vm281_vm0, %v20272_v37, 0.0  ;;  %v20279_v37 = vld [vmem:[#allocation171_spill] sm:$0xff] }
0x106e   : >> { %10211 = vrot.lane.b32.xlu0 %v14794_v38, %s13231_s16  ;;  %v1118_v38 = vsel %vm281_vm0, %v20273_v43, 0.0  ;;  %v20280_v43 = vld [vmem:[#allocation117_spill] sm:$0xff] }
0x106f   : >> { %v2504_v12 = vsel %vm281_vm0, %v20280_v43, 0.0 }
0x1085   : >> { %4296 = vmax.xlane.f32.xlu1 %v4295_v3  ;;  %v20275_v3 = vld [vmem:[#allocation141_spill] sm:$0xff] }
0x1086   : >> { %v2038_v23 = vsel %vm281_vm0, %v20275_v3, 0.0 }
0x108d   : >> { %1104 = vadd.xlane.f32.xlu0 %v1103_v35  ;;  %v20276_v35 = vld [vmem:[#allocation261_spill] sm:$0xff] }
0x108e   : >> { %v2050_v26 = vsel %vm281_vm0, %v20276_v35, 0.0  ;;  %v20286_v35 = vld [vmem:[#allocation279_spill] sm:$0xff] }
0x1091   : >> { %1110 = vadd.xlane.f32.xlu0 %v1109_v30  ;;  %v20278_v30 = vld [vmem:[#allocation263_spill] sm:$0xff] }
0x1095   : >> { %1113 = vadd.xlane.f32.xlu0 %v1112_v22  ;;  %v1115_v22 = vsel %vm281_vm0, %v20279_v37, 0.0  ;;  %v20289_v37 = vld [vmem:[#allocation248_spill] sm:$0xff] }
0x1096   : >> { %10221 = vrot.lane.b32.xlu1 %v14808_v31, %s13231_s16  ;;  %v1590_v31 = vsel %vm281_vm0, %v15289_v8, 0.0  ;;  %v2056_v8 = vsel %vm281_vm0, %v20278_v30, 0.0  ;;  %v20288_v30 = vld [vmem:[#allocation93_spill] sm:$0xff] }
0x1099   : >> { %1119 = vadd.xlane.f32.xlu0 %v1118_v38  ;;  %v20281_v38 = vld [vmem:[#allocation173_spill] sm:$0xff] }
0x109a   : >> { %v1121_v44 = vsel %vm281_vm0, %v20281_v38, 0.0 }
0x109d   : >> { %1125 = vadd.xlane.f32.xlu0 %v1124_v27  ;;  %v20282_v27 = vld [vmem:[#allocation275_spill] sm:$0xff] }
0x10a1   : >> { %1573 = vadd.xlane.f32.xlu0 %v1572_v36  ;;  %v2510_v36 = vsel %vm281_vm0, %v20282_v27, 0.0 }
0x10a5   : >> { %1579 = vadd.xlane.f32.xlu0 %v1578_v1  ;;  %v20283_v1 = vld [vmem:[#allocation243_spill] sm:$0xff] }
0x10a9   : >> { %1585 = vadd.xlane.f32.xlu0 %v1584_v57  ;;  %v1569_v57 = vsel %vm281_vm0, %v20283_v1, 0.0  ;;  %v20292_v1 = vld [vmem:[#allocation140_spill] sm:$0xff] }
0x10ad   : >> { %1591 = vadd.xlane.f32.xlu0 %v1590_v31  ;;  %v20284_v31 = vld [vmem:[#allocation277_spill] sm:$0xff] }
0x10ae   : >> { %v2516_v3 = vsel %vm281_vm0, %v20284_v31, 0.0  ;;  %v20293_v31 = vld [vmem:[#allocation207_spill] sm:$0xff] }
0x10b1   : >> { %2039 = vadd.xlane.f32.xlu0 %v2038_v23  ;;  %v20285_v23 = vld [vmem:[#allocation246_spill] sm:$0xff] }
0x10b5   : >> { %2045 = vadd.xlane.f32.xlu0 %v2044_v4  ;;  %v1575_v4 = vsel %vm281_vm0, %v20285_v23, 0.0 }
0x10b9   : >> { %2051 = vadd.xlane.f32.xlu0 %v2050_v26  ;;  %v2522_v26 = vsel %vm281_vm0, %v20286_v35, 0.0 }
0x10ba   : >> { %1107 = vadd.xlane.f32.xlu1 %v1106_v40  ;;  %v1581_v40 = vsel %vm281_vm0, %v20287_v47, 0.0  ;;  %v20295_v47 = vld [vmem:[#allocation293_spill] sm:$0xff] }
0x10bd   : >> { %2057 = vadd.xlane.f32.xlu0 %v2056_v8  ;;  %v2970_v8 = vsel %vm281_vm0, %v20288_v30, 0.0 }
0x10be   : >> { %1116 = vadd.xlane.f32.xlu1 %v1115_v22  ;;  %v1587_v22 = vsel %vm281_vm0, %v20289_v37, 0.0 }
0x10c1   : >> { %2505 = vadd.xlane.f32.xlu0 %v2504_v12  ;;  %v20290_v12 = vld [vmem:[#allocation291_spill] sm:$0xff] }
0x10c2   : >> { %1122 = vadd.xlane.f32.xlu1 %v1121_v44  ;;  %v2976_v38 = vsel %vm281_vm0, %v20290_v12, 0.0  ;;  %v20291_v44 = vld [vmem:[#allocation206_spill] sm:$0xff] }
0x10c5   : >> { %2511 = vadd.xlane.f32.xlu0 %v2510_v36 }
0x10c6   : >> { %1570 = vadd.xlane.f32.xlu1 %v1569_v57  ;;  %v2035_v57 = vsel %vm281_vm0, %v20292_v1, 0.0 }
0x10c9   : >> { %2517 = vadd.xlane.f32.xlu0 %v2516_v3 }
0x10ca   : >> { %1576 = vadd.xlane.f32.xlu1 %v1575_v4 }
0x10cd   : >> { %2523 = vadd.xlane.f32.xlu0 %v2522_v26 }
0x10ce   : >> { %1582 = vadd.xlane.f32.xlu1 %v1581_v40  ;;  %v2982_v40 = vsel %vm281_vm0, %v20295_v47, 0.0 }
0x10d1   : >> { %2971 = vadd.xlane.f32.xlu0 %v2970_v8  ;;  %v20296_v8 = vld [vmem:[#allocation259_spill] sm:$0xff] }
0x10d2   : >> { %1588 = vadd.xlane.f32.xlu1 %v1587_v22  ;;  %v2041_v37 = vsel %vm281_vm0, %v20296_v8, 0.0 }
0x10d4   : >> { %v4282_v43 = vpop.xlane.xlu1 %4281 }
0x10d5   : >> { %v16677_v27 = vmax.f32 %v20291_v44, %v4282_v43   ;;  %v4279_v36 = vpop.xlane.xlu0 %4278  ;;  %2977 = vadd.xlane.f32.xlu0 %v2976_v38  ;;  %v20297_v43 = vld [vmem:[#allocation204_spill] sm:$0xff] }
0x10d6   : >> { %v16682_v3 = vmax.f32 %v20293_v31, %v4279_v36   ;;  %2036 = vadd.xlane.f32.xlu1 %v2035_v57  ;;  %v20298_v36 = vld [vmem:[#allocation295_spill] sm:$0xff] }
0x10d7   : >> { %v2988_v1 = vsel %vm281_vm0, %v20298_v36, 0.0  ;;  %v20303_v38 = vld [vmem:[#allocation69_spill] sm:$0xff]  ;;  %v4334_v52 = vsub.f32 %v16572_v20, %v16677_v27  ;;  %v3902_v20 = vsel %vm281_vm0, %v16407_v54, 0.0 }
0x10d8   : >> { %v20294_v23 = vmov %v16682_v3  ;;  %v20299_v3 = vld [vmem:[#allocation260_spill] sm:$0xff]  ;;  %v3436_v36 = vsel %vm281_vm0, %v20303_v38, 0.0 }
0x10d9   : >> { %v4333_v26 = vsub.f32 %v16578_v19, %v20294_v23  ;;  %v4288_v30 = vpop.xlane.xlu0 %4287  ;;  %2983 = vadd.xlane.f32.xlu0 %v2982_v40  ;;  %v2047_v47 = vsel %vm281_vm0, %v20299_v3, 0.0  ;;  %v20300_v40 = vld [vmem:[#allocation205_spill] sm:$0xff]  ;;  %v20304_v3 = vld [vmem:[#allocation262_spill] sm:$0xff] }
0x10da   : >> { %v16695_v12 = vmax.f32 %v20297_v43, %v4288_v30   ;;  %2042 = vadd.xlane.f32.xlu1 %v2041_v37  ;;  %v3442_v37 = vsel %vm281_vm0, %v20307_v24, 0.0 }
0x10db   : >> { %v4341_v22 = vmul.f32 1.442695, %v4333_v26  ;;  %v20302_v26 = vld [vmem:[#allocation203_spill] sm:$0xff] }
0x10dd   : >> { %v4285_v19 = vpop.xlane.xlu0 %4284  ;;  %v4291_v57 = vpop.xlane.xlu1 %4290  ;;  %2989 = vadd.xlane.f32.xlu0 %v2988_v1  ;;  %10449 = vpow2.f32 %v4341_v22  ;;  %v2053_v22 = vsel %vm281_vm0, %v20304_v3, 0.0  ;;  %v2501_v1 = vsel %vm281_vm0, %v20308_v48, 0.0 }
0x10de   : >> { %v16704_v8 = vmax.f32 %v20300_v40, %v4285_v19   ;;  %2048 = vadd.xlane.f32.xlu1 %v2047_v47  ;;  %v16707_v30 = vmax.f32 %v20302_v26, %v4291_v57   ;;  %v20305_v19 = vld [vmem:[#allocation202_spill] sm:$0xff] }
0x10e0   : >> { %v20301_v35 = vmov %v16704_v8 }
0x10e1   : >> { %v4294_v4 = vpop.xlane.xlu0 %4293  ;;  %3437 = vadd.xlane.f32.xlu0 %v3436_v36  ;;  %v10217_v3 = vpop.permute.xlu1 %10216 }
0x10e2   : >> { %v16718_v8 = vmax.f32 %v20305_v19, %v4294_v4   ;;  %2054 = vadd.xlane.f32.xlu1 %v2053_v22  ;;  %v20310_v22 = vld [vmem:[#allocation309_spill] sm:$0xff]  ;;  %v10218_v57 = vunpack.i.l.bf16 %v10217_v3 }
0x10e4   : >> { %v20306_v47 = vmov %v16718_v8  ;;  %v3448_v8 = vsel %vm281_vm0, %v20310_v22, 0.0  ;;  %v3454_v22 = vsel %vm281_vm0, %v20312_v49, 0.0 }
0x10e5   : >> { %3443 = vadd.xlane.f32.xlu0 %v3442_v37  ;;  %v4300_v38 = vpop.xlane.xlu0 %4299  ;;  %v20311_v37 = vld [vmem:[#allocation274_spill] sm:$0xff] }
0x10e6   : >> { %v16727_v36 = vmax.f32 %v20309_v53, %v4300_v38   ;;  %2502 = vadd.xlane.f32.xlu1 %v2501_v1  ;;  %v2507_v48 = vsel %vm281_vm0, %v20311_v37, 0.0  ;;  %v10219_v38 = vunpack.i.h.bf16 %v10217_v3  ;;  %v4343_v37 = vmul.f32 1.442695, %v4334_v52 }
0x10e7   : >> { %v16729_v61 = vpop.eup %10449  ;;  %v4336_v3 = vsub.f32 %v16584_v59, %v16695_v12  ;;  %v3908_v52 = vsel %vm281_vm0, %v16473_v0, 0.0  ;;  %v20315_v59 = vld [vmem:[#allocation92_spill] sm:$0xff] }
0x10e8   : >> { %6831 = vmatprep.mubr.msk.f32.mxu1 %vm281_vm0, %v16729_v61  ;;  %v7215_v50 = vpack.c.bf16 %v10219_v38, %v10218_v57  ;;  %10451 = vpow2.f32 %v4343_v37  ;;  %v2967_v57 = vsel %vm281_vm0, %v20315_v59, 0.0  ;;  %v20316_v38 = vld [vmem:[#allocation290_spill] sm:$0xff]  ;;  %20535 = vst [vmem:[#allocation39_spill] sm:$0xff] %v16727_v36 }
0x10e9   : >> { %3449 = vadd.xlane.f32.xlu0 %v3448_v8  ;;  %v10212_v24 = vpop.permute.xlu0 %10211  ;;  %v2513_v8 = vsel %vm281_vm0, %v20313_v46, 0.0  ;;  %v4338_v46 = vsub.f32 %v16602_v56, %v20306_v47  ;;  %v3920_v56 = vsel %vm281_vm0, %v16487_v2, 0.0  ;;  %v20318_v37 = vld [vmem:[#allocation294_spill] sm:$0xff] }
0x10ea   : >> { %v10214_v1 = vunpack.i.h.bf16 %v10212_v24  ;;  %v10213_v18 = vunpack.i.l.bf16 %v10212_v24  ;;  %2508 = vadd.xlane.f32.xlu1 %v2507_v48  ;;  %v4347_v24 = vmul.f32 1.442695, %v4336_v3  ;;  %v3914_v48 = vsel %vm281_vm0, %v16479_v63, 0.0  ;;  %v20319_v2 = vld [vmem:[#allocation68_spill] sm:$0xff] }
0x10eb   : >> { %v4351_v54 = vmul.f32 1.442695, %v4338_v46  ;;  %v2985_v3 = vsel %vm281_vm0, %v20318_v37, 0.0 }
0x10ec   : >> { %v7211_v4 = vpack.c.bf16 %v10214_v1, %v10213_v18  ;;  %v20314_v18 = vld [vmem:[#allocation278_spill] sm:$0xff]  ;;  %10453 = vpow2.f32 %v4347_v24 }
0x10ed   : >> { %3455 = vadd.xlane.f32.xlu0 %v3454_v22  ;;  %v2519_v49 = vsel %vm281_vm0, %v20314_v18, 0.0  ;;  %10455 = vpow2.f32 %v4351_v54  ;;  %v20317_v22 = vld [vmem:[#allocation292_spill] sm:$0xff]  ;;  %v4335_v54 = vsub.f32 %v16590_v14, %v20301_v35  ;;  %v3899_v14 = vsel %vm281_vm0, %v16405_v25, 0.0 }
0x10ee   : >> { %7212 = vmatprep.subr.bf16.mxu1 %v7211_v4  ;;  %2514 = vadd.xlane.f32.xlu1 %v2513_v8  ;;  %v2979_v8 = vsel %vm281_vm0, %v20317_v22, 0.0  ;;  %v20322_v22 = vld [vmem:[#allocation40_spill] sm:$0xff]  ;;  %v3905_v25 = vsel %vm281_vm0, %v16463_v15, 0.0  ;;  %v20329_v15 = vld [vmem:[#allocation177_spill] sm:$0xff] }
0x10ef   : >> { %7214 = vmatpush3.bf16.msra.mxu1 %v7211_v4  ;;  %v4340_v4 = vsub.f32 %v16606_v39, %v16727_v36 }
0x10f0   : >> { %7216 = vmatprep.subr.bf16.mxu1 %v7215_v50 }
0x10f1   : >> { %3903 = vadd.xlane.f32.xlu0 %v3902_v20  ;;  %v4355_v0 = vmul.f32 1.442695, %v4340_v4  ;;  %v20321_v4 = vld [vmem:[#allocation308_spill] sm:$0xff] }
0x10f2   : >> { %2520 = vadd.xlane.f32.xlu1 %v2519_v49  ;;  %v10452_v1 = vpop.eup %10451  ;;  %v3433_v49 = vsel %vm281_vm0, %v20319_v2, 0.0  ;;  %v20323_v2 = vld [vmem:[#allocation176_spill] sm:$0xff] }
0x10f3   : >> { %7218 = vmatpush3.bf16.msra.mxu1 %v7215_v50  ;;  %v2973_v50 = vsel %vm281_vm0, %v20316_v38, 0.0  ;;  %10457 = vpow2.f32 %v4355_v0  ;;  %v4368_v39 = vsel %vm281_vm0, %v10452_v1, 0.0  ;;  %v4345_v38 = vmul.f32 1.442695, %v4335_v54 }
0x10f4   : >> { %v3451_v0 = vsel %vm281_vm0, %v16247_v28, 0.0 }
0x10f5   : >> { %3909 = vadd.xlane.f32.xlu0 %v3908_v52  ;;  %v20320_v52 = vld [vmem:[#allocation306_spill] sm:$0xff]  ;;  %10459 = vpow2.f32 %v4345_v38  ;;  %v3911_v38 = vsel %vm281_vm0, %v16477_v17, 0.0 }
0x10f6   : >> { %2968 = vadd.xlane.f32.xlu1 %v2967_v57  ;;  %v10454_v63 = vpop.eup %10453  ;;  %v3439_v59 = vsel %vm281_vm0, %v20320_v52, 0.0  ;;  %v20332_v17 = vld [vmem:[#allocation168_spill] sm:$0xff] }
0x10f7   : >> { %v4374_v20 = vsel %vm281_vm0, %v10454_v63, 0.0  ;;  %v10456_v18 = vpop.eup %10455 }
0x10f8   : >> { %v4380_v24 = vsel %vm281_vm0, %v10456_v18, 0.0 }
0x10f9   : >> { %3915 = vadd.xlane.f32.xlu0 %v3914_v48  ;;  %v3445_v48 = vsel %vm281_vm0, %v20321_v4, 0.0  ;;  %v20327_v4 = vld [vmem:[#allocation165_spill] sm:$0xff] }
0x10fa   : >> { %2974 = vadd.xlane.f32.xlu1 %v2973_v50  ;;  %v4337_v50 = vsub.f32 %v16594_v60, %v16707_v30 }
0x10fd   : >> { %3921 = vadd.xlane.f32.xlu0 %v3920_v56  ;;  %v16774_v46 = vpop.eup %10457 }
0x10fe   : >> { %2980 = vadd.xlane.f32.xlu1 %v2979_v8  ;;  %v4386_v57 = vsel %vm281_vm0, %v16774_v46, 0.0  ;;  %v4349_v8 = vmul.f32 1.442695, %v4337_v50 }
0x1100   : >> { %10461 = vpow2.f32 %v4349_v8 }
0x1101   : >> { %4369 = vadd.xlane.f32.xlu0 %v4368_v39 }
0x1102   : >> { %2986 = vadd.xlane.f32.xlu1 %v2985_v3 }
0x1105   : >> { %4375 = vadd.xlane.f32.xlu0 %v4374_v20 }
0x1106   : >> { %3434 = vadd.xlane.f32.xlu1 %v3433_v49  ;;  %v20324_v49 = vld [vmem:[#allocation167_spill] sm:$0xff] }
0x1109   : >> { %4381 = vadd.xlane.f32.xlu0 %v4380_v24  ;;  %v1095_v24 = vmul.f32 %v20324_v49, %v20323_v2  ;;  %v4365_v2 = vsel %vm281_vm0, %v16729_v61, 0.0  ;;  %v20338_v61 = vld [vmem:[#allocation249_spill] sm:$0xff] }
0x110a   : >> { %3440 = vadd.xlane.f32.xlu1 %v3439_v59 }
0x110d   : >> { %4387 = vadd.xlane.f32.xlu0 %v4386_v57 }
0x110e   : >> { %3446 = vadd.xlane.f32.xlu1 %v3445_v48 }
0x1112   : >> { %3452 = vadd.xlane.f32.xlu1 %v3451_v0  ;;  %v4297_v56 = vpop.xlane.xlu1 %4296  ;;  %v10460_v0 = vpop.eup %10459 }
0x1113   : >> { %v16789_v20 = vmax.f32 %v20322_v22, %v4297_v56  }
0x1115   : >> { %v4339_v37 = vsub.f32 %v16618_v42, %v16789_v20  ;;  %v20326_v42 = vld [vmem:[#allocation178_spill] sm:$0xff]  ;;  %20536 = vst [vmem:[#allocation40_spill] sm:$0xff] %v16789_v20 }
0x1116   : >> { %3900 = vadd.xlane.f32.xlu1 %v3899_v14  ;;  %v10222_v60 = vpop.permute.xlu1 %10221  ;;  %v1097_v48 = vmul.f32 %v20327_v4, %v20326_v42  ;;  %v20330_v14 = vld [vmem:[#allocation164_spill] sm:$0xff] }
0x1117   : >> { %v10224_v3 = vunpack.i.h.bf16 %v10222_v60  ;;  %v10223_v28 = vunpack.i.l.bf16 %v10222_v60  ;;  %v4353_v52 = vmul.f32 1.442695, %v4339_v37  ;;  %v1098_v8 = vmul.f32 %v20330_v14, %v20329_v15 }
0x1118   : >> { %v3917_v37 = vsel %vm281_vm0, %v16485_v41, 0.0  ;;  %v20335_v41 = vld [vmem:[#allocation180_spill] sm:$0xff] }
0x1119   : >> { %v7219_v59 = vpack.c.bf16 %v10224_v3, %v10223_v28  ;;  %10463 = vpow2.f32 %v4353_v52  ;;  %v10462_v3 = vpop.eup %10461  ;;  %v20333_v28 = vld [vmem:[#allocation162_spill] sm:$0xff]  ;;  %v20336_v52 = vld [vmem:[#allocation160_spill] sm:$0xff] }
0x111a   : >> { %v1105_v57 = vpop.xlane.xlu0 %1104  ;;  %3906 = vadd.xlane.f32.xlu1 %v3905_v25  ;;  %v4377_v4 = vsel %vm281_vm0, %v10462_v3, 0.0 }
0x111b   : >> { %v16801_v54 = vadd.f32 %v1105_v57, %v1095_v24   ;;  %7220 = vmatprep.subr.bf16.mxu1 %v7219_v59 }
0x111c   : >> { %7222 = vmatpush3.bf16.msra.mxu1 %v7219_v59  ;;  %v4371_v59 = vsel %vm281_vm0, %v10460_v0, 0.0 }
0x111d   : >> { %20325 = vst [vmem:[#allocation328_spill] sm:$0xff] %v16801_v54  ;;  %v20339_v54 = vld [vmem:[#allocation154_spill] sm:$0xff] }
0x111e   : >> { %v1111_v50 = vpop.xlane.xlu0 %1110  ;;  %3912 = vadd.xlane.f32.xlu1 %v3911_v38  ;;  %v1562_v42 = vmul.f32 %v20339_v54, %v20338_v61  ;;  %v20356_v54 = vld [vmem:[#allocation120_spill] sm:$0xff] }
0x111f   : >> { %v16807_v56 = vadd.f32 %v1111_v50, %v1097_v48   ;;  %6832 = vmatmul.mubr.msk.f32.vlgmr.msra.gmra.mrb[56].mxu1 %vm281_vm0, %v10452_v1  ;;  %v1100_v1 = vmul.f32 %v20333_v28, %v20332_v17  ;;  %v20341_v50 = vld [vmem:[#allocation146_spill] sm:$0xff]  ;;  %v20348_v28 = vld [vmem:[#allocation148_spill] sm:$0xff] }
0x1120   : >> { %6834 = vmatprep.mubr.msk.f32.mxu1 %vm281_vm0, %v10460_v0 }
0x1121   : >> { %20328 = vst [vmem:[#allocation329_spill] sm:$0xff] %v16807_v56  ;;  %v20342_v56 = vld [vmem:[#allocation152_spill] sm:$0xff] }
0x1122   : >> { %v1114_v60 = vpop.xlane.xlu0 %1113  ;;  %3918 = vadd.xlane.f32.xlu1 %v3917_v37 }
0x1123   : >> { %v16815_v15 = vadd.f32 %v1114_v60, %v1098_v8   ;;  %6835 = vmatmul.mubr.msk.f32.gmra.mrb[58].mxu1 %vm281_vm0, %v10454_v63  ;;  %v10464_v24 = vpop.eup %10463  ;;  %v1102_v63 = vmul.f32 %v20336_v52, %v20335_v41  ;;  %v20344_v8 = vld [vmem:[#allocation144_spill] sm:$0xff]  ;;  %v20351_v41 = vld [vmem:[#allocation130_spill] sm:$0xff] }
0x1124   : >> { %6837 = vmatprep.mubr.msk.f32.mxu1 %vm281_vm0, %v10462_v3  ;;  %v4383_v0 = vsel %vm281_vm0, %v10464_v24, 0.0  ;;  %v20347_v3 = vld [vmem:[#allocation142_spill] sm:$0xff] }
0x1125   : >> { %20331 = vst [vmem:[#allocation330_spill] sm:$0xff] %v16815_v15  ;;  %v1564_v15 = vmul.f32 %v20342_v56, %v20341_v50  ;;  %v20359_v50 = vld [vmem:[#allocation166_spill] sm:$0xff] }
0x1126   : >> { %v1120_v49 = vpop.xlane.xlu0 %1119  ;;  %4366 = vadd.xlane.f32.xlu1 %v4365_v2 }
0x1127   : >> { %v16823_v2 = vadd.f32 %v1120_v49, %v1100_v1   ;;  %6838 = vmatmul.mubr.msk.f32.gmra.mrb[60].mxu1 %vm281_vm0, %v10456_v18  ;;  %v1568_v1 = vmul.f32 %v20348_v28, %v20347_v3  ;;  %v20350_v49 = vld [vmem:[#allocation264_spill] sm:$0xff]  ;;  %v20364_v3 = vld [vmem:[#allocation179_spill] sm:$0xff] }
0x1128   : >> { %6840 = vmatprep.mubr.msk.f32.mxu1 %vm281_vm0, %v10464_v24  ;;  %v2028_v52 = vmul.f32 %v20351_v41, %v20350_v49  ;;  %v20365_v28 = vld [vmem:[#allocation163_spill] sm:$0xff] }
0x1129   : >> { %20334 = vst [vmem:[#allocation331_spill] sm:$0xff] %v16823_v2 }
0x112a   : >> { %v1126_v25 = vpop.xlane.xlu0 %1125  ;;  %4372 = vadd.xlane.f32.xlu1 %v4371_v59 }
0x112b   : >> { %v16830_v18 = vadd.f32 %v1126_v25, %v1102_v63   ;;  %6841 = vmatmul.mubr.msk.f32.gmra.mrb[62].mxu1 %vm281_vm0, %v16774_v46  ;;  %v20345_v46 = vld [vmem:[#allocation150_spill] sm:$0xff] }
0x112c   : >> { %v1566_v37 = vmul.f32 %v20345_v46, %v20344_v8  ;;  %v20353_v63 = vld [vmem:[#allocation122_spill] sm:$0xff]  ;;  %v20363_v46 = vld [vmem:[#allocation124_spill] sm:$0xff] }
0x112d   : >> { %20337 = vst [vmem:[#allocation332_spill] sm:$0xff] %v16830_v18  ;;  %v20362_v8 = vld [vmem:[#allocation118_spill] sm:$0xff] }
0x112e   : >> { %v1574_v48 = vpop.xlane.xlu0 %1573  ;;  %4378 = vadd.xlane.f32.xlu1 %v4377_v4 }
0x112f   : >> { %v16837_v38 = vadd.f32 %v1574_v48, %v1562_v42   ;;  %v20357_v42 = vld [vmem:[#allocation126_spill] sm:$0xff] }
0x1130   : >> { %v2032_v4 = vmul.f32 %v20357_v42, %v20356_v54 }
0x1131   : >> { %20340 = vst [vmem:[#allocation333_spill] sm:$0xff] %v16837_v38  ;;  %v20358_v38 = vld [vmem:[#allocation175_spill] sm:$0xff] }
0x1132   : >> { %v1580_v14 = vpop.xlane.xlu0 %1579  ;;  %4384 = vadd.xlane.f32.xlu1 %v4383_v0  ;;  %v1096_v56 = vmul.f32 %v20359_v50, %v20358_v38  ;;  %v20375_v38 = vld [vmem:[#allocation104_spill] sm:$0xff] }
0x1133   : >> { %v16842_v60 = vadd.f32 %v1580_v14, %v1564_v15  }
0x1135   : >> { %20343 = vst [vmem:[#allocation334_spill] sm:$0xff] %v16842_v60  ;;  %v20354_v60 = vld [vmem:[#allocation128_spill] sm:$0xff] }
0x1136   : >> { %v1586_v17 = vpop.xlane.xlu0 %1585  ;;  %v2030_v59 = vmul.f32 %v20354_v60, %v20353_v63 }
0x1137   : >> { %v16846_v15 = vadd.f32 %v1586_v17, %v1566_v37   ;;  %v2034_v37 = vmul.f32 %v20363_v46, %v20362_v8 }
0x1139   : >> { %20346 = vst [vmem:[#allocation335_spill] sm:$0xff] %v16846_v15 }
0x113a   : >> { %v1592_v2 = vpop.xlane.xlu0 %1591 }
0x113b   : >> { %v16850_v14 = vadd.f32 %v1592_v2, %v1568_v1   ;;  %v1099_v1 = vmul.f32 %v20365_v28, %v20364_v3 }
0x113d   : >> { %20349 = vst [vmem:[#allocation336_spill] sm:$0xff] %v16850_v14 }
0x113e   : >> { %v2040_v24 = vpop.xlane.xlu0 %2039 }
0x113f   : >> { %v16854_v17 = vadd.f32 %v2040_v24, %v2028_v52   ;;  %v20368_v52 = vld [vmem:[#allocation280_spill] sm:$0xff] }
0x1140   : >> { %v20369_v24 = vld [vmem:[#allocation106_spill] sm:$0xff] }
0x1141   : >> { %20352 = vst [vmem:[#allocation337_spill] sm:$0xff] %v16854_v17  ;;  %v2494_v63 = vmul.f32 %v20369_v24, %v20368_v52  ;;  %v20386_v24 = vld [vmem:[#allocation94_spill] sm:$0xff] }
0x1142   : >> { %v2046_v25 = vpop.xlane.xlu0 %2045 }
0x1143   : >> { %v16858_v0 = vadd.f32 %v2046_v25, %v2030_v59   ;;  %v20370_v59 = vld [vmem:[#allocation238_spill] sm:$0xff]  ;;  %v20371_v25 = vld [vmem:[#allocation161_spill] sm:$0xff] }
0x1144   : >> { %v1101_v54 = vmul.f32 %v20371_v25, %v20370_v59  ;;  %v20389_v25 = vld [vmem:[#allocation151_spill] sm:$0xff] }
0x1145   : >> { %20355 = vst [vmem:[#allocation338_spill] sm:$0xff] %v16858_v0 }
0x1146   : >> { %v2052_v48 = vpop.xlane.xlu0 %2051 }
0x1147   : >> { %v16864_v15 = vadd.f32 %v2052_v48, %v2032_v4   ;;  %v1108_v14 = vpop.xlane.xlu1 %1107  ;;  %v20374_v48 = vld [vmem:[#allocation98_spill] sm:$0xff] }
0x1148   : >> { %v16866_v0 = vadd.f32 %v1108_v14, %v1096_v56   ;;  %v2496_v50 = vmul.f32 %v20375_v38, %v20374_v48 }
0x1149   : >> { %20360 = vst [vmem:[#allocation339_spill] sm:$0xff] %v16864_v15  ;;  %v20377_v15 = vld [vmem:[#allocation155_spill] sm:$0xff] }
0x114a   : >> { %20361 = vst [vmem:[#allocation340_spill] sm:$0xff] %v16866_v0  ;;  %v2058_v17 = vpop.xlane.xlu0 %2057 }
0x114b   : >> { %v16872_v41 = vadd.f32 %v2058_v17, %v2034_v37   ;;  %v1117_v2 = vpop.xlane.xlu1 %1116  ;;  %v20380_v37 = vld [vmem:[#allocation96_spill] sm:$0xff]  ;;  %v20381_v17 = vld [vmem:[#allocation102_spill] sm:$0xff] }
0x114c   : >> { %v16874_v49 = vadd.f32 %v1117_v2, %v1099_v1   ;;  %v2498_v3 = vmul.f32 %v20381_v17, %v20380_v37  ;;  %v20382_v1 = vld [vmem:[#allocation147_spill] sm:$0xff]  ;;  %v20383_v2 = vld [vmem:[#allocation153_spill] sm:$0xff]  ;;  %v20398_v17 = vld [vmem:[#allocation74_spill] sm:$0xff] }
0x114d   : >> { %20366 = vst [vmem:[#allocation341_spill] sm:$0xff] %v16872_v41  ;;  %v20376_v41 = vld [vmem:[#allocation250_spill] sm:$0xff] }
0x114e   : >> { %20367 = vst [vmem:[#allocation342_spill] sm:$0xff] %v16874_v49  ;;  %v2506_v60 = vpop.xlane.xlu0 %2505  ;;  %v1561_v14 = vmul.f32 %v20377_v15, %v20376_v41  ;;  %v1563_v49 = vmul.f32 %v20383_v2, %v20382_v1 }
0x114f   : >> { %v16880_v0 = vadd.f32 %v2506_v60, %v2494_v63   ;;  %v1123_v42 = vpop.xlane.xlu1 %1122  ;;  %v20387_v63 = vld [vmem:[#allocation100_spill] sm:$0xff] }
0x1150   : >> { %v16882_v4 = vadd.f32 %v1123_v42, %v1101_v54   ;;  %v2500_v60 = vmul.f32 %v20387_v63, %v20386_v24 }
0x1151   : >> { %20372 = vst [vmem:[#allocation343_spill] sm:$0xff] %v16880_v0 }
0x1152   : >> { %20373 = vst [vmem:[#allocation344_spill] sm:$0xff] %v16882_v4  ;;  %v2512_v56 = vpop.xlane.xlu0 %2511 }
0x1153   : >> { %v16888_v52 = vadd.f32 %v2512_v56, %v2496_v50   ;;  %v1571_v8 = vpop.xlane.xlu1 %1570  ;;  %v20392_v50 = vld [vmem:[#allocation296_spill] sm:$0xff] }
0x1154   : >> { %v16890_v46 = vadd.f32 %v1571_v8, %v1561_v14   ;;  %v20393_v56 = vld [vmem:[#allocation82_spill] sm:$0xff]  ;;  %v20395_v14 = vld [vmem:[#allocation149_spill] sm:$0xff] }
0x1155   : >> { %20378 = vst [vmem:[#allocation345_spill] sm:$0xff] %v16888_v52  ;;  %v20388_v52 = vld [vmem:[#allocation145_spill] sm:$0xff]  ;;  %v2960_v41 = vmul.f32 %v20393_v56, %v20392_v50 }
0x1156   : >> { %20379 = vst [vmem:[#allocation346_spill] sm:$0xff] %v16890_v46  ;;  %v2518_v28 = vpop.xlane.xlu0 %2517  ;;  %v1565_v54 = vmul.f32 %v20389_v25, %v20388_v52 }
0x1157   : >> { %v16896_v48 = vadd.f32 %v2518_v28, %v2498_v3   ;;  %v1577_v4 = vpop.xlane.xlu1 %1576  ;;  %v20399_v3 = vld [vmem:[#allocation80_spill] sm:$0xff] }
0x1158   : >> { %v16898_v2 = vadd.f32 %v1577_v4, %v1563_v49   ;;  %v2962_v28 = vmul.f32 %v20399_v3, %v20398_v17 }
0x1159   : >> { %20384 = vst [vmem:[#allocation347_spill] sm:$0xff] %v16896_v48  ;;  %v20394_v48 = vld [vmem:[#allocation143_spill] sm:$0xff] }
0x115a   : >> { %20385 = vst [vmem:[#allocation348_spill] sm:$0xff] %v16898_v2  ;;  %v2524_v59 = vpop.xlane.xlu0 %2523  ;;  %v1567_v8 = vmul.f32 %v20395_v14, %v20394_v48  ;;  %v20401_v2 = vld [vmem:[#allocation131_spill] sm:$0xff]  ;;  %v20412_v14 = vld [vmem:[#allocation121_spill] sm:$0xff] }
0x115b   : >> { %v16904_v38 = vadd.f32 %v2524_v59, %v2500_v60   ;;  %v1583_v0 = vpop.xlane.xlu1 %1582  ;;  %v20404_v60 = vld [vmem:[#allocation72_spill] sm:$0xff]  ;;  %v20405_v59 = vld [vmem:[#allocation78_spill] sm:$0xff] }
0x115c   : >> { %v16906_v42 = vadd.f32 %v1583_v0, %v1565_v54   ;;  %v2964_v52 = vmul.f32 %v20405_v59, %v20404_v60  ;;  %v20406_v54 = vld [vmem:[#allocation123_spill] sm:$0xff]  ;;  %v20407_v0 = vld [vmem:[#allocation129_spill] sm:$0xff]  ;;  %v20421_v60 = vld [vmem:[#allocation56_spill] sm:$0xff] }
0x115d   : >> { %20390 = vst [vmem:[#allocation349_spill] sm:$0xff] %v16904_v38  ;;  %v20400_v38 = vld [vmem:[#allocation265_spill] sm:$0xff] }
0x115e   : >> { %20391 = vst [vmem:[#allocation350_spill] sm:$0xff] %v16906_v42  ;;  %v2972_v15 = vpop.xlane.xlu0 %2971  ;;  %v2027_v49 = vmul.f32 %v20401_v2, %v20400_v38  ;;  %v2029_v42 = vmul.f32 %v20407_v0, %v20406_v54  ;;  %v20417_v2 = vld [vmem:[#allocation119_spill] sm:$0xff] }
0x115f   : >> { %v16912_v46 = vadd.f32 %v2972_v15, %v2960_v41   ;;  %v1589_v37 = vpop.xlane.xlu1 %1588  ;;  %v20411_v41 = vld [vmem:[#allocation76_spill] sm:$0xff]  ;;  %v20423_v54 = vld [vmem:[#allocation107_spill] sm:$0xff] }
0x1160   : >> { %v16914_v56 = vadd.f32 %v1589_v37, %v1567_v8   ;;  %v20413_v8 = vld [vmem:[#allocation127_spill] sm:$0xff] }
0x1161   : >> { %20396 = vst [vmem:[#allocation351_spill] sm:$0xff] %v16912_v46  ;;  %v2031_v46 = vmul.f32 %v20413_v8, %v20412_v14  ;;  %v20428_v14 = vld [vmem:[#allocation105_spill] sm:$0xff] }
0x1162   : >> { %20397 = vst [vmem:[#allocation352_spill] sm:$0xff] %v16914_v56  ;;  %v2978_v1 = vpop.xlane.xlu0 %2977  ;;  %v20410_v56 = vld [vmem:[#allocation70_spill] sm:$0xff] }
0x1163   : >> { %v16920_v4 = vadd.f32 %v2978_v1, %v2962_v28   ;;  %v2037_v24 = vpop.xlane.xlu1 %2036  ;;  %v2966_v15 = vmul.f32 %v20411_v41, %v20410_v56  ;;  %v20416_v28 = vld [vmem:[#allocation58_spill] sm:$0xff] }
0x1164   : >> { %v16922_v63 = vadd.f32 %v2037_v24, %v2027_v49   ;;  %v3426_v1 = vmul.f32 %v20416_v28, %v16269_v58  ;;  %v20418_v49 = vld [vmem:[#allocation125_spill] sm:$0xff] }
0x1165   : >> { %20402 = vst [vmem:[#allocation353_spill] sm:$0xff] %v16920_v4 }
0x1166   : >> { %20403 = vst [vmem:[#allocation354_spill] sm:$0xff] %v16922_v63  ;;  %v2984_v25 = vpop.xlane.xlu0 %2983 }
0x1167   : >> { %v16928_v4 = vadd.f32 %v2984_v25, %v2964_v52   ;;  %v2043_v50 = vpop.xlane.xlu1 %2042  ;;  %v20422_v25 = vld [vmem:[#allocation281_spill] sm:$0xff] }
0x1168   : >> { %v16930_v59 = vadd.f32 %v2043_v50, %v2029_v42   ;;  %v2493_v0 = vmul.f32 %v20423_v54, %v20422_v25  ;;  %v20426_v50 = vld [vmem:[#allocation54_spill] sm:$0xff]  ;;  %v20438_v25 = vld [vmem:[#allocation95_spill] sm:$0xff]  ;;  %v20439_v54 = vld [vmem:[#allocation101_spill] sm:$0xff] }
0x1169   : >> { %20408 = vst [vmem:[#allocation355_spill] sm:$0xff] %v16928_v4  ;;  %v2033_v4 = vmul.f32 %v20418_v49, %v20417_v2  ;;  %v3430_v56 = vmul.f32 %v20426_v50, %v16311_v6  ;;  %v20435_v6 = vsub.f32 %v20291_v44, %v16677_v27  ;;  %v20443_v44 = vld [vmem:[#allocation216_spill] sm:$0xff] }
0x116a   : >> { %20409 = vst [vmem:[#allocation356_spill] sm:$0xff] %v16930_v59  ;;  %v2990_v48 = vpop.xlane.xlu0 %2989  ;;  %v3428_v59 = vmul.f32 %v20421_v60, %v16293_v13 }
0x116b   : >> { %v16936_v37 = vadd.f32 %v2990_v48, %v2966_v15   ;;  %v2049_v17 = vpop.xlane.xlu1 %2048  ;;  %v20427_v15 = vld [vmem:[#allocation99_spill] sm:$0xff] }
0x116c   : >> { %v16938_v3 = vadd.f32 %v2049_v17, %v2031_v46   ;;  %v2495_v8 = vmul.f32 %v20428_v14, %v20427_v15  ;;  %v20444_v15 = vld [vmem:[#allocation297_spill] sm:$0xff] }
0x116d   : >> { %20414 = vst [vmem:[#allocation357_spill] sm:$0xff] %v16936_v37  ;;  %v20431_v37 = vld [vmem:[#allocation52_spill] sm:$0xff] }
0x116e   : >> { %20415 = vst [vmem:[#allocation358_spill] sm:$0xff] %v16938_v3  ;;  %v3438_v38 = vpop.xlane.xlu0 %3437  ;;  %v3432_v17 = vmul.f32 %v20431_v37, %v16323_v51  ;;  %v2499_v51 = vmul.f32 %v20439_v54, %v20438_v25  ;;  %v20457_v54 = vld [vmem:[#allocation79_spill] sm:$0xff] }
0x116f   : >> { %v16944_v24 = vadd.f32 %v3438_v38, %v3426_v1   ;;  %v2055_v63 = vpop.xlane.xlu1 %2054  ;;  %v20433_v38 = vld [vmem:[#allocation103_spill] sm:$0xff] }
0x1170   : >> { %v16946_v1 = vadd.f32 %v2055_v63, %v2033_v4   ;;  %v4319_v4 = vmul.f32 1.442695, %v20435_v6 }
0x1171   : >> { %20419 = vst [vmem:[#allocation359_spill] sm:$0xff] %v16944_v24 }
0x1172   : >> { %20420 = vst [vmem:[#allocation360_spill] sm:$0xff] %v16946_v1  ;;  %v3444_v52 = vpop.xlane.xlu0 %3443  ;;  %v20432_v1 = vld [vmem:[#allocation97_spill] sm:$0xff]  ;;  %10465 = vpow2.f32 %v4319_v4 }
0x1173   : >> { %v16952_v3 = vadd.f32 %v3444_v52, %v3428_v59   ;;  %v2503_v42 = vpop.xlane.xlu1 %2502  ;;  %v2497_v2 = vmul.f32 %v20433_v38, %v20432_v1  ;;  %v20450_v1 = vld [vmem:[#allocation75_spill] sm:$0xff] }
0x1174   : >> { %v16954_v58 = vadd.f32 %v2503_v42, %v2493_v0   ;;  %v20441_v42 = vsub.f32 %v20297_v43, %v16695_v12  ;;  %v20449_v43 = vld [vmem:[#allocation214_spill] sm:$0xff] }
0x1175   : >> { %20424 = vst [vmem:[#allocation361_spill] sm:$0xff] %v16952_v3 }
0x1176   : >> { %20425 = vst [vmem:[#allocation362_spill] sm:$0xff] %v16954_v58  ;;  %v3450_v41 = vpop.xlane.xlu0 %3449  ;;  %v4323_v50 = vmul.f32 1.442695, %v20441_v42 }
0x1177   : >> { %v16960_v63 = vadd.f32 %v3450_v41, %v3430_v56   ;;  %v2509_v46 = vpop.xlane.xlu1 %2508 }
0x1178   : >> { %v16962_v13 = vadd.f32 %v2509_v46, %v2495_v8   ;;  %10467 = vpow2.f32 %v4323_v50  ;;  %v20462_v50 = vld [vmem:[#allocation71_spill] sm:$0xff] }
0x1179   : >> { %20429 = vst [vmem:[#allocation363_spill] sm:$0xff] %v16960_v63  ;;  %v20437_v63 = vld [vmem:[#allocation218_spill] sm:$0xff] }
0x117a   : >> { %20430 = vst [vmem:[#allocation364_spill] sm:$0xff] %v16962_v13  ;;  %v3456_v28 = vpop.xlane.xlu0 %3455  ;;  %v3892_v60 = vmul.f32 %v20437_v63, %v16507_v16  ;;  %v20445_v16 = vld [vmem:[#allocation83_spill] sm:$0xff]  ;;  %v20447_v13 = vsub.f32 %v20305_v19, %v20306_v47  ;;  %v20455_v19 = vld [vmem:[#allocation213_spill] sm:$0xff] }
0x117b   : >> { %v16968_v56 = vadd.f32 %v3456_v28, %v3432_v17   ;;  %v2515_v49 = vpop.xlane.xlu1 %2514  ;;  %v2959_v14 = vmul.f32 %v20445_v16, %v20444_v15  ;;  %v3896_v17 = vmul.f32 %v20449_v43, %v16546_v33 }
0x117c   : >> { %v16973_v24 = vadd.f32 %v2515_v49, %v2497_v2   ;;  %v4327_v37 = vmul.f32 1.442695, %v20447_v13  ;;  %v20453_v49 = vsub.f32 %v20309_v53, %v16727_v36  ;;  %v17010_v63 = vpop.eup %10465  ;;  %v20461_v53 = vld [vmem:[#allocation200_spill] sm:$0xff]  ;;  %v20467_v13 = vld [vmem:[#allocation59_spill] sm:$0xff] }
0x117d   : >> { %20434 = vst [vmem:[#allocation365_spill] sm:$0xff] %v16968_v56  ;;  %v3894_v56 = vmul.f32 %v20443_v44, %v16531_v55  ;;  %v20451_v55 = vld [vmem:[#allocation81_spill] sm:$0xff] }
0x117e   : >> { %20436 = vst [vmem:[#allocation366_spill] sm:$0xff] %v16973_v24  ;;  %v3904_v52 = vpop.xlane.xlu0 %3903  ;;  %v2961_v38 = vmul.f32 %v20451_v55, %v20450_v1  ;;  %10469 = vpow2.f32 %v4327_v37  ;;  %v4331_v6 = vmul.f32 1.442695, %v20453_v49  ;;  %v3898_v24 = vmul.f32 %v20455_v19, %v16558_v11  ;;  %v20463_v11 = vld [vmem:[#allocation77_spill] sm:$0xff] }
0x117f   : >> { %v16979_v0 = vadd.f32 %v3904_v52, %v3892_v60   ;;  %v2521_v3 = vpop.xlane.xlu1 %2520  ;;  %v2965_v44 = vmul.f32 %v20463_v11, %v20462_v50  ;;  %v3425_v37 = vmul.f32 %v20467_v13, %v16271_v32  ;;  %v20474_v32 = vld [vmem:[#allocation195_spill] sm:$0xff]  ;;  %v20571_v36 = vld [vmem:[#allocation317_spill] sm:$0xff] }
0x1180   : >> { %v16984_v51 = vadd.f32 %v2521_v3, %v2499_v51   ;;  %10471 = vpow2.f32 %v4331_v6 }
0x1181   : >> { %20440 = vst [vmem:[#allocation367_spill] sm:$0xff] %v16979_v0  ;;  %v4358_v0 = vmul.f32 %v20461_v53, %v17010_v63 }
0x1182   : >> { %20442 = vst [vmem:[#allocation368_spill] sm:$0xff] %v16984_v51  ;;  %v3910_v41 = vpop.xlane.xlu0 %3909  ;;  %v17020_v3 = vpop.eup %10467 }
0x1183   : >> { %v16990_v8 = vadd.f32 %v3910_v41, %v3894_v56   ;;  %v2969_v46 = vpop.xlane.xlu1 %2968 }
0x1184   : >> { %v16995_v25 = vadd.f32 %v2969_v46, %v2959_v14  }
0x1185   : >> { %20446 = vst [vmem:[#allocation369_spill] sm:$0xff] %v16990_v8 }
0x1186   : >> { %20448 = vst [vmem:[#allocation370_spill] sm:$0xff] %v16995_v25  ;;  %v3916_v28 = vpop.xlane.xlu0 %3915  ;;  %v20456_v25 = vld [vmem:[#allocation73_spill] sm:$0xff] }
0x1187   : >> { %v17001_v60 = vadd.f32 %v3916_v28, %v3896_v17   ;;  %v2975_v2 = vpop.xlane.xlu1 %2974  ;;  %v2963_v51 = vmul.f32 %v20457_v54, %v20456_v25  ;;  %v20470_v28 = vld [vmem:[#allocation196_spill] sm:$0xff]  ;;  %v20475_v25 = vld [vmem:[#allocation55_spill] sm:$0xff] }
0x1188   : >> { %v17006_v4 = vadd.f32 %v2975_v2, %v2961_v38   ;;  %v17030_v8 = vpop.eup %10469  ;;  %v20471_v38 = vld [vmem:[#allocation57_spill] sm:$0xff] }
0x1189   : >> { %20452 = vst [vmem:[#allocation371_spill] sm:$0xff] %v17001_v60 }
0x118a   : >> { %20454 = vst [vmem:[#allocation372_spill] sm:$0xff] %v17006_v4  ;;  %v3922_v33 = vpop.xlane.xlu0 %3921  ;;  %v17040_v1 = vpop.eup %10471 }
0x118b   : >> { %v17014_v56 = vadd.f32 %v3922_v33, %v3898_v24   ;;  %v2981_v60 = vpop.xlane.xlu1 %2980  ;;  %v4364_v24 = vmul.f32 %v20474_v32, %v17040_v1 }
0x118c   : >> { %v17016_v6 = vadd.f32 %v2981_v60, %v2963_v51   ;;  %v3429_v51 = vmul.f32 %v20475_v25, %v16313_v34 }
0x118d   : >> { %20458 = vst [vmem:[#allocation373_spill] sm:$0xff] %v17014_v56  ;;  %v20459_v57 = vmov %v17014_v56  ;;  %v20466_v56 = vld [vmem:[#allocation198_spill] sm:$0xff] }
0x118e   : >> { %20460 = vst [vmem:[#allocation374_spill] sm:$0xff] %v17016_v6  ;;  %v4370_v42 = vpop.xlane.xlu0 %4369  ;;  %v4360_v14 = vmul.f32 %v20466_v56, %v17020_v3  ;;  %v20481_v56 = vmov %v16509_v5 }
0x118f   : >> { %v17024_v15 = vadd.f32 %v4370_v42, %v4358_v0   ;;  %v2987_v16 = vpop.xlane.xlu1 %2986  ;;  %v20478_v42 = vld [vmem:[#allocation53_spill] sm:$0xff] }
0x1190   : >> { %v17026_v2 = vadd.f32 %v2987_v16, %v2965_v44   ;;  %v20480_v44 = vsub.f32 %v20293_v31, %v20294_v23  ;;  %v20487_v31 = vsub.f32 %v20302_v26, %v16707_v30  ;;  %v20494_v26 = vld [vmem:[#allocation201_spill] sm:$0xff] }
0x1191   : >> { %v20464_v41 = vmov %v17024_v15  ;;  %v4362_v15 = vmul.f32 %v20470_v28, %v17030_v8 }
0x1192   : >> { %20465 = vst [vmem:[#allocation375_spill] sm:$0xff] %v17026_v2  ;;  %v4376_v46 = vpop.xlane.xlu0 %4375  ;;  %v3427_v2 = vmul.f32 %v20471_v38, %v16295_v62  ;;  %v3431_v62 = vmul.f32 %v20478_v42, %v16325_v7  ;;  %v4317_v16 = vmul.f32 1.442695, %v20480_v44  ;;  %v20485_v7 = vld [vmem:[#allocation217_spill] sm:$0xff] }
0x1193   : >> { %v17034_v13 = vadd.f32 %v4376_v46, %v4360_v14   ;;  %v3435_v43 = vpop.xlane.xlu1 %3434  ;;  %v20482_v14 = vld [vmem:[#allocation219_spill] sm:$0xff] }
0x1194   : >> { %v17036_v17 = vadd.f32 %v3435_v43, %v3425_v37   ;;  %v3891_v46 = vmul.f32 %v20482_v14, %v20481_v56  ;;  %10473 = vpow2.f32 %v4317_v16  ;;  %v20484_v37 = vsub.f32 %v20300_v40, %v20301_v35 }
0x1195   : >> { %v20468_v49 = vmov %v17034_v13  ;;  %v20490_v40 = vsub.f32 %v20322_v22, %v16789_v20  ;;  %v20499_v22 = vld [vmem:[#allocation197_spill] sm:$0xff]  ;;  %v20574_v20 = vld [vmem:[#allocation315_spill] sm:$0xff] }
0x1196   : >> { %20469 = vst [vmem:[#allocation376_spill] sm:$0xff] %v17036_v17  ;;  %v4382_v55 = vpop.xlane.xlu0 %4381  ;;  %v4321_v43 = vmul.f32 1.442695, %v20484_v37  ;;  %v3893_v17 = vmul.f32 %v20485_v7, %v16533_v10  ;;  %v20491_v10 = vld [vmem:[#allocation44_spill] sm:$0xff] }
0x1197   : >> { %v17044_v6 = vadd.f32 %v4382_v55, %v4362_v15   ;;  %v3441_v4 = vpop.xlane.xlu1 %3440  ;;  %v4325_v15 = vmul.f32 1.442695, %v20487_v31  ;;  %v20488_v55 = vld [vmem:[#allocation215_spill] sm:$0xff] }
0x1198   : >> { %v17046_v19 = vadd.f32 %v3441_v4, %v3427_v2   ;;  %10475 = vpow2.f32 %v4321_v43  ;;  %v3895_v38 = vmul.f32 %v20488_v55, %v16548_v29  ;;  %v4329_v4 = vmul.f32 1.442695, %v20490_v40  ;;  %v20502_v43 = vld [vmem:[#allocation193_spill] sm:$0xff] }
0x1199   : >> { %v20472_v54 = vmov %v17044_v6  ;;  %10477 = vpow2.f32 %v4325_v15  ;;  %v4398_v7 = vmul.f32 %v20502_v43, %v17010_v63  ;;  %v20506_v15 = vld [vmem:[#allocation192_spill] sm:$0xff]  ;;  %v20510_v63 = vld [vmem:[#allocation190_spill] sm:$0xff] }
0x119a   : >> { %20473 = vst [vmem:[#allocation377_spill] sm:$0xff] %v17046_v19  ;;  %v4388_v33 = vpop.xlane.xlu0 %4387  ;;  %v3897_v19 = vmul.f32 %v20491_v10, %v16560_v21  ;;  %10479 = vpow2.f32 %v4329_v4  ;;  %v4400_v55 = vmul.f32 %v20506_v15, %v17020_v3  ;;  %v20533_v15 = vmov %v20464_v41  ;;  %v20577_v43 = vld [vmem:[#allocation313_spill] sm:$0xff] }
0x119b   : >> { %v17052_v60 = vadd.f32 %v4388_v33, %v4364_v24   ;;  %v3447_v0 = vpop.xlane.xlu1 %3446  ;;  %v20871_v43 = vld [vmem:[#allocation326_spill] sm:$0xff] (%p17133_p8)  ;;  %v20922_v15 = vld [vmem:[#allocation355_spill] sm:$0xff] (%p17133_p8) }
0x119c   : >> { %v17054_v51 = vadd.f32 %v3447_v0, %v3429_v51  }
0x119d   : >> { %v20476_v53 = vmov %v17052_v60  ;;  %v20497_v60 = vld [vmem:[#allocation199_spill] sm:$0xff] }
0x119e   : >> { %20477 = vst [vmem:[#allocation378_spill] sm:$0xff] %v17054_v51  ;;  %v10474_v32 = vpop.eup %10473 }
0x119f   : >> { %v3453_v50 = vpop.xlane.xlu1 %3452  ;;  %v4357_v25 = vmul.f32 %v20494_v26, %v10474_v32 }
0x11a0   : >> { %v17058_v11 = vadd.f32 %v3453_v50, %v3431_v62  }
0x11a2   : >> { %20479 = vst [vmem:[#allocation379_spill] sm:$0xff] %v17058_v11  ;;  %v10476_v51 = vpop.eup %10475 }
0x11a3   : >> { %v3901_v13 = vpop.xlane.xlu1 %3900  ;;  %v4359_v0 = vmul.f32 %v20497_v60, %v10476_v51  ;;  %v10478_v42 = vpop.eup %10477 }
0x11a4   : >> { %v17065_v34 = vadd.f32 %v3901_v13, %v3891_v46   ;;  %v10480_v21 = vpop.eup %10479  ;;  %v20501_v13 = vld [vmem:[#allocation38_spill] sm:$0xff] }
0x11a5   : >> { %v20590_v45 = vld [vmem:[#allocation378_spill] sm:$0xff] }
0x11a6   : >> { %20483 = vst [vmem:[#allocation380_spill] sm:$0xff] %v17065_v34  ;;  %v4363_v34 = vmul.f32 %v20501_v13, %v10480_v21  ;;  %v20531_v13 = vmov %v20468_v49  ;;  %20591 = vst [vmem:[#allocation55_spill] sm:$0xff] %v20590_v45  ;;  %v20606_v45 = vld [vmem:[#allocation63_spill] sm:$0xff] }
0x11a7   : >> { %v3907_v28 = vpop.xlane.xlu1 %3906  ;;  %20607 = vst [vmem:[#allocation63_spill] sm:$0xff] %v20606_v45  ;;  %v20624_v45 = vld [vmem:[#allocation300_spill] sm:$0xff]  ;;  %v20909_v13 = vld [vmem:[#allocation302_spill] sm:$0xff] (%p17133_p8) }
0x11a8   : >> { %v17072_v16 = vadd.f32 %v3907_v28, %v3893_v17   ;;  %v20503_v28 = vld [vmem:[#allocation194_spill] sm:$0xff]  ;;  %20625 = vst [vmem:[#allocation72_spill] sm:$0xff] %v20624_v45  ;;  %v20640_v45 = vld [vmem:[#allocation353_spill] sm:$0xff] }
0x11a9   : >> { %v4397_v31 = vmul.f32 %v20503_v28, %v10474_v32  ;;  %v20565_v28 = vld [vmem:[#allocation48_spill] sm:$0xff]  ;;  %20641 = vst [vmem:[#allocation80_spill] sm:$0xff] %v20640_v45 }
0x11aa   : >> { %20486 = vst [vmem:[#allocation381_spill] sm:$0xff] %v17072_v16  ;;  %v4361_v16 = vmul.f32 %v20499_v22, %v10478_v42  ;;  %v20561_v22 = vld [vmem:[#allocation51_spill] sm:$0xff]  ;;  %20575 = vst [vmem:[#allocation48_spill] sm:$0xff] %v20574_v20  ;;  %v20656_v45 = vld [vmem:[#allocation88_spill] sm:$0xff]  ;;  %v20865_v28 = vmov (%p17133_p8), %v20476_v53 }
0x11ab   : >> { %v3913_v2 = vpop.xlane.xlu1 %3912  ;;  %v20588_v20 = vld [vmem:[#allocation363_spill] sm:$0xff]  ;;  %20657 = vst [vmem:[#allocation88_spill] sm:$0xff] %v20656_v45  ;;  %v20672_v45 = vld [vmem:[#allocation284_spill] sm:$0xff] }
0x11ac   : >> { %v17079_v6 = vadd.f32 %v3913_v2, %v3895_v38   ;;  %v20507_v2 = vld [vmem:[#allocation37_spill] sm:$0xff]  ;;  %20589 = vst [vmem:[#allocation54_spill] sm:$0xff] %v20588_v20  ;;  %v20604_v20 = vld [vmem:[#allocation62_spill] sm:$0xff]  ;;  %20673 = vst [vmem:[#allocation96_spill] sm:$0xff] %v20672_v45 }
0x11ad   : >> { %v4399_v40 = vmul.f32 %v20507_v2, %v10476_v51  ;;  %20605 = vst [vmem:[#allocation62_spill] sm:$0xff] %v20604_v20  ;;  %v20622_v20 = vld [vmem:[#allocation303_spill] sm:$0xff]  ;;  %v20688_v45 = vld [vmem:[#allocation345_spill] sm:$0xff] }
0x11ae   : >> { %20489 = vst [vmem:[#allocation382_spill] sm:$0xff] %v17079_v6  ;;  %20623 = vst [vmem:[#allocation71_spill] sm:$0xff] %v20622_v20  ;;  %v20638_v20 = vld [vmem:[#allocation374_spill] sm:$0xff] }
0x11af   : >> { %v3919_v24 = vpop.xlane.xlu1 %3918  ;;  %20639 = vst [vmem:[#allocation79_spill] sm:$0xff] %v20638_v20  ;;  %v20642_v20 = vld [vmem:[#allocation372_spill] sm:$0xff]  ;;  %20689 = vst [vmem:[#allocation104_spill] sm:$0xff] %v20688_v45 }
0x11b0   : >> { %v17086_v33 = vadd.f32 %v3919_v24, %v3897_v19   ;;  %v4402_v24 = vmul.f32 %v20510_v63, %v17030_v8  ;;  %v20527_v8 = vmov %v20476_v53  ;;  %20643 = vst [vmem:[#allocation81_spill] sm:$0xff] %v20642_v20  ;;  %v20658_v20 = vld [vmem:[#allocation89_spill] sm:$0xff]  ;;  %v20704_v45 = vld [vmem:[#allocation112_spill] sm:$0xff] }
0x11b1   : >> { %20659 = vst [vmem:[#allocation89_spill] sm:$0xff] %v20658_v20  ;;  %v20674_v20 = vld [vmem:[#allocation285_spill] sm:$0xff]  ;;  %20705 = vst [vmem:[#allocation112_spill] sm:$0xff] %v20704_v45  ;;  %v20720_v45 = vld [vmem:[#allocation268_spill] sm:$0xff] }
0x11b2   : >> { %20492 = vst [vmem:[#allocation383_spill] sm:$0xff] %v17086_v33  ;;  %v20493_v39 = vmov %v17086_v33  ;;  %v20511_v33 = vld [vmem:[#allocation191_spill] sm:$0xff]  ;;  %20675 = vst [vmem:[#allocation97_spill] sm:$0xff] %v20674_v20  ;;  %v20911_v8 = vld [vmem:[#allocation300_spill] sm:$0xff] (%p17133_p8) }
0x11b3   : >> { %v4367_v29 = vpop.xlane.xlu1 %4366  ;;  %20554 = vst [vmem:[#allocation44_spill] sm:$0xff] %v20493_v39  ;;  %v20578_v39 = vld [vmem:[#allocation314_spill] sm:$0xff]  ;;  %v20690_v20 = vld [vmem:[#allocation364_spill] sm:$0xff]  ;;  %20721 = vst [vmem:[#allocation120_spill] sm:$0xff] %v20720_v45 }
0x11b4   : >> { %v17089_v17 = vadd.f32 %v4367_v29, %v4357_v25   ;;  %v20514_v25 = vld [vmem:[#allocation188_spill] sm:$0xff]  ;;  %20691 = vst [vmem:[#allocation105_spill] sm:$0xff] %v20690_v20  ;;  %v20736_v45 = vld [vmem:[#allocation338_spill] sm:$0xff]  ;;  %v20877_v53 = vld [vmem:[#allocation320_spill] sm:$0xff] (%p17133_p8) }
0x11b5   : >> { %v4404_v60 = vmul.f32 %v20514_v25, %v17040_v1  ;;  %v20537_v25 = vmov %v20306_v47  ;;  %v20546_v47 = vld [vmem:[#allocation325_spill] sm:$0xff]  ;;  %v20556_v63 = vld [vmem:[#allocation382_spill] sm:$0xff]  ;;  %20737 = vst [vmem:[#allocation128_spill] sm:$0xff] %v20736_v45  ;;  %v20752_v45 = vld [vmem:[#allocation136_spill] sm:$0xff] }
0x11b6   : >> { %20495 = vst [vmem:[#allocation384_spill] sm:$0xff] %v17089_v17  ;;  %v20496_v50 = vmov %v17089_v17  ;;  %v20706_v20 = vld [vmem:[#allocation113_spill] sm:$0xff]  ;;  %20753 = vst [vmem:[#allocation136_spill] sm:$0xff] %v20752_v45  ;;  %v20901_v63 = vld [vmem:[#allocation363_spill] sm:$0xff] (%p17133_p8) }
0x11b7   : >> { %v4373_v11 = vpop.xlane.xlu1 %4372  ;;  %20707 = vst [vmem:[#allocation113_spill] sm:$0xff] %v20706_v20  ;;  %v20722_v20 = vld [vmem:[#allocation269_spill] sm:$0xff]  ;;  %v20768_v45 = vld [vmem:[#allocation253_spill] sm:$0xff] }
0x11b8   : >> { %v17092_v14 = vadd.f32 %v4373_v11, %v4359_v0   ;;  %v20515_v0 = vld [vmem:[#allocation189_spill] sm:$0xff]  ;;  %20723 = vst [vmem:[#allocation121_spill] sm:$0xff] %v20722_v20  ;;  %v20738_v20 = vld [vmem:[#allocation356_spill] sm:$0xff]  ;;  %20769 = vst [vmem:[#allocation144_spill] sm:$0xff] %v20768_v45 }
0x11b9   : >> { %20739 = vst [vmem:[#allocation129_spill] sm:$0xff] %v20738_v20  ;;  %v20754_v20 = vld [vmem:[#allocation137_spill] sm:$0xff]  ;;  %v20784_v45 = vld [vmem:[#allocation334_spill] sm:$0xff]  ;;  %v20881_v47 = vld [vmem:[#allocation383_spill] sm:$0xff] (%p17133_p8) }
0x11ba   : >> { %v20498_v44 = vmov %v17092_v14  ;;  %20755 = vst [vmem:[#allocation137_spill] sm:$0xff] %v20754_v20  ;;  %v20770_v20 = vld [vmem:[#allocation254_spill] sm:$0xff]  ;;  %20785 = vst [vmem:[#allocation152_spill] sm:$0xff] %v20784_v45 }
0x11bb   : >> { %v4379_v56 = vpop.xlane.xlu1 %4378  ;;  %20771 = vst [vmem:[#allocation145_spill] sm:$0xff] %v20770_v20  ;;  %v20786_v20 = vld [vmem:[#allocation348_spill] sm:$0xff]  ;;  %v20800_v45 = vld [vmem:[#allocation245_spill] sm:$0xff]  ;;  %20882 = vst [vmem:[#allocation39_spill] sm:$0xff] (%p17133_p8), %v20881_v47 }
0x11bc   : >> { %v17095_v11 = vadd.f32 %v4379_v56, %v4361_v16   ;;  %v20553_v56 = vmov %v20459_v57  ;;  %v20558_v16 = vld [vmem:[#allocation381_spill] sm:$0xff]  ;;  %v20580_v57 = vld [vmem:[#allocation311_spill] sm:$0xff]  ;;  %20787 = vst [vmem:[#allocation153_spill] sm:$0xff] %v20786_v20  ;;  %20801 = vst [vmem:[#allocation160_spill] sm:$0xff] %v20800_v45 }
0x11bd   : >> { %v20802_v20 = vld [vmem:[#allocation244_spill] sm:$0xff]  ;;  %v20818_v45 = vld [vmem:[#allocation235_spill] sm:$0xff] }
0x11be   : >> { %v20500_v46 = vmov %v17095_v11  ;;  %20803 = vst [vmem:[#allocation161_spill] sm:$0xff] %v20802_v20  ;;  %v20812_v20 = vld [vmem:[#allocation236_spill] sm:$0xff]  ;;  %20819 = vst [vmem:[#allocation169_spill] sm:$0xff] %v20818_v45  ;;  %v20838_v45 = vld [vmem:[#allocation328_spill] sm:$0xff] }
0x11bf   : >> { %v4385_v37 = vpop.xlane.xlu1 %4384  ;;  %20813 = vst [vmem:[#allocation166_spill] sm:$0xff] %v20812_v20  ;;  %v20828_v20 = vld [vmem:[#allocation331_spill] sm:$0xff]  ;;  %20839 = vst [vmem:[#allocation179_spill] sm:$0xff] %v20838_v45  ;;  %v20844_v45 = vld [vmem:[#allocation229_spill] sm:$0xff] }
0x11c0   : >> { %v17098_v29 = vadd.f32 %v4385_v37, %v4363_v34   ;;  %v20542_v34 = vmov %v20294_v23  ;;  %v20544_v37 = vmov %v20269_v9  ;;  %v20562_v23 = vld [vmem:[#allocation319_spill] sm:$0xff]  ;;  %20829 = vst [vmem:[#allocation174_spill] sm:$0xff] %v20828_v20  ;;  %20845 = vst [vmem:[#allocation182_spill] sm:$0xff] %v20844_v45  ;;  %v20852_v20 = vld [vmem:[#allocation186_spill] sm:$0xff] }
0x11c1   : >> { %v20586_v9 = vld [vmem:[#allocation379_spill] sm:$0xff]  ;;  %20853 = vst [vmem:[#allocation186_spill] sm:$0xff] %v20852_v20  ;;  %v20873_v45 = vld [vmem:[#allocation324_spill] sm:$0xff] (%p17133_p8)  ;;  %v20888_v37 = vld [vmem:[#allocation381_spill] sm:$0xff] (%p17133_p8) }
0x11c2   : >> { %20528 = vst [vmem:[#allocation38_spill] sm:$0xff] %v17098_v29  ;;  %20587 = vst [vmem:[#allocation53_spill] sm:$0xff] %v20586_v9  ;;  %v20594_v9 = vld [vmem:[#allocation377_spill] sm:$0xff]  ;;  %v20890_v34 = vld [vmem:[#allocation380_spill] sm:$0xff] (%p17133_p8) }
0x11c3   : >> { %20595 = vst [vmem:[#allocation57_spill] sm:$0xff] %v20594_v9  ;;  %v20610_v9 = vld [vmem:[#allocation65_spill] sm:$0xff]  ;;  %v20894_v20 = vld [vmem:[#allocation316_spill] sm:$0xff] (%p17133_p8)  ;;  %v20908_v25 = vld [vmem:[#allocation305_spill] sm:$0xff] (%p17133_p8) }
0x11c4   : >> { %20611 = vst [vmem:[#allocation65_spill] sm:$0xff] %v20610_v9  ;;  %v20616_v9 = vld [vmem:[#allocation304_spill] sm:$0xff] }
0x11c5   : >> { %20617 = vst [vmem:[#allocation68_spill] sm:$0xff] %v20616_v9  ;;  %v20632_v9 = vld [vmem:[#allocation357_spill] sm:$0xff] }
0x11c6   : >> { %20633 = vst [vmem:[#allocation76_spill] sm:$0xff] %v20632_v9  ;;  %v20650_v9 = vld [vmem:[#allocation85_spill] sm:$0xff] }
0x11c7   : >> { %20651 = vst [vmem:[#allocation85_spill] sm:$0xff] %v20650_v9  ;;  %v20666_v9 = vld [vmem:[#allocation289_spill] sm:$0xff]  ;;  %v20899_v56 = vld [vmem:[#allocation365_spill] sm:$0xff] (%p17133_p8) }
0x11c8   : >> { %20667 = vst [vmem:[#allocation93_spill] sm:$0xff] %v20666_v9  ;;  %v20684_v9 = vld [vmem:[#allocation347_spill] sm:$0xff]  ;;  %v20904_v47 = vld [vmem:[#allocation377_spill] sm:$0xff] (%p17133_p8) }
0x11c9   : >> { %20685 = vst [vmem:[#allocation102_spill] sm:$0xff] %v20684_v9  ;;  %v20700_v9 = vld [vmem:[#allocation110_spill] sm:$0xff] }
0x11ca   : >> { %20701 = vst [vmem:[#allocation110_spill] sm:$0xff] %v20700_v9  ;;  %v20716_v9 = vld [vmem:[#allocation270_spill] sm:$0xff] }
0x11cb   : >> { %20717 = vst [vmem:[#allocation118_spill] sm:$0xff] %v20716_v9  ;;  %v20732_v9 = vld [vmem:[#allocation339_spill] sm:$0xff] }
0x11cc   : >> { %20733 = vst [vmem:[#allocation126_spill] sm:$0xff] %v20732_v9  ;;  %v20748_v9 = vld [vmem:[#allocation134_spill] sm:$0xff] }
0x11cd   : >> { %20749 = vst [vmem:[#allocation134_spill] sm:$0xff] %v20748_v9  ;;  %v20764_v9 = vld [vmem:[#allocation255_spill] sm:$0xff] }
0x11ce   : >> { %20765 = vst [vmem:[#allocation142_spill] sm:$0xff] %v20764_v9  ;;  %v20772_v9 = vld [vmem:[#allocation251_spill] sm:$0xff] }
0x11cf   : >> { %20773 = vst [vmem:[#allocation146_spill] sm:$0xff] %v20772_v9  ;;  %v20788_v9 = vld [vmem:[#allocation333_spill] sm:$0xff] }
0x11d0   : >> { %20789 = vst [vmem:[#allocation154_spill] sm:$0xff] %v20788_v9  ;;  %v20804_v9 = vld [vmem:[#allocation241_spill] sm:$0xff] }
0x11d1   : >> { %20805 = vst [vmem:[#allocation162_spill] sm:$0xff] %v20804_v9  ;;  %v20820_v9 = vld [vmem:[#allocation232_spill] sm:$0xff] }
0x11d2   : >> { %20821 = vst [vmem:[#allocation170_spill] sm:$0xff] %v20820_v9  ;;  %v20840_v9 = vld [vmem:[#allocation181_spill] sm:$0xff] }
0x11d3   : >> { %20841 = vst [vmem:[#allocation180_spill] sm:$0xff] %v20840_v9  ;;  %v20932_v9 = vld [vmem:[#allocation370_spill] sm:$0xff] (%p17133_p8) }
0x11f2   : >> { %v6833_v17 = vpop.f32.mrb[56].mxu1 }
0x11f3   : >> { %v17103_v6 = vadd.f32 %v6833_v17, %v4398_v7   ;;  %v4519_v14 = vpop.f32.mrb[57].mxu1  ;;  %v20534_v17 = vmov %v20496_v50  ;;  %v20592_v50 = vld [vmem:[#allocation361_spill] sm:$0xff] }
0x11f4   : >> { %v17105_v7 = vadd.f32 %v4519_v14, %v4397_v31   ;;  %v20532_v14 = vmov %v20498_v44  ;;  %v20539_v31 = vmov %v16695_v12  ;;  %v20547_v12 = vld [vmem:[#allocation322_spill] sm:$0xff]  ;;  %20593 = vst [vmem:[#allocation56_spill] sm:$0xff] %v20592_v50  ;;  %v20608_v50 = vld [vmem:[#allocation64_spill] sm:$0xff]  ;;  %v20918_v17 = vld [vmem:[#allocation357_spill] sm:$0xff] (%p17133_p8) }
0x11f5   : >> { %v20504_v48 = vmov %v17103_v6  ;;  %v4401_v6 = vmul.f32 %v20511_v33, %v10478_v42  ;;  %v20541_v33 = vmov %v16677_v27  ;;  %20548 = vst [vmem:[#allocation42_spill] sm:$0xff] %v20547_v12  ;;  %v20550_v27 = vld [vmem:[#allocation320_spill] sm:$0xff]  ;;  %v20557_v12 = vld [vmem:[#allocation369_spill] sm:$0xff]  ;;  %20609 = vst [vmem:[#allocation64_spill] sm:$0xff] %v20608_v50 }
0x11f6   : >> { %v20505_v59 = vmov %v17105_v7  ;;  %v6836_v38 = vpop.f32.mrb[58].mxu1  ;;  %20551 = vst [vmem:[#allocation43_spill] sm:$0xff] %v20550_v27  ;;  %v20564_v27 = vld [vmem:[#allocation50_spill] sm:$0xff]  ;;  %v20576_v42 = vld [vmem:[#allocation316_spill] sm:$0xff]  ;;  %v20895_v31 = vld [vmem:[#allocation313_spill] sm:$0xff] (%p17133_p8) }
0x11f7   : >> { %v17110_v4 = vadd.f32 %v6836_v38, %v4400_v55   ;;  %v4529_v10 = vpop.f32.mrb[59].mxu1  ;;  %v20526_v7 = vmov %v20505_v59  ;;  %v20545_v38 = vld [vmem:[#allocation324_spill] sm:$0xff]  ;;  %v20552_v55 = vld [vmem:[#allocation321_spill] sm:$0xff]  ;;  %20581 = vst [vmem:[#allocation50_spill] sm:$0xff] %v20580_v57  ;;  %v20626_v50 = vld [vmem:[#allocation301_spill] sm:$0xff]  ;;  %v20864_v27 = vmov (%p17133_p8), %v20505_v59 }
0x11f8   : >> { %v17112_v19 = vadd.f32 %v4529_v10, %v4399_v40   ;;  %v20529_v10 = vmov %v20472_v54  ;;  %v20573_v40 = vld [vmem:[#allocation318_spill] sm:$0xff]  ;;  %v20598_v57 = vld [vmem:[#allocation376_spill] sm:$0xff]  ;;  %20627 = vst [vmem:[#allocation73_spill] sm:$0xff] %v20626_v50  ;;  %v20644_v50 = vld [vmem:[#allocation351_spill] sm:$0xff] }
0x11f9   : >> { %v20508_v5 = vmov %v17110_v4  ;;  %v4403_v4 = vmul.f32 %v20515_v0, %v10480_v21  ;;  %v20560_v21 = vld [vmem:[#allocation380_spill] sm:$0xff]  ;;  %20599 = vst [vmem:[#allocation59_spill] sm:$0xff] %v20598_v57  ;;  %v20614_v57 = vld [vmem:[#allocation67_spill] sm:$0xff]  ;;  %20645 = vst [vmem:[#allocation82_spill] sm:$0xff] %v20644_v50  ;;  %v20869_v40 = vmov (%p17133_p8), %v20498_v44 }
0x11fa   : >> { %v20509_v61 = vmov %v17112_v19  ;;  %v6839_v32 = vpop.f32.mrb[60].mxu1  ;;  %v20559_v19 = vld [vmem:[#allocation367_spill] sm:$0xff]  ;;  %20615 = vst [vmem:[#allocation67_spill] sm:$0xff] %v20614_v57  ;;  %v20630_v57 = vld [vmem:[#allocation299_spill] sm:$0xff]  ;;  %v20660_v50 = vld [vmem:[#allocation90_spill] sm:$0xff]  ;;  %v20861_v22 = vmov (%p17133_p8), %v20508_v5 }
0x11fb   : >> { %v17117_v2 = vadd.f32 %v6839_v32, %v4402_v24   ;;  %v4539_v26 = vpop.f32.mrb[61].mxu1  ;;  %20524 = vst [vmem:[#allocation37_spill] sm:$0xff] %v20509_v61  ;;  %v20540_v32 = vmov %v20301_v35  ;;  %v20563_v24 = vld [vmem:[#allocation49_spill] sm:$0xff]  ;;  %20631 = vst [vmem:[#allocation75_spill] sm:$0xff] %v20630_v57  ;;  %v20648_v57 = vld [vmem:[#allocation84_spill] sm:$0xff]  ;;  %v20862_v23 = vmov (%p17133_p8), %v20509_v61 }
0x11fc   : >> { %v17119_v3 = vadd.f32 %v4539_v26, %v4401_v6   ;;  %v20525_v6 = vmov %v20504_v48  ;;  %v20538_v26 = vmov %v16707_v30  ;;  %v20566_v35 = vld [vmem:[#allocation45_spill] sm:$0xff]  ;;  %v20568_v30 = vld [vmem:[#allocation47_spill] sm:$0xff]  ;;  %20579 = vst [vmem:[#allocation49_spill] sm:$0xff] %v20578_v39  ;;  %20649 = vst [vmem:[#allocation84_spill] sm:$0xff] %v20648_v57  ;;  %v20863_v24 = vmov (%p17133_p8), %v20504_v48 }
0x11fd   : >> { %v20512_v62 = vmov %v17117_v2  ;;  %20567 = vst [vmem:[#allocation45_spill] sm:$0xff] %v20566_v35  ;;  %v20569_v35 = vld [vmem:[#allocation46_spill] sm:$0xff]  ;;  %20572 = vst [vmem:[#allocation47_spill] sm:$0xff] %v20571_v36  ;;  %v20584_v36 = vld [vmem:[#allocation365_spill] sm:$0xff]  ;;  %v20866_v30 = vmov (%p17133_p8), %v20472_v54 }
0x11fe   : >> { %v20513_v58 = vmov %v17119_v3  ;;  %v6842_v51 = vpop.f32.mrb[62].mxu1  ;;  %v20521_v2 = vmov %v20512_v62  ;;  %20570 = vst [vmem:[#allocation46_spill] sm:$0xff] %v20569_v35  ;;  %v20582_v35 = vld [vmem:[#allocation312_spill] sm:$0xff]  ;;  %20585 = vst [vmem:[#allocation52_spill] sm:$0xff] %v20584_v36  ;;  %v20596_v39 = vld [vmem:[#allocation359_spill] sm:$0xff]  ;;  %v20859_v19 = vmov (%p17133_p8), %v20512_v62 }
0x11ff   : >> { %v17124_v0 = vadd.f32 %v6842_v51, %v4404_v60   ;;  %v4549_v11 = vpop.f32.mrb[63].mxu1  ;;  %v20522_v3 = vmov %v20513_v58  ;;  %v20549_v51 = vld [vmem:[#allocation323_spill] sm:$0xff]  ;;  %20583 = vst [vmem:[#allocation51_spill] sm:$0xff] %v20582_v35  ;;  %20597 = vst [vmem:[#allocation58_spill] sm:$0xff] %v20596_v39  ;;  %v20600_v35 = vld [vmem:[#allocation60_spill] sm:$0xff]  ;;  %v20860_v21 = vmov (%p17133_p8), %v20513_v58 }
0x1200   : >> { %v17126_v1 = vadd.f32 %v4549_v11, %v4403_v4   ;;  %v20523_v4 = vmov %v20508_v5  ;;  %v20530_v11 = vmov %v20500_v46  ;;  %v20555_v60 = vld [vmem:[#allocation371_spill] sm:$0xff]  ;;  %20601 = vst [vmem:[#allocation60_spill] sm:$0xff] %v20600_v35  ;;  %v20602_v36 = vld [vmem:[#allocation61_spill] sm:$0xff]  ;;  %v20612_v39 = vld [vmem:[#allocation66_spill] sm:$0xff] }
0x1201   : >> { %v20516_v18 = vmov %v17124_v0  ;;  %20603 = vst [vmem:[#allocation61_spill] sm:$0xff] %v20602_v36  ;;  %20613 = vst [vmem:[#allocation66_spill] sm:$0xff] %v20612_v39  ;;  %v20618_v35 = vld [vmem:[#allocation305_spill] sm:$0xff]  ;;  %v20620_v36 = vld [vmem:[#allocation302_spill] sm:$0xff] }
0x1202   : >> { %v20517_v52 = vmov %v17126_v1  ;;  %v20519_v0 = vmov %v20516_v18  ;;  %20619 = vst [vmem:[#allocation69_spill] sm:$0xff] %v20618_v35  ;;  %20621 = vst [vmem:[#allocation70_spill] sm:$0xff] %v20620_v36  ;;  %v20628_v39 = vld [vmem:[#allocation298_spill] sm:$0xff]  ;;  %v20664_v57 = vld [vmem:[#allocation288_spill] sm:$0xff]  ;;  %v20857_v12 = vmov (%p17133_p8), %v20516_v18 }
0x1203   : >> { %v20520_v1 = vmov %v20517_v52  ;;  %20629 = vst [vmem:[#allocation74_spill] sm:$0xff] %v20628_v39  ;;  %v20634_v35 = vld [vmem:[#allocation375_spill] sm:$0xff]  ;;  %v20646_v39 = vld [vmem:[#allocation370_spill] sm:$0xff]  ;;  %20661 = vst [vmem:[#allocation90_spill] sm:$0xff] %v20660_v50  ;;  %v20858_v16 = vmov (%p17133_p8), %v20517_v52 }
0x1204   : >> { %20635 = vst [vmem:[#allocation77_spill] sm:$0xff] %v20634_v35  ;;  %v20636_v36 = vld [vmem:[#allocation355_spill] sm:$0xff]  ;;  %20647 = vst [vmem:[#allocation83_spill] sm:$0xff] %v20646_v39  ;;  %v20652_v35 = vld [vmem:[#allocation86_spill] sm:$0xff] }
0x1205   : >> { %20637 = vst [vmem:[#allocation78_spill] sm:$0xff] %v20636_v36  ;;  %20653 = vst [vmem:[#allocation86_spill] sm:$0xff] %v20652_v35  ;;  %v20654_v36 = vld [vmem:[#allocation87_spill] sm:$0xff]  ;;  %v20678_v50 = vld [vmem:[#allocation283_spill] sm:$0xff] }
0x1206   : >> { %20655 = vst [vmem:[#allocation87_spill] sm:$0xff] %v20654_v36  ;;  %v20662_v39 = vld [vmem:[#allocation91_spill] sm:$0xff]  ;;  %20665 = vst [vmem:[#allocation92_spill] sm:$0xff] %v20664_v57  ;;  %v20670_v36 = vld [vmem:[#allocation287_spill] sm:$0xff] }
0x1207   : >> { %20663 = vst [vmem:[#allocation91_spill] sm:$0xff] %v20662_v39  ;;  %v20668_v35 = vld [vmem:[#allocation286_spill] sm:$0xff]  ;;  %20671 = vst [vmem:[#allocation95_spill] sm:$0xff] %v20670_v36  ;;  %v20680_v39 = vld [vmem:[#allocation349_spill] sm:$0xff] }
0x1208   : >> { %20669 = vst [vmem:[#allocation94_spill] sm:$0xff] %v20668_v35  ;;  %v20676_v36 = vld [vmem:[#allocation282_spill] sm:$0xff]  ;;  %20679 = vst [vmem:[#allocation99_spill] sm:$0xff] %v20678_v50  ;;  %v20682_v57 = vld [vmem:[#allocation368_spill] sm:$0xff] }
0x1209   : >> { %20677 = vst [vmem:[#allocation98_spill] sm:$0xff] %v20676_v36  ;;  %20681 = vst [vmem:[#allocation100_spill] sm:$0xff] %v20680_v39  ;;  %v20686_v35 = vld [vmem:[#allocation366_spill] sm:$0xff]  ;;  %v20692_v36 = vld [vmem:[#allocation343_spill] sm:$0xff] }
0x120a   : >> { %20683 = vst [vmem:[#allocation101_spill] sm:$0xff] %v20682_v57  ;;  %20687 = vst [vmem:[#allocation103_spill] sm:$0xff] %v20686_v35  ;;  %v20694_v50 = vld [vmem:[#allocation362_spill] sm:$0xff]  ;;  %v20696_v39 = vld [vmem:[#allocation108_spill] sm:$0xff] }
0x120b   : >> { %20693 = vst [vmem:[#allocation106_spill] sm:$0xff] %v20692_v36  ;;  %20695 = vst [vmem:[#allocation107_spill] sm:$0xff] %v20694_v50  ;;  %v20698_v57 = vld [vmem:[#allocation109_spill] sm:$0xff]  ;;  %v20702_v35 = vld [vmem:[#allocation111_spill] sm:$0xff] }
0x120c   : >> { %20697 = vst [vmem:[#allocation108_spill] sm:$0xff] %v20696_v39  ;;  %20699 = vst [vmem:[#allocation109_spill] sm:$0xff] %v20698_v57  ;;  %v20708_v36 = vld [vmem:[#allocation114_spill] sm:$0xff]  ;;  %v20710_v50 = vld [vmem:[#allocation115_spill] sm:$0xff] }
0x120d   : >> { %20703 = vst [vmem:[#allocation111_spill] sm:$0xff] %v20702_v35  ;;  %20709 = vst [vmem:[#allocation114_spill] sm:$0xff] %v20708_v36  ;;  %v20712_v39 = vld [vmem:[#allocation272_spill] sm:$0xff]  ;;  %v20714_v57 = vld [vmem:[#allocation273_spill] sm:$0xff] }
0x120e   : >> { %20711 = vst [vmem:[#allocation115_spill] sm:$0xff] %v20710_v50  ;;  %20713 = vst [vmem:[#allocation116_spill] sm:$0xff] %v20712_v39  ;;  %v20718_v35 = vld [vmem:[#allocation271_spill] sm:$0xff]  ;;  %v20724_v39 = vld [vmem:[#allocation266_spill] sm:$0xff] }
0x120f   : >> { %20715 = vst [vmem:[#allocation117_spill] sm:$0xff] %v20714_v57  ;;  %20719 = vst [vmem:[#allocation119_spill] sm:$0xff] %v20718_v35  ;;  %v20726_v36 = vld [vmem:[#allocation267_spill] sm:$0xff]  ;;  %v20728_v50 = vld [vmem:[#allocation341_spill] sm:$0xff] }
0x1210   : >> { %20725 = vst [vmem:[#allocation122_spill] sm:$0xff] %v20724_v39  ;;  %20727 = vst [vmem:[#allocation123_spill] sm:$0xff] %v20726_v36  ;;  %v20730_v57 = vld [vmem:[#allocation360_spill] sm:$0xff]  ;;  %v20734_v35 = vld [vmem:[#allocation358_spill] sm:$0xff] }
0x1211   : >> { %20729 = vst [vmem:[#allocation124_spill] sm:$0xff] %v20728_v50  ;;  %20731 = vst [vmem:[#allocation125_spill] sm:$0xff] %v20730_v57  ;;  %v20740_v39 = vld [vmem:[#allocation337_spill] sm:$0xff]  ;;  %v20742_v36 = vld [vmem:[#allocation354_spill] sm:$0xff] }
0x1212   : >> { %20735 = vst [vmem:[#allocation127_spill] sm:$0xff] %v20734_v35  ;;  %20741 = vst [vmem:[#allocation130_spill] sm:$0xff] %v20740_v39  ;;  %v20744_v50 = vld [vmem:[#allocation132_spill] sm:$0xff]  ;;  %v20746_v57 = vld [vmem:[#allocation133_spill] sm:$0xff] }
0x1213   : >> { %20743 = vst [vmem:[#allocation131_spill] sm:$0xff] %v20742_v36  ;;  %20745 = vst [vmem:[#allocation132_spill] sm:$0xff] %v20744_v50  ;;  %v20750_v35 = vld [vmem:[#allocation135_spill] sm:$0xff]  ;;  %v20756_v39 = vld [vmem:[#allocation138_spill] sm:$0xff] }
0x1214   : >> { %20747 = vst [vmem:[#allocation133_spill] sm:$0xff] %v20746_v57  ;;  %20751 = vst [vmem:[#allocation135_spill] sm:$0xff] %v20750_v35  ;;  %v20758_v36 = vld [vmem:[#allocation139_spill] sm:$0xff]  ;;  %v20760_v50 = vld [vmem:[#allocation257_spill] sm:$0xff] }
0x1215   : >> { %20757 = vst [vmem:[#allocation138_spill] sm:$0xff] %v20756_v39  ;;  %20759 = vst [vmem:[#allocation139_spill] sm:$0xff] %v20758_v36  ;;  %v20762_v57 = vld [vmem:[#allocation258_spill] sm:$0xff]  ;;  %v20766_v35 = vld [vmem:[#allocation256_spill] sm:$0xff] }
0x1216   : >> { %20761 = vst [vmem:[#allocation140_spill] sm:$0xff] %v20760_v50  ;;  %20763 = vst [vmem:[#allocation141_spill] sm:$0xff] %v20762_v57  ;;  %v20774_v39 = vld [vmem:[#allocation252_spill] sm:$0xff]  ;;  %v20780_v57 = vld [vmem:[#allocation335_spill] sm:$0xff] }
0x1217   : >> { %20767 = vst [vmem:[#allocation143_spill] sm:$0xff] %v20766_v35  ;;  %20775 = vst [vmem:[#allocation147_spill] sm:$0xff] %v20774_v39  ;;  %v20776_v36 = vld [vmem:[#allocation336_spill] sm:$0xff]  ;;  %v20782_v35 = vld [vmem:[#allocation350_spill] sm:$0xff] }
0x1218   : >> { %20777 = vst [vmem:[#allocation148_spill] sm:$0xff] %v20776_v36  ;;  %v20778_v50 = vld [vmem:[#allocation352_spill] sm:$0xff]  ;;  %20781 = vst [vmem:[#allocation150_spill] sm:$0xff] %v20780_v57  ;;  %v20790_v39 = vld [vmem:[#allocation346_spill] sm:$0xff] }
0x1219   : >> { %20779 = vst [vmem:[#allocation149_spill] sm:$0xff] %v20778_v50  ;;  %20783 = vst [vmem:[#allocation151_spill] sm:$0xff] %v20782_v35  ;;  %v20792_v36 = vld [vmem:[#allocation156_spill] sm:$0xff]  ;;  %v20794_v50 = vld [vmem:[#allocation157_spill] sm:$0xff] }
0x121a   : >> { %20791 = vst [vmem:[#allocation155_spill] sm:$0xff] %v20790_v39  ;;  %20793 = vst [vmem:[#allocation156_spill] sm:$0xff] %v20792_v36  ;;  %v20796_v57 = vld [vmem:[#allocation158_spill] sm:$0xff]  ;;  %v20798_v35 = vld [vmem:[#allocation159_spill] sm:$0xff] }
0x121b   : >> { %20795 = vst [vmem:[#allocation157_spill] sm:$0xff] %v20794_v50  ;;  %20797 = vst [vmem:[#allocation158_spill] sm:$0xff] %v20796_v57  ;;  %v20806_v39 = vld [vmem:[#allocation242_spill] sm:$0xff]  ;;  %v20808_v36 = vld [vmem:[#allocation239_spill] sm:$0xff] }
0x121c   : >> { %20799 = vst [vmem:[#allocation159_spill] sm:$0xff] %v20798_v35  ;;  %20807 = vst [vmem:[#allocation163_spill] sm:$0xff] %v20806_v39  ;;  %v20810_v50 = vld [vmem:[#allocation240_spill] sm:$0xff]  ;;  %v20814_v57 = vld [vmem:[#allocation237_spill] sm:$0xff] }
0x121d   : >> { %20809 = vst [vmem:[#allocation164_spill] sm:$0xff] %v20808_v36  ;;  %20811 = vst [vmem:[#allocation165_spill] sm:$0xff] %v20810_v50  ;;  %v20816_v35 = vld [vmem:[#allocation234_spill] sm:$0xff]  ;;  %v20822_v39 = vld [vmem:[#allocation233_spill] sm:$0xff] }
0x121e   : >> { %20815 = vst [vmem:[#allocation167_spill] sm:$0xff] %v20814_v57  ;;  %20817 = vst [vmem:[#allocation168_spill] sm:$0xff] %v20816_v35  ;;  %v20824_v36 = vld [vmem:[#allocation332_spill] sm:$0xff]  ;;  %v20830_v57 = vld [vmem:[#allocation342_spill] sm:$0xff]  ;;  %435 = sbr.rel (!%p17133_p8) target bundleno = 343 (0x157), region = 79 }
0x121f   : >> { %20823 = vst [vmem:[#allocation171_spill] sm:$0xff] %v20822_v39  ;;  %20825 = vst [vmem:[#allocation172_spill] sm:$0xff] %v20824_v36  ;;  %v20826_v50 = vld [vmem:[#allocation344_spill] sm:$0xff]  ;;  %v20832_v36 = vld [vmem:[#allocation330_spill] sm:$0xff] }
0x1220   : >> { %20827 = vst [vmem:[#allocation173_spill] sm:$0xff] %v20826_v50  ;;  %20831 = vst [vmem:[#allocation175_spill] sm:$0xff] %v20830_v57  ;;  %v20834_v57 = vld [vmem:[#allocation329_spill] sm:$0xff]  ;;  %v20836_v35 = vld [vmem:[#allocation340_spill] sm:$0xff] }
0x1221   : >> { %20833 = vst [vmem:[#allocation176_spill] sm:$0xff] %v20832_v36  ;;  %20835 = vst [vmem:[#allocation177_spill] sm:$0xff] %v20834_v57  ;;  %v20842_v39 = vld [vmem:[#allocation231_spill] sm:$0xff]  ;;  %v20846_v50 = vld [vmem:[#allocation230_spill] sm:$0xff] }
0x1222   : >> { %20837 = vst [vmem:[#allocation178_spill] sm:$0xff] %v20836_v35  ;;  %20843 = vst [vmem:[#allocation181_spill] sm:$0xff] %v20842_v39  ;;  %v20848_v36 = vld [vmem:[#allocation184_spill] sm:$0xff]  ;;  %v20854_v57 = vld [vmem:[#allocation187_spill] sm:$0xff]  ;;  %v20867_v35 = vmov (%p17133_p8), %v20500_v46 }
0x1223   : >> { %20847 = vst [vmem:[#allocation183_spill] sm:$0xff] %v20846_v50  ;;  %20849 = vst [vmem:[#allocation184_spill] sm:$0xff] %v20848_v36  ;;  %v20850_v50 = vld [vmem:[#allocation185_spill] sm:$0xff]  ;;  %v20870_v42 = vld [vmem:[#allocation384_spill] sm:$0xff] (%p17133_p8) }
0x1224   : >> { %20851 = vst [vmem:[#allocation185_spill] sm:$0xff] %v20850_v50  ;;  %20855 = vst [vmem:[#allocation187_spill] sm:$0xff] %v20854_v57  ;;  %v20872_v44 = vld [vmem:[#allocation327_spill] sm:$0xff] (%p17133_p8)  ;;  %v20874_v46 = vld [vmem:[#allocation325_spill] sm:$0xff] (%p17133_p8) }
0x1225   : > { %20868 = vst [vmem:[#allocation37_spill] sm:$0xff] %v20468_v49  ;;  %v20875_v49 = vld [vmem:[#allocation322_spill] sm:$0xff]  ;;  %v20876_v50 = vld [vmem:[#allocation323_spill] sm:$0xff]  ;;  %v20878_v54 = vld [vmem:[#allocation321_spill] sm:$0xff] }
0x1226   : > { %v20879_v5 = vld [vmem:[#allocation373_spill] sm:$0xff]  ;;  %v20883_v18 = vld [vmem:[#allocation371_spill] sm:$0xff]  ;;  %v20885_v61 = vld [vmem:[#allocation382_spill] sm:$0xff]  ;;  %20919 = vst [vmem:[#allocation45_spill] sm:$0xff] %v20918_v17 }
0x1227   : > { %20880 = vst [vmem:[#allocation38_spill] sm:$0xff] %v20879_v5  ;;  %20884 = vst [vmem:[#allocation40_spill] sm:$0xff] %v20883_v18  ;;  %v20887_v3 = vld [vmem:[#allocation369_spill] sm:$0xff]  ;;  %v20889_v38 = vld [vmem:[#allocation367_spill] sm:$0xff] }
0x1228   : > { %20886 = vst [vmem:[#allocation41_spill] sm:$0xff] %v20885_v61  ;;  %v20891_v36 = vld [vmem:[#allocation317_spill] sm:$0xff]  ;;  %v20892_v33 = vld [vmem:[#allocation318_spill] sm:$0xff]  ;;  %v20893_v32 = vld [vmem:[#allocation315_spill] sm:$0xff] }
0x1229   : > { %v20896_v60 = vld [vmem:[#allocation314_spill] sm:$0xff]  ;;  %v20897_v7 = vld [vmem:[#allocation311_spill] sm:$0xff]  ;;  %v20898_v52 = vld [vmem:[#allocation312_spill] sm:$0xff]  ;;  %20923 = vst [vmem:[#allocation47_spill] sm:$0xff] %v20922_v15 }
0x122a   : > { %v20900_v59 = vld [vmem:[#allocation379_spill] sm:$0xff]  ;;  %v20902_v51 = vld [vmem:[#allocation378_spill] sm:$0xff]  ;;  %v20903_v55 = vld [vmem:[#allocation361_spill] sm:$0xff]  ;;  %20933 = vst [vmem:[#allocation52_spill] sm:$0xff] %v20932_v9 }
0x122b   : > { %v20905_v11 = vld [vmem:[#allocation359_spill] sm:$0xff]  ;;  %v20906_v48 = vld [vmem:[#allocation376_spill] sm:$0xff]  ;;  %v20907_v10 = vld [vmem:[#allocation304_spill] sm:$0xff] }
0x122c   : > { %v20910_v26 = vld [vmem:[#allocation303_spill] sm:$0xff]  ;;  %v20912_v58 = vld [vmem:[#allocation301_spill] sm:$0xff]  ;;  %v20914_v1 = vld [vmem:[#allocation298_spill] sm:$0xff] }
0x122d   : > { %20913 = vst [vmem:[#allocation42_spill] sm:$0xff] %v20912_v58  ;;  %20915 = vst [vmem:[#allocation43_spill] sm:$0xff] %v20914_v1  ;;  %v20916_v62 = vld [vmem:[#allocation299_spill] sm:$0xff]  ;;  %v20920_v14 = vld [vmem:[#allocation375_spill] sm:$0xff] }
0x122e   : > { %20917 = vst [vmem:[#allocation44_spill] sm:$0xff] %v20916_v62  ;;  %20921 = vst [vmem:[#allocation46_spill] sm:$0xff] %v20920_v14  ;;  %v20924_v2 = vld [vmem:[#allocation374_spill] sm:$0xff]  ;;  %v20926_v6 = vld [vmem:[#allocation353_spill] sm:$0xff] }
0x122f   : > { %20925 = vst [vmem:[#allocation48_spill] sm:$0xff] %v20924_v2  ;;  %20927 = vst [vmem:[#allocation49_spill] sm:$0xff] %v20926_v6  ;;  %v20928_v0 = vld [vmem:[#allocation372_spill] sm:$0xff]  ;;  %v20930_v4 = vld [vmem:[#allocation351_spill] sm:$0xff] }
0x1230   : > { %20929 = vst [vmem:[#allocation50_spill] sm:$0xff] %v20928_v0  ;;  %20931 = vst [vmem:[#allocation51_spill] sm:$0xff] %v20930_v4  ;;  %v20934_v39 = vld [vmem:[#allocation288_spill] sm:$0xff]  ;;  %v20936_v57 = vld [vmem:[#allocation289_spill] sm:$0xff] }
0x1231   : > { %20935 = vst [vmem:[#allocation53_spill] sm:$0xff] %v20934_v39  ;;  %20937 = vst [vmem:[#allocation54_spill] sm:$0xff] %v20936_v57  ;;  %v20938_v5 = vld [vmem:[#allocation286_spill] sm:$0xff]  ;;  %v20940_v18 = vld [vmem:[#allocation287_spill] sm:$0xff] }
0x1232   : > { %20939 = vst [vmem:[#allocation55_spill] sm:$0xff] %v20938_v5  ;;  %20941 = vst [vmem:[#allocation56_spill] sm:$0xff] %v20940_v18  ;;  %v20942_v61 = vld [vmem:[#allocation284_spill] sm:$0xff]  ;;  %v20944_v58 = vld [vmem:[#allocation285_spill] sm:$0xff] }
0x1233   : > { %20943 = vst [vmem:[#allocation57_spill] sm:$0xff] %v20942_v61  ;;  %20945 = vst [vmem:[#allocation58_spill] sm:$0xff] %v20944_v58  ;;  %v20946_v1 = vld [vmem:[#allocation282_spill] sm:$0xff]  ;;  %v20948_v62 = vld [vmem:[#allocation283_spill] sm:$0xff] }
0x1234   : > { %20947 = vst [vmem:[#allocation59_spill] sm:$0xff] %v20946_v1  ;;  %20949 = vst [vmem:[#allocation60_spill] sm:$0xff] %v20948_v62  ;;  %v20950_v17 = vld [vmem:[#allocation349_spill] sm:$0xff]  ;;  %v20952_v14 = vld [vmem:[#allocation368_spill] sm:$0xff] }
0x1235   : > { %20951 = vst [vmem:[#allocation61_spill] sm:$0xff] %v20950_v17  ;;  %20953 = vst [vmem:[#allocation62_spill] sm:$0xff] %v20952_v14  ;;  %v20954_v15 = vld [vmem:[#allocation347_spill] sm:$0xff]  ;;  %v20956_v2 = vld [vmem:[#allocation366_spill] sm:$0xff] }
0x1236   : > { %20955 = vst [vmem:[#allocation63_spill] sm:$0xff] %v20954_v15  ;;  %20957 = vst [vmem:[#allocation64_spill] sm:$0xff] %v20956_v2  ;;  %v20958_v6 = vld [vmem:[#allocation345_spill] sm:$0xff]  ;;  %v20960_v0 = vld [vmem:[#allocation364_spill] sm:$0xff] }
0x1237   : > { %20959 = vst [vmem:[#allocation65_spill] sm:$0xff] %v20958_v6  ;;  %20961 = vst [vmem:[#allocation66_spill] sm:$0xff] %v20960_v0  ;;  %v20962_v4 = vld [vmem:[#allocation343_spill] sm:$0xff]  ;;  %v20964_v9 = vld [vmem:[#allocation362_spill] sm:$0xff] }
0x1238   : > { %20963 = vst [vmem:[#allocation67_spill] sm:$0xff] %v20962_v4  ;;  %20965 = vst [vmem:[#allocation68_spill] sm:$0xff] %v20964_v9  ;;  %v20966_v39 = vld [vmem:[#allocation272_spill] sm:$0xff]  ;;  %v20968_v57 = vld [vmem:[#allocation273_spill] sm:$0xff] }
0x1239   : > { %20967 = vst [vmem:[#allocation69_spill] sm:$0xff] %v20966_v39  ;;  %20969 = vst [vmem:[#allocation70_spill] sm:$0xff] %v20968_v57  ;;  %v20970_v5 = vld [vmem:[#allocation270_spill] sm:$0xff]  ;;  %v20972_v18 = vld [vmem:[#allocation271_spill] sm:$0xff] }
0x123a   : > { %20971 = vst [vmem:[#allocation71_spill] sm:$0xff] %v20970_v5  ;;  %20973 = vst [vmem:[#allocation72_spill] sm:$0xff] %v20972_v18  ;;  %v20974_v61 = vld [vmem:[#allocation268_spill] sm:$0xff]  ;;  %v20976_v58 = vld [vmem:[#allocation269_spill] sm:$0xff] }
0x123b   : > { %20975 = vst [vmem:[#allocation73_spill] sm:$0xff] %v20974_v61  ;;  %20977 = vst [vmem:[#allocation74_spill] sm:$0xff] %v20976_v58  ;;  %v20978_v1 = vld [vmem:[#allocation266_spill] sm:$0xff]  ;;  %v20980_v62 = vld [vmem:[#allocation267_spill] sm:$0xff] }
0x123c   : > { %20979 = vst [vmem:[#allocation75_spill] sm:$0xff] %v20978_v1  ;;  %20981 = vst [vmem:[#allocation76_spill] sm:$0xff] %v20980_v62  ;;  %v20982_v17 = vld [vmem:[#allocation341_spill] sm:$0xff]  ;;  %v20984_v14 = vld [vmem:[#allocation360_spill] sm:$0xff] }
0x123d   : > { %20983 = vst [vmem:[#allocation77_spill] sm:$0xff] %v20982_v17  ;;  %20985 = vst [vmem:[#allocation78_spill] sm:$0xff] %v20984_v14  ;;  %v20986_v15 = vld [vmem:[#allocation339_spill] sm:$0xff]  ;;  %v20988_v2 = vld [vmem:[#allocation358_spill] sm:$0xff] }
0x123e   : > { %20987 = vst [vmem:[#allocation79_spill] sm:$0xff] %v20986_v15  ;;  %20989 = vst [vmem:[#allocation80_spill] sm:$0xff] %v20988_v2  ;;  %v20990_v6 = vld [vmem:[#allocation338_spill] sm:$0xff]  ;;  %v20992_v0 = vld [vmem:[#allocation356_spill] sm:$0xff] }
0x123f   : > { %20991 = vst [vmem:[#allocation81_spill] sm:$0xff] %v20990_v6  ;;  %20993 = vst [vmem:[#allocation82_spill] sm:$0xff] %v20992_v0  ;;  %v20994_v4 = vld [vmem:[#allocation337_spill] sm:$0xff]  ;;  %v20996_v9 = vld [vmem:[#allocation354_spill] sm:$0xff] }
0x1240   : > { %20995 = vst [vmem:[#allocation83_spill] sm:$0xff] %v20994_v4  ;;  %20997 = vst [vmem:[#allocation84_spill] sm:$0xff] %v20996_v9  ;;  %v20998_v39 = vld [vmem:[#allocation257_spill] sm:$0xff]  ;;  %v21000_v57 = vld [vmem:[#allocation258_spill] sm:$0xff] }
0x1241   : > { %20999 = vst [vmem:[#allocation85_spill] sm:$0xff] %v20998_v39  ;;  %21001 = vst [vmem:[#allocation86_spill] sm:$0xff] %v21000_v57  ;;  %v21002_v5 = vld [vmem:[#allocation255_spill] sm:$0xff]  ;;  %v21004_v18 = vld [vmem:[#allocation256_spill] sm:$0xff] }
0x1242   : > { %21003 = vst [vmem:[#allocation87_spill] sm:$0xff] %v21002_v5  ;;  %21005 = vst [vmem:[#allocation88_spill] sm:$0xff] %v21004_v18  ;;  %v21006_v61 = vld [vmem:[#allocation253_spill] sm:$0xff]  ;;  %v21008_v58 = vld [vmem:[#allocation254_spill] sm:$0xff] }
0x1243   : > { %21007 = vst [vmem:[#allocation89_spill] sm:$0xff] %v21006_v61  ;;  %21009 = vst [vmem:[#allocation90_spill] sm:$0xff] %v21008_v58  ;;  %v21010_v1 = vld [vmem:[#allocation251_spill] sm:$0xff]  ;;  %v21012_v62 = vld [vmem:[#allocation252_spill] sm:$0xff] }
0x1244   : > { %21011 = vst [vmem:[#allocation91_spill] sm:$0xff] %v21010_v1  ;;  %21013 = vst [vmem:[#allocation92_spill] sm:$0xff] %v21012_v62  ;;  %v21014_v17 = vld [vmem:[#allocation336_spill] sm:$0xff]  ;;  %v21018_v15 = vld [vmem:[#allocation335_spill] sm:$0xff] }
0x1245   : > { %21015 = vst [vmem:[#allocation93_spill] sm:$0xff] %v21014_v17  ;;  %v21016_v14 = vld [vmem:[#allocation352_spill] sm:$0xff]  ;;  %21019 = vst [vmem:[#allocation95_spill] sm:$0xff] %v21018_v15  ;;  %v21020_v2 = vld [vmem:[#allocation350_spill] sm:$0xff] }
0x1246   : > { %21017 = vst [vmem:[#allocation94_spill] sm:$0xff] %v21016_v14  ;;  %21021 = vst [vmem:[#allocation96_spill] sm:$0xff] %v21020_v2  ;;  %v21022_v6 = vld [vmem:[#allocation334_spill] sm:$0xff]  ;;  %v21024_v0 = vld [vmem:[#allocation348_spill] sm:$0xff] }
0x1247   : > { %21023 = vst [vmem:[#allocation97_spill] sm:$0xff] %v21022_v6  ;;  %21025 = vst [vmem:[#allocation98_spill] sm:$0xff] %v21024_v0  ;;  %v21026_v4 = vld [vmem:[#allocation333_spill] sm:$0xff]  ;;  %v21028_v9 = vld [vmem:[#allocation346_spill] sm:$0xff] }
0x1248   : > { %21027 = vst [vmem:[#allocation99_spill] sm:$0xff] %v21026_v4  ;;  %21029 = vst [vmem:[#allocation100_spill] sm:$0xff] %v21028_v9  ;;  %v21030_v39 = vld [vmem:[#allocation239_spill] sm:$0xff]  ;;  %v21032_v57 = vld [vmem:[#allocation240_spill] sm:$0xff] }
0x1249   : > { %21031 = vst [vmem:[#allocation101_spill] sm:$0xff] %v21030_v39  ;;  %21033 = vst [vmem:[#allocation102_spill] sm:$0xff] %v21032_v57  ;;  %v21034_v5 = vld [vmem:[#allocation236_spill] sm:$0xff]  ;;  %v21036_v18 = vld [vmem:[#allocation237_spill] sm:$0xff] }
0x124a   : > { %21035 = vst [vmem:[#allocation103_spill] sm:$0xff] %v21034_v5  ;;  %21037 = vst [vmem:[#allocation104_spill] sm:$0xff] %v21036_v18  ;;  %v21038_v61 = vld [vmem:[#allocation234_spill] sm:$0xff]  ;;  %v21040_v14 = vld [vmem:[#allocation235_spill] sm:$0xff] }
0x124b   : > { %21039 = vst [vmem:[#allocation105_spill] sm:$0xff] %v21038_v61  ;;  %v21041_v17 = vld [vmem:[#allocation232_spill] sm:$0xff]  ;;  %v21042_v9 = vld [vmem:[#allocation233_spill] sm:$0xff]  ;;  %v21046_v6 = vld [vmem:[#allocation342_spill] sm:$0xff] }
0x124c   : > { %v21043_v18 = vld [vmem:[#allocation332_spill] sm:$0xff]  ;;  %v21045_v2 = vld [vmem:[#allocation331_spill] sm:$0xff]  ;;  %v21047_v15 = vld [vmem:[#allocation330_spill] sm:$0xff] }
0x124d   : > { %v21044_v4 = vld [vmem:[#allocation344_spill] sm:$0xff]  ;;  %v21048_v1 = vld [vmem:[#allocation329_spill] sm:$0xff] }
0x124e   : > { %v21049_v0 = vld [vmem:[#allocation340_spill] sm:$0xff] }
0x124f   : > { %v21050_v5 = vld [vmem:[#allocation328_spill] sm:$0xff] }
0x1250 PF: > { %21120 = vst [vmem:[#allocation2_spill] sm:$0xff] %v12707_v12  ;;  %21121 = vst [vmem:[#allocation3_spill] sm:$0xff] %v12711_v16  ;;  %v21132_v58 = vld [vmem:[#allocation37_spill] sm:$0xff]  ;;  %v21171_v12 = vld [vmem:[#allocation43_spill] sm:$0xff]  ;;  %s13232_s18 = smov 8   ;;  %s13233_s25 = smov 16   ;;  %v13215_v5 = vphi %v13749_v5, %v21050_v5   ;;  %v13211_v0 = vphi %v13747_v0, %v21049_v0   ;;  %v13207_v1 = vphi %v13745_v1, %v21048_v1   ;;  %v13203_v15 = vphi %v13743_v15, %v21047_v15   ;;  %v13199_v6 = vphi %v13741_v6, %v21046_v6   ;;  %v13195_v2 = vphi %v13739_v2, %v21045_v2   ;;  %v13191_v4 = vphi %v13737_v4, %v21044_v4   ;;  %v13187_v18 = vphi %v13735_v18, %v21043_v18   ;;  %v13183_v9 = vphi %v13733_v9, %v21042_v9   ;;  %v13179_v17 = vphi %v13731_v17, %v21041_v17   ;;  %v13175_v14 = vphi %v13729_v14, %v21040_v14   ;;  %v12915_v8 = vphi %v13599_v8, %v20911_v8   ;;  %v12911_v26 = vphi %v13597_v26, %v20910_v26   ;;  %v12907_v13 = vphi %v13595_v13, %v20909_v13   ;;  %v12903_v25 = vphi %v13593_v25, %v20908_v25   ;;  %v12899_v10 = vphi %v13591_v10, %v20907_v10   ;;  %v12895_v48 = vphi %v13589_v48, %v20906_v48   ;;  %v12891_v11 = vphi %v13587_v11, %v20905_v11   ;;  %v12887_v47 = vphi %v13585_v47, %v20904_v47   ;;  %v12883_v55 = vphi %v13583_v55, %v20903_v55   ;;  %v12879_v51 = vphi %v13581_v51, %v20902_v51   ;;  %v12875_v63 = vphi %v13579_v63, %v20901_v63   ;;  %v12871_v59 = vphi %v13577_v59, %v20900_v59   ;;  %v12867_v56 = vphi %v13575_v56, %v20899_v56   ;;  %v12863_v52 = vphi %v13573_v52, %v20898_v52   ;;  %v12859_v7 = vphi %v13571_v7, %v20897_v7   ;;  %v12855_v60 = vphi %v13569_v60, %v20896_v60   ;;  %v12851_v31 = vphi %v13567_v31, %v20895_v31   ;;  %v12847_v20 = vphi %v13565_v20, %v20894_v20   ;;  %v12843_v32 = vphi %v13563_v32, %v20893_v32   ;;  %v12839_v33 = vphi %v13561_v33, %v20892_v33   ;;  %v12835_v36 = vphi %v13559_v36, %v20891_v36   ;;  %v12831_v34 = vphi %v13557_v34, %v20890_v34   ;;  %v12827_v38 = vphi %v13555_v38, %v20889_v38   ;;  %v12823_v37 = vphi %v13553_v37, %v20888_v37   ;;  %v12819_v3 = vphi %v13551_v3, %v20887_v3   ;;  %v12799_v54 = vphi %v13541_v54, %v20878_v54   ;;  %v12795_v53 = vphi %v13539_v53, %v20877_v53   ;;  %v12791_v50 = vphi %v13537_v50, %v20876_v50   ;;  %v12787_v49 = vphi %v13535_v49, %v20875_v49   ;;  %v12783_v46 = vphi %v13533_v46, %v20874_v46   ;;  %v12779_v45 = vphi %v13531_v45, %v20873_v45   ;;  %v12775_v44 = vphi %v13529_v44, %v20872_v44   ;;  %v12771_v43 = vphi %v13527_v43, %v20871_v43   ;;  %v12767_v42 = vphi %v13525_v42, %v20870_v42   ;;  %v12763_v41 = vphi %v13523_v41, %v20464_v41   ;;  %v12759_v40 = vphi %v13521_v40, %v20869_v40   ;;  %v12751_v35 = vphi %v13517_v35, %v20867_v35   ;;  %v12747_v30 = vphi %v13515_v30, %v20866_v30   ;;  %v12743_v29 = vphi %v13513_v29, %v17098_v29   ;;  %v12739_v28 = vphi %v13511_v28, %v20865_v28   ;;  %v12735_v27 = vphi %v13509_v27, %v20864_v27   ;;  %v12731_v24 = vphi %v13507_v24, %v20863_v24   ;;  %v12727_v23 = vphi %v13505_v23, %v20862_v23   ;;  %v12723_v22 = vphi %v13503_v22, %v20861_v22   ;;  %v12719_v21 = vphi %v13501_v21, %v20860_v21   ;;  %v12715_v19 = vphi %v13499_v19, %v20859_v19   ;;  %v12711_v16 = vphi %v13497_v16, %v20858_v16   ;;  %v12707_v12 = vphi %v13495_v12, %v20857_v12  }
0x1251   : > { %21122 = vst [vmem:[#allocation4_spill] sm:$0xff] %v12715_v19  ;;  %21123 = vst [vmem:[#allocation5_spill] sm:$0xff] %v12719_v21  ;;  %v21173_v16 = vld [vmem:[#allocation45_spill] sm:$0xff]  ;;  %v21205_v19 = vld [vmem:[#allocation66_spill] sm:$0xff]  ;;  %s13234_s13 = smov 24   ;;  %s13235_s14 = smov 32  }
0x1252   : > { %21124 = vst [vmem:[#allocation6_spill] sm:$0xff] %v12723_v22  ;;  %21125 = vst [vmem:[#allocation7_spill] sm:$0xff] %v12727_v23  ;;  %v21169_v22 = vld [vmem:[#allocation42_spill] sm:$0xff]  ;;  %v21172_v23 = vld [vmem:[#allocation44_spill] sm:$0xff]  ;;  %s13236_s19 = smov 40   ;;  %s13237_s6 = smov 48  }
0x1253   : > { %21126 = vst [vmem:[#allocation8_spill] sm:$0xff] %v12731_v24  ;;  %21127 = vst [vmem:[#allocation9_spill] sm:$0xff] %v12735_v27  ;;  %v21145_v62 = vld [vmem:[#allocation38_spill] sm:$0xff]  ;;  %v21147_v39 = vld [vmem:[#allocation39_spill] sm:$0xff]  ;;  %s13238_s28 = smov 56   ;;  %vm4918_vm11 = vcmask 64512  }
0x1254   : > { %21128 = vst [vmem:[#allocation10_spill] sm:$0xff] %v12739_v28  ;;  %21129 = vst [vmem:[#allocation11_spill] sm:$0xff] %v12743_v29  ;;  %v21183_v28 = vld [vmem:[#allocation51_spill] sm:$0xff]  ;;  %v21202_v24 = vld [vmem:[#allocation64_spill] sm:$0xff]  ;;  %vm4927_vm12 = vcmask 130048   ;;  %vm4936_vm13 = vcmask 195584  }
0x1255   : > { %21130 = vst [vmem:[#allocation12_spill] sm:$0xff] %v12747_v30  ;;  %21131 = vst [vmem:[#allocation13_spill] sm:$0xff] %v12751_v35  ;;  %v21189_v29 = vld [vmem:[#allocation55_spill] sm:$0xff]  ;;  %v21220_v27 = vld [vmem:[#allocation76_spill] sm:$0xff]  ;;  %vm4945_vm14 = vcmask 261120   ;;  %vm4954_vm15 = vcmask 326656  }
0x1256   : > { %21133 = vst [vmem:[#allocation14_spill] sm:$0xff] %v21132_v58  ;;  %21134 = vst [vmem:[#allocation15_spill] sm:$0xff] %v12759_v40  ;;  %v21149_v57 = vld [vmem:[#allocation40_spill] sm:$0xff]  ;;  %v21151_v61 = vld [vmem:[#allocation41_spill] sm:$0xff]  ;;  %vm4963_vm1 = vcmask 392192   ;;  %vm4972_vm2 = vcmask 457728  }
0x1257   : > { %21135 = vst [vmem:[#allocation16_spill] sm:$0xff] %v12763_v41  ;;  %21136 = vst [vmem:[#allocation17_spill] sm:$0xff] %v12767_v42  ;;  %v21179_v58 = vld [vmem:[#allocation49_spill] sm:$0xff]  ;;  %v21223_v21 = vld [vmem:[#allocation78_spill] sm:$0xff] }
0x1258   : > { %21137 = vst [vmem:[#allocation18_spill] sm:$0xff] %v12771_v43  ;;  %21138 = vst [vmem:[#allocation19_spill] sm:$0xff] %v12775_v44  ;;  %v21177_v43 = vld [vmem:[#allocation47_spill] sm:$0xff]  ;;  %v21181_v44 = vld [vmem:[#allocation50_spill] sm:$0xff] }
0x1259   : > { %21139 = vst [vmem:[#allocation20_spill] sm:$0xff] %v12779_v45  ;;  %21140 = vst [vmem:[#allocation21_spill] sm:$0xff] %v12783_v46  ;;  %v21185_v40 = vld [vmem:[#allocation53_spill] sm:$0xff]  ;;  %v21224_v30 = vld [vmem:[#allocation79_spill] sm:$0xff] }
0x125a   : > { %21141 = vst [vmem:[#allocation22_spill] sm:$0xff] %v12787_v49  ;;  %21142 = vst [vmem:[#allocation23_spill] sm:$0xff] %v12791_v50  ;;  %v21175_v49 = vld [vmem:[#allocation46_spill] sm:$0xff]  ;;  %v21178_v50 = vld [vmem:[#allocation48_spill] sm:$0xff] }
0x125b   : > { %21143 = vst [vmem:[#allocation24_spill] sm:$0xff] %v12795_v53  ;;  %21144 = vst [vmem:[#allocation25_spill] sm:$0xff] %v12799_v54  ;;  %v21221_v41 = vld [vmem:[#allocation77_spill] sm:$0xff]  ;;  %v21225_v53 = vld [vmem:[#allocation80_spill] sm:$0xff] }
0x125c   : > { %21146 = vst [vmem:[#allocation26_spill] sm:$0xff] %v21145_v62  ;;  %21148 = vst [vmem:[#allocation27_spill] sm:$0xff] %v21147_v39  ;;  %v21195_v62 = vld [vmem:[#allocation59_spill] sm:$0xff]  ;;  %v21228_v45 = vld [vmem:[#allocation82_spill] sm:$0xff] }
0x125d   : > { %21150 = vst [vmem:[#allocation28_spill] sm:$0xff] %v21149_v57  ;;  %21152 = vst [vmem:[#allocation29_spill] sm:$0xff] %v12819_v3  ;;  %v21191_v3 = vld [vmem:[#allocation57_spill] sm:$0xff]  ;;  %v21201_v39 = vld [vmem:[#allocation63_spill] sm:$0xff] }
0x125e   : > { %21153 = vst [vmem:[#allocation30_spill] sm:$0xff] %v12823_v37  ;;  %21154 = vst [vmem:[#allocation31_spill] sm:$0xff] %v12827_v38  ;;  %v21197_v37 = vld [vmem:[#allocation61_spill] sm:$0xff]  ;;  %v21238_v35 = vld [vmem:[#allocation91_spill] sm:$0xff] }
0x125f   : > { %21155 = vst [vmem:[#allocation32_spill] sm:$0xff] %v12831_v34  ;;  %21156 = vst [vmem:[#allocation33_spill] sm:$0xff] %v12835_v36  ;;  %v21187_v36 = vld [vmem:[#allocation54_spill] sm:$0xff]  ;;  %v21235_v42 = vld [vmem:[#allocation89_spill] sm:$0xff] }
0x1260   : > { %21157 = vst [vmem:[#allocation34_spill] sm:$0xff] %v12839_v33  ;;  %21158 = vst [vmem:[#allocation35_spill] sm:$0xff] %v12843_v32  ;;  %v21193_v33 = vld [vmem:[#allocation58_spill] sm:$0xff]  ;;  %v21239_v54 = vld [vmem:[#allocation92_spill] sm:$0xff] }
0x1261   : > { %21159 = vst [vmem:[#allocation36_spill] sm:$0xff] %v12851_v31  ;;  %21160 = vst [vmem:[#allocation37_spill] sm:$0xff] %v12855_v60  ;;  %v21184_v31 = vld [vmem:[#allocation52_spill] sm:$0xff]  ;;  %v21240_v38 = vld [vmem:[#allocation93_spill] sm:$0xff] }
0x1262   : > { %21161 = vst [vmem:[#allocation38_spill] sm:$0xff] %v12859_v7  ;;  %21162 = vst [vmem:[#allocation39_spill] sm:$0xff] %v12867_v56  ;;  %v21190_v60 = vld [vmem:[#allocation56_spill] sm:$0xff]  ;;  %v21207_v56 = vld [vmem:[#allocation67_spill] sm:$0xff] }
0x1263   : > { %21163 = vst [vmem:[#allocation40_spill] sm:$0xff] %v12871_v59  ;;  %21164 = vst [vmem:[#allocation41_spill] sm:$0xff] %v12883_v55  ;;  %v21203_v55 = vld [vmem:[#allocation65_spill] sm:$0xff]  ;;  %v21213_v59 = vld [vmem:[#allocation71_spill] sm:$0xff] }
0x1264   : > { %21165 = vst [vmem:[#allocation385_spill] sm:$0xff] %v12887_v47  ;;  %21166 = vst [vmem:[#allocation386_spill] sm:$0xff] %v12899_v10  ;;  %v21199_v10 = vld [vmem:[#allocation62_spill] sm:$0xff]  ;;  %v21209_v47 = vld [vmem:[#allocation69_spill] sm:$0xff] }
0x1265   : > { %21167 = vst [vmem:[#allocation387_spill] sm:$0xff] %v12903_v25  ;;  %21168 = vst [vmem:[#allocation388_spill] sm:$0xff] %v12915_v8  ;;  %v21196_v8 = vld [vmem:[#allocation60_spill] sm:$0xff]  ;;  %v21211_v25 = vld [vmem:[#allocation70_spill] sm:$0xff] }
0x1266   : > { %21170 = vst [vmem:[#allocation42_spill] sm:$0xff] %v21169_v22  ;;  %21174 = vst [vmem:[#allocation43_spill] sm:$0xff] %v21173_v16  ;;  %v21208_v22 = vld [vmem:[#allocation68_spill] sm:$0xff]  ;;  %v21219_v16 = vld [vmem:[#allocation75_spill] sm:$0xff] }
0x1267   : > { %21176 = vst [vmem:[#allocation44_spill] sm:$0xff] %v21175_v49  ;;  %21180 = vst [vmem:[#allocation45_spill] sm:$0xff] %v21179_v58  ;;  %v21215_v58 = vld [vmem:[#allocation73_spill] sm:$0xff]  ;;  %v21229_v49 = vld [vmem:[#allocation83_spill] sm:$0xff] }
0x1268   : > { %21182 = vst [vmem:[#allocation46_spill] sm:$0xff] %v21181_v44  ;;  %21186 = vst [vmem:[#allocation47_spill] sm:$0xff] %v21185_v40  ;;  %v21217_v40 = vld [vmem:[#allocation74_spill] sm:$0xff]  ;;  %v21226_v44 = vld [vmem:[#allocation81_spill] sm:$0xff] }
0x1269   : > { %21188 = vst [vmem:[#allocation48_spill] sm:$0xff] %v21187_v36  ;;  %21192 = vst [vmem:[#allocation49_spill] sm:$0xff] %v21191_v3  ;;  %v21214_v3 = vld [vmem:[#allocation72_spill] sm:$0xff]  ;;  %v21232_v36 = vld [vmem:[#allocation86_spill] sm:$0xff] }
0x126a   : > { %21194 = vst [vmem:[#allocation50_spill] sm:$0xff] %v21193_v33  ;;  %21198 = vst [vmem:[#allocation51_spill] sm:$0xff] %v21197_v37  ;;  %v21230_v33 = vld [vmem:[#allocation84_spill] sm:$0xff]  ;;  %v21233_v37 = vld [vmem:[#allocation87_spill] sm:$0xff] }
0x126b   : > { %21200 = vst [vmem:[#allocation52_spill] sm:$0xff] %v21199_v10  ;;  %21204 = vst [vmem:[#allocation53_spill] sm:$0xff] %v21203_v55  ;;  %v21231_v55 = vld [vmem:[#allocation85_spill] sm:$0xff]  ;;  %v21241_v46 = vld [vmem:[#allocation94_spill] sm:$0xff] }
0x126c   : > { %21206 = vst [vmem:[#allocation54_spill] sm:$0xff] %v21205_v19  ;;  %21210 = vst [vmem:[#allocation55_spill] sm:$0xff] %v21209_v47  ;;  %v21237_v47 = vld [vmem:[#allocation90_spill] sm:$0xff]  ;;  %v21242_v57 = vld [vmem:[#allocation95_spill] sm:$0xff] }
0x126d   : > { %21212 = vst [vmem:[#allocation56_spill] sm:$0xff] %v21211_v25  ;;  %21216 = vst [vmem:[#allocation57_spill] sm:$0xff] %v21215_v58  ;;  %v21234_v58 = vld [vmem:[#allocation88_spill] sm:$0xff]  ;;  %v21244_v19 = vld [vmem:[#allocation97_spill] sm:$0xff] }
0x126e   : > { %21218 = vst [vmem:[#allocation58_spill] sm:$0xff] %v21217_v40  ;;  %21222 = vst [vmem:[#allocation59_spill] sm:$0xff] %v21221_v41  ;;  %v21243_v7 = vld [vmem:[#allocation96_spill] sm:$0xff]  ;;  %v21245_v32 = vld [vmem:[#allocation98_spill] sm:$0xff] }
0x126f   : > { %21227 = vst [vmem:[#allocation60_spill] sm:$0xff] %v21226_v44  ;;  %21236 = vst [vmem:[#allocation61_spill] sm:$0xff] %v21235_v42  ;;  %v21246_v10 = vld [vmem:[#allocation99_spill] sm:$0xff]  ;;  %v21247_v40 = vld [vmem:[#allocation100_spill] sm:$0xff] }
0x1270   : > { %v21248_v44 = vld [vmem:[#allocation101_spill] sm:$0xff]  ;;  %v21250_v25 = vld [vmem:[#allocation102_spill] sm:$0xff]  ;;  %v21252_v41 = vld [vmem:[#allocation103_spill] sm:$0xff]  ;;  %21256 = vst [vmem:[#allocation65_spill] sm:$0xff] %v13175_v14  ;;  %10481 = vrcp.f32 %v21246_v10 }
0x1271   : > { %21249 = vst [vmem:[#allocation62_spill] sm:$0xff] %v21248_v44  ;;  %21251 = vst [vmem:[#allocation63_spill] sm:$0xff] %v21250_v25  ;;  %v21253_v42 = vld [vmem:[#allocation104_spill] sm:$0xff]  ;;  %v21254_v34 = vld [vmem:[#allocation105_spill] sm:$0xff]  ;;  %10483 = vrcp.f32 %v21247_v40 }
0x1272   : > { %21255 = vst [vmem:[#allocation64_spill] sm:$0xff] %v21254_v34  ;;  %21257 = vst [vmem:[#allocation66_spill] sm:$0xff] %v13187_v18  ;;  %10485 = vrcp.f32 %v21242_v57 }
0x1273   : > { %21258 = vst [vmem:[#allocation67_spill] sm:$0xff] %v13203_v15  ;;  %21259 = vst [vmem:[#allocation68_spill] sm:$0xff] %v13207_v1  ;;  %10487 = vrcp.f32 %v21243_v7 }
0x1274   : > { %10489 = vrcp.f32 %v21225_v53 }
0x1275   : > { %10491 = vrcp.f32 %v21230_v33 }
0x1276   : > { %10493 = vrcp.f32 %v21224_v30 }
0x1277   : > { %10495 = vrcp.f32 %v21229_v49 }
0x1278   : > { %10497 = vrcp.f32 %v21202_v24 }
0x1279   : > { %10499 = vrcp.f32 %v21208_v22 }
0x127a   : > { %v10482_v34 = vpop.eup %10481  ;;  %10501 = vrcp.f32 %v21201_v39  ;;  %v21268_v39 = vld [vmem:[#allocation54_spill] sm:$0xff] }
0x127b   : > { %v10484_v44 = vpop.eup %10483  ;;  %v4591_v14 = vmul.f32 %v21238_v35, %v10482_v34  ;;  %10503 = vrcp.f32 %v21207_v56 }
0x127c   : > { %v10486_v25 = vpop.eup %10485  ;;  %v4590_v15 = vmul.f32 %v21239_v54, %v10484_v44  ;;  %10505 = vrcp.f32 %v21178_v50 }
0x127d   : > { %v10488_v18 = vpop.eup %10487  ;;  %4704 = vrot.lane.b32.xlu1 %v4591_v14, %s13232_s18  ;;  %v4595_v1 = vmul.f32 %v21233_v37, %v10486_v25  ;;  %10507 = vrcp.f32 %v21184_v31 }
0x127e   : > { %v10490_v40 = vpop.eup %10489  ;;  %4702 = vrot.lane.b32.xlu0 %v4590_v15, %s13232_s18  ;;  %v4594_v53 = vmul.f32 %v21234_v58, %v10488_v18  ;;  %10509 = vrcp.f32 %v21241_v46  ;;  %v21266_v18 = vld [vmem:[#allocation52_spill] sm:$0xff]  ;;  %v21267_v58 = vld [vmem:[#allocation35_spill] sm:$0xff] }
0x127f   : > { %v10492_v30 = vpop.eup %10491  ;;  %v4610_v49 = vmul.f32 %v21214_v3, %v10490_v40  ;;  %10511 = vrcp.f32 %v21245_v32 }
0x1280   : > { %v10494_v54 = vpop.eup %10493  ;;  %v4606_v44 = vmul.f32 %v21220_v27, %v10492_v30  ;;  %10513 = vrcp.f32 %v21177_v43  ;;  %v21270_v30 = vld [vmem:[#allocation28_spill] sm:$0xff] }
0x1281   : > { %4712 = vrot.lane.b32.xlu1 %v4595_v1, %s13232_s18  ;;  %v10496_v34 = vpop.eup %10495  ;;  %v4611_v22 = vmul.f32 %v21213_v59, %v10494_v54  ;;  %10515 = vrcp.f32 %v21183_v28 }
0x1282   : > { %4710 = vrot.lane.b32.xlu0 %v4594_v53, %s13232_s18  ;;  %v10498_v37 = vpop.eup %10497  ;;  %v4607_v3 = vmul.f32 %v21219_v16, %v10496_v34  ;;  %10517 = vrcp.f32 %v12879_v51 }
0x1283   : > { %v10500_v56 = vpop.eup %10499  ;;  %v4626_v7 = vmul.f32 %v21190_v60, %v10498_v37  ;;  %10519 = vrcp.f32 %v12895_v48 }
0x1284   : > { %v10502_v10 = vpop.eup %10501  ;;  %v4622_v24 = vmul.f32 %v21196_v8, %v10500_v56  ;;  %10521 = vrcp.f32 %v21240_v38  ;;  %v4981_v56 = vld [vmem:[%s18811_s3] sm:$0xff] }
0x1285   : > { %4742 = vrot.lane.b32.xlu1 %v4610_v49, %s13233_s25  ;;  %v10504_v59 = vpop.eup %10503  ;;  %v4627_v16 = vmul.f32 %v21189_v29, %v10502_v10  ;;  %10523 = vrcp.f32 %v21244_v19  ;;  %v21271_v49 = vld [vmem:[#allocation21_spill] sm:$0xff] }
0x1286   : > { %4734 = vrot.lane.b32.xlu0 %v4606_v44, %s13233_s25  ;;  %v10506_v46 = vpop.eup %10505  ;;  %v4623_v31 = vmul.f32 %v21195_v62, %v10504_v59  ;;  %10525 = vrcp.f32 %v21223_v21  ;;  %v21272_v44 = vld [vmem:[#allocation31_spill] sm:$0xff]  ;;  %v21274_v10 = vld [vmem:[#allocation13_spill] sm:$0xff] }
0x1287   : > { %v10508_v32 = vpop.eup %10507  ;;  %v4642_v8 = vmul.f32 %v12911_v26, %v10506_v46  ;;  %10527 = vrcp.f32 %v21228_v45  ;;  %v21261_v45 = vld [vmem:[#allocation61_spill] sm:$0xff]  ;;  %v21275_v59 = vld [vmem:[#allocation55_spill] sm:$0xff] }
0x1288   : > { %v10510_v43 = vpop.eup %10509  ;;  %v4638_v29 = vmul.f32 %v21172_v23, %v10508_v32  ;;  %10529 = vrcp.f32 %v12875_v63  ;;  %v21260_v63 = vld [vmem:[#allocation32_spill] sm:$0xff]  ;;  %v21276_v46 = vld [vmem:[#allocation17_spill] sm:$0xff] }
0x1289   : > { %4744 = vrot.lane.b32.xlu1 %v4611_v22, %s13233_s25  ;;  %v10512_v28 = vpop.eup %10511  ;;  %v4596_v33 = vmul.f32 %v21232_v36, %v10510_v43  ;;  %10531 = vrcp.f32 %v12891_v11  ;;  %v21262_v36 = vld [vmem:[#allocation59_spill] sm:$0xff]  ;;  %v21273_v22 = vld [vmem:[#allocation25_spill] sm:$0xff] }
0x128a   : > { %4736 = vrot.lane.b32.xlu0 %v4607_v3, %s13233_s25  ;;  %v10514_v25 = vpop.eup %10513  ;;  %v4592_v48 = vmul.f32 %v21237_v47, %v10512_v28  ;;  %10533 = vrcp.f32 %v21151_v61  ;;  %v21264_v47 = vld [vmem:[#allocation60_spill] sm:$0xff]  ;;  %v21269_v61 = vld [vmem:[#allocation38_spill] sm:$0xff]  ;;  %v21277_v32 = vld [vmem:[#allocation57_spill] sm:$0xff] }
0x128b   : > { %v10516_v26 = vpop.eup %10515  ;;  %v4643_v23 = vmul.f32 %v12907_v13, %v10514_v25  ;;  %10535 = vrcp.f32 %v21260_v63  ;;  %v4984_v28 = vld [vmem:[%s18811_s3 + $0x18] sm:$0xff]  ;;  %v21283_v63 = vld [vmem:[#allocation20_spill] sm:$0xff] }
0x128c   : > { %v10518_v38 = vpop.eup %10517  ;;  %v4639_v60 = vmul.f32 %v21171_v12, %v10516_v26  ;;  %10537 = vrcp.f32 %v21262_v36 }
0x128d   : > { %4774 = vrot.lane.b32.xlu1 %v4626_v7, %s13234_s13  ;;  %v10520_v19 = vpop.eup %10519  ;;  %v4658_v51 = vmul.f32 %v12847_v20, %v10518_v38  ;;  %10539 = vrcp.f32 %v21264_v47  ;;  %v4982_v7 = vld [vmem:[%s18811_s3 + $0x8] sm:$0xff]  ;;  %v4988_v47 = vld [vmem:[%s18811_s3 + $0x38] sm:$0xff] }
0x128e   : > { %4766 = vrot.lane.b32.xlu0 %v4622_v24, %s13234_s13  ;;  %v10522_v21 = vpop.eup %10521  ;;  %v4654_v13 = vmul.f32 %v12863_v52, %v10520_v19  ;;  %v21263_v52 = vld [vmem:[#allocation56_spill] sm:$0xff]  ;;  %10541 = vrcp.f32 %v21266_v18  ;;  %v7223_v24 = vpack.c.bf16 %v4982_v7, %v4981_v56  ;;  %v21296_v56 = vld [vmem:[#allocation385_spill] sm:$0xff] }
0x128f   : > { %v10524_v27 = vpop.eup %10523  ;;  %v4597_v12 = vmul.f32 %v21231_v55, %v10522_v21  ;;  %v21265_v55 = vld [vmem:[#allocation58_spill] sm:$0xff]  ;;  %10543 = vrcp.f32 %v21268_v39  ;;  %v21288_v18 = vld [vmem:[#allocation16_spill] sm:$0xff] }
0x1290   : > { %v10526_v35 = vpop.eup %10525  ;;  %v4593_v11 = vmul.f32 %v21261_v45, %v10524_v27  ;;  %10545 = vrcp.f32 %v21270_v30  ;;  %7224 = vmatprep.subr.bf16.mxu0 %v7223_v24  ;;  %7247 = vmatprep.subr.bf16.mxu1 %v7223_v24  ;;  %v4985_v21 = vld [vmem:[%s18811_s3 + $0x20] sm:$0xff]  ;;  %v21282_v27 = vld [vmem:[#allocation44_spill] sm:$0xff]  ;;  %v21292_v30 = vld [vmem:[#allocation45_spill] sm:$0xff] }
0x1291   : > { %4776 = vrot.lane.b32.xlu1 %v4627_v16, %s13234_s13  ;;  %v10528_v50 = vpop.eup %10527  ;;  %v4612_v20 = vmul.f32 %v21263_v52, %v10526_v35  ;;  %10547 = vrcp.f32 %v21272_v44  ;;  %7226 = vmatpush3.bf16.msra.mxu0 %v7223_v24  ;;  %v21284_v45 = vld [vmem:[#allocation46_spill] sm:$0xff] }
0x1292   : > { %4768 = vrot.lane.b32.xlu0 %v4623_v31, %s13234_s13  ;;  %v10530_v1 = vpop.eup %10529  ;;  %v4608_v14 = vmul.f32 %v21265_v55, %v10528_v50  ;;  %10549 = vrcp.f32 %v21274_v10  ;;  %7251 = vmatpush3.bf16.msra.mxu1 %v7223_v24  ;;  %v21285_v50 = vld [vmem:[#allocation24_spill] sm:$0xff]  ;;  %v21297_v10 = vld [vmem:[#allocation42_spill] sm:$0xff] }
0x1293   : > { %v10532_v15 = vpop.eup %10531  ;;  %v4659_v62 = vmul.f32 %v21267_v58, %v10530_v1  ;;  %10551 = vrcp.f32 %v21276_v46  ;;  %v21286_v1 = vld [vmem:[#allocation12_spill] sm:$0xff] }
0x1294   : > { %v10534_v57 = vpop.eup %10533  ;;  %v4655_v40 = vmul.f32 %v21269_v61, %v10532_v15  ;;  %v21290_v61 = vld [vmem:[#allocation43_spill] sm:$0xff]  ;;  %v21299_v46 = vld [vmem:[#allocation4_spill] sm:$0xff] }
0x1295   : > { %4806 = vrot.lane.b32.xlu1 %v4642_v8, %s13235_s14  ;;  %v10536_v53 = vpop.eup %10535  ;;  %v4674_v54 = vmul.f32 %v21271_v49, %v10534_v57 }
0x1296   : > { %4798 = vrot.lane.b32.xlu0 %v4638_v29, %s13235_s14  ;;  %v10538_v34 = vpop.eup %10537  ;;  %v4670_v37 = vmul.f32 %v21273_v22, %v10536_v53  ;;  %v4983_v29 = vld [vmem:[%s18811_s3 + $0x10] sm:$0xff] }
0x1297   : > { %v10540_v3 = vpop.eup %10539  ;;  %v4613_v16 = vmul.f32 %v21275_v59, %v10538_v34  ;;  %v7227_v25 = vpack.c.bf16 %v4984_v28, %v4983_v29  ;;  %v21294_v22 = vld [vmem:[#allocation40_spill] sm:$0xff] }
0x1298   : > { %v10542_v31 = vpop.eup %10541  ;;  %v4609_v8 = vmul.f32 %v21277_v32, %v10540_v3  ;;  %v21300_v32 = vld [vmem:[#allocation41_spill] sm:$0xff] }
0x1299   : > { %4714 = vrot.lane.b32.xlu1 %v4596_v33, %s13232_s18  ;;  %v10544_v43 = vpop.eup %10543  ;;  %v21278_v33 = vld [vmem:[#allocation51_spill] sm:$0xff]  ;;  %7228 = vmatprep.subr.bf16.mxu0 %v7227_v25 }
0x129a   : > { %4706 = vrot.lane.b32.xlu0 %v4592_v48, %s13232_s18  ;;  %10553 = vrcp.f32 %v21278_v33  ;;  %v21279_v48 = vld [vmem:[#allocation48_spill] sm:$0xff]  ;;  %v10546_v38 = vpop.eup %10545  ;;  %7248 = vmatprep.subr.bf16.mxu1 %v7227_v25  ;;  %v21302_v33 = vld [vmem:[#allocation27_spill] sm:$0xff] }
0x129b   : > { %v4628_v26 = vmul.f32 %v21279_v48, %v10542_v31  ;;  %7230 = vmatpush3.bf16.msra.mxu0 %v7227_v25  ;;  %7252 = vmatpush3.bf16.msra.mxu1 %v7227_v25  ;;  %v4675_v35 = vmul.f32 %v21283_v63, %v10546_v38  ;;  %v21303_v25 = vld [vmem:[#allocation386_spill] sm:$0xff]  ;;  %v21305_v38 = vld [vmem:[#allocation388_spill] sm:$0xff] }
0x129c   : > { %v21309_v63 = vld [vmem:[#allocation37_spill] sm:$0xff] }
0x129d   : > { %4808 = vrot.lane.b32.xlu1 %v4643_v23, %s13235_s14  ;;  %v21280_v23 = vld [vmem:[#allocation53_spill] sm:$0xff] }
0x129e   : > { %4800 = vrot.lane.b32.xlu0 %v4639_v60, %s13235_s14  ;;  %10555 = vrcp.f32 %v21280_v23  ;;  %v21281_v60 = vld [vmem:[#allocation50_spill] sm:$0xff] }
0x129f   : > { %v4624_v19 = vmul.f32 %v21281_v60, %v10544_v43  ;;  %10557 = vrcp.f32 %v21282_v27  ;;  %v21301_v43 = vld [vmem:[#allocation8_spill] sm:$0xff]  ;;  %v21308_v27 = vld [vmem:[#allocation29_spill] sm:$0xff] }
0x12a0   : > { %10559 = vrcp.f32 %v21284_v45 }
0x12a1   : > { %4838 = vrot.lane.b32.xlu1 %v4658_v51, %s13236_s19  ;;  %v10548_v51 = vpop.eup %10547  ;;  %10561 = vrcp.f32 %v21286_v1 }
0x12a2   : > { %4830 = vrot.lane.b32.xlu0 %v4654_v13, %s13236_s19  ;;  %v4986_v13 = vld [vmem:[%s18811_s3 + $0x28] sm:$0xff]  ;;  %v4671_v36 = vmul.f32 %v21285_v50, %v10548_v51  ;;  %10563 = vrcp.f32 %v21288_v18  ;;  %v21306_v51 = vld [vmem:[#allocation26_spill] sm:$0xff]  ;;  %v21311_v50 = vld [vmem:[#allocation33_spill] sm:$0xff] }
0x12a3   : > { %10565 = vrcp.f32 %v21290_v61 }
0x12a4   : > { %10567 = vrcp.f32 %v21292_v30 }
0x12a5   : > { %4716 = vrot.lane.b32.xlu1 %v4597_v12, %s13232_s18  ;;  %v7231_v12 = vpack.c.bf16 %v4986_v13, %v4985_v21  ;;  %10569 = vrcp.f32 %v21294_v22  ;;  %v21307_v21 = vld [vmem:[#allocation34_spill] sm:$0xff] }
0x12a6   : > { %4708 = vrot.lane.b32.xlu0 %v4593_v11, %s13232_s18  ;;  %v10550_v11 = vpop.eup %10549  ;;  %10571 = vrcp.f32 %v21296_v56 }
0x12a7   : > { %7232 = vmatprep.subr.bf16.mxu0 %v7231_v12  ;;  %v10552_v52 = vpop.eup %10551  ;;  %7249 = vmatprep.subr.bf16.mxu1 %v7231_v12 }
0x12a8   : > { %7234 = vmatpush3.bf16.msra.mxu0 %v7231_v12  ;;  %7253 = vmatpush3.bf16.msra.mxu1 %v7231_v12  ;;  %v10554_v58 = vpop.eup %10553 }
0x12a9   : > { %4746 = vrot.lane.b32.xlu1 %v4612_v20, %s13233_s25  ;;  %v4987_v20 = vld [vmem:[%s18811_s3 + $0x30] sm:$0xff]  ;;  %v10556_v57 = vpop.eup %10555 }
0x12aa   : > { %4738 = vrot.lane.b32.xlu0 %v4608_v14, %s13233_s25  ;;  %v7235_v55 = vpack.c.bf16 %v4988_v47, %v4987_v20  ;;  %v21287_v14 = vld [vmem:[#allocation5_spill] sm:$0xff]  ;;  %v10558_v49 = vpop.eup %10557  ;;  %v21313_v47 = vld [vmem:[#allocation36_spill] sm:$0xff] }
0x12ab   : > { %v4690_v15 = vmul.f32 %v21287_v14, %v10550_v11  ;;  %v10560_v34 = vpop.eup %10559  ;;  %v21310_v11 = vld [vmem:[#allocation11_spill] sm:$0xff]  ;;  %v21314_v14 = vld [vmem:[#allocation10_spill] sm:$0xff] }
0x12ac   : > { %7236 = vmatprep.subr.bf16.mxu0 %v7235_v55  ;;  %7250 = vmatprep.subr.bf16.mxu1 %v7235_v55  ;;  %v10562_v7 = vpop.eup %10561  ;;  %v4640_v24 = vmul.f32 %v21297_v10, %v10560_v34  ;;  %v21320_v34 = vld [vmem:[#allocation3_spill] sm:$0xff]  ;;  %v21322_v10 = vld [vmem:[#allocation2_spill] sm:$0xff] }
0x12ad   : > { %4840 = vrot.lane.b32.xlu1 %v4659_v62, %s13236_s19  ;;  %v21289_v62 = vld [vmem:[#allocation9_spill] sm:$0xff]  ;;  %7238 = vmatpush3.bf16.msra.mxu0 %v7235_v55  ;;  %v10564_v59 = vpop.eup %10563  ;;  %v4691_v31 = vmul.f32 %v21299_v46, %v10562_v7 }
0x12ae   : > { %4832 = vrot.lane.b32.xlu0 %v4655_v40, %s13236_s19  ;;  %v4686_v39 = vmul.f32 %v21289_v62, %v10552_v52  ;;  %7254 = vmatpush3.bf16.msra.mxu1 %v7235_v55  ;;  %v21291_v40 = vld [vmem:[#allocation47_spill] sm:$0xff]  ;;  %v4687_v29 = vmul.f32 %v21301_v43, %v10564_v59  ;;  %v21323_v59 = vld [vmem:[#allocation6_spill] sm:$0xff] }
0x12af   : > { %v4629_v53 = vmul.f32 %v21291_v40, %v10554_v58  ;;  %v21312_v52 = vld [vmem:[#allocation15_spill] sm:$0xff]  ;;  %v21316_v58 = vld [vmem:[#allocation14_spill] sm:$0xff] }
0x12b0   : > { %v21318_v40 = vld [vmem:[#allocation18_spill] sm:$0xff] }
0x12b1   : > { %4870 = vrot.lane.b32.xlu1 %v4674_v54, %s13237_s6  ;;  %v21293_v54 = vld [vmem:[#allocation49_spill] sm:$0xff] }
0x12b2   : > { %4862 = vrot.lane.b32.xlu0 %v4670_v37, %s13237_s6  ;;  %v4625_v44 = vmul.f32 %v21293_v54, %v10556_v57  ;;  %v21295_v37 = vld [vmem:[#allocation387_spill] sm:$0xff] }
0x12b3   : > { %v4644_v3 = vmul.f32 %v21295_v37, %v10558_v49  ;;  %v21319_v49 = vld [vmem:[#allocation22_spill] sm:$0xff] }
0x12b5   : > { %4748 = vrot.lane.b32.xlu1 %v4613_v16, %s13233_s25  ;;  %v21298_v16 = vld [vmem:[#allocation39_spill] sm:$0xff] }
0x12b6   : > { %4740 = vrot.lane.b32.xlu0 %v4609_v8, %s13233_s25  ;;  %10573 = vrcp.f32 %v21298_v16  ;;  %v10566_v8 = vpop.eup %10565 }
0x12b7   : > { %10575 = vrcp.f32 %v21300_v32  ;;  %v10568_v28 = vpop.eup %10567  ;;  %v4645_v48 = vmul.f32 %v21303_v25, %v10566_v8 }
0x12b8   : > { %10577 = vrcp.f32 %v21302_v33  ;;  %v10570_v23 = vpop.eup %10569  ;;  %v4641_v60 = vmul.f32 %v21305_v38, %v10568_v28 }
0x12b9   : > { %4778 = vrot.lane.b32.xlu1 %v4628_v26, %s13234_s13  ;;  %v21304_v26 = vld [vmem:[#allocation30_spill] sm:$0xff]  ;;  %v4660_v13 = vmul.f32 %v21307_v21, %v10570_v23 }
0x12ba   : > { %4770 = vrot.lane.b32.xlu0 %v4624_v19, %s13234_s13  ;;  %10579 = vrcp.f32 %v21304_v26  ;;  %v10572_v19 = vpop.eup %10571 }
0x12bb   : > { %10581 = vrcp.f32 %v21306_v51 }
0x12bc   : > { %10583 = vrcp.f32 %v21308_v27 }
0x12bd   : > { %4872 = vrot.lane.b32.xlu1 %v4675_v35, %s13237_s6  ;;  %v4656_v35 = vmul.f32 %v21309_v63, %v10572_v19  ;;  %10585 = vrcp.f32 %v21310_v11 }
0x12be   : > { %4864 = vrot.lane.b32.xlu0 %v4671_v36, %s13237_s6  ;;  %10587 = vrcp.f32 %v21312_v52 }
0x12bf   : > { %10589 = vrcp.f32 %v21314_v14 }
0x12c0   : > { %v10574_v12 = vpop.eup %10573  ;;  %10591 = vrcp.f32 %v21316_v58 }
0x12c1   : > { %4902 = vrot.lane.b32.xlu1 %v4690_v15, %s13238_s28  ;;  %v10576_v45 = vpop.eup %10575  ;;  %v4661_v36 = vmul.f32 %v21311_v50, %v10574_v12  ;;  %v21315_v15 = vld [vmem:[#allocation19_spill] sm:$0xff]  ;;  %10593 = vrcp.f32 %v13199_v6 }
0x12c2   : > { %4894 = vrot.lane.b32.xlu0 %v4686_v39, %s13238_s28  ;;  %v10578_v20 = vpop.eup %10577  ;;  %v4657_v1 = vmul.f32 %v21313_v47, %v10576_v45  ;;  %v21317_v39 = vld [vmem:[#allocation23_spill] sm:$0xff]  ;;  %10595 = vrcp.f32 %v13215_v5 }
0x12c3   : > { %v4676_v18 = vmul.f32 %v21315_v15, %v10578_v20  ;;  %10597 = vrcp.f32 %v13195_v2 }
0x12c4   : > { %v10580_v55 = vpop.eup %10579  ;;  %10599 = vrcp.f32 %v13211_v0 }
0x12c5   : > { %4780 = vrot.lane.b32.xlu1 %v4629_v53, %s13234_s13  ;;  %v10582_v62 = vpop.eup %10581  ;;  %v4672_v57 = vmul.f32 %v21317_v39, %v10580_v55  ;;  %10601 = vrcp.f32 %v13191_v4 }
0x12c6   : > { %4772 = vrot.lane.b32.xlu0 %v4625_v44, %s13234_s13  ;;  %v10584_v61 = vpop.eup %10583  ;;  %v4677_v53 = vmul.f32 %v21318_v40, %v10582_v62 }
0x12c7   : > { %v10586_v30 = vpop.eup %10585  ;;  %v4673_v54 = vmul.f32 %v21319_v49, %v10584_v61 }
0x12c8   : > { %v10588_v44 = vpop.eup %10587  ;;  %v4692_v22 = vmul.f32 %v21320_v34, %v10586_v30 }
0x12c9   : > { %4810 = vrot.lane.b32.xlu1 %v4644_v3, %s13235_s14  ;;  %v10590_v37 = vpop.eup %10589  ;;  %v21321_v3 = vld [vmem:[#allocation7_spill] sm:$0xff] }
0x12ca   : > { %4802 = vrot.lane.b32.xlu0 %v4640_v24, %s13235_s14  ;;  %v4688_v56 = vmul.f32 %v21321_v3, %v10588_v44  ;;  %v10592_v7 = vpop.eup %10591  ;;  %v4693_v24 = vmul.f32 %v21322_v10, %v10590_v37 }
0x12cb   : > { %v4689_v16 = vmul.f32 %v21323_v59, %v10592_v7  ;;  %v10594_v47 = vpop.eup %10593 }
0x12cc   : > { %v10596_v55 = vpop.eup %10595  ;;  %v4578_v15 = vmul.f32 %v21253_v42, %v10594_v47 }
0x12cd   : > { %4904 = vrot.lane.b32.xlu1 %v4691_v31, %s13238_s28  ;;  %v4574_v6 = vmul.f32 %v13183_v9, %v10596_v55  ;;  %v10598_v30 = vpop.eup %10597 }
0x12ce   : > { %4896 = vrot.lane.b32.xlu0 %v4687_v29, %s13238_s28  ;;  %v10600_v34 = vpop.eup %10599  ;;  %v4579_v7 = vmul.f32 %v21252_v41, %v10598_v30  ;;  %v21330_v30 = vld [vmem:[#allocation64_spill] sm:$0xff] }
0x12cf   : > { %v4575_v10 = vmul.f32 %v13179_v17, %v10600_v34  ;;  %v10602_v47 = vpop.eup %10601 }
0x12d1   : > { %4812 = vrot.lane.b32.xlu1 %v4645_v48, %s13235_s14 }
0x12d2   : > { %4804 = vrot.lane.b32.xlu0 %v4641_v60, %s13235_s14 }
0x12d5   : > { %4842 = vrot.lane.b32.xlu1 %v4660_v13, %s13236_s19 }
0x12d6   : > { %4834 = vrot.lane.b32.xlu0 %v4656_v35, %s13236_s19 }
0x12d9   : > { %4844 = vrot.lane.b32.xlu1 %v4661_v36, %s13236_s19 }
0x12da   : > { %4836 = vrot.lane.b32.xlu0 %v4657_v1, %s13236_s19 }
0x12dd   : > { %4874 = vrot.lane.b32.xlu1 %v4676_v18, %s13237_s6 }
0x12de   : > { %4866 = vrot.lane.b32.xlu0 %v4672_v57, %s13237_s6 }
0x12e1   : > { %4876 = vrot.lane.b32.xlu1 %v4677_v53, %s13237_s6 }
0x12e2   : > { %4868 = vrot.lane.b32.xlu0 %v4673_v54, %s13237_s6 }
0x12e5   : > { %4906 = vrot.lane.b32.xlu1 %v4692_v22, %s13238_s28 }
0x12e6   : > { %4898 = vrot.lane.b32.xlu0 %v4688_v56, %s13238_s28 }
0x12e9   : > { %4908 = vrot.lane.b32.xlu1 %v4693_v24, %s13238_s28 }
0x12ea   : > { %4900 = vrot.lane.b32.xlu0 %v4689_v16, %s13238_s28 }
0x12ef   : > { %v18637_v46 = vpop.permute.xlu1 %4704 }
0x12f0   : > { %v4703_v31 = vpop.permute.xlu0 %4702 }
0x12f1   : > { %v4919_v62 = vsel %vm4918_vm11, %v4574_v6, %v4703_v31  ;;  %v4920_v31 = vsel %vm4918_vm11, %v4575_v10, %v18637_v46  ;;  %v21327_v6 = vld [vmem:[#allocation63_spill] sm:$0xff] }
0x12f3   : > { %v18639_v32 = vpop.permute.xlu1 %4712 }
0x12f4   : > { %v4711_v8 = vpop.permute.xlu0 %4710  ;;  %v4924_v16 = vsel %vm4918_vm11, %v4579_v7, %v18639_v32 }
0x12f5   : > { %v4923_v58 = vsel %vm4918_vm11, %v4578_v15, %v4711_v8 }
0x12f7   : > { %v4743_v43 = vpop.permute.xlu1 %4742 }
0x12f8   : > { %v4735_v29 = vpop.permute.xlu0 %4734  ;;  %v4932_v2 = vsel %vm4927_vm12, %v4923_v58, %v4743_v43  ;;  %v4580_v58 = vmul.f32 %v21327_v6, %v10602_v47 }
0x12f9   : > { %v4928_v42 = vsel %vm4927_vm12, %v4919_v62, %v4735_v29 }
0x12fb   : > { %v18641_v28 = vpop.permute.xlu1 %4744 }
0x12fc   : > { %v18643_v33 = vpop.permute.xlu0 %4736  ;;  %v4933_v8 = vsel %vm4927_vm12, %v4924_v16, %v18641_v28 }
0x12fd   : > { %v4929_v41 = vsel %vm4927_vm12, %v4920_v31, %v18643_v33 }
0x12ff   : > { %v4775_v25 = vpop.permute.xlu1 %4774 }
0x1300   : > { %v4767_v48 = vpop.permute.xlu0 %4766  ;;  %v4941_v9 = vsel %vm4936_vm13, %v4932_v2, %v4775_v25  ;;  %v21328_v2 = vld [vmem:[#allocation65_spill] sm:$0xff] }
0x1301   : > { %v4937_v57 = vsel %vm4936_vm13, %v4928_v42, %v4767_v48 }
0x1303   : > { %v18645_v26 = vpop.permute.xlu1 %4776 }
0x1304   : > { %v18647_v23 = vpop.permute.xlu0 %4768  ;;  %v4942_v29 = vsel %vm4936_vm13, %v4933_v8, %v18645_v26 }
0x1305   : > { %v4938_v25 = vsel %vm4936_vm13, %v4929_v41, %v18647_v23 }
0x1307   : > { %v4807_v38 = vpop.permute.xlu1 %4806 }
0x1308   : > { %v4799_v60 = vpop.permute.xlu0 %4798  ;;  %v4950_v61 = vsel %vm4945_vm14, %v4941_v9, %v4807_v38 }
0x1309   : > { %v4946_v40 = vsel %vm4945_vm14, %v4937_v57, %v4799_v60 }
0x130b   : > { %v18649_v19 = vpop.permute.xlu1 %4714 }
0x130c   : > { %v18651_v51 = vpop.permute.xlu0 %4706  ;;  %v4925_v57 = vsel %vm4918_vm11, %v4580_v58, %v18649_v19 }
0x130f   : > { %v18653_v21 = vpop.permute.xlu1 %4808 }
0x1310   : > { %v18655_v13 = vpop.permute.xlu0 %4800  ;;  %v4951_v32 = vsel %vm4945_vm14, %v4942_v29, %v18653_v21  ;;  %v21324_v21 = vld [vmem:[#allocation68_spill] sm:$0xff] }
0x1311   : > { %v4947_v46 = vsel %vm4945_vm14, %v4938_v25, %v18655_v13  ;;  %10603 = vrcp.f32 %v21324_v21 }
0x1313   : > { %v4839_v27 = vpop.permute.xlu1 %4838 }
0x1314   : > { %v4831_v12 = vpop.permute.xlu0 %4830  ;;  %v4959_v53 = vsel %vm4954_vm15, %v4950_v61, %v4839_v27  ;;  %v21329_v61 = vld [vmem:[#allocation62_spill] sm:$0xff] }
0x1315   : > { %v4955_v49 = vsel %vm4954_vm15, %v4946_v40, %v4831_v12 }
0x1317   : > { %v18657_v63 = vpop.permute.xlu1 %4716 }
0x1318   : > { %v18659_v35 = vpop.permute.xlu0 %4708 }
0x131b   : > { %v18661_v45 = vpop.permute.xlu1 %4746  ;;  %v10604_v15 = vpop.eup %10603 }
0x131c   : > { %v18663_v11 = vpop.permute.xlu0 %4738 }
0x131f   : > { %v4841_v50 = vpop.permute.xlu1 %4840 }
0x1320   : > { %v4833_v36 = vpop.permute.xlu0 %4832  ;;  %v4960_v48 = vsel %vm4954_vm15, %v4951_v32, %v4841_v50  ;;  %v21325_v50 = vld [vmem:[#allocation66_spill] sm:$0xff] }
0x1321   : > { %v4956_v28 = vsel %vm4954_vm15, %v4947_v46, %v4833_v36  ;;  %10605 = vrcp.f32 %v21325_v50  ;;  %v21326_v36 = vld [vmem:[#allocation67_spill] sm:$0xff] }
0x1322   : > { %10607 = vrcp.f32 %v21326_v36 }
0x1323   : > { %v4871_v52 = vpop.permute.xlu1 %4870 }
0x1324   : > { %v4863_v20 = vpop.permute.xlu0 %4862  ;;  %v4968_v54 = vsel %vm4963_vm1, %v4959_v53, %v4871_v52 }
0x1325   : > { %v4964_v22 = vsel %vm4963_vm1, %v4955_v49, %v4863_v20 }
0x1327   : > { %v18667_v1 = vpop.permute.xlu1 %4748 }
0x1328   : > { %v18669_v14 = vpop.permute.xlu0 %4740 }
0x132b   : > { %v18675_v18 = vpop.permute.xlu1 %4778  ;;  %v10606_v62 = vpop.eup %10605 }
0x132c   : > { %v18677_v5 = vpop.permute.xlu0 %4770  ;;  %v10608_v9 = vpop.eup %10607  ;;  %v4581_v40 = vmul.f32 %v21329_v61, %v10606_v62 }
0x132d   : > { %v4577_v49 = vmul.f32 %v21330_v30, %v10608_v9 }
0x132f   : > { %v4873_v0 = vpop.permute.xlu1 %4872  ;;  %v4922_v7 = vsel %vm4918_vm11, %v4577_v49, %v18659_v35 }
0x1330   : > { %v4865_v39 = vpop.permute.xlu0 %4864  ;;  %v4969_v38 = vsel %vm4963_vm1, %v4960_v48, %v4873_v0  ;;  %v4576_v0 = vmul.f32 %v21328_v2, %v10604_v15  ;;  %v4931_v16 = vsel %vm4927_vm12, %v4922_v7, %v18669_v14 }
0x1331   : > { %v4965_v60 = vsel %vm4963_vm1, %v4956_v28, %v4865_v39  ;;  %v6023_v28 = vld [vmem:[%s18812_s4] ss:$0 sm:$0xff] }
0x1332   : > { %v4921_v53 = vsel %vm4918_vm11, %v4576_v0, %v18651_v51  ;;  %v4926_v51 = vsel %vm4918_vm11, %v4581_v40, %v18657_v63 }
0x1333   : > { %v4903_v44 = vpop.permute.xlu1 %4902  ;;  %v4930_v34 = vsel %vm4927_vm12, %v4921_v53, %v18663_v11  ;;  %v4935_v11 = vsel %vm4927_vm12, %v4926_v51, %v18667_v1 }
0x1334   : > { %v4895_v37 = vpop.permute.xlu0 %4894  ;;  %v4977_v3 = vsel %vm4972_vm2, %v4968_v54, %v4903_v44  ;;  %v4934_v54 = vsel %vm4927_vm12, %v4925_v57, %v18661_v45  ;;  %v4939_v19 = vsel %vm4936_vm13, %v4930_v34, %v18677_v5 }
0x1335   : > { %v4973_v56 = vsel %vm4972_vm2, %v4964_v22, %v4895_v37  ;;  %6865 = vmatprep.mubr.msk.f32.mxu1 %vm281_vm0, %v4977_v3  ;;  %v4943_v22 = vsel %vm4936_vm13, %v4934_v54, %v18675_v18 }
0x1336   : > { %6859 = vmatprep.mubr.msk.f32.mxu0 %vm281_vm0, %v4973_v56 }
0x1337   : > { %v4781_v24 = vpop.permute.xlu1 %4780 }
0x1338   : > { %v18697_v59 = vpop.permute.xlu0 %4772  ;;  %v4944_v63 = vsel %vm4936_vm13, %v4935_v11, %v4781_v24 }
0x1339   : > { %v4940_v35 = vsel %vm4936_vm13, %v4931_v16, %v18697_v59 }
0x133b   : > { %v4811_v43 = vpop.permute.xlu1 %4810 }
0x133c   : > { %v4803_v17 = vpop.permute.xlu0 %4802  ;;  %v4952_v3 = vsel %vm4945_vm14, %v4943_v22, %v4811_v43 }
0x133d   : > { %v4948_v56 = vsel %vm4945_vm14, %v4939_v19, %v4803_v17 }
0x133f   : > { %v4905_v33 = vpop.permute.xlu1 %4904 }
0x1340   : > { %v4897_v26 = vpop.permute.xlu0 %4896  ;;  %v4978_v27 = vsel %vm4972_vm2, %v4969_v38, %v4905_v33 }
0x1341   : > { %v4974_v23 = vsel %vm4972_vm2, %v4965_v60, %v4897_v26  ;;  %6866 = vmatmul.mubr.msk.f32.vlgmr.msra.gmra.mrb[0].mxu1 %vm281_vm0, %v4978_v27 }
0x1342   : > { %6860 = vmatmul.mubr.msk.f32.vlgmr.msra.gmra.mrb[0].mxu0 %vm281_vm0, %v4974_v23 }
0x1343   : > { %v4813_v13 = vpop.permute.xlu1 %4812 }
0x1344   : > { %v4805_v12 = vpop.permute.xlu0 %4804  ;;  %v4953_v1 = vsel %vm4945_vm14, %v4944_v63, %v4813_v13 }
0x1345   : > { %v4949_v29 = vsel %vm4945_vm14, %v4940_v35, %v4805_v12 }
0x1347   : > { %v4843_v52 = vpop.permute.xlu1 %4842 }
0x1348   : > { %v4835_v20 = vpop.permute.xlu0 %4834  ;;  %v4961_v45 = vsel %vm4954_vm15, %v4952_v3, %v4843_v52 }
0x1349   : > { %v4957_v18 = vsel %vm4954_vm15, %v4948_v56, %v4835_v20 }
0x134b   : > { %v4845_v55 = vpop.permute.xlu1 %4844 }
0x134c   : > { %v4837_v4 = vpop.permute.xlu0 %4836  ;;  %v4962_v14 = vsel %vm4954_vm15, %v4953_v1, %v4845_v55 }
0x134d   : > { %v4958_v24 = vsel %vm4954_vm15, %v4949_v29, %v4837_v4 }
0x134f   : > { %v4875_v42 = vpop.permute.xlu1 %4874 }
0x1350   : > { %v4867_v39 = vpop.permute.xlu0 %4866  ;;  %v4970_v10 = vsel %vm4963_vm1, %v4961_v45, %v4875_v42 }
0x1351   : > { %v4966_v31 = vsel %vm4963_vm1, %v4957_v18, %v4867_v39 }
0x1353   : > { %v4877_v44 = vpop.permute.xlu1 %4876 }
0x1354   : > { %v4869_v37 = vpop.permute.xlu0 %4868  ;;  %v4971_v17 = vsel %vm4963_vm1, %v4962_v14, %v4877_v44 }
0x1355   : > { %v4967_v59 = vsel %vm4963_vm1, %v4958_v24, %v4869_v37 }
0x1357   : > { %v4907_v5 = vpop.permute.xlu1 %4906 }
0x1358   : > { %v4899_v8 = vpop.permute.xlu0 %4898  ;;  %v4979_v43 = vsel %vm4972_vm2, %v4970_v10, %v4907_v5 }
0x1359   : > { %v4975_v41 = vsel %vm4972_vm2, %v4966_v31, %v4899_v8  ;;  %6868 = vmatprep.mubr.msk.f32.mxu1 %vm281_vm0, %v4979_v43 }
0x135a   : > { %6862 = vmatprep.mubr.msk.f32.mxu0 %vm281_vm0, %v4975_v41 }
0x135b   : > { %v4909_v25 = vpop.permute.xlu1 %4908 }
0x135c   : > { %v4901_v32 = vpop.permute.xlu0 %4900  ;;  %v4980_v46 = vsel %vm4972_vm2, %v4971_v17, %v4909_v25 }
0x135d   : > { %v4976_v48 = vsel %vm4972_vm2, %v4967_v59, %v4901_v32  ;;  %6869 = vmatmul.mubr.msk.f32.gmra.mrb[2].mxu1 %vm281_vm0, %v4980_v46 }
0x135e   : > { %6863 = vmatmul.mubr.msk.f32.gmra.mrb[2].mxu0 %vm281_vm0, %v4976_v48 }
0x1414   : > { %v6867_v38 = vpop.f32.mrb[0].mxu1 }
0x1415   : > { %v6861_v33 = vpop.f32.mrb[0].mxu0  ;;  %v5112_v60 = vadd.f32 %v6867_v38, %v6023_v28  ;;  %v5106_v26 = vpop.f32.mrb[1].mxu1 }
0x1416   : > { %v5092_v27 = vadd.f32 %v6861_v33, %v6023_v28  ;;  %v5086_v23 = vpop.f32.mrb[1].mxu0  ;;  %v5107_v21 = vadd.f32 %v6023_v28, %v5106_v26 }
0x1417   : > { %5130 = vst.msk [vmem:[%s13421_s9 + $0x28] sm:$0xff] %vm281_vm0, %v5112_v60  ;;  %v5087_v13 = vadd.f32 %v6023_v28, %v5086_v23 }
0x1418   : > { %5126 = vst.msk [vmem:[%s13421_s9 + $0x8] sm:$0xff] %vm281_vm0, %v5092_v27  ;;  %5129 = vst.msk [vmem:[%s13421_s9 + $0x20] sm:$0xff] %vm281_vm0, %v5107_v21 }
0x1419   : > { %5125 = vst.msk [vmem:[%s13421_s9] sm:$0xff] %vm281_vm0, %v5087_v13 }
0x1430   : > { %v6870_v12 = vpop.f32.mrb[2].mxu1 }
0x1431   : > { %v6864_v50 = vpop.f32.mrb[2].mxu0  ;;  %v5122_v36 = vadd.f32 %v6870_v12, %v6023_v28  ;;  %v5116_v52 = vpop.f32.mrb[3].mxu1 }
0x1432   : > { %v5102_v20 = vadd.f32 %v6864_v50, %v6023_v28  ;;  %v5096_v47 = vpop.f32.mrb[3].mxu0  ;;  %v5117_v55 = vadd.f32 %v6023_v28, %v5116_v52 }
0x1433   : > { %5132 = vst.msk [vmem:[%s13421_s9 + $0x38] sm:$0xff] %vm281_vm0, %v5122_v36  ;;  %v5097_v15 = vadd.f32 %v6023_v28, %v5096_v47 }
0x1434   : > { %5128 = vst.msk [vmem:[%s13421_s9 + $0x18] sm:$0xff] %vm281_vm0, %v5102_v20  ;;  %5131 = vst.msk [vmem:[%s13421_s9 + $0x30] sm:$0xff] %vm281_vm0, %v5117_v55 }
0x1435   : > { %5127 = vst.msk [vmem:[%s13421_s9 + $0x10] sm:$0xff] %vm281_vm0, %v5097_v15 }
0x1436 PF: > { %s15_s22 = sadd.s32 1, %s11931_s22   ;;  %s21331_s18 = smov %s11923_s20 }
0x1437   : > { %p12_p9 = scmp.ge.s32.totalorder %s15_s22, 6   ;;  %s21332_s19 = smov %s11927_s21 }
0x1438   : > { %s21333_s20 = smov %s21336_s23  ;;  %s21334_s21 = smov %s21340_s24 }
0x1439   :  { %14 = sbr.rel (!%p12_p9) target bundleno = 3 (0x3), region = 90 }

</bundles_post_ra>
